<compile_context>
chip_gen: v7x
topology: tpu7x:2x2x1
jax: 0.10.0
libtpu: 0.0.40
codegen_flags: <defaults>
</compile_context>

<pallas_src>
import functools
import math

import jax
import jax.numpy as jnp
from jax import lax
from jax.experimental import pallas as pl
from jax.experimental.pallas import tpu as pltpu

# ----------------------------- synthetic sub-modules -----------------------------

TAU_V = 20.0          # membrane time constant of the leaky-integrator NeuronModel
TAU_I = 10.0          # synaptic-current time constant
ALPHA_V = math.exp(-1.0 / TAU_V)
ALPHA_I = math.exp(-1.0 / TAU_I)
ETA = 0.05            # Hebbian learning rate of the plasticity rule

B_TILE = 8            # batch tile per grid step: fills all 8 vreg sublanes


def neuron_step(inp, v, i):
    """NeuronModel dynamics: states = (v, i_syn), output = tanh(v)."""
    i_new = ALPHA_I * i + inp
    v_new = ALPHA_V * v + (1.0 - ALPHA_V) * i_new
    return jnp.tanh(v_new), v_new, i_new


def exp_convolve(x, trace, decay):
    return decay * trace + (1.0 - decay) * x


# ----------------------------------- kernel --------------------------------------


def memory_kernel(x_ref, w_ref, mem_in_ref,
                  mem_ref, kv_seq_ref, states_ref,
                  i_scratch,
                  *, seq_len, hidden, btile, chunk, decay_trace):
    T, B, H = seq_len, btile, hidden
    in_size = w_ref.shape[1]

    # ---- prologue: i = F.linear(x, W) for the whole (T, B) tile, one MXU matmul ----
    x2d = x_ref[...].reshape(T * B, in_size)                       # (T*B, I)
    i_all = lax.dot_general(x2d, w_ref[...],
                            dimension_numbers=(((1,), (1,)), ((), ())),
                            preferred_element_type=jnp.float32)    # (T*B, 2H)
    i_scratch[...] = i_all.reshape(T, B, 2 * H)                    # stage in VMEM

    # VMEM-resident memory accumulator: lives in the output block for this batch tile.
    mem_ref[...] = mem_in_ref[...]

    def step(t, carry):
        kv, ki, vv, vi, ktr, vtr = carry

        row = i_scratch[t]                                          # (B, 2H) one load
        ik_t = row[:, :H]
        iv_t = row[:, H:]

        # key pathway
        key, kv, ki = neuron_step(ik_t, kv, ki)

        m = mem_ref[...]                                            # (B, H, H)
        # 0.2 * (key.unsqueeze(1) * mem).sum(2): sublane broadcast + lane reduce (VPU/XLU)
        ikv_t = 0.2 * jnp.sum(m * key[:, None, :], axis=-1)         # (B, H)

        # value pathway
        val, vv, vi = neuron_step(iv_t + ikv_t, vv, vi)

        # eligibility traces
        ktr = exp_convolve(key, ktr, decay_trace)
        vtr = exp_convolve(val, vtr, decay_trace)

        # Oja-style Hebbian rank-1 plasticity; the single lane->sublane relayout of vtr
        # is formed once per step and reused for both terms.
        vtr_col = vtr[:, :, None]                                   # (B, H, 1)
        mem_ref[...] = m + ETA * vtr_col * (ktr[:, None, :] - vtr_col * m)
        # TODO(synk): the t == 220 torch.rand_like noise injection + clamp of the
        # reference is a host-RNG side effect and is omitted.

        # packed, lane-denser sequence write: one (B, 2H) store per step
        kv_seq_ref[t] = jnp.concatenate([key, val], axis=-1)
        return kv, ki, vv, vi, ktr, vtr

    zeros = jnp.zeros((B, H), jnp.float32)
    carry = (zeros, zeros, zeros, zeros, zeros, zeros)

    num_chunks = T // chunk
    if num_chunks == 1:
        # fully static unroll of the time loop
        for s in range(T):
            carry = step(s, carry)
    else:
        def chunk_body(c, carry):
            base = pl.multiple_of(c * chunk, chunk)
            for s in range(chunk):
                carry = step(base + s, carry)
            return carry
        carry = lax.fori_loop(0, num_chunks, chunk_body, carry)

    kv, ki, vv, vi, ktr, vtr = carry
    states_ref[0] = kv
    states_ref[1] = ki
    states_ref[2] = vv
    states_ref[3] = vi
    states_ref[4] = ktr
    states_ref[5] = vtr


# ----------------------------------- wrapper --------------------------------------


def _pick_chunk(seq_len):
    for c in (8, 4, 2):
        if seq_len % c == 0:
            return c
    return 1


def memory_layer_forward(x, W, mem=None, *, feedback_delay=4, tau_trace=20.0):
    """Pallas implementation of MemoryLayer.forward(x, mem, recall=False, states=None)."""
    # TODO(synk): recall=True branch (readout path + val_buffer ring write) not kernelized.
    B, T, I = x.shape
    H2 = W.shape[0]
    H = H2 // 2
    out_dtype = x.dtype
    if mem is None:
        mem = jnp.zeros((B, H, H), jnp.float32)
    decay_trace = math.exp(-1.0 / tau_trace)

    # pad the batch up to a multiple of the batch tile
    B_pad = ((B + B_TILE - 1) // B_TILE) * B_TILE
    if B_pad != B:
        x = jnp.pad(x, ((0, B_pad - B), (0, 0), (0, 0)))
        mem = jnp.pad(mem, ((0, B_pad - B), (0, 0), (0, 0)))

    # time-major input so per-step loads inside the kernel are contiguous (B_TILE, 2H) rows
    x_t = jnp.transpose(x, (1, 0, 2)).astype(jnp.float32)           # (T, B_pad, I)
    mem_f = mem.astype(jnp.float32)
    W_f = W.astype(jnp.float32)

    chunk = _pick_chunk(T)
    kernel = functools.partial(memory_kernel, seq_len=T, hidden=H,
                               btile=B_TILE, chunk=chunk, decay_trace=decay_trace)

    out_shapes = (
        jax.ShapeDtypeStruct((B_pad, H, H), jnp.float32),      # mem
        jax.ShapeDtypeStruct((T, B_pad, 2 * H), jnp.float32),  # packed key||val sequence
        jax.ShapeDtypeStruct((6, B_pad, H), jnp.float32),      # packed final states
    )

    grid_spec = pltpu.PrefetchScalarGridSpec(
        num_scalar_prefetch=0,
        grid=(B_pad // B_TILE,),
        in_specs=[
            pl.BlockSpec((T, B_TILE, I), lambda b: (0, b, 0)),
            pl.BlockSpec((H2, I), lambda b: (0, 0)),
            pl.BlockSpec((B_TILE, H, H), lambda b: (b, 0, 0)),
        ],
        out_specs=[
            pl.BlockSpec((B_TILE, H, H), lambda b: (b, 0, 0)),
            pl.BlockSpec((T, B_TILE, 2 * H), lambda b: (0, b, 0)),
            pl.BlockSpec((6, B_TILE, H), lambda b: (0, b, 0)),
        ],
        scratch_shapes=[pltpu.VMEM((T, B_TILE, 2 * H), jnp.float32)],
    )

    mem_out, kv_seq, packed = pl.pallas_call(
        kernel,
        out_shape=out_shapes,
        grid_spec=grid_spec,
        compiler_params=pltpu.CompilerParams(dimension_semantics=("parallel",)),
    )(x_t, W_f, mem_f)

    # wrapper-side layout plumbing: unpack / transpose / strip batch padding (cheap XLA ops)
    mem_out = mem_out[:B].astype(out_dtype)
    key_seq = jnp.transpose(kv_seq[:, :B, :H], (1, 0, 2)).astype(out_dtype)
    val_seq = jnp.transpose(kv_seq[:, :B, H:], (1, 0, 2)).astype(out_dtype)
    packed = packed[:, :B].astype(out_dtype)

    key_states = (packed[0], packed[1])
    val_states = (packed[2], packed[3])
    key_trace = packed[4]
    val_trace = packed[5]
    val_buffer = jnp.zeros((B, feedback_delay, H), out_dtype)  # untouched when recall=False
    states = [key_states, val_states, key_trace, val_trace, val_buffer]
    return mem_out, key_seq, val_seq, states


# ------------------------------- pure-JAX reference -------------------------------


def memory_layer_reference(x, W, mem=None, *, tau_trace=20.0):
    B, T, _ = x.shape
    H = W.shape[0] // 2
    decay = math.exp(-1.0 / tau_trace)
    if mem is None:
        mem = jnp.zeros((B, H, H), jnp.float32)
    i_all = jnp.einsum('bti,hi->bth', x, W)
    ik, iv = i_all[..., :H], i_all[..., H:]
    kv = ki = vv = vi = ktr = vtr = jnp.zeros((B, H), jnp.float32)
    keys, vals = [], []
    for t in range(T):
        key, kv, ki = neuron_step(ik[:, t], kv, ki)
        ikv_t = 0.2 * jnp.sum(mem * key[:, None, :], axis=-1)
        val, vv, vi = neuron_step(iv[:, t] + ikv_t, vv, vi)
        ktr = exp_convolve(key, ktr, decay)
        vtr = exp_convolve(val, vtr, decay)
        vtr_col = vtr[:, :, None]
        mem = mem + ETA * vtr_col * (ktr[:, None, :] - vtr_col * mem)
        keys.append(key)
        vals.append(val)
    return mem, jnp.stack(keys, 1), jnp.stack(vals, 1)


# ------------------------------------- main ----------------------------------------

if __name__ == "__main__":
    B, T, I, H = 16, 8, 32, 32
    FEEDBACK_DELAY = 4
    TAU_TRACE = 20.0

    key = jax.random.PRNGKey(0)
    kx, kw = jax.random.split(key)
    x = jax.random.normal(kx, (B, T, I), dtype=jnp.float32)

    # xavier_uniform_(W, gain=sqrt(2)) on W of shape (2H, I)
    gain = math.sqrt(2.0)
    bound = gain * math.sqrt(6.0 / (I + 2 * H))
    W = jax.random.uniform(kw, (2 * H, I), dtype=jnp.float32,
                           minval=-bound, maxval=bound)

    mem_out, key_seq, val_seq, states = memory_layer_forward(
        x, W, feedback_delay=FEEDBACK_DELAY, tau_trace=TAU_TRACE)
    jax.block_until_ready((mem_out, key_seq, val_seq))

    mem_ref, key_ref, val_ref = memory_layer_reference(x, W, tau_trace=TAU_TRACE)
    assert jnp.allclose(mem_out, mem_ref, atol=1e-5, rtol=1e-5)
    assert jnp.allclose(key_seq, key_ref, atol=1e-5, rtol=1e-5)
    assert jnp.allclose(val_seq, val_ref, atol=1e-5, rtol=1e-5)

    print("KERNEL_OK")
</pallas_src>

<mosaic_0001>
module attributes {stable_mosaic.version = 11 : i64} {
  func.func @memory_kernel(%arg0: i32, %arg1: memref<8x8x32xf32, #tpu.memory_space<vmem>>, %arg2: memref<64x32xf32, #tpu.memory_space<vmem>>, %arg3: memref<8x32x32xf32, #tpu.memory_space<vmem>>, %arg4: memref<8x32x32xf32, #tpu.memory_space<vmem>>, %arg5: memref<8x8x64xf32, #tpu.memory_space<vmem>>, %arg6: memref<6x8x32xf32, #tpu.memory_space<vmem>>, %arg7: memref<8x8x64xf32, #tpu.memory_space<vmem>>) attributes {dimension_semantics = [#tpu.dimension_semantics<parallel>], iteration_bounds = array<i64: 2>, scalar_prefetch = 0 : i64, scratch_operands = 1 : i64, tpu.core_type = #tpu.core_type<tc>, window_params = [{transform_indices = @transform_0, window_bounds = array<i64: 8, 8, 32>}, {pipeline_mode = #tpu.pipeline_mode<synchronous>, transform_indices = @transform_1, window_bounds = array<i64: 64, 32>}, {transform_indices = @transform_2, window_bounds = array<i64: 8, 32, 32>}, {transform_indices = @transform_3, window_bounds = array<i64: 8, 32, 32>}, {transform_indices = @transform_4, window_bounds = array<i64: 8, 8, 64>}, {transform_indices = @transform_5, window_bounds = array<i64: 6, 8, 32>}]} {
    %c0 = arith.constant 0 : index
    %c0_0 = arith.constant 0 : index
    %c0_1 = arith.constant 0 : index
    %0 = vector.load %arg1[%c0, %c0_0, %c0_1] : memref<8x8x32xf32, #tpu.memory_space<vmem>>, vector<8x8x32xf32>
    %1 = vector.shape_cast %0 : vector<8x8x32xf32> to vector<64x32xf32>
    %c0_2 = arith.constant 0 : index
    %c0_3 = arith.constant 0 : index
    %2 = vector.load %arg2[%c0_2, %c0_3] : memref<64x32xf32, #tpu.memory_space<vmem>>, vector<64x32xf32>
    %cst = arith.constant dense<0.000000e+00> : vector<64x64xf32>
    %3 = tpu.matmul %1, %2, %cst {dimension_numbers = #tpu.dot_dimension_numbers<[1], [1], [0], [0], [0, 0, 1, 0], [], []>} : vector<64x32xf32>, vector<64x32xf32>, vector<64x64xf32> -> vector<64x64xf32>
    %4 = vector.shape_cast %3 : vector<64x64xf32> to vector<8x8x64xf32>
    %c0_4 = arith.constant 0 : index
    %c0_5 = arith.constant 0 : index
    %c0_6 = arith.constant 0 : index
    %5 = vector.load %arg7[%c0_4, %c0_5, %c0_6] : memref<8x8x64xf32, #tpu.memory_space<vmem>>, vector<8x8x64xf32>
    tpu.vector_store %arg7[%c0_4, %c0_5, %c0_6], %4 {strides = array<i32>} : memref<8x8x64xf32, #tpu.memory_space<vmem>>, vector<8x8x64xf32>,
    %c0_7 = arith.constant 0 : index
    %c0_8 = arith.constant 0 : index
    %c0_9 = arith.constant 0 : index
    %6 = vector.load %arg3[%c0_7, %c0_8, %c0_9] : memref<8x32x32xf32, #tpu.memory_space<vmem>>, vector<8x32x32xf32>
    %c0_10 = arith.constant 0 : index
    %c0_11 = arith.constant 0 : index
    %c0_12 = arith.constant 0 : index
    %7 = vector.load %arg4[%c0_10, %c0_11, %c0_12] : memref<8x32x32xf32, #tpu.memory_space<vmem>>, vector<8x32x32xf32>
    tpu.vector_store %arg4[%c0_10, %c0_11, %c0_12], %6 {strides = array<i32>} : memref<8x32x32xf32, #tpu.memory_space<vmem>>, vector<8x32x32xf32>,
    %cst_13 = arith.constant 0.000000e+00 : f32
    %8 = vector.broadcast %cst_13 : f32 to vector<8x32xf32>
    %c0_14 = arith.constant 0 : index
    %c0_15 = arith.constant 0 : index
    %c0_16 = arith.constant 0 : index
    %9 = vector.load %arg7[%c0_14, %c0_15, %c0_16] : memref<8x8x64xf32, #tpu.memory_space<vmem>>, vector<1x8x64xf32>
    %10 = vector.shape_cast %9 : vector<1x8x64xf32> to vector<8x64xf32>
    %11 = vector.extract_strided_slice %10 {offsets = [0, 0], sizes = [8, 32], strides = [1, 1]} : vector<8x64xf32> to vector<8x32xf32>
    %12 = vector.extract_strided_slice %10 {offsets = [0, 32], sizes = [8, 32], strides = [1, 1]} : vector<8x64xf32> to vector<8x32xf32>
    %cst_17 = arith.constant 0.904837429 : f32
    %13 = vector.broadcast %cst_17 : f32 to vector<8x32xf32>
    %14 = arith.mulf %13, %8 : vector<8x32xf32>
    %15 = arith.addf %14, %11 : vector<8x32xf32>
    %cst_18 = arith.constant 0.951229453 : f32
    %16 = vector.broadcast %cst_18 : f32 to vector<8x32xf32>
    %17 = arith.mulf %16, %8 : vector<8x32xf32>
    %cst_19 = arith.constant 0.0487705767 : f32
    %18 = vector.broadcast %cst_19 : f32 to vector<8x32xf32>
    %19 = arith.mulf %18, %15 : vector<8x32xf32>
    %20 = arith.addf %17, %19 : vector<8x32xf32>
    %21 = math.tanh %20 : vector<8x32xf32>
    %c0_20 = arith.constant 0 : index
    %c0_21 = arith.constant 0 : index
    %c0_22 = arith.constant 0 : index
    %22 = vector.load %arg4[%c0_20, %c0_21, %c0_22] : memref<8x32x32xf32, #tpu.memory_space<vmem>>, vector<8x32x32xf32>
    %23 = vector.shape_cast %21 : vector<8x32xf32> to vector<8x1x32xf32>
    %24 = vector.broadcast %23 : vector<8x1x32xf32> to vector<8x32x32xf32>
    %25 = arith.mulf %22, %24 : vector<8x32x32xf32>
    %cst_23 = arith.constant dense<0.000000e+00> : vector<8x32xf32>
    %26 = vector.multi_reduction <add>, %25, %cst_23 [2] : vector<8x32x32xf32> to vector<8x32xf32>
    %cst_24 = arith.constant 2.000000e-01 : f32
    %27 = vector.broadcast %cst_24 : f32 to vector<8x32xf32>
    %28 = arith.mulf %27, %26 : vector<8x32xf32>
    %29 = arith.addf %12, %28 : vector<8x32xf32>
    %cst_25 = arith.constant 0.904837429 : f32
    %30 = vector.broadcast %cst_25 : f32 to vector<8x32xf32>
    %31 = arith.mulf %30, %8 : vector<8x32xf32>
    %32 = arith.addf %31, %29 : vector<8x32xf32>
    %cst_26 = arith.constant 0.951229453 : f32
    %33 = vector.broadcast %cst_26 : f32 to vector<8x32xf32>
    %34 = arith.mulf %33, %8 : vector<8x32xf32>
    %cst_27 = arith.constant 0.0487705767 : f32
    %35 = vector.broadcast %cst_27 : f32 to vector<8x32xf32>
    %36 = arith.mulf %35, %32 : vector<8x32xf32>
    %37 = arith.addf %34, %36 : vector<8x32xf32>
    %38 = math.tanh %37 : vector<8x32xf32>
    %cst_28 = arith.constant 0.951229453 : f32
    %39 = vector.broadcast %cst_28 : f32 to vector<8x32xf32>
    %40 = arith.mulf %39, %8 : vector<8x32xf32>
    %cst_29 = arith.constant 0.0487705767 : f32
    %41 = vector.broadcast %cst_29 : f32 to vector<8x32xf32>
    %42 = arith.mulf %41, %21 : vector<8x32xf32>
    %43 = arith.addf %40, %42 : vector<8x32xf32>
    %cst_30 = arith.constant 0.951229453 : f32
    %44 = vector.broadcast %cst_30 : f32 to vector<8x32xf32>
    %45 = arith.mulf %44, %8 : vector<8x32xf32>
    %cst_31 = arith.constant 0.0487705767 : f32
    %46 = vector.broadcast %cst_31 : f32 to vector<8x32xf32>
    %47 = arith.mulf %46, %38 : vector<8x32xf32>
    %48 = arith.addf %45, %47 : vector<8x32xf32>
    %49 = vector.shape_cast %48 : vector<8x32xf32> to vector<8x32x1xf32>
    %cst_32 = arith.constant 5.000000e-02 : f32
    %50 = vector.broadcast %cst_32 : f32 to vector<8x32x1xf32>
    %51 = arith.mulf %50, %49 : vector<8x32x1xf32>
    %52 = vector.shape_cast %43 : vector<8x32xf32> to vector<8x1x32xf32>
    %53 = vector.broadcast %49 : vector<8x32x1xf32> to vector<8x32x32xf32>
    %54 = arith.mulf %53, %22 : vector<8x32x32xf32>
    %55 = vector.broadcast %52 : vector<8x1x32xf32> to vector<8x32x32xf32>
    %56 = arith.subf %55, %54 : vector<8x32x32xf32>
    %57 = vector.broadcast %51 : vector<8x32x1xf32> to vector<8x32x32xf32>
    %58 = arith.mulf %57, %56 : vector<8x32x32xf32>
    %59 = arith.addf %22, %58 : vector<8x32x32xf32>
    %c0_33 = arith.constant 0 : index
    %c0_34 = arith.constant 0 : index
    %c0_35 = arith.constant 0 : index
    %60 = vector.load %arg4[%c0_33, %c0_34, %c0_35] : memref<8x32x32xf32, #tpu.memory_space<vmem>>, vector<8x32x32xf32>
    tpu.vector_store %arg4[%c0_33, %c0_34, %c0_35], %59 {strides = array<i32>} : memref<8x32x32xf32, #tpu.memory_space<vmem>>, vector<8x32x32xf32>,
    %61 = tpu.concatenate %21, %38 in 1 : vector<8x32xf32>, vector<8x32xf32> -> vector<8x64xf32>
    %c0_36 = arith.constant 0 : index
    %c0_37 = arith.constant 0 : index
    %c0_38 = arith.constant 0 : index
    %62 = vector.load %arg5[%c0_36, %c0_37, %c0_38] : memref<8x8x64xf32, #tpu.memory_space<vmem>>, vector<1x8x64xf32>
    %63 = vector.shape_cast %62 : vector<1x8x64xf32> to vector<8x64xf32>
    %64 = vector.shape_cast %61 : vector<8x64xf32> to vector<1x8x64xf32>
    tpu.vector_store %arg5[%c0_36, %c0_37, %c0_38], %64 {strides = array<i32>} : memref<8x8x64xf32, #tpu.memory_space<vmem>>, vector<1x8x64xf32>,
    %c1 = arith.constant 1 : index
    %c0_39 = arith.constant 0 : index
    %c0_40 = arith.constant 0 : index
    %65 = vector.load %arg7[%c1, %c0_39, %c0_40] : memref<8x8x64xf32, #tpu.memory_space<vmem>>, vector<1x8x64xf32>
    %66 = vector.shape_cast %65 : vector<1x8x64xf32> to vector<8x64xf32>
    %67 = vector.extract_strided_slice %66 {offsets = [0, 0], sizes = [8, 32], strides = [1, 1]} : vector<8x64xf32> to vector<8x32xf32>
    %68 = vector.extract_strided_slice %66 {offsets = [0, 32], sizes = [8, 32], strides = [1, 1]} : vector<8x64xf32> to vector<8x32xf32>
    %cst_41 = arith.constant 0.904837429 : f32
    %69 = vector.broadcast %cst_41 : f32 to vector<8x32xf32>
    %70 = arith.mulf %69, %15 : vector<8x32xf32>
    %71 = arith.addf %70, %67 : vector<8x32xf32>
    %cst_42 = arith.constant 0.951229453 : f32
    %72 = vector.broadcast %cst_42 : f32 to vector<8x32xf32>
    %73 = arith.mulf %72, %20 : vector<8x32xf32>
    %cst_43 = arith.constant 0.0487705767 : f32
    %74 = vector.broadcast %cst_43 : f32 to vector<8x32xf32>
    %75 = arith.mulf %74, %71 : vector<8x32xf32>
    %76 = arith.addf %73, %75 : vector<8x32xf32>
    %77 = math.tanh %76 : vector<8x32xf32>
    %c0_44 = arith.constant 0 : index
    %c0_45 = arith.constant 0 : index
    %c0_46 = arith.constant 0 : index
    %78 = vector.load %arg4[%c0_44, %c0_45, %c0_46] : memref<8x32x32xf32, #tpu.memory_space<vmem>>, vector<8x32x32xf32>
    %79 = vector.shape_cast %77 : vector<8x32xf32> to vector<8x1x32xf32>
    %80 = vector.broadcast %79 : vector<8x1x32xf32> to vector<8x32x32xf32>
    %81 = arith.mulf %78, %80 : vector<8x32x32xf32>
    %cst_47 = arith.constant dense<0.000000e+00> : vector<8x32xf32>
    %82 = vector.multi_reduction <add>, %81, %cst_47 [2] : vector<8x32x32xf32> to vector<8x32xf32>
    %cst_48 = arith.constant 2.000000e-01 : f32
    %83 = vector.broadcast %cst_48 : f32 to vector<8x32xf32>
    %84 = arith.mulf %83, %82 : vector<8x32xf32>
    %85 = arith.addf %68, %84 : vector<8x32xf32>
    %cst_49 = arith.constant 0.904837429 : f32
    %86 = vector.broadcast %cst_49 : f32 to vector<8x32xf32>
    %87 = arith.mulf %86, %32 : vector<8x32xf32>
    %88 = arith.addf %87, %85 : vector<8x32xf32>
    %cst_50 = arith.constant 0.951229453 : f32
    %89 = vector.broadcast %cst_50 : f32 to vector<8x32xf32>
    %90 = arith.mulf %89, %37 : vector<8x32xf32>
    %cst_51 = arith.constant 0.0487705767 : f32
    %91 = vector.broadcast %cst_51 : f32 to vector<8x32xf32>
    %92 = arith.mulf %91, %88 : vector<8x32xf32>
    %93 = arith.addf %90, %92 : vector<8x32xf32>
    %94 = math.tanh %93 : vector<8x32xf32>
    %cst_52 = arith.constant 0.951229453 : f32
    %95 = vector.broadcast %cst_52 : f32 to vector<8x32xf32>
    %96 = arith.mulf %95, %43 : vector<8x32xf32>
    %cst_53 = arith.constant 0.0487705767 : f32
    %97 = vector.broadcast %cst_53 : f32 to vector<8x32xf32>
    %98 = arith.mulf %97, %77 : vector<8x32xf32>
    %99 = arith.addf %96, %98 : vector<8x32xf32>
    %cst_54 = arith.constant 0.951229453 : f32
    %100 = vector.broadcast %cst_54 : f32 to vector<8x32xf32>
    %101 = arith.mulf %100, %48 : vector<8x32xf32>
    %cst_55 = arith.constant 0.0487705767 : f32
    %102 = vector.broadcast %cst_55 : f32 to vector<8x32xf32>
    %103 = arith.mulf %102, %94 : vector<8x32xf32>
    %104 = arith.addf %101, %103 : vector<8x32xf32>
    %105 = vector.shape_cast %104 : vector<8x32xf32> to vector<8x32x1xf32>
    %cst_56 = arith.constant 5.000000e-02 : f32
    %106 = vector.broadcast %cst_56 : f32 to vector<8x32x1xf32>
    %107 = arith.mulf %106, %105 : vector<8x32x1xf32>
    %108 = vector.shape_cast %99 : vector<8x32xf32> to vector<8x1x32xf32>
    %109 = vector.broadcast %105 : vector<8x32x1xf32> to vector<8x32x32xf32>
    %110 = arith.mulf %109, %78 : vector<8x32x32xf32>
    %111 = vector.broadcast %108 : vector<8x1x32xf32> to vector<8x32x32xf32>
    %112 = arith.subf %111, %110 : vector<8x32x32xf32>
    %113 = vector.broadcast %107 : vector<8x32x1xf32> to vector<8x32x32xf32>
    %114 = arith.mulf %113, %112 : vector<8x32x32xf32>
    %115 = arith.addf %78, %114 : vector<8x32x32xf32>
    %c0_57 = arith.constant 0 : index
    %c0_58 = arith.constant 0 : index
    %c0_59 = arith.constant 0 : index
    %116 = vector.load %arg4[%c0_57, %c0_58, %c0_59] : memref<8x32x32xf32, #tpu.memory_space<vmem>>, vector<8x32x32xf32>
    tpu.vector_store %arg4[%c0_57, %c0_58, %c0_59], %115 {strides = array<i32>} : memref<8x32x32xf32, #tpu.memory_space<vmem>>, vector<8x32x32xf32>,
    %117 = tpu.concatenate %77, %94 in 1 : vector<8x32xf32>, vector<8x32xf32> -> vector<8x64xf32>
    %c1_60 = arith.constant 1 : index
    %c0_61 = arith.constant 0 : index
    %c0_62 = arith.constant 0 : index
    %118 = vector.load %arg5[%c1_60, %c0_61, %c0_62] : memref<8x8x64xf32, #tpu.memory_space<vmem>>, vector<1x8x64xf32>
    %119 = vector.shape_cast %118 : vector<1x8x64xf32> to vector<8x64xf32>
    %120 = vector.shape_cast %117 : vector<8x64xf32> to vector<1x8x64xf32>
    tpu.vector_store %arg5[%c1_60, %c0_61, %c0_62], %120 {strides = array<i32>} : memref<8x8x64xf32, #tpu.memory_space<vmem>>, vector<1x8x64xf32>,
    %c2 = arith.constant 2 : index
    %c0_63 = arith.constant 0 : index
    %c0_64 = arith.constant 0 : index
    %121 = vector.load %arg7[%c2, %c0_63, %c0_64] : memref<8x8x64xf32, #tpu.memory_space<vmem>>, vector<1x8x64xf32>
    %122 = vector.shape_cast %121 : vector<1x8x64xf32> to vector<8x64xf32>
    %123 = vector.extract_strided_slice %122 {offsets = [0, 0], sizes = [8, 32], strides = [1, 1]} : vector<8x64xf32> to vector<8x32xf32>
    %124 = vector.extract_strided_slice %122 {offsets = [0, 32], sizes = [8, 32], strides = [1, 1]} : vector<8x64xf32> to vector<8x32xf32>
    %cst_65 = arith.constant 0.904837429 : f32
    %125 = vector.broadcast %cst_65 : f32 to vector<8x32xf32>
    %126 = arith.mulf %125, %71 : vector<8x32xf32>
    %127 = arith.addf %126, %123 : vector<8x32xf32>
    %cst_66 = arith.constant 0.951229453 : f32
    %128 = vector.broadcast %cst_66 : f32 to vector<8x32xf32>
    %129 = arith.mulf %128, %76 : vector<8x32xf32>
    %cst_67 = arith.constant 0.0487705767 : f32
    %130 = vector.broadcast %cst_67 : f32 to vector<8x32xf32>
    %131 = arith.mulf %130, %127 : vector<8x32xf32>
    %132 = arith.addf %129, %131 : vector<8x32xf32>
    %133 = math.tanh %132 : vector<8x32xf32>
    %c0_68 = arith.constant 0 : index
    %c0_69 = arith.constant 0 : index
    %c0_70 = arith.constant 0 : index
    %134 = vector.load %arg4[%c0_68, %c0_69, %c0_70] : memref<8x32x32xf32, #tpu.memory_space<vmem>>, vector<8x32x32xf32>
    %135 = vector.shape_cast %133 : vector<8x32xf32> to vector<8x1x32xf32>
    %136 = vector.broadcast %135 : vector<8x1x32xf32> to vector<8x32x32xf32>
    %137 = arith.mulf %134, %136 : vector<8x32x32xf32>
    %cst_71 = arith.constant dense<0.000000e+00> : vector<8x32xf32>
    %138 = vector.multi_reduction <add>, %137, %cst_71 [2] : vector<8x32x32xf32> to vector<8x32xf32>
    %cst_72 = arith.constant 2.000000e-01 : f32
    %139 = vector.broadcast %cst_72 : f32 to vector<8x32xf32>
    %140 = arith.mulf %139, %138 : vector<8x32xf32>
    %141 = arith.addf %124, %140 : vector<8x32xf32>
    %cst_73 = arith.constant 0.904837429 : f32
    %142 = vector.broadcast %cst_73 : f32 to vector<8x32xf32>
    %143 = arith.mulf %142, %88 : vector<8x32xf32>
    %144 = arith.addf %143, %141 : vector<8x32xf32>
    %cst_74 = arith.constant 0.951229453 : f32
    %145 = vector.broadcast %cst_74 : f32 to vector<8x32xf32>
    %146 = arith.mulf %145, %93 : vector<8x32xf32>
    %cst_75 = arith.constant 0.0487705767 : f32
    %147 = vector.broadcast %cst_75 : f32 to vector<8x32xf32>
    %148 = arith.mulf %147, %144 : vector<8x32xf32>
    %149 = arith.addf %146, %148 : vector<8x32xf32>
    %150 = math.tanh %149 : vector<8x32xf32>
    %cst_76 = arith.constant 0.951229453 : f32
    %151 = vector.broadcast %cst_76 : f32 to vector<8x32xf32>
    %152 = arith.mulf %151, %99 : vector<8x32xf32>
    %cst_77 = arith.constant 0.0487705767 : f32
    %153 = vector.broadcast %cst_77 : f32 to vector<8x32xf32>
    %154 = arith.mulf %153, %133 : vector<8x32xf32>
    %155 = arith.addf %152, %154 : vector<8x32xf32>
    %cst_78 = arith.constant 0.951229453 : f32
    %156 = vector.broadcast %cst_78 : f32 to vector<8x32xf32>
    %157 = arith.mulf %156, %104 : vector<8x32xf32>
    %cst_79 = arith.constant 0.0487705767 : f32
    %158 = vector.broadcast %cst_79 : f32 to vector<8x32xf32>
    %159 = arith.mulf %158, %150 : vector<8x32xf32>
    %160 = arith.addf %157, %159 : vector<8x32xf32>
    %161 = vector.shape_cast %160 : vector<8x32xf32> to vector<8x32x1xf32>
    %cst_80 = arith.constant 5.000000e-02 : f32
    %162 = vector.broadcast %cst_80 : f32 to vector<8x32x1xf32>
    %163 = arith.mulf %162, %161 : vector<8x32x1xf32>
    %164 = vector.shape_cast %155 : vector<8x32xf32> to vector<8x1x32xf32>
    %165 = vector.broadcast %161 : vector<8x32x1xf32> to vector<8x32x32xf32>
    %166 = arith.mulf %165, %134 : vector<8x32x32xf32>
    %167 = vector.broadcast %164 : vector<8x1x32xf32> to vector<8x32x32xf32>
    %168 = arith.subf %167, %166 : vector<8x32x32xf32>
    %169 = vector.broadcast %163 : vector<8x32x1xf32> to vector<8x32x32xf32>
    %170 = arith.mulf %169, %168 : vector<8x32x32xf32>
    %171 = arith.addf %134, %170 : vector<8x32x32xf32>
    %c0_81 = arith.constant 0 : index
    %c0_82 = arith.constant 0 : index
    %c0_83 = arith.constant 0 : index
    %172 = vector.load %arg4[%c0_81, %c0_82, %c0_83] : memref<8x32x32xf32, #tpu.memory_space<vmem>>, vector<8x32x32xf32>
    tpu.vector_store %arg4[%c0_81, %c0_82, %c0_83], %171 {strides = array<i32>} : memref<8x32x32xf32, #tpu.memory_space<vmem>>, vector<8x32x32xf32>,
    %173 = tpu.concatenate %133, %150 in 1 : vector<8x32xf32>, vector<8x32xf32> -> vector<8x64xf32>
    %c2_84 = arith.constant 2 : index
    %c0_85 = arith.constant 0 : index
    %c0_86 = arith.constant 0 : index
    %174 = vector.load %arg5[%c2_84, %c0_85, %c0_86] : memref<8x8x64xf32, #tpu.memory_space<vmem>>, vector<1x8x64xf32>
    %175 = vector.shape_cast %174 : vector<1x8x64xf32> to vector<8x64xf32>
    %176 = vector.shape_cast %173 : vector<8x64xf32> to vector<1x8x64xf32>
    tpu.vector_store %arg5[%c2_84, %c0_85, %c0_86], %176 {strides = array<i32>} : memref<8x8x64xf32, #tpu.memory_space<vmem>>, vector<1x8x64xf32>,
    %c3 = arith.constant 3 : index
    %c0_87 = arith.constant 0 : index
    %c0_88 = arith.constant 0 : index
    %177 = vector.load %arg7[%c3, %c0_87, %c0_88] : memref<8x8x64xf32, #tpu.memory_space<vmem>>, vector<1x8x64xf32>
    %178 = vector.shape_cast %177 : vector<1x8x64xf32> to vector<8x64xf32>
    %179 = vector.extract_strided_slice %178 {offsets = [0, 0], sizes = [8, 32], strides = [1, 1]} : vector<8x64xf32> to vector<8x32xf32>
    %180 = vector.extract_strided_slice %178 {offsets = [0, 32], sizes = [8, 32], strides = [1, 1]} : vector<8x64xf32> to vector<8x32xf32>
    %cst_89 = arith.constant 0.904837429 : f32
    %181 = vector.broadcast %cst_89 : f32 to vector<8x32xf32>
    %182 = arith.mulf %181, %127 : vector<8x32xf32>
    %183 = arith.addf %182, %179 : vector<8x32xf32>
    %cst_90 = arith.constant 0.951229453 : f32
    %184 = vector.broadcast %cst_90 : f32 to vector<8x32xf32>
    %185 = arith.mulf %184, %132 : vector<8x32xf32>
    %cst_91 = arith.constant 0.0487705767 : f32
    %186 = vector.broadcast %cst_91 : f32 to vector<8x32xf32>
    %187 = arith.mulf %186, %183 : vector<8x32xf32>
    %188 = arith.addf %185, %187 : vector<8x32xf32>
    %189 = math.tanh %188 : vector<8x32xf32>
    %c0_92 = arith.constant 0 : index
    %c0_93 = arith.constant 0 : index
    %c0_94 = arith.constant 0 : index
    %190 = vector.load %arg4[%c0_92, %c0_93, %c0_94] : memref<8x32x32xf32, #tpu.memory_space<vmem>>, vector<8x32x32xf32>
    %191 = vector.shape_cast %189 : vector<8x32xf32> to vector<8x1x32xf32>
    %192 = vector.broadcast %191 : vector<8x1x32xf32> to vector<8x32x32xf32>
    %193 = arith.mulf %190, %192 : vector<8x32x32xf32>
    %cst_95 = arith.constant dense<0.000000e+00> : vector<8x32xf32>
    %194 = vector.multi_reduction <add>, %193, %cst_95 [2] : vector<8x32x32xf32> to vector<8x32xf32>
    %cst_96 = arith.constant 2.000000e-01 : f32
    %195 = vector.broadcast %cst_96 : f32 to vector<8x32xf32>
    %196 = arith.mulf %195, %194 : vector<8x32xf32>
    %197 = arith.addf %180, %196 : vector<8x32xf32>
    %cst_97 = arith.constant 0.904837429 : f32
    %198 = vector.broadcast %cst_97 : f32 to vector<8x32xf32>
    %199 = arith.mulf %198, %144 : vector<8x32xf32>
    %200 = arith.addf %199, %197 : vector<8x32xf32>
    %cst_98 = arith.constant 0.951229453 : f32
    %201 = vector.broadcast %cst_98 : f32 to vector<8x32xf32>
    %202 = arith.mulf %201, %149 : vector<8x32xf32>
    %cst_99 = arith.constant 0.0487705767 : f32
    %203 = vector.broadcast %cst_99 : f32 to vector<8x32xf32>
    %204 = arith.mulf %203, %200 : vector<8x32xf32>
    %205 = arith.addf %202, %204 : vector<8x32xf32>
    %206 = math.tanh %205 : vector<8x32xf32>
    %cst_100 = arith.constant 0.951229453 : f32
    %207 = vector.broadcast %cst_100 : f32 to vector<8x32xf32>
    %208 = arith.mulf %207, %155 : vector<8x32xf32>
    %cst_101 = arith.constant 0.0487705767 : f32
    %209 = vector.broadcast %cst_101 : f32 to vector<8x32xf32>
    %210 = arith.mulf %209, %189 : vector<8x32xf32>
    %211 = arith.addf %208, %210 : vector<8x32xf32>
    %cst_102 = arith.constant 0.951229453 : f32
    %212 = vector.broadcast %cst_102 : f32 to vector<8x32xf32>
    %213 = arith.mulf %212, %160 : vector<8x32xf32>
    %cst_103 = arith.constant 0.0487705767 : f32
    %214 = vector.broadcast %cst_103 : f32 to vector<8x32xf32>
    %215 = arith.mulf %214, %206 : vector<8x32xf32>
    %216 = arith.addf %213, %215 : vector<8x32xf32>
    %217 = vector.shape_cast %216 : vector<8x32xf32> to vector<8x32x1xf32>
    %cst_104 = arith.constant 5.000000e-02 : f32
    %218 = vector.broadcast %cst_104 : f32 to vector<8x32x1xf32>
    %219 = arith.mulf %218, %217 : vector<8x32x1xf32>
    %220 = vector.shape_cast %211 : vector<8x32xf32> to vector<8x1x32xf32>
    %221 = vector.broadcast %217 : vector<8x32x1xf32> to vector<8x32x32xf32>
    %222 = arith.mulf %221, %190 : vector<8x32x32xf32>
    %223 = vector.broadcast %220 : vector<8x1x32xf32> to vector<8x32x32xf32>
    %224 = arith.subf %223, %222 : vector<8x32x32xf32>
    %225 = vector.broadcast %219 : vector<8x32x1xf32> to vector<8x32x32xf32>
    %226 = arith.mulf %225, %224 : vector<8x32x32xf32>
    %227 = arith.addf %190, %226 : vector<8x32x32xf32>
    %c0_105 = arith.constant 0 : index
    %c0_106 = arith.constant 0 : index
    %c0_107 = arith.constant 0 : index
    %228 = vector.load %arg4[%c0_105, %c0_106, %c0_107] : memref<8x32x32xf32, #tpu.memory_space<vmem>>, vector<8x32x32xf32>
    tpu.vector_store %arg4[%c0_105, %c0_106, %c0_107], %227 {strides = array<i32>} : memref<8x32x32xf32, #tpu.memory_space<vmem>>, vector<8x32x32xf32>,
    %229 = tpu.concatenate %189, %206 in 1 : vector<8x32xf32>, vector<8x32xf32> -> vector<8x64xf32>
    %c3_108 = arith.constant 3 : index
    %c0_109 = arith.constant 0 : index
    %c0_110 = arith.constant 0 : index
    %230 = vector.load %arg5[%c3_108, %c0_109, %c0_110] : memref<8x8x64xf32, #tpu.memory_space<vmem>>, vector<1x8x64xf32>
    %231 = vector.shape_cast %230 : vector<1x8x64xf32> to vector<8x64xf32>
    %232 = vector.shape_cast %229 : vector<8x64xf32> to vector<1x8x64xf32>
    tpu.vector_store %arg5[%c3_108, %c0_109, %c0_110], %232 {strides = array<i32>} : memref<8x8x64xf32, #tpu.memory_space<vmem>>, vector<1x8x64xf32>,
    %c4 = arith.constant 4 : index
    %c0_111 = arith.constant 0 : index
    %c0_112 = arith.constant 0 : index
    %233 = vector.load %arg7[%c4, %c0_111, %c0_112] : memref<8x8x64xf32, #tpu.memory_space<vmem>>, vector<1x8x64xf32>
    %234 = vector.shape_cast %233 : vector<1x8x64xf32> to vector<8x64xf32>
    %235 = vector.extract_strided_slice %234 {offsets = [0, 0], sizes = [8, 32], strides = [1, 1]} : vector<8x64xf32> to vector<8x32xf32>
    %236 = vector.extract_strided_slice %234 {offsets = [0, 32], sizes = [8, 32], strides = [1, 1]} : vector<8x64xf32> to vector<8x32xf32>
    %cst_113 = arith.constant 0.904837429 : f32
    %237 = vector.broadcast %cst_113 : f32 to vector<8x32xf32>
    %238 = arith.mulf %237, %183 : vector<8x32xf32>
    %239 = arith.addf %238, %235 : vector<8x32xf32>
    %cst_114 = arith.constant 0.951229453 : f32
    %240 = vector.broadcast %cst_114 : f32 to vector<8x32xf32>
    %241 = arith.mulf %240, %188 : vector<8x32xf32>
    %cst_115 = arith.constant 0.0487705767 : f32
    %242 = vector.broadcast %cst_115 : f32 to vector<8x32xf32>
    %243 = arith.mulf %242, %239 : vector<8x32xf32>
    %244 = arith.addf %241, %243 : vector<8x32xf32>
    %245 = math.tanh %244 : vector<8x32xf32>
    %c0_116 = arith.constant 0 : index
    %c0_117 = arith.constant 0 : index
    %c0_118 = arith.constant 0 : index
    %246 = vector.load %arg4[%c0_116, %c0_117, %c0_118] : memref<8x32x32xf32, #tpu.memory_space<vmem>>, vector<8x32x32xf32>
    %247 = vector.shape_cast %245 : vector<8x32xf32> to vector<8x1x32xf32>
    %248 = vector.broadcast %247 : vector<8x1x32xf32> to vector<8x32x32xf32>
    %249 = arith.mulf %246, %248 : vector<8x32x32xf32>
    %cst_119 = arith.constant dense<0.000000e+00> : vector<8x32xf32>
    %250 = vector.multi_reduction <add>, %249, %cst_119 [2] : vector<8x32x32xf32> to vector<8x32xf32>
    %cst_120 = arith.constant 2.000000e-01 : f32
    %251 = vector.broadcast %cst_120 : f32 to vector<8x32xf32>
    %252 = arith.mulf %251, %250 : vector<8x32xf32>
    %253 = arith.addf %236, %252 : vector<8x32xf32>
    %cst_121 = arith.constant 0.904837429 : f32
    %254 = vector.broadcast %cst_121 : f32 to vector<8x32xf32>
    %255 = arith.mulf %254, %200 : vector<8x32xf32>
    %256 = arith.addf %255, %253 : vector<8x32xf32>
    %cst_122 = arith.constant 0.951229453 : f32
    %257 = vector.broadcast %cst_122 : f32 to vector<8x32xf32>
    %258 = arith.mulf %257, %205 : vector<8x32xf32>
    %cst_123 = arith.constant 0.0487705767 : f32
    %259 = vector.broadcast %cst_123 : f32 to vector<8x32xf32>
    %260 = arith.mulf %259, %256 : vector<8x32xf32>
    %261 = arith.addf %258, %260 : vector<8x32xf32>
    %262 = math.tanh %261 : vector<8x32xf32>
    %cst_124 = arith.constant 0.951229453 : f32
    %263 = vector.broadcast %cst_124 : f32 to vector<8x32xf32>
    %264 = arith.mulf %263, %211 : vector<8x32xf32>
    %cst_125 = arith.constant 0.0487705767 : f32
    %265 = vector.broadcast %cst_125 : f32 to vector<8x32xf32>
    %266 = arith.mulf %265, %245 : vector<8x32xf32>
    %267 = arith.addf %264, %266 : vector<8x32xf32>
    %cst_126 = arith.constant 0.951229453 : f32
    %268 = vector.broadcast %cst_126 : f32 to vector<8x32xf32>
    %269 = arith.mulf %268, %216 : vector<8x32xf32>
    %cst_127 = arith.constant 0.0487705767 : f32
    %270 = vector.broadcast %cst_127 : f32 to vector<8x32xf32>
    %271 = arith.mulf %270, %262 : vector<8x32xf32>
    %272 = arith.addf %269, %271 : vector<8x32xf32>
    %273 = vector.shape_cast %272 : vector<8x32xf32> to vector<8x32x1xf32>
    %cst_128 = arith.constant 5.000000e-02 : f32
    %274 = vector.broadcast %cst_128 : f32 to vector<8x32x1xf32>
    %275 = arith.mulf %274, %273 : vector<8x32x1xf32>
    %276 = vector.shape_cast %267 : vector<8x32xf32> to vector<8x1x32xf32>
    %277 = vector.broadcast %273 : vector<8x32x1xf32> to vector<8x32x32xf32>
    %278 = arith.mulf %277, %246 : vector<8x32x32xf32>
    %279 = vector.broadcast %276 : vector<8x1x32xf32> to vector<8x32x32xf32>
    %280 = arith.subf %279, %278 : vector<8x32x32xf32>
    %281 = vector.broadcast %275 : vector<8x32x1xf32> to vector<8x32x32xf32>
    %282 = arith.mulf %281, %280 : vector<8x32x32xf32>
    %283 = arith.addf %246, %282 : vector<8x32x32xf32>
    %c0_129 = arith.constant 0 : index
    %c0_130 = arith.constant 0 : index
    %c0_131 = arith.constant 0 : index
    %284 = vector.load %arg4[%c0_129, %c0_130, %c0_131] : memref<8x32x32xf32, #tpu.memory_space<vmem>>, vector<8x32x32xf32>
    tpu.vector_store %arg4[%c0_129, %c0_130, %c0_131], %283 {strides = array<i32>} : memref<8x32x32xf32, #tpu.memory_space<vmem>>, vector<8x32x32xf32>,
    %285 = tpu.concatenate %245, %262 in 1 : vector<8x32xf32>, vector<8x32xf32> -> vector<8x64xf32>
    %c4_132 = arith.constant 4 : index
    %c0_133 = arith.constant 0 : index
    %c0_134 = arith.constant 0 : index
    %286 = vector.load %arg5[%c4_132, %c0_133, %c0_134] : memref<8x8x64xf32, #tpu.memory_space<vmem>>, vector<1x8x64xf32>
    %287 = vector.shape_cast %286 : vector<1x8x64xf32> to vector<8x64xf32>
    %288 = vector.shape_cast %285 : vector<8x64xf32> to vector<1x8x64xf32>
    tpu.vector_store %arg5[%c4_132, %c0_133, %c0_134], %288 {strides = array<i32>} : memref<8x8x64xf32, #tpu.memory_space<vmem>>, vector<1x8x64xf32>,
    %c5 = arith.constant 5 : index
    %c0_135 = arith.constant 0 : index
    %c0_136 = arith.constant 0 : index
    %289 = vector.load %arg7[%c5, %c0_135, %c0_136] : memref<8x8x64xf32, #tpu.memory_space<vmem>>, vector<1x8x64xf32>
    %290 = vector.shape_cast %289 : vector<1x8x64xf32> to vector<8x64xf32>
    %291 = vector.extract_strided_slice %290 {offsets = [0, 0], sizes = [8, 32], strides = [1, 1]} : vector<8x64xf32> to vector<8x32xf32>
    %292 = vector.extract_strided_slice %290 {offsets = [0, 32], sizes = [8, 32], strides = [1, 1]} : vector<8x64xf32> to vector<8x32xf32>
    %cst_137 = arith.constant 0.904837429 : f32
    %293 = vector.broadcast %cst_137 : f32 to vector<8x32xf32>
    %294 = arith.mulf %293, %239 : vector<8x32xf32>
    %295 = arith.addf %294, %291 : vector<8x32xf32>
    %cst_138 = arith.constant 0.951229453 : f32
    %296 = vector.broadcast %cst_138 : f32 to vector<8x32xf32>
    %297 = arith.mulf %296, %244 : vector<8x32xf32>
    %cst_139 = arith.constant 0.0487705767 : f32
    %298 = vector.broadcast %cst_139 : f32 to vector<8x32xf32>
    %299 = arith.mulf %298, %295 : vector<8x32xf32>
    %300 = arith.addf %297, %299 : vector<8x32xf32>
    %301 = math.tanh %300 : vector<8x32xf32>
    %c0_140 = arith.constant 0 : index
    %c0_141 = arith.constant 0 : index
    %c0_142 = arith.constant 0 : index
    %302 = vector.load %arg4[%c0_140, %c0_141, %c0_142] : memref<8x32x32xf32, #tpu.memory_space<vmem>>, vector<8x32x32xf32>
    %303 = vector.shape_cast %301 : vector<8x32xf32> to vector<8x1x32xf32>
    %304 = vector.broadcast %303 : vector<8x1x32xf32> to vector<8x32x32xf32>
    %305 = arith.mulf %302, %304 : vector<8x32x32xf32>
    %cst_143 = arith.constant dense<0.000000e+00> : vector<8x32xf32>
    %306 = vector.multi_reduction <add>, %305, %cst_143 [2] : vector<8x32x32xf32> to vector<8x32xf32>
    %cst_144 = arith.constant 2.000000e-01 : f32
    %307 = vector.broadcast %cst_144 : f32 to vector<8x32xf32>
    %308 = arith.mulf %307, %306 : vector<8x32xf32>
    %309 = arith.addf %292, %308 : vector<8x32xf32>
    %cst_145 = arith.constant 0.904837429 : f32
    %310 = vector.broadcast %cst_145 : f32 to vector<8x32xf32>
    %311 = arith.mulf %310, %256 : vector<8x32xf32>
    %312 = arith.addf %311, %309 : vector<8x32xf32>
    %cst_146 = arith.constant 0.951229453 : f32
    %313 = vector.broadcast %cst_146 : f32 to vector<8x32xf32>
    %314 = arith.mulf %313, %261 : vector<8x32xf32>
    %cst_147 = arith.constant 0.0487705767 : f32
    %315 = vector.broadcast %cst_147 : f32 to vector<8x32xf32>
    %316 = arith.mulf %315, %312 : vector<8x32xf32>
    %317 = arith.addf %314, %316 : vector<8x32xf32>
    %318 = math.tanh %317 : vector<8x32xf32>
    %cst_148 = arith.constant 0.951229453 : f32
    %319 = vector.broadcast %cst_148 : f32 to vector<8x32xf32>
    %320 = arith.mulf %319, %267 : vector<8x32xf32>
    %cst_149 = arith.constant 0.0487705767 : f32
    %321 = vector.broadcast %cst_149 : f32 to vector<8x32xf32>
    %322 = arith.mulf %321, %301 : vector<8x32xf32>
    %323 = arith.addf %320, %322 : vector<8x32xf32>
    %cst_150 = arith.constant 0.951229453 : f32
    %324 = vector.broadcast %cst_150 : f32 to vector<8x32xf32>
    %325 = arith.mulf %324, %272 : vector<8x32xf32>
    %cst_151 = arith.constant 0.0487705767 : f32
    %326 = vector.broadcast %cst_151 : f32 to vector<8x32xf32>
    %327 = arith.mulf %326, %318 : vector<8x32xf32>
    %328 = arith.addf %325, %327 : vector<8x32xf32>
    %329 = vector.shape_cast %328 : vector<8x32xf32> to vector<8x32x1xf32>
    %cst_152 = arith.constant 5.000000e-02 : f32
    %330 = vector.broadcast %cst_152 : f32 to vector<8x32x1xf32>
    %331 = arith.mulf %330, %329 : vector<8x32x1xf32>
    %332 = vector.shape_cast %323 : vector<8x32xf32> to vector<8x1x32xf32>
    %333 = vector.broadcast %329 : vector<8x32x1xf32> to vector<8x32x32xf32>
    %334 = arith.mulf %333, %302 : vector<8x32x32xf32>
    %335 = vector.broadcast %332 : vector<8x1x32xf32> to vector<8x32x32xf32>
    %336 = arith.subf %335, %334 : vector<8x32x32xf32>
    %337 = vector.broadcast %331 : vector<8x32x1xf32> to vector<8x32x32xf32>
    %338 = arith.mulf %337, %336 : vector<8x32x32xf32>
    %339 = arith.addf %302, %338 : vector<8x32x32xf32>
    %c0_153 = arith.constant 0 : index
    %c0_154 = arith.constant 0 : index
    %c0_155 = arith.constant 0 : index
    %340 = vector.load %arg4[%c0_153, %c0_154, %c0_155] : memref<8x32x32xf32, #tpu.memory_space<vmem>>, vector<8x32x32xf32>
    tpu.vector_store %arg4[%c0_153, %c0_154, %c0_155], %339 {strides = array<i32>} : memref<8x32x32xf32, #tpu.memory_space<vmem>>, vector<8x32x32xf32>,
    %341 = tpu.concatenate %301, %318 in 1 : vector<8x32xf32>, vector<8x32xf32> -> vector<8x64xf32>
    %c5_156 = arith.constant 5 : index
    %c0_157 = arith.constant 0 : index
    %c0_158 = arith.constant 0 : index
    %342 = vector.load %arg5[%c5_156, %c0_157, %c0_158] : memref<8x8x64xf32, #tpu.memory_space<vmem>>, vector<1x8x64xf32>
    %343 = vector.shape_cast %342 : vector<1x8x64xf32> to vector<8x64xf32>
    %344 = vector.shape_cast %341 : vector<8x64xf32> to vector<1x8x64xf32>
    tpu.vector_store %arg5[%c5_156, %c0_157, %c0_158], %344 {strides = array<i32>} : memref<8x8x64xf32, #tpu.memory_space<vmem>>, vector<1x8x64xf32>,
    %c6 = arith.constant 6 : index
    %c0_159 = arith.constant 0 : index
    %c0_160 = arith.constant 0 : index
    %345 = vector.load %arg7[%c6, %c0_159, %c0_160] : memref<8x8x64xf32, #tpu.memory_space<vmem>>, vector<1x8x64xf32>
    %346 = vector.shape_cast %345 : vector<1x8x64xf32> to vector<8x64xf32>
    %347 = vector.extract_strided_slice %346 {offsets = [0, 0], sizes = [8, 32], strides = [1, 1]} : vector<8x64xf32> to vector<8x32xf32>
    %348 = vector.extract_strided_slice %346 {offsets = [0, 32], sizes = [8, 32], strides = [1, 1]} : vector<8x64xf32> to vector<8x32xf32>
    %cst_161 = arith.constant 0.904837429 : f32
    %349 = vector.broadcast %cst_161 : f32 to vector<8x32xf32>
    %350 = arith.mulf %349, %295 : vector<8x32xf32>
    %351 = arith.addf %350, %347 : vector<8x32xf32>
    %cst_162 = arith.constant 0.951229453 : f32
    %352 = vector.broadcast %cst_162 : f32 to vector<8x32xf32>
    %353 = arith.mulf %352, %300 : vector<8x32xf32>
    %cst_163 = arith.constant 0.0487705767 : f32
    %354 = vector.broadcast %cst_163 : f32 to vector<8x32xf32>
    %355 = arith.mulf %354, %351 : vector<8x32xf32>
    %356 = arith.addf %353, %355 : vector<8x32xf32>
    %357 = math.tanh %356 : vector<8x32xf32>
    %c0_164 = arith.constant 0 : index
    %c0_165 = arith.constant 0 : index
    %c0_166 = arith.constant 0 : index
    %358 = vector.load %arg4[%c0_164, %c0_165, %c0_166] : memref<8x32x32xf32, #tpu.memory_space<vmem>>, vector<8x32x32xf32>
    %359 = vector.shape_cast %357 : vector<8x32xf32> to vector<8x1x32xf32>
    %360 = vector.broadcast %359 : vector<8x1x32xf32> to vector<8x32x32xf32>
    %361 = arith.mulf %358, %360 : vector<8x32x32xf32>
    %cst_167 = arith.constant dense<0.000000e+00> : vector<8x32xf32>
    %362 = vector.multi_reduction <add>, %361, %cst_167 [2] : vector<8x32x32xf32> to vector<8x32xf32>
    %cst_168 = arith.constant 2.000000e-01 : f32
    %363 = vector.broadcast %cst_168 : f32 to vector<8x32xf32>
    %364 = arith.mulf %363, %362 : vector<8x32xf32>
    %365 = arith.addf %348, %364 : vector<8x32xf32>
    %cst_169 = arith.constant 0.904837429 : f32
    %366 = vector.broadcast %cst_169 : f32 to vector<8x32xf32>
    %367 = arith.mulf %366, %312 : vector<8x32xf32>
    %368 = arith.addf %367, %365 : vector<8x32xf32>
    %cst_170 = arith.constant 0.951229453 : f32
    %369 = vector.broadcast %cst_170 : f32 to vector<8x32xf32>
    %370 = arith.mulf %369, %317 : vector<8x32xf32>
    %cst_171 = arith.constant 0.0487705767 : f32
    %371 = vector.broadcast %cst_171 : f32 to vector<8x32xf32>
    %372 = arith.mulf %371, %368 : vector<8x32xf32>
    %373 = arith.addf %370, %372 : vector<8x32xf32>
    %374 = math.tanh %373 : vector<8x32xf32>
    %cst_172 = arith.constant 0.951229453 : f32
    %375 = vector.broadcast %cst_172 : f32 to vector<8x32xf32>
    %376 = arith.mulf %375, %323 : vector<8x32xf32>
    %cst_173 = arith.constant 0.0487705767 : f32
    %377 = vector.broadcast %cst_173 : f32 to vector<8x32xf32>
    %378 = arith.mulf %377, %357 : vector<8x32xf32>
    %379 = arith.addf %376, %378 : vector<8x32xf32>
    %cst_174 = arith.constant 0.951229453 : f32
    %380 = vector.broadcast %cst_174 : f32 to vector<8x32xf32>
    %381 = arith.mulf %380, %328 : vector<8x32xf32>
    %cst_175 = arith.constant 0.0487705767 : f32
    %382 = vector.broadcast %cst_175 : f32 to vector<8x32xf32>
    %383 = arith.mulf %382, %374 : vector<8x32xf32>
    %384 = arith.addf %381, %383 : vector<8x32xf32>
    %385 = vector.shape_cast %384 : vector<8x32xf32> to vector<8x32x1xf32>
    %cst_176 = arith.constant 5.000000e-02 : f32
    %386 = vector.broadcast %cst_176 : f32 to vector<8x32x1xf32>
    %387 = arith.mulf %386, %385 : vector<8x32x1xf32>
    %388 = vector.shape_cast %379 : vector<8x32xf32> to vector<8x1x32xf32>
    %389 = vector.broadcast %385 : vector<8x32x1xf32> to vector<8x32x32xf32>
    %390 = arith.mulf %389, %358 : vector<8x32x32xf32>
    %391 = vector.broadcast %388 : vector<8x1x32xf32> to vector<8x32x32xf32>
    %392 = arith.subf %391, %390 : vector<8x32x32xf32>
    %393 = vector.broadcast %387 : vector<8x32x1xf32> to vector<8x32x32xf32>
    %394 = arith.mulf %393, %392 : vector<8x32x32xf32>
    %395 = arith.addf %358, %394 : vector<8x32x32xf32>
    %c0_177 = arith.constant 0 : index
    %c0_178 = arith.constant 0 : index
    %c0_179 = arith.constant 0 : index
    %396 = vector.load %arg4[%c0_177, %c0_178, %c0_179] : memref<8x32x32xf32, #tpu.memory_space<vmem>>, vector<8x32x32xf32>
    tpu.vector_store %arg4[%c0_177, %c0_178, %c0_179], %395 {strides = array<i32>} : memref<8x32x32xf32, #tpu.memory_space<vmem>>, vector<8x32x32xf32>,
    %397 = tpu.concatenate %357, %374 in 1 : vector<8x32xf32>, vector<8x32xf32> -> vector<8x64xf32>
    %c6_180 = arith.constant 6 : index
    %c0_181 = arith.constant 0 : index
    %c0_182 = arith.constant 0 : index
    %398 = vector.load %arg5[%c6_180, %c0_181, %c0_182] : memref<8x8x64xf32, #tpu.memory_space<vmem>>, vector<1x8x64xf32>
    %399 = vector.shape_cast %398 : vector<1x8x64xf32> to vector<8x64xf32>
    %400 = vector.shape_cast %397 : vector<8x64xf32> to vector<1x8x64xf32>
    tpu.vector_store %arg5[%c6_180, %c0_181, %c0_182], %400 {strides = array<i32>} : memref<8x8x64xf32, #tpu.memory_space<vmem>>, vector<1x8x64xf32>,
    %c7 = arith.constant 7 : index
    %c0_183 = arith.constant 0 : index
    %c0_184 = arith.constant 0 : index
    %401 = vector.load %arg7[%c7, %c0_183, %c0_184] : memref<8x8x64xf32, #tpu.memory_space<vmem>>, vector<1x8x64xf32>
    %402 = vector.shape_cast %401 : vector<1x8x64xf32> to vector<8x64xf32>
    %403 = vector.extract_strided_slice %402 {offsets = [0, 0], sizes = [8, 32], strides = [1, 1]} : vector<8x64xf32> to vector<8x32xf32>
    %404 = vector.extract_strided_slice %402 {offsets = [0, 32], sizes = [8, 32], strides = [1, 1]} : vector<8x64xf32> to vector<8x32xf32>
    %cst_185 = arith.constant 0.904837429 : f32
    %405 = vector.broadcast %cst_185 : f32 to vector<8x32xf32>
    %406 = arith.mulf %405, %351 : vector<8x32xf32>
    %407 = arith.addf %406, %403 : vector<8x32xf32>
    %cst_186 = arith.constant 0.951229453 : f32
    %408 = vector.broadcast %cst_186 : f32 to vector<8x32xf32>
    %409 = arith.mulf %408, %356 : vector<8x32xf32>
    %cst_187 = arith.constant 0.0487705767 : f32
    %410 = vector.broadcast %cst_187 : f32 to vector<8x32xf32>
    %411 = arith.mulf %410, %407 : vector<8x32xf32>
    %412 = arith.addf %409, %411 : vector<8x32xf32>
    %413 = math.tanh %412 : vector<8x32xf32>
    %c0_188 = arith.constant 0 : index
    %c0_189 = arith.constant 0 : index
    %c0_190 = arith.constant 0 : index
    %414 = vector.load %arg4[%c0_188, %c0_189, %c0_190] : memref<8x32x32xf32, #tpu.memory_space<vmem>>, vector<8x32x32xf32>
    %415 = vector.shape_cast %413 : vector<8x32xf32> to vector<8x1x32xf32>
    %416 = vector.broadcast %415 : vector<8x1x32xf32> to vector<8x32x32xf32>
    %417 = arith.mulf %414, %416 : vector<8x32x32xf32>
    %cst_191 = arith.constant dense<0.000000e+00> : vector<8x32xf32>
    %418 = vector.multi_reduction <add>, %417, %cst_191 [2] : vector<8x32x32xf32> to vector<8x32xf32>
    %cst_192 = arith.constant 2.000000e-01 : f32
    %419 = vector.broadcast %cst_192 : f32 to vector<8x32xf32>
    %420 = arith.mulf %419, %418 : vector<8x32xf32>
    %421 = arith.addf %404, %420 : vector<8x32xf32>
    %cst_193 = arith.constant 0.904837429 : f32
    %422 = vector.broadcast %cst_193 : f32 to vector<8x32xf32>
    %423 = arith.mulf %422, %368 : vector<8x32xf32>
    %424 = arith.addf %423, %421 : vector<8x32xf32>
    %cst_194 = arith.constant 0.951229453 : f32
    %425 = vector.broadcast %cst_194 : f32 to vector<8x32xf32>
    %426 = arith.mulf %425, %373 : vector<8x32xf32>
    %cst_195 = arith.constant 0.0487705767 : f32
    %427 = vector.broadcast %cst_195 : f32 to vector<8x32xf32>
    %428 = arith.mulf %427, %424 : vector<8x32xf32>
    %429 = arith.addf %426, %428 : vector<8x32xf32>
    %430 = math.tanh %429 : vector<8x32xf32>
    %cst_196 = arith.constant 0.951229453 : f32
    %431 = vector.broadcast %cst_196 : f32 to vector<8x32xf32>
    %432 = arith.mulf %431, %379 : vector<8x32xf32>
    %cst_197 = arith.constant 0.0487705767 : f32
    %433 = vector.broadcast %cst_197 : f32 to vector<8x32xf32>
    %434 = arith.mulf %433, %413 : vector<8x32xf32>
    %435 = arith.addf %432, %434 : vector<8x32xf32>
    %cst_198 = arith.constant 0.951229453 : f32
    %436 = vector.broadcast %cst_198 : f32 to vector<8x32xf32>
    %437 = arith.mulf %436, %384 : vector<8x32xf32>
    %cst_199 = arith.constant 0.0487705767 : f32
    %438 = vector.broadcast %cst_199 : f32 to vector<8x32xf32>
    %439 = arith.mulf %438, %430 : vector<8x32xf32>
    %440 = arith.addf %437, %439 : vector<8x32xf32>
    %441 = vector.shape_cast %440 : vector<8x32xf32> to vector<8x32x1xf32>
    %cst_200 = arith.constant 5.000000e-02 : f32
    %442 = vector.broadcast %cst_200 : f32 to vector<8x32x1xf32>
    %443 = arith.mulf %442, %441 : vector<8x32x1xf32>
    %444 = vector.shape_cast %435 : vector<8x32xf32> to vector<8x1x32xf32>
    %445 = vector.broadcast %441 : vector<8x32x1xf32> to vector<8x32x32xf32>
    %446 = arith.mulf %445, %414 : vector<8x32x32xf32>
    %447 = vector.broadcast %444 : vector<8x1x32xf32> to vector<8x32x32xf32>
    %448 = arith.subf %447, %446 : vector<8x32x32xf32>
    %449 = vector.broadcast %443 : vector<8x32x1xf32> to vector<8x32x32xf32>
    %450 = arith.mulf %449, %448 : vector<8x32x32xf32>
    %451 = arith.addf %414, %450 : vector<8x32x32xf32>
    %c0_201 = arith.constant 0 : index
    %c0_202 = arith.constant 0 : index
    %c0_203 = arith.constant 0 : index
    %452 = vector.load %arg4[%c0_201, %c0_202, %c0_203] : memref<8x32x32xf32, #tpu.memory_space<vmem>>, vector<8x32x32xf32>
    tpu.vector_store %arg4[%c0_201, %c0_202, %c0_203], %451 {strides = array<i32>} : memref<8x32x32xf32, #tpu.memory_space<vmem>>, vector<8x32x32xf32>,
    %453 = tpu.concatenate %413, %430 in 1 : vector<8x32xf32>, vector<8x32xf32> -> vector<8x64xf32>
    %c7_204 = arith.constant 7 : index
    %c0_205 = arith.constant 0 : index
    %c0_206 = arith.constant 0 : index
    %454 = vector.load %arg5[%c7_204, %c0_205, %c0_206] : memref<8x8x64xf32, #tpu.memory_space<vmem>>, vector<1x8x64xf32>
    %455 = vector.shape_cast %454 : vector<1x8x64xf32> to vector<8x64xf32>
    %456 = vector.shape_cast %453 : vector<8x64xf32> to vector<1x8x64xf32>
    tpu.vector_store %arg5[%c7_204, %c0_205, %c0_206], %456 {strides = array<i32>} : memref<8x8x64xf32, #tpu.memory_space<vmem>>, vector<1x8x64xf32>,
    %c0_207 = arith.constant 0 : index
    %c0_208 = arith.constant 0 : index
    %c0_209 = arith.constant 0 : index
    %457 = vector.load %arg6[%c0_207, %c0_208, %c0_209] : memref<6x8x32xf32, #tpu.memory_space<vmem>>, vector<1x8x32xf32>
    %458 = vector.shape_cast %457 : vector<1x8x32xf32> to vector<8x32xf32>
    %459 = vector.shape_cast %412 : vector<8x32xf32> to vector<1x8x32xf32>
    tpu.vector_store %arg6[%c0_207, %c0_208, %c0_209], %459 {strides = array<i32>} : memref<6x8x32xf32, #tpu.memory_space<vmem>>, vector<1x8x32xf32>,
    %c1_210 = arith.constant 1 : index
    %c0_211 = arith.constant 0 : index
    %c0_212 = arith.constant 0 : index
    %460 = vector.load %arg6[%c1_210, %c0_211, %c0_212] : memref<6x8x32xf32, #tpu.memory_space<vmem>>, vector<1x8x32xf32>
    %461 = vector.shape_cast %460 : vector<1x8x32xf32> to vector<8x32xf32>
    %462 = vector.shape_cast %407 : vector<8x32xf32> to vector<1x8x32xf32>
    tpu.vector_store %arg6[%c1_210, %c0_211, %c0_212], %462 {strides = array<i32>} : memref<6x8x32xf32, #tpu.memory_space<vmem>>, vector<1x8x32xf32>,
    %c2_213 = arith.constant 2 : index
    %c0_214 = arith.constant 0 : index
    %c0_215 = arith.constant 0 : index
    %463 = vector.load %arg6[%c2_213, %c0_214, %c0_215] : memref<6x8x32xf32, #tpu.memory_space<vmem>>, vector<1x8x32xf32>
    %464 = vector.shape_cast %463 : vector<1x8x32xf32> to vector<8x32xf32>
    %465 = vector.shape_cast %429 : vector<8x32xf32> to vector<1x8x32xf32>
    tpu.vector_store %arg6[%c2_213, %c0_214, %c0_215], %465 {strides = array<i32>} : memref<6x8x32xf32, #tpu.memory_space<vmem>>, vector<1x8x32xf32>,
    %c3_216 = arith.constant 3 : index
    %c0_217 = arith.constant 0 : index
    %c0_218 = arith.constant 0 : index
    %466 = vector.load %arg6[%c3_216, %c0_217, %c0_218] : memref<6x8x32xf32, #tpu.memory_space<vmem>>, vector<1x8x32xf32>
    %467 = vector.shape_cast %466 : vector<1x8x32xf32> to vector<8x32xf32>
    %468 = vector.shape_cast %424 : vector<8x32xf32> to vector<1x8x32xf32>
    tpu.vector_store %arg6[%c3_216, %c0_217, %c0_218], %468 {strides = array<i32>} : memref<6x8x32xf32, #tpu.memory_space<vmem>>, vector<1x8x32xf32>,
    %c4_219 = arith.constant 4 : index
    %c0_220 = arith.constant 0 : index
    %c0_221 = arith.constant 0 : index
    %469 = vector.load %arg6[%c4_219, %c0_220, %c0_221] : memref<6x8x32xf32, #tpu.memory_space<vmem>>, vector<1x8x32xf32>
    %470 = vector.shape_cast %469 : vector<1x8x32xf32> to vector<8x32xf32>
    %471 = vector.shape_cast %435 : vector<8x32xf32> to vector<1x8x32xf32>
    tpu.vector_store %arg6[%c4_219, %c0_220, %c0_221], %471 {strides = array<i32>} : memref<6x8x32xf32, #tpu.memory_space<vmem>>, vector<1x8x32xf32>,
    %c5_222 = arith.constant 5 : index
    %c0_223 = arith.constant 0 : index
    %c0_224 = arith.constant 0 : index
    %472 = vector.load %arg6[%c5_222, %c0_223, %c0_224] : memref<6x8x32xf32, #tpu.memory_space<vmem>>, vector<1x8x32xf32>
    %473 = vector.shape_cast %472 : vector<1x8x32xf32> to vector<8x32xf32>
    %474 = vector.shape_cast %440 : vector<8x32xf32> to vector<1x8x32xf32>
    tpu.vector_store %arg6[%c5_222, %c0_223, %c0_224], %474 {strides = array<i32>} : memref<6x8x32xf32, #tpu.memory_space<vmem>>, vector<1x8x32xf32>,
    return
  }
  func.func @transform_0(%arg0: i32) -> (i32, i32, i32) {
    %c0_i32 = arith.constant 0 : i32
    %c0_i32_0 = arith.constant 0 : i32
    %c0_i32_1 = arith.constant 0 : i32
    return %c0_i32, %arg0, %c0_i32_0 : i32, i32, i32
  }
  func.func @transform_1(%arg0: i32) -> (i32, i32) {
    %c0_i32 = arith.constant 0 : i32
    %c0_i32_0 = arith.constant 0 : i32
    %c0_i32_1 = arith.constant 0 : i32
    return %c0_i32, %c0_i32_0 : i32, i32
  }
  func.func @transform_2(%arg0: i32) -> (i32, i32, i32) {
    %c0_i32 = arith.constant 0 : i32
    %c0_i32_0 = arith.constant 0 : i32
    %c0_i32_1 = arith.constant 0 : i32
    return %arg0, %c0_i32, %c0_i32_0 : i32, i32, i32
  }
  func.func @transform_3(%arg0: i32) -> (i32, i32, i32) {
    %c0_i32 = arith.constant 0 : i32
    %c0_i32_0 = arith.constant 0 : i32
    %c0_i32_1 = arith.constant 0 : i32
    return %arg0, %c0_i32, %c0_i32_0 : i32, i32, i32
  }
  func.func @transform_4(%arg0: i32) -> (i32, i32, i32) {
    %c0_i32 = arith.constant 0 : i32
    %c0_i32_0 = arith.constant 0 : i32
    %c0_i32_1 = arith.constant 0 : i32
    return %c0_i32, %arg0, %c0_i32_0 : i32, i32, i32
  }
  func.func @transform_5(%arg0: i32) -> (i32, i32, i32) {
    %c0_i32 = arith.constant 0 : i32
    %c0_i32_0 = arith.constant 0 : i32
    %c0_i32_1 = arith.constant 0 : i32
    return %c0_i32, %arg0, %c0_i32_0 : i32, i32, i32
  }
}

</mosaic_0001>

<bundles_post_ra>
// kernel: tpu_custom_call.1
= control target key start
LH: loop header
LB: loop body
LE: loop exit
PB: predicated region body
PF: predicated region fallthrough
CT: control target
= control target key end

     0   :  { %s13707_s0 = inlined_call_operand.hbm [shape: f32[8,16,32], index: 0, kind: input, shape index: {}]   ;;  %s13708_s1 = inlined_call_operand.vmem [shape: f32[64,32], index: 1, kind: input, shape index: {}]   ;;  %s13709_s2 = inlined_call_operand.hbm [shape: f32[16,32,32], index: 2, kind: input, shape index: {}]   ;;  %s13710_s3 = inlined_call_operand.hbm [shape: f32[16,32,32], index: 3, kind: output, shape index: {0}]   ;;  %s13711_s4 = inlined_call_operand.hbm [shape: f32[8,16,64], index: 4, kind: output, shape index: {1}]   ;;  %s13712_s5 = inlined_call_operand.hbm [shape: f32[6,16,32], index: 5, kind: output, shape index: {2}]  }
   0x1   :  { %13944 = sst [smem:[#allocation48_spill]] %s13707_s0 }
   0x2   :  { %11 = vsyncpa [#allocation4], 0 }
   0x3   :  { %13 = vsyncpa [#allocation4 + $0x1], 0 }
   0x4   :  { %14 = vsyncpa [#allocation7], 0 }
   0x5   :  { %16 = vsyncpa [#allocation7 + $0x1], 0 }
   0x6   :  { %17 = vsyncpa [#allocation5], 0 }
   0x7   :  { %19 = vsyncpa [#allocation5 + $0x1], 0 }
   0x8   :  { %20 = vsyncpa [#allocation10], 0 }
   0x9   :  { %22 = vsyncpa [#allocation10 + $0x1], 0  ;;  %s8928_s18 = smov 0   ;;  %s8930_s19 = smov 0  }
   0xa   :  { %s8932_s20 = smov 0   ;;  %s8934_s21 = smov 0  }
   0xb LB: > { %s8949_s22 = sadd.s32 4294967295, %s8883_s21   ;;  %s13714_s23 = sadd.s32 4294967294, %s8883_s21   ;;  %s8883_s21 = sphi %s8934_s21, %s14265_s21   ;;  %s8879_s20 = sphi %s8932_s20, %s14264_s20   ;;  %s8875_s19 = sphi %s8930_s19, %s14263_s19   ;;  %s8871_s18 = sphi %s8928_s18, %s14262_s18  }
   0xc   : > { %s8953_s24 = sadd.s32 1, %s8883_s21   ;;  %s35_s25 = sadd.s32 1, %s8879_s20 }
   0xd   : > { %s32_s26 = ssub.s32 %s8883_s21, %s8953_s24  ;;  %p42_p0 = scmp.ne.s32.totalorder %s8879_s20, %s8875_s19 }
   0xe   : > { %p33_p1 = scmp.eq.s32.totalorder %s32_s26, 0  ;;  %p43_p2 = scmp.eq.s32.totalorder %s8883_s21, 0 }
   0xf   : > { %p48_p3 = scmp.ne.s32.totalorder %s8875_s19, %s8871_s18  ;;  %p49_p4 = scmp.eq.s32.totalorder %s8949_s22, 0 }
  0x10   : > { %s8965_s27 = scalar_select %p33_p1, %s8879_s20, %s35_s25  }
  0x11   : > { %p8967_p5 = por %p43_p2, %p42_p0  ;;  %p8971_p6 = por %p49_p4, %p48_p3 }
  0x12   : > { %p119_p7 = scmp.eq.s32.totalorder %s8949_s22, 1  ;;  %p125_p8 = scmp.eq.s32.totalorder %s13714_s23, 1 }
  0x13   : > { %s13946_s29 = scalar_select %p8971_p6, 1, 0 }
  0x14   : > { %p8468_p10 = scmp.lt.s32.totalorder %s8883_s21, 2  ;;  %p8980_p11 = por %p119_p7, %p42_p0 }
  0x15   : > { %p8984_p12 = por %p125_p8, %p48_p3  ;;  %s8989_s7 = sand.u32 1, %s8879_s20  }
  0x16   : > { %s13947_s30 = scalar_select %p8980_p11, 1, 0 }
  0x17   : > { %s13948_s6 = scalar_select %p8984_p12, 1, 0 }
  0x18   : > { %s8313_s8 = sshll.u32 %s8883_s21, 7  ;;  %s8312_s9 = sshll.u32 %s8989_s7, 6 }
  0x19   : > { %s13949_s0 = sld [smem:[#allocation48_spill]]  ;;  %s204_s13 = scalar_lea.vmem [#allocation3], %s8312_s9 }
  0x1a   : > { %s210_s14 = sshll.u32 %s204_s13, 4  ;;  %p9000_p13 = pnand %p8468_p10, %p8967_p5  ;;  %s9004_s14 = int_to_ptr.vmem [resolvable:$true] %s210_s14 }
  0x1b   : > { %s201_s16 = scalar_lea.sflag [#allocation4], %s8989_s7 }
  0x1c   : > { %p8695_p2 = pneg %p9000_p13 }
  0x1f   : > { %s8996_s12 = scalar_lea.hbm %s13949_s0, %s8313_s8  ;;  %s8698_s28 = scalar_lea.hbm %s13949_s0, 2048 }
  0x20   : > { %s8693_s17 = scalar_lea.hbm %s8996_s12, 1024  ;;  %p8699_p5 = scmp.lt.u32.totalorder %s8996_s12, %s13949_s0 }
  0x21   : > { %p8694_p1 = scmp.ne.s32.totalorder %s8996_s12, %s8693_s17  ;;  %p8700_p7 = scmp.lt.u32.totalorder %s8698_s28, %s8693_s17 }
  0x22   : > { %p8702_p10 = scmp.lt.u32.totalorder %s8693_s17, %s8996_s12 }
  0x23   : > { %p8696_p3 = pnand %p8695_p2, %p8694_p1  ;;  %p8701_p8 = por %p8700_p7, %p8699_p5 }
  0x25   : > { %p8697_p4 = pneg %p8696_p3  ;;  %p8703_p9 = por %p8702_p10, %p8701_p8 }
  0x27   : > { %p8704_p0 = pnand %p8703_p9, %p8697_p4 }
  0x29   : > { %8707 = shalt.err (!%p8704_p0)
}
  0x2a   : > { %s8708_s10 = scalar_lea.vmem %s9004_s14, 1024  ;;  %s8885_s11 = smov [#allocation3]  }
  0x2b   : > { %p8709_p1 = scmp.ne.s32.totalorder %s9004_s14, %s8708_s10  ;;  %s8713_s13 = sshll.u32 %s8885_s11, 4  ;;  %s8714_s13 = int_to_ptr.vmem [resolvable:$false] %s8713_s13 }
  0x2c   : > { %s8715_s25 = scalar_lea.vmem %s8714_s13, 2048  ;;  %p8716_p11 = scmp.lt.s32.totalorder %s9004_s14, %s8714_s13 }
  0x2d   : > { %p8711_p3 = pnand %p8709_p1, %p8695_p2  ;;  %p8717_p5 = scmp.lt.s32.totalorder %s8715_s25, %s8708_s10 }
  0x2f   : > { %p8712_p12 = pneg %p8711_p3  ;;  %p8718_p7 = por %p8717_p5, %p8716_p11 }
  0x31   : > { %p8719_p8 = pnand %p8718_p7, %p8712_p12 }
  0x33   : > { %8722 = shalt.err (!%p8719_p8)
}
  0x34   : > { %s8886_s17 = smov 256   ;;  %s8887_s26 = smov 128  }
  0x35   : > { %s8888_s28 = smov 8   ;;  %p240_p9 = scmp.lt.s32.totalorder %s8883_s21, 3 }
  0x36   : > { %8454 = dma.hbm_to_vmem [thread:$0]  (!%p9000_p13), %s8996_s12, 1024, %s9004_s14, %s201_s16, %s8886_s17, %s8887_s26, %s8888_s28  }
  0x37   : > { %s8314_s8 = sshll.u32 %s8989_s7, 8  ;;  %s8361_s9 = sshll.u32 %s8883_s21, 12 }
  0x38   : > { %p13951_p11 = scmp.ge.s32.totalorder %s8883_s21, 1  ;;  %s9049_s25 = scalar_lea.hbm %s13709_s2, %s8361_s9 }
  0x39   : > { %s224_s23 = scalar_lea.vmem [#allocation6], %s8314_s8  ;;  %s221_s12 = scalar_lea.sflag [#allocation7], %s8989_s7 }
  0x3a   : > { %p9042_p12 = pnand %p13951_p11, %p240_p9  ;;  %s232_s0 = sshll.u32 %s224_s23, 4  ;;  %s9051_s0 = int_to_ptr.vmem [resolvable:$true] %s232_s0 }
  0x3b   : > { %s8723_s14 = scalar_lea.hbm %s9049_s25, 4096  ;;  %s8728_s9 = scalar_lea.hbm %s13709_s2, 8192 }
  0x3c   : > { %p8724_p0 = scmp.ne.s32.totalorder %s9049_s25, %s8723_s14  ;;  %p8729_p1 = scmp.lt.u32.totalorder %s9049_s25, %s13709_s2 }
  0x3d   : > { %p8730_p3 = scmp.lt.u32.totalorder %s8728_s9, %s8723_s14  ;;  %p8732_p7 = scmp.lt.u32.totalorder %s8723_s14, %s9049_s25 }
  0x3e   : > { %p8726_p4 = pnand %p8724_p0, %p8695_p2 }
  0x3f   : > { %p8731_p5 = por %p8730_p3, %p8729_p1 }
  0x40   : > { %p8727_p10 = pneg %p8726_p4 }
  0x41   : > { %p8733_p8 = por %p8732_p7, %p8731_p5 }
  0x43   : > { %p8734_p9 = pnand %p8733_p8, %p8727_p10 }
  0x45   : > { %8737 = shalt.err (!%p8734_p9)
}
  0x46   : > { %s8738_s23 = scalar_lea.vmem %s9051_s0, 4096  ;;  %s8889_s8 = smov [#allocation6]  }
  0x47   : > { %p8739_p11 = scmp.ne.s32.totalorder %s9051_s0, %s8738_s23  ;;  %s8743_s16 = sshll.u32 %s8889_s8, 4  ;;  %s8744_s16 = int_to_ptr.vmem [resolvable:$false] %s8743_s16 }
  0x48   : > { %s8745_s17 = scalar_lea.vmem %s8744_s16, 8192  ;;  %p8746_p6 = scmp.lt.s32.totalorder %s9051_s0, %s8744_s16 }
  0x49   : > { %p8741_p0 = pnand %p8739_p11, %p8695_p2  ;;  %p8747_p1 = scmp.lt.s32.totalorder %s8745_s17, %s8738_s23 }
  0x4b   : > { %p8742_p4 = pneg %p8741_p0  ;;  %p8748_p3 = por %p8747_p1, %p8746_p6 }
  0x4d   : > { %p8749_p5 = pnand %p8748_p3, %p8742_p4 }
  0x4f   : > { %8752 = shalt.err (!%p8749_p5)
}
  0x50   : > { %8457 = dma.hbm_to_vmem [thread:$0]  (!%p9000_p13), %s9049_s25, 4096, %s9051_s0, %s221_s12, %s8887_s26, %s8887_s26, %s8888_s28  }
  0x51   : > { %244 = sbr.rel (%p9042_p12) target bundleno = 3443 (0xd73), region = 32 }
  0x58   : > { %s9085_s14 = sand.u32 1, %s8875_s19   ;;  %p13953_p6 = scmp.ne.s32.totalorder %s13946_s29, 0 }
  0x59   : > { %s8319_s9 = sshll.u32 %s9085_s14, 6  ;;  %s247_s15 = scalar_lea.sflag [#allocation4], %s9085_s14 }
  0x5a   : > { %s9091_s11 = scalar_lea.vmem [#allocation3], %s8319_s9 }
  0x5b   : > { %8854 = dma.done.wait (%p13953_p6), %s247_s15, 1024  }
  0x5c   : > { %8856 = vsyncadd (%p13953_p6), %s247_s15, 4294966272  ;;  %s8320_s0 = sshll.u32 %s9085_s14, 8  ;;  %s256_s7 = scalar_lea.sflag [#allocation7], %s9085_s14 }
  0x5d   : > { %s9101_s26 = scalar_lea.vmem [#allocation6], %s8320_s0 }
  0x5e   : > { %8858 = dma.done.wait (%p13953_p6), %s256_s7, 4096  }
  0x5f   : > { %8860 = vsyncadd (%p13953_p6), %s256_s7, 4294963200  ;;  %vm319_vm0 = vcmask 261120   ;;  %v311_v1 = vld [vmem:[%s13708_s1] sm:$0xff]  ;;  %v312_v2 = vld [vmem:[%s13708_s1 + $0x8] sm:$0xff]  ;;  %s9190_s13 = scalar_lea.vmem [#allocation8], %s8320_s0  ;;  %vm473_vm2 = vcmask 523264  }
  0x60   : > { %vm9109_vm1 = vmpackc.low %vm319_vm0, %vm319_vm0  ;;  %v313_v3 = vld [vmem:[%s13708_s1 + $0x10] sm:$0xff]  ;;  %v8408_v4 = vpack.c.bf16 %v312_v2, %v311_v1  ;;  %v314_v5 = vld [vmem:[%s13708_s1 + $0x18] sm:$0xff]  ;;  %v8890_v1 = vmov 1966171168   ;;  %vm877_vm3 = vcmask 392512   ;;  %vm884_vm4 = vcmask 458112  }
  0x61   : > { %v8414_v6 = vpack.c.bf16 %v314_v5, %v313_v3  ;;  %v303_v7 = vld [vmem:[%s9091_s11] sm:$0xff]  ;;  %v316_v10 = vld [vmem:[%s13708_s1 + $0x28] sm:$0xff]  ;;  %v317_v12 = vld [vmem:[%s13708_s1 + $0x30] sm:$0xff]  ;;  %v586_v2 = vunpack.c.l.s4 %v8890_v1  ;;  %v588_v3 = vlaneseq  ;;  %vm891_vm5 = vcmask 523712   ;;  %s8891_s29 = smov 96   ;;  %s8356_s23 = sshll.u32 %s8949_s22, 7 }
  0x62   : > { %8410 = vmatprep.subr.msk.bf16.mxu0 %vm9109_vm1, %v8408_v4  ;;  %8432 = vmatprep.subr.msk.bf16.mxu1 %vm9109_vm1, %v8408_v4  ;;  %v307_v8 = vld [vmem:[%s9091_s11 + $0x20] sm:$0xff]  ;;  %v318_v13 = vld [vmem:[%s13708_s1 + $0x38] sm:$0xff]  ;;  %v304_v15 = vld [vmem:[%s9091_s11 + $0x8] sm:$0xff]  ;;  %vm1026_vm6 = vcmask 1041409   ;;  %vm1028_vm7 = vcmask 1042434   ;;  %vm1030_vm8 = vcmask 1043459   ;;  %s13416_s15 = scalar_lea.hbm %s13711_s4, %s8356_s23 }
  0x63   : > { %8413 = vmatpush3.bf16.xpose.msk.msra.mxu0 %vm9109_vm1, %v8408_v4  ;;  %8436 = vmatpush3.bf16.xpose.msk.msra.mxu1 %vm9109_vm1, %v8408_v4  ;;  %v315_v9 = vld [vmem:[%s13708_s1 + $0x20] sm:$0xff]  ;;  %v8426_v14 = vpack.c.bf16 %v318_v13, %v317_v12  ;;  %v308_v16 = vld [vmem:[%s9091_s11 + $0x28] sm:$0xff]  ;;  %v305_v17 = vld [vmem:[%s9091_s11 + $0x10] sm:$0xff]  ;;  %vm1032_vm9 = vcmask 1044484   ;;  %vm1034_vm10 = vcmask 1045509   ;;  %vm1036_vm11 = vcmask 1046534  }
  0x64   : > { %8416 = vmatprep.subr.msk.bf16.mxu0 %vm9109_vm1, %v8414_v6  ;;  %8433 = vmatprep.subr.msk.bf16.mxu1 %vm9109_vm1, %v8414_v6  ;;  %v8420_v11 = vpack.c.bf16 %v316_v10, %v315_v9  ;;  %v309_v18 = vld [vmem:[%s9091_s11 + $0x30] sm:$0xff]  ;;  %v306_v19 = vld [vmem:[%s9091_s11 + $0x18] sm:$0xff]  ;;  %v482_v21 = vld [vmem:[%s9101_s26] sm:$0xff]  ;;  %v587_v9 = vunpack.c.0.s8 %v586_v2  ;;  %v9298_v10 = vshrl.u32 %v588_v3, 7  ;;  %vm1038_vm12 = vcmask 1047559   ;;  %p14239_p2 = scmp.ne.s32.totalorder %s13947_s30, 0 }
  0x65   : > { %8396 = vmatprep.mubr.msk.f32.mxu0 %vm319_vm0, %v303_v7  ;;  %8402 = vmatprep.mubr.msk.f32.mxu1 %vm319_vm0, %v307_v8  ;;  %v310_v20 = vld [vmem:[%s9091_s11 + $0x38] sm:$0xff]  ;;  %v483_v22 = vld [vmem:[%s9101_s26 + $0x8] sm:$0xff]  ;;  %v484_v23 = vld [vmem:[%s9101_s26 + $0x10] sm:$0xff]  ;;  %514 = vst.msk [vmem:[%s9190_s13] sm:$0xff] %vm319_vm0, %v482_v21  ;;  %s8440_s11 = smul.u32 48, %s9085_s14  ;;  %s8892_s10 = smov [#allocation9]  }
  0x66   : > { %515 = vst.msk [vmem:[%s9190_s13 + $0x8] sm:$0xff] %vm319_vm0, %v483_v22  ;;  %516 = vst.msk [vmem:[%s9190_s13 + $0x10] sm:$0xff] %vm319_vm0, %v484_v23  ;;  %v486_v24 = vld [vmem:[%s9101_s26 + $0x20] sm:$0xff]  ;;  %v487_v25 = vld [vmem:[%s9101_s26 + $0x28] sm:$0xff]  ;;  %s8757_s25 = sshll.u32 %s8892_s10, 4  ;;  %s8758_s25 = int_to_ptr.vmem [resolvable:$false] %s8757_s25 }
  0x67   : > { %v485_v26 = vld [vmem:[%s9101_s26 + $0x18] sm:$0xff]  ;;  %518 = vst.msk [vmem:[%s9190_s13 + $0x20] sm:$0xff] %vm319_vm0, %v486_v24  ;;  %519 = vst.msk [vmem:[%s9190_s13 + $0x28] sm:$0xff] %vm319_vm0, %v487_v25  ;;  %v488_v27 = vld [vmem:[%s9101_s26 + $0x30] sm:$0xff]  ;;  %s9373_s0 = scalar_lea.vmem [#allocation11], %s8440_s11  ;;  %s8759_s12 = scalar_lea.vmem %s8758_s25, 2048 }
  0x68   : > { %517 = vst.msk [vmem:[%s9190_s13 + $0x18] sm:$0xff] %vm319_vm0, %v485_v26  ;;  %520 = vst.msk [vmem:[%s9190_s13 + $0x30] sm:$0xff] %vm319_vm0, %v488_v27  ;;  %v491_v28 = vld [vmem:[%s9101_s26 + $0x48] sm:$0xff]  ;;  %v490_v29 = vld [vmem:[%s9101_s26 + $0x40] sm:$0xff]  ;;  %v9314_v26 = vsub.s32 0, %v9298_v10 }
  0x69   : > { %v489_v30 = vld [vmem:[%s9101_s26 + $0x38] sm:$0xff]  ;;  %523 = vst.msk [vmem:[%s9190_s13 + $0x48] sm:$0xff] %vm319_vm0, %v491_v28  ;;  %522 = vst.msk [vmem:[%s9190_s13 + $0x40] sm:$0xff] %vm319_vm0, %v490_v29  ;;  %v492_v31 = vld [vmem:[%s9101_s26 + $0x50] sm:$0xff] }
  0x6a   : > { %521 = vst.msk [vmem:[%s9190_s13 + $0x38] sm:$0xff] %vm319_vm0, %v489_v30  ;;  %524 = vst.msk [vmem:[%s9190_s13 + $0x50] sm:$0xff] %vm319_vm0, %v492_v31  ;;  %v493_v32 = vld [vmem:[%s9101_s26 + $0x58] sm:$0xff]  ;;  %v499_v33 = vld [vmem:[%s9101_s26 + $0x88] sm:$0xff] }
  0x6b   : > { %8419 = vmatpush3.bf16.xpose.msk.msra.mxu0 %vm9109_vm1, %v8414_v6  ;;  %8437 = vmatpush3.bf16.xpose.msk.msra.mxu1 %vm9109_vm1, %v8414_v6  ;;  %525 = vst.msk [vmem:[%s9190_s13 + $0x58] sm:$0xff] %vm319_vm0, %v493_v32  ;;  %531 = vst.msk [vmem:[%s9190_s13 + $0x88] sm:$0xff] %vm319_vm0, %v499_v33  ;;  %v498_v34 = vld [vmem:[%s9101_s26 + $0x80] sm:$0xff]  ;;  %v500_v35 = vld [vmem:[%s9101_s26 + $0x90] sm:$0xff] }
  0x6c   : > { %8422 = vmatprep.subr.msk.bf16.mxu0 %vm9109_vm1, %v8420_v11  ;;  %8434 = vmatprep.subr.msk.bf16.mxu1 %vm9109_vm1, %v8420_v11  ;;  %530 = vst.msk [vmem:[%s9190_s13 + $0x80] sm:$0xff] %vm319_vm0, %v498_v34  ;;  %532 = vst.msk [vmem:[%s9190_s13 + $0x90] sm:$0xff] %vm319_vm0, %v500_v35  ;;  %v501_v36 = vld [vmem:[%s9101_s26 + $0x98] sm:$0xff]  ;;  %v495_v37 = vld [vmem:[%s9101_s26 + $0x68] sm:$0xff] }
  0x6d   : > { %533 = vst.msk [vmem:[%s9190_s13 + $0x98] sm:$0xff] %vm319_vm0, %v501_v36  ;;  %527 = vst.msk [vmem:[%s9190_s13 + $0x68] sm:$0xff] %vm319_vm0, %v495_v37  ;;  %v494_v38 = vld [vmem:[%s9101_s26 + $0x60] sm:$0xff]  ;;  %v496_v39 = vld [vmem:[%s9101_s26 + $0x70] sm:$0xff] }
  0x6e   : > { %526 = vst.msk [vmem:[%s9190_s13 + $0x60] sm:$0xff] %vm319_vm0, %v494_v38  ;;  %528 = vst.msk [vmem:[%s9190_s13 + $0x70] sm:$0xff] %vm319_vm0, %v496_v39  ;;  %v497_v40 = vld [vmem:[%s9101_s26 + $0x78] sm:$0xff]  ;;  %v503_v41 = vld [vmem:[%s9101_s26 + $0xa8] sm:$0xff] }
  0x6f   : > { %v502_v42 = vld [vmem:[%s9101_s26 + $0xa0] sm:$0xff]  ;;  %529 = vst.msk [vmem:[%s9190_s13 + $0x78] sm:$0xff] %vm319_vm0, %v497_v40  ;;  %535 = vst.msk [vmem:[%s9190_s13 + $0xa8] sm:$0xff] %vm319_vm0, %v503_v41  ;;  %v504_v43 = vld [vmem:[%s9101_s26 + $0xb0] sm:$0xff] }
  0x70   : > { %534 = vst.msk [vmem:[%s9190_s13 + $0xa0] sm:$0xff] %vm319_vm0, %v502_v42  ;;  %536 = vst.msk [vmem:[%s9190_s13 + $0xb0] sm:$0xff] %vm319_vm0, %v504_v43  ;;  %v506_v44 = vld [vmem:[%s9101_s26 + $0xc0] sm:$0xff]  ;;  %v507_v45 = vld [vmem:[%s9101_s26 + $0xc8] sm:$0xff] }
  0x71   : > { %538 = vst.msk [vmem:[%s9190_s13 + $0xc0] sm:$0xff] %vm319_vm0, %v506_v44  ;;  %539 = vst.msk [vmem:[%s9190_s13 + $0xc8] sm:$0xff] %vm319_vm0, %v507_v45  ;;  %v505_v46 = vld [vmem:[%s9101_s26 + $0xb8] sm:$0xff]  ;;  %v508_v47 = vld [vmem:[%s9101_s26 + $0xd0] sm:$0xff] }
  0x72   : > { %537 = vst.msk [vmem:[%s9190_s13 + $0xb8] sm:$0xff] %vm319_vm0, %v505_v46  ;;  %v509_v48 = vld [vmem:[%s9101_s26 + $0xd8] sm:$0xff]  ;;  %540 = vst.msk [vmem:[%s9190_s13 + $0xd0] sm:$0xff] %vm319_vm0, %v508_v47  ;;  %v511_v49 = vld [vmem:[%s9101_s26 + $0xe8] sm:$0xff] }
  0x73   : > { %8425 = vmatpush3.bf16.xpose.msk.msra.mxu0 %vm9109_vm1, %v8420_v11  ;;  %8438 = vmatpush3.bf16.xpose.msk.msra.mxu1 %vm9109_vm1, %v8420_v11  ;;  %541 = vst.msk [vmem:[%s9190_s13 + $0xd8] sm:$0xff] %vm319_vm0, %v509_v48  ;;  %543 = vst.msk [vmem:[%s9190_s13 + $0xe8] sm:$0xff] %vm319_vm0, %v511_v49  ;;  %v510_v50 = vld [vmem:[%s9101_s26 + $0xe0] sm:$0xff]  ;;  %v512_v51 = vld [vmem:[%s9101_s26 + $0xf0] sm:$0xff] }
  0x74   : > { %8428 = vmatprep.subr.msk.bf16.mxu0 %vm9109_vm1, %v8426_v14  ;;  %8435 = vmatprep.subr.msk.bf16.mxu1 %vm9109_vm1, %v8426_v14  ;;  %v513_v52 = vld [vmem:[%s9101_s26 + $0xf8] sm:$0xff]  ;;  %542 = vst.msk [vmem:[%s9190_s13 + $0xe0] sm:$0xff] %vm319_vm0, %v510_v50  ;;  %544 = vst.msk [vmem:[%s9190_s13 + $0xf0] sm:$0xff] %vm319_vm0, %v512_v51  ;;  %v9319_v30 = vld [vmem:[%s9190_s13] sm:$0xff]  ;;  %s9638_s26 = scalar_lea.vmem [#allocation9], %s8319_s9  ;;  %s8102_s9 = sand.u32 1, %s8949_s22  }
  0x75   : > { %545 = vst.msk [vmem:[%s9190_s13 + $0xf8] sm:$0xff] %vm319_vm0, %v513_v52  ;;  %v9330_v40 = vld [vmem:[%s9190_s13 + $0x20] sm:$0xff]  ;;  %v9333_v41 = vld [vmem:[%s9190_s13 + $0x8] sm:$0xff]  ;;  %s8137_s8 = sshll.u32 %s9638_s26, 4  ;;  %s13421_s7 = scalar_lea.sflag [#allocation10], %s8102_s9  ;;  %s13418_s8 = int_to_ptr.vmem [resolvable:$true] %s8137_s8 }
  0x76   : > { %v9339_v45 = vld [vmem:[%s9190_s13 + $0x28] sm:$0xff]  ;;  %s8753_s28 = scalar_lea.vmem %s13418_s8, 1024  ;;  %p8760_p7 = scmp.lt.s32.totalorder %s13418_s8, %s8758_s25 }
  0x77   : > { %p8754_p13 = scmp.ne.s32.totalorder %s13418_s8, %s8753_s28  ;;  %p8761_p8 = scmp.lt.s32.totalorder %s8759_s12, %s8753_s28 }
  0x79   : > { %p8755_p12 = pnand %p8754_p13, %p14239_p2  ;;  %p8762_p9 = por %p8761_p8, %p8760_p7 }
  0x7b   : > { %8431 = vmatpush3.bf16.xpose.msk.msra.mxu0 %vm9109_vm1, %v8426_v14  ;;  %8439 = vmatpush3.bf16.xpose.msk.msra.mxu1 %vm9109_vm1, %v8426_v14  ;;  %p8756_p10 = pneg %p8755_p12 }
  0x7d   : > { %p8763_p11 = pnand %p8762_p9, %p8756_p10 }
  0x82   : > { %8397 = vmatmul.mubr.msk.f32.vlgmr.msra.gmra.mrb[0].mxu0 %vm319_vm0, %v304_v15  ;;  %8403 = vmatmul.mubr.msk.f32.vlgmr.msra.gmra.mrb[0].mxu1 %vm319_vm0, %v308_v16 }
  0x83   : > { %8399 = vmatprep.mubr.msk.f32.mxu0 %vm319_vm0, %v305_v17  ;;  %8405 = vmatprep.mubr.msk.f32.mxu1 %vm319_vm0, %v309_v18  ;;  %v9304_v17 = vsub.s32 %v587_v9, %v9298_v10 }
  0x86   : > { %8400 = vmatmul.mubr.msk.f32.gmra.mrb[2].mxu0 %vm319_vm0, %v306_v19  ;;  %8406 = vmatmul.mubr.msk.f32.gmra.mrb[2].mxu1 %vm319_vm0, %v310_v20 }
 0x155   : > { %v8398_v53 = vpop.f32.mrb[0].mxu0  ;;  %v8404_v54 = vpop.f32.mrb[0].mxu1 }
 0x156   : > { %475 = vst.msk [vmem:[#allocation2 + $0x8] sm:$0xff] %vm473_vm2, %v8398_v53  ;;  %v434_v55 = vpop.f32.mrb[1].mxu0  ;;  %479 = vst.msk [vmem:[#allocation2 + $0x28] sm:$0xff] %vm473_vm2, %v8404_v54  ;;  %v454_v56 = vpop.f32.mrb[1].mxu1  ;;  %v9349_v54 = vld [vmem:[%s9190_s13 + $0x10] sm:$0xff] }
 0x157   : > { %474 = vst.msk [vmem:[#allocation2] sm:$0xff] %vm473_vm2, %v434_v55  ;;  %478 = vst.msk [vmem:[#allocation2 + $0x20] sm:$0xff] %vm473_vm2, %v454_v56 }
 0x159   : > { %v8401_v57 = vpop.f32.mrb[2].mxu0  ;;  %v8407_v58 = vpop.f32.mrb[2].mxu1 }
 0x15a   : > { %477 = vst.msk [vmem:[#allocation2 + $0x18] sm:$0xff] %vm473_vm2, %v8401_v57  ;;  %v444_v59 = vpop.f32.mrb[3].mxu0  ;;  %481 = vst.msk [vmem:[#allocation2 + $0x38] sm:$0xff] %vm473_vm2, %v8407_v58  ;;  %v464_v60 = vpop.f32.mrb[3].mxu1  ;;  %v9354_v58 = vld [vmem:[%s9190_s13 + $0x30] sm:$0xff] }
 0x15b   : > { %476 = vst.msk [vmem:[#allocation2 + $0x10] sm:$0xff] %vm473_vm2, %v444_v59  ;;  %480 = vst.msk [vmem:[#allocation2 + $0x30] sm:$0xff] %vm473_vm2, %v464_v60 }
 0x15d   : > { %v1495_v0 = vld [vmem:[#allocation2 + $0x8] sm:$0xff] }
 0x15e   : > { %v9293_v61 = vld [vmem:[#allocation2] sm:$0xff]  ;;  %v5255_v29 = vld [vmem:[#allocation2 + $0x28] sm:$0xff] }
 0x15f   : > { %v548_v62 = vmul.f32 0.048770577, %v9293_v61  ;;  %v1496_v63 = vmul.f32 0.9048374, %v9293_v61  ;;  %v4315_v20 = vld [vmem:[#allocation2 + $0x20] sm:$0xff] }
 0x161   : > { %8510 = vtanh.f32 %v548_v62  ;;  %v1497_v4 = vadd.f32 %v1496_v63, %v1495_v0  ;;  %v1498_v6 = vmul.f32 0.95122945, %v548_v62  ;;  %v3375_v13 = vld [vmem:[#allocation2 + $0x18] sm:$0xff] }
 0x162   : > { %v2435_v5 = vld [vmem:[#allocation2 + $0x10] sm:$0xff]  ;;  %v7135_v55 = vld [vmem:[#allocation2 + $0x38] sm:$0xff] }
 0x163   : > { %v1499_v7 = vmul.f32 0.048770577, %v1497_v4  ;;  %v2436_v8 = vmul.f32 0.9048374, %v1497_v4  ;;  %v6195_v42 = vld [vmem:[#allocation2 + $0x30] sm:$0xff] }
 0x165   : > { %v9300_v11 = vadd.f32 %v1499_v7, %v1498_v6  ;;  %v2437_v12 = vadd.f32 %v2436_v8, %v2435_v5  ;;  %v9364_v6 = vld [vmem:[%s9190_s13 + $0x18] sm:$0xff] }
 0x167   : > { %v2438_v14 = vmul.f32 0.95122945, %v9300_v11  ;;  %v2439_v15 = vmul.f32 0.048770577, %v2437_v12  ;;  %v3376_v16 = vmul.f32 0.9048374, %v2437_v12  ;;  %8512 = vtanh.f32 %v9300_v11 }
 0x168   : > { %v577_v11 = vld [vmem:[%s9190_s13 + $0xd0] sm:$0xff] }
 0x169   : > { %v9306_v18 = vadd.f32 %v2439_v15, %v2438_v14  ;;  %v3377_v19 = vadd.f32 %v3376_v16, %v3375_v13  ;;  %v9371_v14 = vld [vmem:[%s9190_s13 + $0x48] sm:$0xff] }
 0x16b   : > { %v9308_v21 = vpop.eup %8510  ;;  %v3378_v22 = vmul.f32 0.95122945, %v9306_v18  ;;  %v3379_v23 = vmul.f32 0.048770577, %v3377_v19  ;;  %v4316_v24 = vmul.f32 0.9048374, %v3377_v19  ;;  %8514 = vtanh.f32 %v9306_v18 }
 0x16c   : > { %v591_v25 = vrot.slane %v9308_v21, %v9304_v17  ;;  %v584_v2 = vcombine.high %v9308_v21, %v9308_v21  ;;  %v579_v18 = vld [vmem:[%s9190_s13 + $0xe0] sm:$0xff] }
 0x16d   : > { %v9316_v27 = vadd.f32 %v3379_v23, %v3378_v22  ;;  %v4317_v28 = vadd.f32 %v4316_v24, %v4315_v20  ;;  %v9383_v22 = vld [vmem:[%s9190_s13 + $0x40] sm:$0xff] }
 0x16e   : > { %v607_v31 = vrot.slane %v591_v25, %v9304_v17  ;;  %v599_v32 = vcombine.high %v591_v25, %v591_v25  ;;  %v598_v19 = vrot.slane %v584_v2, %v9304_v17  ;;  %v9388_v25 = vld [vmem:[%s9190_s13 + $0x38] sm:$0xff] }
 0x16f   : > { %v4318_v33 = vmul.f32 0.95122945, %v9316_v27  ;;  %v4319_v34 = vmul.f32 0.048770577, %v4317_v28  ;;  %v5256_v35 = vmul.f32 0.9048374, %v4317_v28  ;;  %8516 = vtanh.f32 %v9316_v27 }
 0x170   : > { %v636_v36 = vrot.slane %v607_v31, %v9314_v26  ;;  %v9325_v37 = vrot.slane %v599_v32, %v9304_v17  ;;  %v629_v59 = vcombine.high %v607_v31, %v607_v31  ;;  %v614_v31 = vrot.slane %v598_v19, %v9304_v17  ;;  %v9397_v32 = vld [vmem:[%s9190_s13 + $0x50] sm:$0xff] }
 0x171   : > { %v9327_v38 = vadd.f32 %v4319_v34, %v4318_v33  ;;  %v5257_v39 = vadd.f32 %v5256_v35, %v5255_v29  ;;  %v9402_v35 = vld [vmem:[%s9190_s13 + $0x58] sm:$0xff] }
 0x172   : > { %v673_v43 = vmul.f32 %v636_v36, %v9319_v30  ;;  %v640_v44 = vrot.slane %v9325_v37, %v9314_v26  ;;  %v674_v51 = vmul.f32 %v636_v36, %v9333_v41  ;;  %v675_v1 = vmul.f32 %v636_v36, %v9349_v54 }
 0x173   : > { %v5258_v46 = vmul.f32 0.95122945, %v9327_v38  ;;  %v5259_v47 = vmul.f32 0.048770577, %v5257_v39  ;;  %v6196_v48 = vmul.f32 0.9048374, %v5257_v39  ;;  %v644_v9 = vrot.slane %v629_v59, %v9314_v26 }
 0x174   : > { %v705_v49 = vsel %vm319_vm0, %v673_v43, 0.0  ;;  %v677_v50 = vmul.f32 %v640_v44, %v9330_v40  ;;  %v678_v57 = vmul.f32 %v640_v44, %v9339_v45  ;;  %v708_v0 = vsel %vm319_vm0, %v674_v51, 0.0  ;;  %v9408_v43 = vld [vmem:[%s9190_s13 + $0x88] sm:$0xff]  ;;  %v9420_v51 = vld [vmem:[%s9190_s13 + $0x90] sm:$0xff] }
 0x175   : > { %v9346_v52 = vadd.f32 %v5259_v47, %v5258_v46  ;;  %v6197_v53 = vadd.f32 %v6196_v48, %v6195_v42  ;;  %706 = vadd.xlane.f32.xlu0 %v705_v49  ;;  %v679_v8 = vmul.f32 %v640_v44, %v9354_v58  ;;  %v711_v15 = vsel %vm319_vm0, %v675_v1, 0.0  ;;  %13956 = vst [vmem:[#allocation16_spill] sm:$0xff] %v9420_v51  ;;  %v9433_v1 = vld [vmem:[%s9190_s13 + $0x60] sm:$0xff] }
 0x176   : > { %v717_v56 = vsel %vm319_vm0, %v677_v50, 0.0  ;;  %v720_v7 = vsel %vm319_vm0, %v678_v57, 0.0  ;;  %v676_v16 = vmul.f32 %v636_v36, %v9364_v6  ;;  %v682_v24 = vmul.f32 %v644_v9, %v9371_v14 }
 0x177   : > { %v6198_v60 = vmul.f32 0.95122945, %v9346_v52  ;;  %v6199_v62 = vmul.f32 0.048770577, %v6197_v53  ;;  %v7136_v63 = vmul.f32 0.9048374, %v6197_v53  ;;  %718 = vadd.xlane.f32.xlu1 %v717_v56  ;;  %v681_v29 = vmul.f32 %v644_v9, %v9383_v22 }
 0x178   : > { %v723_v23 = vsel %vm319_vm0, %v679_v8, 0.0  ;;  %v714_v28 = vsel %vm319_vm0, %v676_v16, 0.0  ;;  %v732_v33 = vsel %vm319_vm0, %v682_v24, 0.0  ;;  %v680_v34 = vmul.f32 %v640_v44, %v9388_v25  ;;  %v9413_v44 = vld [vmem:[%s9190_s13 + $0x80] sm:$0xff]  ;;  %v570_v56 = vld [vmem:[%s9190_s13 + $0x98] sm:$0xff]  ;;  %v9439_v8 = vld [vmem:[%s9190_s13 + $0x70] sm:$0xff] }
 0x179   : > { %v9361_v4 = vadd.f32 %v6199_v62, %v6198_v60  ;;  %v7137_v5 = vadd.f32 %v7136_v63, %v7135_v55  ;;  %709 = vadd.xlane.f32.xlu0 %v708_v0  ;;  %v729_v36 = vsel %vm319_vm0, %v681_v29, 0.0  ;;  %v683_v39 = vmul.f32 %v644_v9, %v9397_v32 }
 0x17a   : > { %v652_v42 = vrot.slane %v614_v31, %v9314_v26  ;;  %v726_v46 = vsel %vm319_vm0, %v680_v34, 0.0  ;;  %v684_v47 = vmul.f32 %v644_v9, %v9402_v35  ;;  %v631_v50 = vcombine.high %v9325_v37, %v9325_v37  ;;  %v9429_v37 = vld [vmem:[%s9190_s13 + $0x68] sm:$0xff] }
 0x17b   : > { %v7138_v12 = vmul.f32 0.95122945, %v9361_v4  ;;  %v7139_v13 = vmul.f32 0.048770577, %v7137_v5  ;;  %721 = vadd.xlane.f32.xlu1 %v720_v7  ;;  %8346 = vst.msk [vmem:[%s9373_s0 + $0x8] sm:$0xff] %vm319_vm0, %v7137_v5  ;;  %v735_v48 = vsel %vm319_vm0, %v683_v39, 0.0  ;;  %v600_v62 = vcombine.high %v598_v19, %v598_v19 }
 0x17c   : > { %v690_v49 = vmul.f32 %v652_v42, %v9408_v43  ;;  %v738_v53 = vsel %vm319_vm0, %v684_v47, 0.0  ;;  %v689_v55 = vmul.f32 %v652_v42, %v9413_v44  ;;  %v691_v59 = vmul.f32 %v652_v42, %v9420_v51  ;;  %v9460_v39 = vld [vmem:[%s9190_s13 + $0xb0] sm:$0xff] }
 0x17d   : > { %v9380_v20 = vadd.f32 %v7139_v13, %v7138_v12  ;;  %712 = vadd.xlane.f32.xlu0 %v711_v15  ;;  %v648_v60 = vrot.slane %v631_v50, %v9314_v26  ;;  %v692_v0 = vmul.f32 %v652_v42, %v570_v56  ;;  %v628_v7 = vrot.slane %v600_v62, %v9304_v17  ;;  %v9444_v13 = vld [vmem:[%s9190_s13 + $0x78] sm:$0xff]  ;;  %v576_v50 = vld [vmem:[%s9190_s13 + $0xc8] sm:$0xff] }
 0x17e   : > { %v756_v57 = vsel %vm319_vm0, %v690_v49, 0.0  ;;  %v753_v63 = vsel %vm319_vm0, %v689_v55, 0.0  ;;  %v759_v2 = vsel %vm319_vm0, %v691_v59, 0.0  ;;  %13957 = vst [vmem:[#allocation17_spill] sm:$0xff] %v9444_v13  ;;  %v630_v29 = vcombine.high %v614_v31, %v614_v31  ;;  %13960 = vst [vmem:[#allocation20_spill] sm:$0xff] %v9460_v39  ;;  %v575_v31 = vld [vmem:[%s9190_s13 + $0xc0] sm:$0xff] }
 0x17f   : > { %724 = vadd.xlane.f32.xlu1 %v723_v23  ;;  %8074 = vst.msk [vmem:[%s9373_s0] sm:$0xff] %vm319_vm0, %v9380_v20  ;;  %v686_v5 = vmul.f32 %v648_v60, %v9429_v37  ;;  %v762_v9 = vsel %vm319_vm0, %v692_v0, 0.0  ;;  %v685_v12 = vmul.f32 %v648_v60, %v9433_v1  ;;  %v687_v16 = vmul.f32 %v648_v60, %v9439_v8  ;;  %v9450_v23 = vld [vmem:[%s9190_s13 + $0xa8] sm:$0xff]  ;;  %v574_v56 = vld [vmem:[%s9190_s13 + $0xb8] sm:$0xff] }
 0x180   : > { %v656_v19 = vrot.slane %v628_v7, %v9314_v26  ;;  %13958 = vst [vmem:[#allocation18_spill] sm:$0xff] %v9450_v23  ;;  %v660_v47 = vrot.slane %v630_v29, %v9314_v26  ;;  %v578_v0 = vld [vmem:[%s9190_s13 + $0xd8] sm:$0xff]  ;;  %8518 = vtanh.f32 %v9327_v38 }
 0x181   : > { %715 = vadd.xlane.f32.xlu0 %v714_v28  ;;  %v744_v15 = vsel %vm319_vm0, %v686_v5, 0.0  ;;  %v741_v24 = vsel %vm319_vm0, %v685_v12, 0.0  ;;  %v688_v28 = vmul.f32 %v648_v60, %v9444_v13  ;;  %v747_v34 = vsel %vm319_vm0, %v687_v16, 0.0  ;;  %v9479_v12 = vpop.eup %8512 }
 0x182   : > { %v695_v49 = vmul.f32 %v656_v19, %v9460_v39  ;;  %v697_v55 = vmul.f32 %v660_v47, %v575_v31  ;;  %v698_v59 = vmul.f32 %v660_v47, %v576_v50  ;;  %v632_v60 = vcombine.high %v628_v7, %v628_v7  ;;  %v580_v7 = vld [vmem:[%s9190_s13 + $0xe8] sm:$0xff]  ;;  %v9497_v50 = vpop.eup %8514 }
 0x183   : > { %733 = vadd.xlane.f32.xlu1 %v732_v33  ;;  %v9455_v33 = vld [vmem:[%s9190_s13 + $0xa0] sm:$0xff]  ;;  %v750_v42 = vsel %vm319_vm0, %v688_v28, 0.0  ;;  %v699_v5 = vmul.f32 %v660_v47, %v577_v11  ;;  %v700_v16 = vmul.f32 %v660_v47, %v578_v0  ;;  %v1984_v29 = vmul.f32 0.048770577, %v9479_v12  ;;  %v582_v47 = vld [vmem:[%s9190_s13 + $0xf8] sm:$0xff]  ;;  %13962 = vst [vmem:[#allocation22_spill] sm:$0xff] %v9497_v50  ;;  %v9507_v11 = vpop.eup %8516 }
 0x184   : > { %13959 = vst [vmem:[#allocation19_spill] sm:$0xff] %v9455_v33  ;;  %v777_v62 = vsel %vm319_vm0, %v697_v55, 0.0  ;;  %v2924_v27 = vmul.f32 0.048770577, %v9497_v50  ;;  %13964 = vst [vmem:[#allocation24_spill] sm:$0xff] %v9507_v11  ;;  %8520 = vtanh.f32 %v9346_v52 }
 0x185   : > { %730 = vadd.xlane.f32.xlu0 %v729_v36  ;;  %v694_v36 = vmul.f32 %v656_v19, %v9450_v23  ;;  %8522 = vtanh.f32 %v9361_v4 }
 0x186   : > { %8524 = vtanh.f32 %v9380_v20 }
 0x187   : > { %727 = vadd.xlane.f32.xlu1 %v726_v46  ;;  %v693_v46 = vmul.f32 %v656_v19, %v9455_v33 }
 0x189   : > { %736 = vadd.xlane.f32.xlu0 %v735_v48  ;;  %v768_v48 = vsel %vm319_vm0, %v694_v36, 0.0  ;;  %v786_v36 = vsel %vm319_vm0, %v700_v16, 0.0 }
 0x18b   : > { %739 = vadd.xlane.f32.xlu1 %v738_v53  ;;  %v765_v53 = vsel %vm319_vm0, %v693_v46, 0.0 }
 0x18d   : > { %757 = vadd.xlane.f32.xlu0 %v756_v57  ;;  %v771_v57 = vsel %vm319_vm0, %v695_v49, 0.0 }
 0x18f   : > { %754 = vadd.xlane.f32.xlu1 %v753_v63  ;;  %v696_v63 = vmul.f32 %v656_v19, %v574_v56  ;;  %v9484_v19 = vmul.f32 0.048770577, %v9308_v21 }
 0x191   : > { %760 = vadd.xlane.f32.xlu0 %v759_v2  ;;  %v780_v2 = vsel %vm319_vm0, %v698_v59, 0.0  ;;  %v1983_v46 = vmul.f32 0.95122945, %v9484_v19 }
 0x193   : > { %763 = vadd.xlane.f32.xlu1 %v762_v9  ;;  %v664_v9 = vrot.slane %v632_v60, %v9314_v26  ;;  %v9495_v49 = vadd.f32 %v1984_v29, %v1983_v46 }
 0x195   : > { %745 = vadd.xlane.f32.xlu0 %v744_v15  ;;  %v774_v15 = vsel %vm319_vm0, %v696_v63, 0.0  ;;  %v702_v28 = vmul.f32 %v664_v9, %v580_v7  ;;  %13961 = vst [vmem:[#allocation21_spill] sm:$0xff] %v9495_v49  ;;  %v704_v55 = vmul.f32 %v664_v9, %v582_v47  ;;  %v3864_v63 = vmul.f32 0.048770577, %v9507_v11 }
 0x197   : > { %742 = vadd.xlane.f32.xlu1 %v741_v24  ;;  %v783_v24 = vsel %vm319_vm0, %v699_v5, 0.0  ;;  %v792_v31 = vsel %vm319_vm0, %v702_v28, 0.0  ;;  %v798_v59 = vsel %vm319_vm0, %v704_v55, 0.0 }
 0x199   : > { %748 = vadd.xlane.f32.xlu0 %v747_v34  ;;  %v581_v34 = vld [vmem:[%s9190_s13 + $0xf0] sm:$0xff] }
 0x19b   : > { %751 = vadd.xlane.f32.xlu1 %v750_v42  ;;  %v701_v42 = vmul.f32 %v664_v9, %v579_v18 }
 0x19d   : > { %769 = vadd.xlane.f32.xlu0 %v768_v48  ;;  %v703_v48 = vmul.f32 %v664_v9, %v581_v34 }
 0x19f   : > { %766 = vadd.xlane.f32.xlu1 %v765_v53  ;;  %v789_v53 = vsel %vm319_vm0, %v701_v42, 0.0  ;;  %v795_v56 = vsel %vm319_vm0, %v703_v48, 0.0 }
 0x1a1   : > { %772 = vadd.xlane.f32.xlu0 %v771_v57  ;;  %v2923_v57 = vmul.f32 0.95122945, %v9495_v49 }
 0x1a3   : > { %778 = vadd.xlane.f32.xlu1 %v777_v62  ;;  %v9505_v60 = vadd.f32 %v2924_v27, %v2923_v57 }
 0x1a5   : > { %781 = vadd.xlane.f32.xlu0 %v780_v2  ;;  %13963 = vst [vmem:[#allocation23_spill] sm:$0xff] %v9505_v60  ;;  %v3863_v62 = vmul.f32 0.95122945, %v9505_v60  ;;  %v9514_v2 = vpop.eup %8518 }
 0x1a6   : > { %13966 = vst [vmem:[#allocation26_spill] sm:$0xff] %v9514_v2  ;;  %v4804_v9 = vmul.f32 0.048770577, %v9514_v2  ;;  %v9521_v7 = vpop.eup %8520 }
 0x1a7   : > { %775 = vadd.xlane.f32.xlu1 %v774_v15  ;;  %v9512_v0 = vadd.f32 %v3864_v63, %v3863_v62  ;;  %13968 = vst [vmem:[#allocation28_spill] sm:$0xff] %v9521_v7  ;;  %v5744_v16 = vmul.f32 0.048770577, %v9521_v7  ;;  %v9528_v18 = vpop.eup %8522 }
 0x1a8   : > { %13970 = vst [vmem:[#allocation30_spill] sm:$0xff] %v9528_v18  ;;  %v6684_v28 = vmul.f32 0.048770577, %v9528_v18  ;;  %v9532_v29 = vpop.eup %8524 }
 0x1a9   : > { %784 = vadd.xlane.f32.xlu0 %v783_v24  ;;  %13965 = vst [vmem:[#allocation25_spill] sm:$0xff] %v9512_v0  ;;  %v4803_v5 = vmul.f32 0.95122945, %v9512_v0  ;;  %13971 = vst [vmem:[#allocation31_spill] sm:$0xff] %v9532_v29  ;;  %v7624_v34 = vmul.f32 0.048770577, %v9532_v29 }
 0x1ab   : > { %787 = vadd.xlane.f32.xlu1 %v786_v36  ;;  %v9519_v38 = vadd.f32 %v4804_v9, %v4803_v5 }
 0x1ad   : > { %793 = vadd.xlane.f32.xlu0 %v792_v31  ;;  %13967 = vst [vmem:[#allocation27_spill] sm:$0xff] %v9519_v38  ;;  %v5743_v15 = vmul.f32 0.95122945, %v9519_v38 }
 0x1af   : > { %790 = vadd.xlane.f32.xlu1 %v789_v53  ;;  %v9526_v52 = vadd.f32 %v5744_v16, %v5743_v15  ;;  %v866_v16 = vand.u32 127, %v588_v3 }
 0x1b1   : > { %796 = vadd.xlane.f32.xlu0 %v795_v56  ;;  %13969 = vst [vmem:[#allocation29_spill] sm:$0xff] %v9526_v52  ;;  %v6683_v24 = vmul.f32 0.95122945, %v9526_v52 }
 0x1b3   : > { %799 = vadd.xlane.f32.xlu1 %v798_v59  ;;  %v9534_v4 = vadd.f32 %v6684_v28, %v6683_v24 }
 0x1b5   : > { %13972 = vst [vmem:[#allocation32_spill] sm:$0xff] %v9534_v4  ;;  %v7623_v36 = vmul.f32 0.95122945, %v9534_v4  ;;  %v886_v4 = vadd.s32 4294967240, %v866_v16 }
 0x1b7   : > { %v9538_v42 = vadd.f32 %v7624_v34, %v7623_v36  ;;  %v867_v34 = vadd.s32 4294967264, %v866_v16  ;;  %v872_v36 = vadd.s32 4294967256, %v866_v16 }
 0x1b9   : > { %13973 = vst [vmem:[#allocation33_spill] sm:$0xff] %v9538_v42  ;;  %8349 = vst.msk [vmem:[%s9373_s0 + $0x20] sm:$0xff] %vm319_vm0, %v9538_v42  ;;  %v879_v42 = vadd.s32 4294967248, %v866_v16  ;;  %v9549_v52 = vsub.s32 %v867_v34, %v9298_v10  ;;  %v9552_v7 = vsub.s32 %v872_v36, %v9298_v10  ;;  %v9558_v16 = vsub.s32 %v886_v4, %v9298_v10 }
 0x1bb   : > { %v9555_v11 = vsub.s32 %v879_v42, %v9298_v10 }
 0x202   : > { %v707_v20 = vpop.xlane.xlu0 %706 }
 0x203   : > { %v801_v0 = vmul.f32 0.2, %v707_v20 }
 0x204   : > { %v719_v46 = vpop.xlane.xlu1 %718 }
 0x205   : > { %v805_v49 = vmul.f32 0.2, %v719_v46  ;;  %v871_v42 = vrot.slane %v801_v0, %v9549_v52 }
 0x206   : > { %v710_v47 = vpop.xlane.xlu0 %709 }
 0x207   : > { %v802_v38 = vmul.f32 0.2, %v710_v47  ;;  %v896_v4 = vrot.slane %v805_v49, %v9549_v52 }
 0x208   : > { %v722_v31 = vpop.xlane.xlu1 %721 }
 0x209   : > { %v806_v2 = vmul.f32 0.2, %v722_v31  ;;  %v876_v47 = vrot.slane %v802_v38, %v9552_v7 }
 0x20a   : > { %v713_v48 = vpop.xlane.xlu0 %712 }
 0x20b   : > { %v803_v3 = vmul.f32 0.2, %v713_v48  ;;  %v900_v20 = vrot.slane %v806_v2, %v9552_v7 }
 0x20c   : > { %v725_v53 = vpop.xlane.xlu1 %724 }
 0x20d   : > { %v807_v60 = vmul.f32 0.2, %v725_v53  ;;  %v883_v48 = vrot.slane %v803_v3, %v9555_v11  ;;  %v901_v36 = vsel %vm877_vm3, %v900_v20, %v896_v4 }
 0x20e   : > { %v716_v55 = vpop.xlane.xlu0 %715 }
 0x20f   : > { %v804_v34 = vmul.f32 0.2, %v716_v55  ;;  %v905_v46 = vrot.slane %v807_v60, %v9555_v11 }
 0x210   : > { %v734_v56 = vpop.xlane.xlu1 %733 }
 0x211   : > { %v810_v31 = vmul.f32 0.2, %v734_v56  ;;  %v890_v38 = vrot.slane %v804_v34, %v9558_v16 }
 0x212   : > { %v731_v57 = vpop.xlane.xlu0 %730 }
 0x213   : > { %v809_v39 = vmul.f32 0.2, %v731_v57  ;;  %v919_v60 = vrot.slane %v810_v31, %v9552_v7 }
 0x214   : > { %v728_v27 = vpop.xlane.xlu1 %727 }
 0x215   : > { %v808_v33 = vmul.f32 0.2, %v728_v27  ;;  %v915_v55 = vrot.slane %v809_v39, %v9549_v52  ;;  %v906_v39 = vsel %vm884_vm4, %v905_v46, %v901_v36 }
 0x216   : > { %v737_v59 = vpop.xlane.xlu0 %736 }
 0x217   : > { %v811_v23 = vmul.f32 0.2, %v737_v59  ;;  %v910_v57 = vrot.slane %v808_v33, %v9558_v16  ;;  %v878_v59 = vsel %vm877_vm3, %v876_v47, %v871_v42  ;;  %v920_v34 = vsel %vm877_vm3, %v919_v60, %v915_v55 }
 0x218   : > { %v740_v62 = vpop.xlane.xlu1 %739  ;;  %v885_v49 = vsel %vm884_vm4, %v883_v48, %v878_v59 }
 0x219   : > { %v924_v2 = vrot.slane %v811_v23, %v9555_v11  ;;  %v812_v56 = vmul.f32 0.2, %v740_v62  ;;  %v911_v23 = vsel %vm891_vm5, %v910_v57, %v906_v39  ;;  %v892_v47 = vsel %vm891_vm5, %v890_v38, %v885_v49 }
 0x21a   : > { %v9543_v63 = vpop.xlane.xlu0 %757  ;;  %v1027_v55 = vsel %vm1026_vm6, %v911_v23, %v892_v47 }
 0x21b   : > { %v925_v20 = vsel %vm884_vm4, %v924_v2, %v920_v34  ;;  %v818_v31 = vmul.f32 0.2, %v9543_v63 }
 0x21c   : > { %v755_v5 = vpop.xlane.xlu1 %754 }
 0x21d   : > { %v817_v62 = vmul.f32 0.2, %v755_v5 }
 0x21e   : > { %v761_v9 = vpop.xlane.xlu0 %760 }
 0x21f   : > { %v819_v48 = vmul.f32 0.2, %v761_v9  ;;  %v953_v38 = vrot.slane %v817_v62, %v9549_v52  ;;  %v957_v9 = vrot.slane %v818_v31, %v9552_v7 }
 0x220   : > { %v9545_v15 = vpop.xlane.xlu1 %763 }
 0x221   : > { %v962_v60 = vrot.slane %v819_v48, %v9555_v11  ;;  %v958_v23 = vsel %vm877_vm3, %v957_v9, %v953_v38 }
 0x222   : > { %v746_v24 = vpop.xlane.xlu0 %745 }
 0x223   : > { %v814_v3 = vmul.f32 0.2, %v746_v24  ;;  %v929_v24 = vrot.slane %v812_v56, %v9558_v16 }
 0x224   : > { %v743_v28 = vpop.xlane.xlu1 %742 }
 0x225   : > { %v813_v27 = vmul.f32 0.2, %v743_v28  ;;  %v930_v63 = vsel %vm891_vm5, %v929_v24, %v925_v20 }
 0x226   : > { %v749_v29 = vpop.xlane.xlu0 %748  ;;  %v1029_v47 = vsel %vm1028_vm7, %v930_v63, %v1027_v55 }
 0x227   : > { %v815_v33 = vmul.f32 0.2, %v749_v29  ;;  %v934_v51 = vrot.slane %v813_v27, %v9549_v52  ;;  %v938_v29 = vrot.slane %v814_v3, %v9552_v7 }
 0x228   : > { %v752_v18 = vpop.xlane.xlu1 %751 }
 0x229   : > { %v816_v46 = vmul.f32 0.2, %v752_v18  ;;  %v943_v5 = vrot.slane %v815_v33, %v9555_v11  ;;  %v939_v2 = vsel %vm877_vm3, %v938_v29, %v934_v51  ;;  %v820_v33 = vmul.f32 0.2, %v9545_v15 }
 0x22a   : > { %v770_v50 = vpop.xlane.xlu0 %769 }
 0x22b   : > { %v822_v56 = vmul.f32 0.2, %v770_v50  ;;  %v948_v3 = vrot.slane %v816_v46, %v9558_v16  ;;  %v944_v51 = vsel %vm884_vm4, %v943_v5, %v939_v2  ;;  %v963_v46 = vsel %vm884_vm4, %v962_v60, %v958_v23 }
 0x22c   : > { %v767_v13 = vpop.xlane.xlu1 %766 }
 0x22d   : > { %v821_v4 = vmul.f32 0.2, %v767_v13  ;;  %v949_v31 = vsel %vm891_vm5, %v948_v3, %v944_v51 }
 0x22e   : > { %v773_v53 = vpop.xlane.xlu0 %772 }
 0x22f   : > { %v823_v36 = vmul.f32 0.2, %v773_v53  ;;  %v972_v49 = vrot.slane %v821_v4, %v9549_v52  ;;  %v976_v53 = vrot.slane %v822_v56, %v9552_v7  ;;  %v967_v4 = vrot.slane %v820_v33, %v9558_v16 }
 0x230   : > { %v779_v0 = vpop.xlane.xlu1 %778 }
 0x231   : > { %v825_v18 = vmul.f32 0.2, %v779_v0  ;;  %v981_v20 = vrot.slane %v823_v36, %v9555_v11  ;;  %v968_v3 = vsel %vm891_vm5, %v967_v4, %v963_v46  ;;  %v9665_v4 = vsub.s32 5, %v9298_v10 }
 0x232   : > { %v782_v28 = vpop.xlane.xlu0 %781 }
 0x233   : > { %v826_v57 = vmul.f32 0.2, %v782_v28  ;;  %v991_v15 = vrot.slane %v825_v18, %v9549_v52 }
 0x234   : > { %v776_v42 = vpop.xlane.xlu1 %775 }
 0x235   : > { %v824_v39 = vmul.f32 0.2, %v776_v42  ;;  %v995_v50 = vrot.slane %v826_v57, %v9552_v7  ;;  %v977_v42 = vsel %vm877_vm3, %v976_v53, %v972_v49 }
 0x236   : > { %v785_v27 = vpop.xlane.xlu0 %784  ;;  %v982_v63 = vsel %vm884_vm4, %v981_v20, %v977_v42  ;;  %v9655_v42 = vsub.s32 3, %v9298_v10 }
 0x237   : > { %v827_v59 = vmul.f32 0.2, %v785_v27  ;;  %v986_v48 = vrot.slane %v824_v39, %v9558_v16  ;;  %v996_v5 = vsel %vm877_vm3, %v995_v50, %v991_v15  ;;  %v9645_v15 = vsub.s32 1, %v9298_v10 }
 0x238   : > { %v788_v13 = vpop.xlane.xlu1 %787 }
 0x239   : > { %v828_v28 = vmul.f32 0.2, %v788_v13  ;;  %v1000_v0 = vrot.slane %v827_v59, %v9555_v11  ;;  %v1031_v59 = vsel %vm1030_vm8, %v949_v31, %v1029_v47  ;;  %v987_v36 = vsel %vm891_vm5, %v986_v48, %v982_v63 }
 0x23a   : > { %v794_v34 = vpop.xlane.xlu0 %793  ;;  %v1033_v39 = vsel %vm1032_vm9, %v968_v3, %v1031_v59  ;;  %v9650_v31 = vsub.s32 2, %v9298_v10 }
 0x23b   : > { %v830_v62 = vmul.f32 0.2, %v794_v34  ;;  %v1005_v55 = vrot.slane %v828_v28, %v9558_v16  ;;  %v1001_v27 = vsel %vm884_vm4, %v1000_v0, %v996_v5  ;;  %v1035_v50 = vsel %vm1034_vm10, %v987_v36, %v1033_v39 }
 0x23c   : > { %v791_v24 = vpop.xlane.xlu1 %790 }
 0x23d   : > { %v829_v29 = vmul.f32 0.2, %v791_v24  ;;  %v1014_v38 = vrot.slane %v830_v62, %v9552_v7  ;;  %v1006_v49 = vsel %vm891_vm5, %v1005_v55, %v1001_v27  ;;  %v9670_v55 = vsub.s32 6, %v9298_v10 }
 0x23e   : > { %v797_v57 = vpop.xlane.xlu0 %796  ;;  %v1037_v28 = vsel %vm1036_vm11, %v1006_v49, %v1035_v50  ;;  %v9675_v27 = vsub.s32 7, %v9298_v10 }
 0x23f   : > { %v1010_v2 = vrot.slane %v829_v29, %v9549_v52  ;;  %v831_v56 = vmul.f32 0.2, %v797_v57  ;;  %v9660_v29 = vsub.s32 4, %v9298_v10 }
 0x240   : > { %v800_v9 = vpop.xlane.xlu1 %799 }
 0x241   : > { %v1015_v18 = vsel %vm877_vm3, %v1014_v38, %v1010_v2  ;;  %v1019_v13 = vrot.slane %v831_v56, %v9555_v11  ;;  %v832_v60 = vmul.f32 0.2, %v800_v9  ;;  %v1250_v2 = vrot.slane %v9484_v19, %v9304_v17 }
 0x243   : > { %v1020_v33 = vsel %vm884_vm4, %v1019_v13, %v1015_v18  ;;  %v1024_v51 = vrot.slane %v832_v60, %v9558_v16  ;;  %v1266_v56 = vrot.slane %v1250_v2, %v9304_v17  ;;  %v1258_v59 = vcombine.high %v1250_v2, %v1250_v2 }
 0x244   : > { %v1542_v60 = vrot.slane %v9479_v12, %v9304_v17 }
 0x245   : > { %v1025_v34 = vsel %vm891_vm5, %v1024_v51, %v1020_v33  ;;  %v9683_v9 = vrot.slane %v1266_v56, %v9314_v26  ;;  %v1280_v13 = vrot.slane %v1258_v59, %v9304_v17  ;;  %v1243_v59 = vcombine.high %v9484_v19, %v9484_v19 }
 0x246   : > { %v1039_v23 = vsel %vm1038_vm12, %v1025_v34, %v1037_v28  ;;  %v1288_v28 = vcombine.high %v1266_v56, %v1266_v56  ;;  %v1535_v19 = vcombine.high %v9479_v12, %v9479_v12 }
 0x247   : > { %v9626_v53 = vadd.f32 %v1039_v23, %v9293_v61 }
 0x249   : > { %v9629_v0 = vmul.f32 0.048770577, %v9626_v53 }
 0x24b   : > { %8526 = vtanh.f32 %v9629_v0 }
 0x255   : > { %v8527_v62 = vpop.eup %8526 }
 0x256   : > { %v9632_v47 = vmul.f32 0.048770577, %v8527_v62  ;;  %v1492_v20 = vsel %vm319_vm0, %v9308_v21, %v8527_v62  ;;  %v9693_v62 = vrot.slane %v1280_v13, %v9314_v26 }
 0x257   : > { %1493 = vst.msk [vmem:[%s9638_s26] sm:$0xff] %vm473_vm2, %v1492_v20 }
 0x258   : > { %v1053_v61 = vrot.slane %v9632_v47, %v9314_v26  ;;  %v1073_v24 = vrot.slane %v9632_v47, %v9645_v15  ;;  %v1093_v21 = vrot.slane %v9632_v47, %v9650_v31  ;;  %v1113_v48 = vrot.slane %v9632_v47, %v9655_v42 }
 0x259   : > { %v1133_v46 = vrot.slane %v9632_v47, %v9660_v29  ;;  %v1153_v5 = vrot.slane %v9632_v47, %v9665_v4  ;;  %v1173_v57 = vrot.slane %v9632_v47, %v9670_v55  ;;  %v1193_v38 = vrot.slane %v9632_v47, %v9675_v27 }
 0x25a   : > { %1060 = vbcast.lane.b32.xlu1 %v1053_v61, 296  ;;  %1056 = vbcast.lane.b32.xlu0 %v1053_v61, 288 }
 0x25e   : > { %1076 = vbcast.lane.b32.xlu1 %v1073_v24, 288  ;;  %1064 = vbcast.lane.b32.xlu0 %v1053_v61, 304 }
 0x262   : > { %1080 = vbcast.lane.b32.xlu1 %v1073_v24, 296  ;;  %1096 = vbcast.lane.b32.xlu0 %v1093_v21, 288 }
 0x266   : > { %1084 = vbcast.lane.b32.xlu1 %v1073_v24, 304  ;;  %1068 = vbcast.lane.b32.xlu0 %v1053_v61, 312 }
 0x26a   : > { %1100 = vbcast.lane.b32.xlu1 %v1093_v21, 296  ;;  %1104 = vbcast.lane.b32.xlu0 %v1093_v21, 304 }
 0x26e   : > { %1088 = vbcast.lane.b32.xlu1 %v1073_v24, 312  ;;  %1120 = vbcast.lane.b32.xlu0 %v1113_v48, 296  ;;  %v1550_v24 = vcombine.high %v1542_v60, %v1542_v60 }
 0x272   : > { %1116 = vbcast.lane.b32.xlu1 %v1113_v48, 288  ;;  %1124 = vbcast.lane.b32.xlu0 %v1113_v48, 304 }
 0x276   : > { %1108 = vbcast.lane.b32.xlu1 %v1093_v21, 312  ;;  %1140 = vbcast.lane.b32.xlu0 %v1133_v46, 296 }
 0x27a   : > { %1136 = vbcast.lane.b32.xlu1 %v1133_v46, 288  ;;  %1144 = vbcast.lane.b32.xlu0 %v1133_v46, 304 }
 0x27e   : > { %1128 = vbcast.lane.b32.xlu1 %v1113_v48, 312  ;;  %1160 = vbcast.lane.b32.xlu0 %v1153_v5, 296 }
 0x282   : > { %1156 = vbcast.lane.b32.xlu1 %v1153_v5, 288  ;;  %1164 = vbcast.lane.b32.xlu0 %v1153_v5, 304 }
 0x286   : > { %1148 = vbcast.lane.b32.xlu1 %v1133_v46, 312  ;;  %1180 = vbcast.lane.b32.xlu0 %v1173_v57, 296 }
 0x28a   : > { %1176 = vbcast.lane.b32.xlu1 %v1173_v57, 288  ;;  %1184 = vbcast.lane.b32.xlu0 %v1173_v57, 304 }
 0x28e   : > { %1168 = vbcast.lane.b32.xlu1 %v1153_v5, 312  ;;  %1200 = vbcast.lane.b32.xlu0 %v1193_v38, 296 }
 0x292   : > { %1196 = vbcast.lane.b32.xlu1 %v1193_v38, 288  ;;  %1204 = vbcast.lane.b32.xlu0 %v1193_v38, 304 }
 0x296   : > { %1188 = vbcast.lane.b32.xlu1 %v1173_v57, 312 }
 0x29a   : > { %1208 = vbcast.lane.b32.xlu1 %v1193_v38, 312 }
 0x2cc   : > { %v1061_v63 = vpop.permute.xlu1 %1060  ;;  %v1057_v10 = vpop.permute.xlu0 %1056 }
 0x2cd   : > { %v1293_v36 = vmul.f32 %v1061_v63, %v9333_v41  ;;  %v1292_v18 = vmul.f32 %v1057_v10, %v9319_v30  ;;  %v1211_v3 = vmul.f32 0.05, %v1061_v63  ;;  %v1210_v39 = vmul.f32 0.05, %v1057_v10 }
 0x2ce   : > { %v1558_v10 = vrot.slane %v1542_v60, %v9304_v17 }
 0x2cf   : > { %v1365_v49 = vsub.f32 %v9683_v9, %v1293_v36  ;;  %v1364_v33 = vsub.f32 %v9683_v9, %v1292_v18 }
 0x2d0   : > { %v1077_v51 = vpop.permute.xlu1 %1076  ;;  %v1065_v50 = vpop.permute.xlu0 %1064 }
 0x2d1   : > { %v1397_v34 = vmul.f32 %v1365_v49, %v1211_v3  ;;  %v1396_v23 = vmul.f32 %v1364_v33, %v1210_v39  ;;  %v1296_v20 = vmul.f32 %v1077_v51, %v9330_v40  ;;  %v1294_v61 = vmul.f32 %v1065_v50, %v9349_v54 }
 0x2d2   : > { %v1214_v46 = vmul.f32 0.05, %v1077_v51  ;;  %v1212_v57 = vmul.f32 0.05, %v1065_v50  ;;  %v1290_v3 = vcombine.high %v1280_v13, %v1280_v13  ;;  %v9718_v51 = vrot.slane %v1550_v24, %v9304_v17 }
 0x2d3   : > { %v1429_v21 = vadd.f32 %v1397_v34, %v9333_v41  ;;  %v1428_v48 = vadd.f32 %v1396_v23, %v9319_v30  ;;  %v1368_v5 = vsub.f32 %v9693_v62, %v1296_v20  ;;  %v1366_v38 = vsub.f32 %v9683_v9, %v1294_v61 }
 0x2d4   : > { %v1081_v2 = vpop.permute.xlu1 %1080  ;;  %v1097_v56 = vpop.permute.xlu0 %1096  ;;  %v9709_v30 = vrot.slane %v1288_v28, %v9314_v26  ;;  %v9723_v13 = vrot.slane %v1243_v59, %v9304_v17  ;;  %v9729_v61 = vrot.slane %v1558_v10, %v9314_v26  ;;  %v1580_v24 = vcombine.high %v1558_v10, %v1558_v10 }
 0x2d5   : > { %1461 = vst.msk [vmem:[%s9190_s13 + $0x8] sm:$0xff] %vm319_vm0, %v1429_v21  ;;  %1460 = vst.msk [vmem:[%s9190_s13] sm:$0xff] %vm319_vm0, %v1428_v48  ;;  %v1400_v63 = vmul.f32 %v1368_v5, %v1214_v46  ;;  %v1297_v41 = vmul.f32 %v1081_v2, %v9339_v45  ;;  %v1398_v36 = vmul.f32 %v1366_v38, %v1212_v57  ;;  %v1215_v39 = vmul.f32 0.05, %v1081_v2 }
 0x2d6   : > { %v1300_v18 = vmul.f32 %v1097_v56, %v9383_v22  ;;  %v1218_v28 = vmul.f32 0.05, %v1097_v56  ;;  %v9735_v48 = vrot.slane %v1290_v3, %v9314_v26  ;;  %v9738_v46 = vrot.slane %v1535_v19, %v9304_v17 }
 0x2d7   : > { %v1432_v49 = vadd.f32 %v1400_v63, %v9330_v40  ;;  %v1369_v33 = vsub.f32 %v9693_v62, %v1297_v41  ;;  %v1430_v50 = vadd.f32 %v1398_v36, %v9349_v54  ;;  %v9744_v2 = vrot.slane %v9718_v51, %v9314_v26 }
 0x2d8   : > { %v1372_v60 = vsub.f32 %v9709_v30, %v1300_v18  ;;  %v1085_v34 = vpop.permute.xlu1 %1084  ;;  %v1069_v23 = vpop.permute.xlu0 %1068 }
 0x2d9   : > { %1464 = vst.msk [vmem:[%s9190_s13 + $0x20] sm:$0xff] %vm319_vm0, %v1432_v49  ;;  %v1401_v20 = vmul.f32 %v1369_v33, %v1215_v39  ;;  %v1298_v40 = vmul.f32 %v1085_v34, %v9354_v58  ;;  %1462 = vst.msk [vmem:[%s9190_s13 + $0x10] sm:$0xff] %vm319_vm0, %v1430_v50  ;;  %v1295_v21 = vmul.f32 %v1069_v23, %v9364_v6  ;;  %v1216_v57 = vmul.f32 0.05, %v1085_v34 }
 0x2da   : > { %v1404_v54 = vmul.f32 %v1372_v60, %v1218_v28  ;;  %v1213_v59 = vmul.f32 0.05, %v1069_v23 }
 0x2db   : > { %v1433_v5 = vadd.f32 %v1401_v20, %v9339_v45  ;;  %v1370_v38 = vsub.f32 %v9693_v62, %v1298_v40  ;;  %v1367_v63 = vsub.f32 %v9683_v9, %v1295_v21  ;;  %v9756_v45 = vrot.slane %v9723_v13, %v9304_v17 }
 0x2dc   : > { %v1436_v56 = vadd.f32 %v1404_v54, %v9383_v22  ;;  %v1101_v41 = vpop.permute.xlu1 %1100  ;;  %v1105_v10 = vpop.permute.xlu0 %1104  ;;  %v9749_v36 = vld [vmem:[%s9190_s13 + $0x8] sm:$0xff]  ;;  %v9752_v18 = vld [vmem:[%s9190_s13] sm:$0xff]  ;;  %v9762_v22 = vrot.slane %v1580_v24, %v9314_v26  ;;  %v1259_v9 = vcombine.high %v9723_v13, %v9723_v13 }
 0x2dd   : > { %1465 = vst.msk [vmem:[%s9190_s13 + $0x28] sm:$0xff] %vm319_vm0, %v1433_v5  ;;  %v1402_v3 = vmul.f32 %v1370_v38, %v1216_v57  ;;  %v1301_v19 = vmul.f32 %v1101_v41, %v9371_v14  ;;  %v1399_v49 = vmul.f32 %v1367_v63, %v1213_v59  ;;  %v1302_v39 = vmul.f32 %v1105_v10, %v9397_v32 }
 0x2de   : > { %1468 = vst.msk [vmem:[%s9190_s13 + $0x40] sm:$0xff] %vm319_vm0, %v1436_v56  ;;  %v1625_v33 = vmul.f32 %v9729_v61, %v9749_v36  ;;  %v1624_v50 = vmul.f32 %v9729_v61, %v9752_v18  ;;  %v1219_v60 = vmul.f32 0.05, %v1101_v41  ;;  %v1220_v23 = vmul.f32 0.05, %v1105_v10 }
 0x2df   : > { %v1434_v28 = vadd.f32 %v1402_v3, %v9354_v58  ;;  %v1373_v34 = vsub.f32 %v9709_v30, %v1301_v19  ;;  %v1431_v13 = vadd.f32 %v1399_v49, %v9364_v6  ;;  %v1374_v20 = vsub.f32 %v9709_v30, %v1302_v39 }
 0x2e0   : > { %v1659_v40 = vsel %vm319_vm0, %v1625_v33, 0.0  ;;  %v1089_v24 = vpop.permute.xlu1 %1088  ;;  %v1656_v54 = vsel %vm319_vm0, %v1624_v50, 0.0  ;;  %v1121_v21 = vpop.permute.xlu0 %1120  ;;  %v9780_v5 = vld [vmem:[%s9190_s13 + $0x20] sm:$0xff]  ;;  %v1582_v6 = vcombine.high %v9718_v51, %v9718_v51  ;;  %v9794_v63 = vrot.slane %v9738_v46, %v9304_v17 }
 0x2e1   : > { %1466 = vst.msk [vmem:[%s9190_s13 + $0x30] sm:$0xff] %vm319_vm0, %v1434_v28  ;;  %v1405_v58 = vmul.f32 %v1373_v34, %v1219_v60  ;;  %1660 = vadd.xlane.f32.xlu1 %v1659_v40  ;;  %v1299_v57 = vmul.f32 %v1089_v24, %v9388_v25  ;;  %1657 = vadd.xlane.f32.xlu0 %v1656_v54  ;;  %1463 = vst.msk [vmem:[%s9190_s13 + $0x18] sm:$0xff] %vm319_vm0, %v1431_v13  ;;  %v1217_v10 = vmul.f32 0.05, %v1089_v24 }
 0x2e2   : > { %v1406_v38 = vmul.f32 %v1374_v20, %v1220_v23  ;;  %v1305_v56 = vmul.f32 %v1121_v21, %v9429_v37  ;;  %v1628_v59 = vmul.f32 %v9744_v2, %v9780_v5  ;;  %v9800_v3 = vrot.slane %v9756_v45, %v9314_v26 }
 0x2e3   : > { %v1437_v41 = vadd.f32 %v1405_v58, %v9371_v14  ;;  %v1371_v51 = vsub.f32 %v9693_v62, %v1299_v57  ;;  %v1223_v49 = vmul.f32 0.05, %v1121_v21  ;;  %v9809_v14 = vld [vmem:[%s9190_s13 + $0x10] sm:$0xff]  ;;  %v1289_v23 = vcombine.high %v9756_v45, %v9756_v45 }
 0x2e4   : > { %v1438_v19 = vadd.f32 %v1406_v38, %v9397_v32  ;;  %v1377_v39 = vsub.f32 %v9735_v48, %v1305_v56  ;;  %v1117_v33 = vpop.permute.xlu1 %1116  ;;  %v1668_v50 = vsel %vm319_vm0, %v1628_v59, 0.0  ;;  %v1125_v28 = vpop.permute.xlu0 %1124  ;;  %v9806_v60 = vld [vmem:[%s9190_s13 + $0x28] sm:$0xff]  ;;  %v9815_v32 = vrot.slane %v1259_v9, %v9304_v17 }
 0x2e5   : > { %1469 = vst.msk [vmem:[%s9190_s13 + $0x48] sm:$0xff] %vm319_vm0, %v1437_v41  ;;  %v1403_v62 = vmul.f32 %v1371_v51, %v1217_v10  ;;  %v1304_v34 = vmul.f32 %v1117_v33, %v9433_v1  ;;  %1669 = vadd.xlane.f32.xlu0 %v1668_v50  ;;  %v1306_v20 = vmul.f32 %v1125_v28, %v9439_v8  ;;  %v1222_v9 = vmul.f32 0.05, %v1117_v33  ;;  %v9831_v57 = vld [vmem:[%s9190_s13 + $0x40] sm:$0xff] }
 0x2e6   : > { %1470 = vst.msk [vmem:[%s9190_s13 + $0x50] sm:$0xff] %vm319_vm0, %v1438_v19  ;;  %v1409_v13 = vmul.f32 %v1377_v39, %v1223_v49  ;;  %v1629_v40 = vmul.f32 %v9744_v2, %v9806_v60  ;;  %v1551_v24 = vcombine.high %v9738_v46, %v9738_v46  ;;  %v1626_v58 = vmul.f32 %v9729_v61, %v9809_v14 }
 0x2e7   : > { %v1435_v54 = vadd.f32 %v1403_v62, %v9388_v25  ;;  %v1376_v21 = vsub.f32 %v9735_v48, %v1304_v34  ;;  %v1224_v56 = vmul.f32 0.05, %v1125_v28  ;;  %v1378_v59 = vsub.f32 %v9735_v48, %v1306_v20 }
 0x2e8   : > { %v1441_v38 = vadd.f32 %v1409_v13, %v9429_v37  ;;  %v1109_v41 = vpop.permute.xlu1 %1108  ;;  %v1671_v10 = vsel %vm319_vm0, %v1629_v40, 0.0  ;;  %v1141_v51 = vpop.permute.xlu0 %1140  ;;  %v9837_v19 = vld [vmem:[%s9190_s13 + $0x30] sm:$0xff]  ;;  %v9843_v39 = vrot.slane %v1582_v6, %v9314_v26  ;;  %v9847_v37 = vrot.slane %v9794_v63, %v9314_v26 }
 0x2e9   : > { %1467 = vst.msk [vmem:[%s9190_s13 + $0x38] sm:$0xff] %vm319_vm0, %v1435_v54  ;;  %v1408_v25 = vmul.f32 %v1376_v21, %v1222_v9  ;;  %v1303_v49 = vmul.f32 %v1109_v41, %v9402_v35  ;;  %1672 = vadd.xlane.f32.xlu0 %v1671_v10  ;;  %v1410_v33 = vmul.f32 %v1378_v59, %v1224_v56  ;;  %v1221_v62 = vmul.f32 0.05, %v1109_v41  ;;  %v9866_v56 = vld [vmem:[%s9190_s13 + $0x18] sm:$0xff]  ;;  %v13974_v59 = vld [vmem:[#allocation16_spill] sm:$0xff] }
 0x2ea   : > { %1473 = vst.msk [vmem:[%s9190_s13 + $0x68] sm:$0xff] %vm319_vm0, %v1441_v38  ;;  %v1309_v50 = vmul.f32 %v1141_v51, %v9408_v43  ;;  %v1630_v28 = vmul.f32 %v9744_v2, %v9837_v19  ;;  %v1632_v35 = vmul.f32 %v9762_v22, %v9831_v57  ;;  %v1662_v13 = vsel %vm319_vm0, %v1626_v58, 0.0 }
 0x2eb   : > { %v1440_v6 = vadd.f32 %v1408_v25, %v9433_v1  ;;  %v1375_v34 = vsub.f32 %v9709_v30, %v1303_v49  ;;  %v1442_v20 = vadd.f32 %v1410_v33, %v9439_v8  ;;  %v1227_v40 = vmul.f32 0.05, %v1141_v51  ;;  %v8542_v25 = vld [vmem:[%s9190_s13 + $0x58] sm:$0xff] }
 0x2ec   : > { %v1381_v54 = vsub.f32 %v9800_v3, %v1309_v50  ;;  %v1674_v43 = vsel %vm319_vm0, %v1630_v28, 0.0  ;;  %v1137_v9 = vpop.permute.xlu1 %1136  ;;  %v1145_v21 = vpop.permute.xlu0 %1144  ;;  %v9863_v38 = vld [vmem:[%s9190_s13 + $0x48] sm:$0xff]  ;;  %v9873_v30 = vrot.slane %v9815_v32, %v9314_v26  ;;  %v1680_v51 = vsel %vm319_vm0, %v1632_v35, 0.0 }
 0x2ed   : > { %1472 = vst.msk [vmem:[%s9190_s13 + $0x60] sm:$0xff] %vm319_vm0, %v1440_v6  ;;  %v1407_v1 = vmul.f32 %v1375_v34, %v1221_v62  ;;  %1675 = vadd.xlane.f32.xlu1 %v1674_v43  ;;  %v1308_v8 = vmul.f32 %v1137_v9, %v9413_v44  ;;  %1663 = vadd.xlane.f32.xlu0 %v1662_v13  ;;  %1474 = vst.msk [vmem:[%s9190_s13 + $0x70] sm:$0xff] %vm319_vm0, %v1442_v20  ;;  %v1226_v44 = vmul.f32 0.05, %v1137_v9  ;;  %v9886_v28 = vld [vmem:[%s9190_s13 + $0x50] sm:$0xff]  ;;  %v8543_v6 = vld [vmem:[%s9190_s13 + $0x88] sm:$0xff] }
 0x2ee   : > { %v1413_v58 = vmul.f32 %v1381_v54, %v1227_v40  ;;  %v1310_v41 = vmul.f32 %v1145_v21, %v13974_v59  ;;  %v1633_v10 = vmul.f32 %v9762_v22, %v9863_v38  ;;  %v1627_v50 = vmul.f32 %v9729_v61, %v9866_v56  ;;  %v13975_v61 = vld [vmem:[#allocation17_spill] sm:$0xff] }
 0x2ef   : > { %v1439_v49 = vadd.f32 %v8542_v25, %v1407_v1  ;;  %v1380_v33 = vsub.f32 %v9800_v3, %v1308_v8  ;;  %v1228_v34 = vmul.f32 0.05, %v1145_v21  ;;  %v9901_v21 = vrot.slane %v1289_v23, %v9314_v26  ;;  %v13976_v8 = vld [vmem:[#allocation18_spill] sm:$0xff] }
 0x2f0   : > { %v1445_v62 = vadd.f32 %v8543_v6, %v1413_v58  ;;  %v1382_v13 = vsub.f32 %v9800_v3, %v1310_v41  ;;  %v1683_v20 = vsel %vm319_vm0, %v1633_v10, 0.0  ;;  %v1129_v35 = vpop.permute.xlu1 %1128  ;;  %v1161_v40 = vpop.permute.xlu0 %1160  ;;  %v9892_v54 = vld [vmem:[%s9190_s13 + $0x38] sm:$0xff]  ;;  %v1634_v41 = vmul.f32 %v9762_v22, %v9886_v28  ;;  %v8544_v10 = vld [vmem:[%s9190_s13 + $0x80] sm:$0xff] }
 0x2f1   : > { %1471 = vst.msk [vmem:[%s9190_s13 + $0x58] sm:$0xff] %vm319_vm0, %v1439_v49  ;;  %v1412_v43 = vmul.f32 %v1380_v33, %v1226_v44  ;;  %1684 = vadd.xlane.f32.xlu1 %v1683_v20  ;;  %v1307_v9 = vmul.f32 %v1129_v35, %v13975_v61  ;;  %1681 = vadd.xlane.f32.xlu0 %v1680_v51  ;;  %v1225_v25 = vmul.f32 0.05, %v1129_v35  ;;  %v1665_v23 = vsel %vm319_vm0, %v1627_v50, 0.0  ;;  %v8545_v49 = vld [vmem:[%s9190_s13 + $0x90] sm:$0xff]  ;;  %v9920_v20 = vld [vmem:[%s9190_s13 + $0x68] sm:$0xff] }
 0x2f2   : > { %1477 = vst.msk [vmem:[%s9190_s13 + $0x88] sm:$0xff] %vm319_vm0, %v1445_v62  ;;  %v1414_v1 = vmul.f32 %v1382_v13, %v1228_v34  ;;  %v1313_v58 = vmul.f32 %v1161_v40, %v13976_v8  ;;  %v1631_v59 = vmul.f32 %v9744_v2, %v9892_v54  ;;  %v1231_v33 = vmul.f32 0.05, %v1161_v40  ;;  %13978 = vst [vmem:[#allocation17_spill] sm:$0xff] %v9920_v20  ;;  %v13979_v50 = vld [vmem:[#allocation19_spill] sm:$0xff]  ;;  %v13980_v61 = vld [vmem:[#allocation20_spill] sm:$0xff] }
 0x2f3   : > { %v1444_v51 = vadd.f32 %v8544_v10, %v1412_v43  ;;  %v1379_v45 = vsub.f32 %v9735_v48, %v1307_v9  ;;  %v1291_v40 = vcombine.high %v9815_v32, %v9815_v32  ;;  %v1686_v8 = vsel %vm319_vm0, %v1634_v41, 0.0 }
 0x2f4   : > { %v1446_v44 = vadd.f32 %v8545_v49, %v1414_v1  ;;  %v1385_v6 = vsub.f32 %v9873_v30, %v1313_v58  ;;  %v1677_v62 = vsel %vm319_vm0, %v1631_v59, 0.0  ;;  %v1157_v2 = vpop.permute.xlu1 %1156  ;;  %v1165_v34 = vpop.permute.xlu0 %1164  ;;  %v9917_v13 = vld [vmem:[%s9190_s13 + $0x60] sm:$0xff]  ;;  %v8546_v58 = vld [vmem:[%s9190_s13 + $0x78] sm:$0xff]  ;;  %v1637_v32 = vmul.f32 %v9843_v39, %v9920_v20 }
 0x2f5   : > { %13977 = vst [vmem:[#allocation16_spill] sm:$0xff] %v9917_v13  ;;  %1476 = vst.msk [vmem:[%s9190_s13 + $0x80] sm:$0xff] %vm319_vm0, %v1444_v51  ;;  %v1411_v48 = vmul.f32 %v1379_v45, %v1225_v25  ;;  %1678 = vadd.xlane.f32.xlu1 %v1677_v62  ;;  %v1312_v35 = vmul.f32 %v1157_v2, %v13979_v50  ;;  %1666 = vadd.xlane.f32.xlu0 %v1665_v23  ;;  %v1230_v10 = vmul.f32 0.05, %v1157_v2  ;;  %v9938_v25 = vld [vmem:[%s9190_s13 + $0x70] sm:$0xff]  ;;  %v8547_v45 = vld [vmem:[%s9190_s13 + $0xa8] sm:$0xff] }
 0x2f6   : > { %1478 = vst.msk [vmem:[%s9190_s13 + $0x90] sm:$0xff] %vm319_vm0, %v1446_v44  ;;  %v1417_v43 = vmul.f32 %v1385_v6, %v1231_v33  ;;  %v1314_v9 = vmul.f32 %v1165_v34, %v13980_v61  ;;  %v1636_v1 = vmul.f32 %v9843_v39, %v9917_v13  ;;  %13981 = vst [vmem:[#allocation18_spill] sm:$0xff] %v9938_v25  ;;  %v1232_v49 = vmul.f32 0.05, %v1165_v34 }
 0x2f7   : > { %v1443_v59 = vadd.f32 %v8546_v58, %v1411_v48  ;;  %v1384_v51 = vsub.f32 %v9873_v30, %v1312_v35  ;;  %v8548_v48 = vld [vmem:[%s9190_s13 + $0x98] sm:$0xff]  ;;  %v9953_v34 = vrot.slane %v1551_v24, %v9304_v17 }
 0x2f8   : > { %v1449_v23 = vadd.f32 %v8547_v45, %v1417_v43  ;;  %v1386_v44 = vsub.f32 %v9873_v30, %v1314_v9  ;;  %v1692_v41 = vsel %vm319_vm0, %v1636_v1, 0.0  ;;  %v1149_v33 = vpop.permute.xlu1 %1148  ;;  %v1181_v6 = vpop.permute.xlu0 %1180  ;;  %v9944_v62 = vld [vmem:[%s9190_s13 + $0x58] sm:$0xff]  ;;  %v8549_v43 = vld [vmem:[%s9190_s13 + $0xc8] sm:$0xff]  ;;  %v1638_v1 = vmul.f32 %v9843_v39, %v9938_v25 }
 0x2f9   : > { %13982 = vst [vmem:[#allocation19_spill] sm:$0xff] %v9944_v62  ;;  %1475 = vst.msk [vmem:[%s9190_s13 + $0x78] sm:$0xff] %vm319_vm0, %v1443_v59  ;;  %v1416_v2 = vmul.f32 %v1384_v51, %v1230_v10  ;;  %1693 = vadd.xlane.f32.xlu1 %v1692_v41  ;;  %v1311_v50 = vmul.f32 %v8548_v48, %v1149_v33  ;;  %1687 = vadd.xlane.f32.xlu0 %v1686_v8  ;;  %v8550_v8 = vld [vmem:[%s9190_s13 + $0xa0] sm:$0xff]  ;;  %v1229_v46 = vmul.f32 0.05, %v1149_v33  ;;  %v8551_v10 = vld [vmem:[%s9190_s13 + $0xb0] sm:$0xff] }
 0x2fa   : > { %1481 = vst.msk [vmem:[%s9190_s13 + $0xa8] sm:$0xff] %vm319_vm0, %v1449_v23  ;;  %v1418_v35 = vmul.f32 %v1386_v44, %v1232_v49  ;;  %v1317_v61 = vmul.f32 %v8549_v43, %v1181_v6  ;;  %v1635_v9 = vmul.f32 %v9762_v22, %v9944_v62  ;;  %v1695_v59 = vsel %vm319_vm0, %v1637_v32, 0.0  ;;  %v8552_v32 = vld [vmem:[%s9190_s13 + $0xc0] sm:$0xff] }
 0x2fb   : > { %v1448_v58 = vadd.f32 %v8550_v8, %v1416_v2  ;;  %v1383_v24 = vsub.f32 %v9800_v3, %v1311_v50  ;;  %v1235_v45 = vmul.f32 0.05, %v1181_v6  ;;  %v9972_v2 = vld [vmem:[%s9190_s13 + $0x88] sm:$0xff]  ;;  %v9978_v6 = vrot.slane %v1291_v40, %v9314_v26 }
 0x2fc   : > { %v1450_v51 = vadd.f32 %v8551_v10, %v1418_v35  ;;  %v1389_v23 = vsub.f32 %v9901_v21, %v1317_v61  ;;  %v1689_v22 = vsel %vm319_vm0, %v1635_v9, 0.0  ;;  %v1177_v49 = vpop.permute.xlu1 %1176  ;;  %v1185_v44 = vpop.permute.xlu0 %1184  ;;  %v9969_v41 = vld [vmem:[%s9190_s13 + $0x80] sm:$0xff]  ;;  %13984 = vst [vmem:[#allocation34_spill] sm:$0xff] %v9972_v2  ;;  %v8553_v35 = vld [vmem:[%s9190_s13 + $0xd0] sm:$0xff]  ;;  %v1698_v8 = vsel %vm319_vm0, %v1638_v1, 0.0 }
 0x2fd   : > { %13983 = vst [vmem:[#allocation20_spill] sm:$0xff] %v9969_v41  ;;  %1480 = vst.msk [vmem:[%s9190_s13 + $0xa0] sm:$0xff] %vm319_vm0, %v1448_v58  ;;  %v1415_v3 = vmul.f32 %v1383_v24, %v1229_v46  ;;  %1690 = vadd.xlane.f32.xlu1 %v1689_v22  ;;  %v1316_v33 = vmul.f32 %v8552_v32, %v1177_v49  ;;  %1696 = vadd.xlane.f32.xlu0 %v1695_v59  ;;  %v1234_v46 = vmul.f32 0.05, %v1177_v49  ;;  %v9990_v59 = vld [vmem:[%s9190_s13 + $0x90] sm:$0xff]  ;;  %v8554_v49 = vld [vmem:[%s9190_s13 + $0xb8] sm:$0xff] }
 0x2fe   : > { %1482 = vst.msk [vmem:[%s9190_s13 + $0xb0] sm:$0xff] %vm319_vm0, %v1450_v51  ;;  %v1421_v50 = vmul.f32 %v1389_v23, %v1235_v45  ;;  %v1318_v61 = vmul.f32 %v8553_v35, %v1185_v44  ;;  %v1640_v9 = vmul.f32 %v9847_v37, %v9969_v41  ;;  %v1641_v40 = vmul.f32 %v9847_v37, %v9972_v2 }
 0x2ff   : > { %v1447_v58 = vadd.f32 %v8548_v48, %v1415_v3  ;;  %v1388_v24 = vsub.f32 %v9901_v21, %v1316_v33  ;;  %13985 = vst [vmem:[#allocation35_spill] sm:$0xff] %v9990_v59  ;;  %v1236_v51 = vmul.f32 0.05, %v1185_v44  ;;  %v8555_v33 = vld [vmem:[%s9190_s13 + $0xe8] sm:$0xff] }
 0x300   : > { %v1453_v10 = vadd.f32 %v8549_v43, %v1421_v50  ;;  %v1390_v45 = vsub.f32 %v9901_v21, %v1318_v61  ;;  %v1704_v23 = vsel %vm319_vm0, %v1640_v9, 0.0  ;;  %v1169_v22 = vpop.permute.xlu1 %1168  ;;  %v1201_v1 = vpop.permute.xlu0 %1200  ;;  %v9995_v41 = vld [vmem:[%s9190_s13 + $0x78] sm:$0xff]  ;;  %v10002_v43 = vrot.slane %v9953_v34, %v9314_v26 }
 0x301   : > { %13986 = vst [vmem:[#allocation36_spill] sm:$0xff] %v9995_v41  ;;  %1479 = vst.msk [vmem:[%s9190_s13 + $0x98] sm:$0xff] %vm319_vm0, %v1447_v58  ;;  %v1420_v48 = vmul.f32 %v1388_v24, %v1234_v46  ;;  %1705 = vadd.xlane.f32.xlu1 %v1704_v23  ;;  %v1315_v3 = vmul.f32 %v8554_v49, %v1169_v22  ;;  %1699 = vadd.xlane.f32.xlu0 %v1698_v8  ;;  %v1233_v58 = vmul.f32 0.05, %v1169_v22 }
 0x302   : > { %1485 = vst.msk [vmem:[%s9190_s13 + $0xc8] sm:$0xff] %vm319_vm0, %v1453_v10  ;;  %v1422_v44 = vmul.f32 %v1390_v45, %v1236_v51  ;;  %v1321_v50 = vmul.f32 %v8555_v33, %v1201_v1  ;;  %v1639_v61 = vmul.f32 %v9843_v39, %v9995_v41  ;;  %v1642_v9 = vmul.f32 %v9847_v37, %v9990_v59  ;;  %v10019_v59 = vld [vmem:[%s9190_s13 + $0xa8] sm:$0xff] }
 0x303   : > { %v1452_v8 = vadd.f32 %v8552_v32, %v1420_v48  ;;  %v1387_v46 = vsub.f32 %v9873_v30, %v1315_v3  ;;  %v1707_v24 = vsel %vm319_vm0, %v1641_v40, 0.0  ;;  %v1239_v51 = vmul.f32 0.05, %v1201_v1  ;;  %13988 = vst [vmem:[#allocation38_spill] sm:$0xff] %v10019_v59  ;;  %v8556_v30 = vld [vmem:[%s9190_s13 + $0xe0] sm:$0xff]  ;;  %v8557_v1 = vld [vmem:[%s9190_s13 + $0xf0] sm:$0xff] }
 0x304   : > { %v1454_v10 = vadd.f32 %v8553_v35, %v1422_v44  ;;  %v1393_v45 = vsub.f32 %v9978_v6, %v1321_v50  ;;  %v1701_v23 = vsel %vm319_vm0, %v1639_v61, 0.0  ;;  %v1197_v2 = vpop.permute.xlu1 %1196  ;;  %v1205_v39 = vpop.permute.xlu0 %1204  ;;  %v10016_v41 = vld [vmem:[%s9190_s13 + $0xa0] sm:$0xff]  ;;  %v1581_v35 = vcombine.high %v9794_v63, %v9794_v63 }
 0x305   : > { %13987 = vst [vmem:[#allocation37_spill] sm:$0xff] %v10016_v41  ;;  %1484 = vst.msk [vmem:[%s9190_s13 + $0xc0] sm:$0xff] %vm319_vm0, %v1452_v8  ;;  %v1419_v32 = vmul.f32 %v1387_v46, %v1233_v58  ;;  %1702 = vadd.xlane.f32.xlu1 %v1701_v23  ;;  %v1320_v40 = vmul.f32 %v8556_v30, %v1197_v2  ;;  %1708 = vadd.xlane.f32.xlu0 %v1707_v24  ;;  %v1710_v44 = vsel %vm319_vm0, %v1642_v9, 0.0  ;;  %v10046_v23 = vld [vmem:[%s9190_s13 + $0xb0] sm:$0xff] }
 0x306   : > { %1486 = vst.msk [vmem:[%s9190_s13 + $0xd0] sm:$0xff] %vm319_vm0, %v1454_v10  ;;  %v1425_v22 = vmul.f32 %v1393_v45, %v1239_v51  ;;  %v1322_v48 = vmul.f32 %v8557_v1, %v1205_v39  ;;  %v1644_v3 = vmul.f32 %v10002_v43, %v10016_v41  ;;  %v1238_v61 = vmul.f32 0.05, %v1197_v2  ;;  %v8558_v2 = vld [vmem:[%s9190_s13 + $0xd8] sm:$0xff]  ;;  %13990 = vst [vmem:[#allocation40_spill] sm:$0xff] %v10046_v23 }
 0x307   : > { %v1451_v50 = vadd.f32 %v8554_v49, %v1419_v32  ;;  %v1392_v8 = vsub.f32 %v9978_v6, %v1320_v40  ;;  %v1645_v63 = vmul.f32 %v10002_v43, %v10019_v59  ;;  %v1240_v46 = vmul.f32 0.05, %v1205_v39 }
 0x308   : > { %v1457_v58 = vadd.f32 %v8555_v33, %v1425_v22  ;;  %v1394_v24 = vsub.f32 %v9978_v6, %v1322_v48  ;;  %v1716_v10 = vsel %vm319_vm0, %v1644_v3, 0.0  ;;  %v1189_v51 = vpop.permute.xlu1 %1188  ;;  %v10038_v45 = vld [vmem:[%s9190_s13 + $0x98] sm:$0xff]  ;;  %v1611_v32 = vrot.slane %v1581_v35, %v9314_v26 }
 0x309   : > { %13989 = vst [vmem:[#allocation39_spill] sm:$0xff] %v10038_v45  ;;  %1483 = vst.msk [vmem:[%s9190_s13 + $0xb8] sm:$0xff] %vm319_vm0, %v1451_v50  ;;  %v1424_v49 = vmul.f32 %v1392_v8, %v1238_v61  ;;  %1717 = vadd.xlane.f32.xlu1 %v1716_v10  ;;  %v1319_v9 = vmul.f32 %v8558_v2, %v1189_v51  ;;  %1711 = vadd.xlane.f32.xlu0 %v1710_v44  ;;  %v1237_v22 = vmul.f32 0.05, %v1189_v51  ;;  %v8559_v35 = vld [vmem:[%s9190_s13 + $0xf8] sm:$0xff] }
 0x30a   : > { %v1643_v33 = vmul.f32 %v9847_v37, %v10038_v45  ;;  %1489 = vst.msk [vmem:[%s9190_s13 + $0xe8] sm:$0xff] %vm319_vm0, %v1457_v58  ;;  %v1426_v39 = vmul.f32 %v1394_v24, %v1240_v46  ;;  %v1719_v37 = vsel %vm319_vm0, %v1645_v63, 0.0  ;;  %v1646_v8 = vmul.f32 %v10002_v43, %v10046_v23 }
 0x30b   : > { %v1456_v40 = vadd.f32 %v8556_v30, %v1424_v49  ;;  %v1391_v48 = vsub.f32 %v9901_v21, %v1319_v9  ;;  %v1583_v63 = vcombine.high %v9953_v34, %v9953_v34 }
 0x30c   : > { %v1713_v3 = vsel %vm319_vm0, %v1643_v33, 0.0  ;;  %v1458_v44 = vadd.f32 %v8557_v1, %v1426_v39  ;;  %v1209_v50 = vpop.permute.xlu1 %1208  ;;  %v10055_v61 = vld [vmem:[%s9190_s13 + $0xc0] sm:$0xff]  ;;  %v10064_v1 = vld [vmem:[%s9190_s13 + $0xc8] sm:$0xff]  ;;  %v1722_v49 = vsel %vm319_vm0, %v1646_v8, 0.0 }
 0x30d   : > { %13991 = vst [vmem:[#allocation41_spill] sm:$0xff] %v10055_v61  ;;  %1488 = vst.msk [vmem:[%s9190_s13 + $0xe0] sm:$0xff] %vm319_vm0, %v1456_v40  ;;  %v1423_v30 = vmul.f32 %v1391_v48, %v1237_v22  ;;  %1714 = vadd.xlane.f32.xlu1 %v1713_v3  ;;  %v1323_v58 = vmul.f32 %v8559_v35, %v1209_v50  ;;  %1720 = vadd.xlane.f32.xlu0 %v1719_v37  ;;  %v1241_v24 = vmul.f32 0.05, %v1209_v50 }
 0x30e   : > { %v1648_v21 = vmul.f32 %v1611_v32, %v10055_v61  ;;  %13992 = vst [vmem:[#allocation42_spill] sm:$0xff] %v10064_v1  ;;  %1490 = vst.msk [vmem:[%s9190_s13 + $0xf0] sm:$0xff] %vm319_vm0, %v1458_v44  ;;  %v1649_v33 = vmul.f32 %v1611_v32, %v10064_v1  ;;  %v1615_v22 = vrot.slane %v1583_v63, %v9314_v26 }
 0x30f   : > { %v1455_v46 = vadd.f32 %v8558_v2, %v1423_v30  ;;  %v1395_v10 = vsub.f32 %v9978_v6, %v1323_v58  ;;  %v10082_v6 = vld [vmem:[%s9190_s13 + $0xd0] sm:$0xff] }
 0x310   : > { %v1728_v51 = vsel %vm319_vm0, %v1648_v21, 0.0  ;;  %v10074_v9 = vld [vmem:[%s9190_s13 + $0xb8] sm:$0xff]  ;;  %13994 = vst [vmem:[#allocation44_spill] sm:$0xff] %v10082_v6  ;;  %v1731_v48 = vsel %vm319_vm0, %v1649_v33, 0.0  ;;  %v1650_v44 = vmul.f32 %v1611_v32, %v10082_v6 }
 0x311   : > { %13993 = vst [vmem:[#allocation43_spill] sm:$0xff] %v10074_v9  ;;  %1487 = vst.msk [vmem:[%s9190_s13 + $0xd8] sm:$0xff] %vm319_vm0, %v1455_v46  ;;  %v1427_v39 = vmul.f32 %v1395_v10, %v1241_v24  ;;  %1729 = vadd.xlane.f32.xlu1 %v1728_v51  ;;  %1723 = vadd.xlane.f32.xlu0 %v1722_v49  ;;  %v1647_v34 = vmul.f32 %v10002_v43, %v10074_v9  ;;  %v10095_v50 = vld [vmem:[%s9190_s13 + $0xe8] sm:$0xff] }
 0x312   : > { %13996 = vst [vmem:[#allocation46_spill] sm:$0xff] %v10095_v50  ;;  %v1734_v8 = vsel %vm319_vm0, %v1650_v44, 0.0 }
 0x313   : > { %v1459_v2 = vadd.f32 %v8559_v35, %v1427_v39  ;;  %v1725_v40 = vsel %vm319_vm0, %v1647_v34, 0.0  ;;  %v1653_v35 = vmul.f32 %v1615_v22, %v10095_v50 }
 0x314   : > { %v10088_v3 = vld [vmem:[%s9190_s13 + $0xe0] sm:$0xff] }
 0x315   : > { %13995 = vst [vmem:[#allocation45_spill] sm:$0xff] %v10088_v3  ;;  %1491 = vst.msk [vmem:[%s9190_s13 + $0xf8] sm:$0xff] %vm319_vm0, %v1459_v2  ;;  %1726 = vadd.xlane.f32.xlu1 %v1725_v40  ;;  %1732 = vadd.xlane.f32.xlu0 %v1731_v48  ;;  %v1652_v43 = vmul.f32 %v1615_v22, %v10088_v3  ;;  %v10102_v21 = vld [vmem:[%s9190_s13 + $0xf0] sm:$0xff]  ;;  %v1743_v46 = vsel %vm319_vm0, %v1653_v35, 0.0 }
 0x316   : > { %13997 = vst [vmem:[#allocation47_spill] sm:$0xff] %v10102_v21  ;;  %v1654_v10 = vmul.f32 %v1615_v22, %v10102_v21 }
 0x317   : > { %v1740_v37 = vsel %vm319_vm0, %v1652_v43, 0.0 }
 0x318   : > { %v1529_v30 = vld [vmem:[%s9190_s13 + $0xd8] sm:$0xff]  ;;  %v1746_v33 = vsel %vm319_vm0, %v1654_v10, 0.0 }
 0x319   : > { %1741 = vadd.xlane.f32.xlu1 %v1740_v37  ;;  %1735 = vadd.xlane.f32.xlu0 %v1734_v8  ;;  %v1651_v58 = vmul.f32 %v1611_v32, %v1529_v30 }
 0x31b   : > { %v1737_v63 = vsel %vm319_vm0, %v1651_v58, 0.0 }
 0x31c   : > { %v1533_v24 = vld [vmem:[%s9190_s13 + $0xf8] sm:$0xff] }
 0x31d   : > { %1738 = vadd.xlane.f32.xlu1 %v1737_v63  ;;  %1744 = vadd.xlane.f32.xlu0 %v1743_v46  ;;  %v1655_v51 = vmul.f32 %v1615_v22, %v1533_v24 }
 0x31f   : > { %v1749_v49 = vsel %vm319_vm0, %v1655_v51, 0.0 }
 0x321   : > { %1750 = vadd.xlane.f32.xlu1 %v1749_v49  ;;  %1747 = vadd.xlane.f32.xlu0 %v1746_v33 }
 0x36e   : > { %v1658_v39 = vpop.xlane.xlu0 %1657  ;;  %v1661_v34 = vpop.xlane.xlu1 %1660 }
 0x36f   : > { %v1753_v33 = vmul.f32 0.2, %v1661_v34  ;;  %v1752_v21 = vmul.f32 0.2, %v1658_v39 }
 0x371   : > { %v1823_v41 = vrot.slane %v1753_v33, %v9552_v7  ;;  %v1819_v59 = vrot.slane %v1752_v21, %v9549_v52 }
 0x372   : > { %v1670_v32 = vpop.xlane.xlu0 %1669 }
 0x373   : > { %v1756_v6 = vmul.f32 0.2, %v1670_v32  ;;  %v1824_v33 = vsel %vm877_vm3, %v1823_v41, %v1819_v59 }
 0x376   : > { %v1673_v2 = vpop.xlane.xlu0 %1672 }
 0x377   : > { %v1757_v3 = vmul.f32 0.2, %v1673_v2  ;;  %v1838_v2 = vrot.slane %v1756_v6, %v9549_v52 }
 0x379   : > { %v1842_v62 = vrot.slane %v1757_v3, %v9552_v7 }
 0x37a   : > { %v1676_v40 = vpop.xlane.xlu1 %1675  ;;  %v1664_v48 = vpop.xlane.xlu0 %1663 }
 0x37b   : > { %v1758_v50 = vmul.f32 0.2, %v1676_v40  ;;  %v1754_v9 = vmul.f32 0.2, %v1664_v48  ;;  %v1843_v21 = vsel %vm877_vm3, %v1842_v62, %v1838_v2 }
 0x37d   : > { %v1847_v25 = vrot.slane %v1758_v50, %v9555_v11  ;;  %v1828_v13 = vrot.slane %v1754_v9, %v9555_v11 }
 0x37e   : > { %v1685_v44 = vpop.xlane.xlu1 %1684  ;;  %v1682_v43 = vpop.xlane.xlu0 %1681 }
 0x37f   : > { %v1761_v34 = vmul.f32 0.2, %v1685_v44  ;;  %v1760_v39 = vmul.f32 0.2, %v1682_v43  ;;  %v1848_v50 = vsel %vm884_vm4, %v1847_v25, %v1843_v21  ;;  %v1829_v9 = vsel %vm884_vm4, %v1828_v13, %v1824_v33 }
 0x381   : > { %v1861_v44 = vrot.slane %v1761_v34, %v9552_v7  ;;  %v1857_v6 = vrot.slane %v1760_v39, %v9549_v52 }
 0x382   : > { %v1679_v37 = vpop.xlane.xlu1 %1678  ;;  %v1667_v8 = vpop.xlane.xlu0 %1666 }
 0x383   : > { %v1759_v61 = vmul.f32 0.2, %v1679_v37  ;;  %v1755_v1 = vmul.f32 0.2, %v1667_v8  ;;  %v1862_v25 = vsel %vm877_vm3, %v1861_v44, %v1857_v6 }
 0x385   : > { %v1852_v32 = vrot.slane %v1759_v61, %v9558_v16  ;;  %v1833_v40 = vrot.slane %v1755_v1, %v9558_v16 }
 0x386   : > { %v1694_v30 = vpop.xlane.xlu1 %1693  ;;  %v1688_v35 = vpop.xlane.xlu0 %1687 }
 0x387   : > { %v1762_v48 = vmul.f32 0.2, %v1688_v35  ;;  %v1853_v61 = vsel %vm891_vm5, %v1852_v32, %v1848_v50  ;;  %v1834_v1 = vsel %vm891_vm5, %v1833_v40, %v1829_v9  ;;  %v1764_v62 = vmul.f32 0.2, %v1694_v30 }
 0x388   : > { %v1968_v13 = vsel %vm1026_vm6, %v1853_v61, %v1834_v1 }
 0x389   : > { %v1866_v43 = vrot.slane %v1762_v48, %v9555_v11 }
 0x38a   : > { %v1691_v58 = vpop.xlane.xlu1 %1690  ;;  %v1697_v22 = vpop.xlane.xlu0 %1696 }
 0x38b   : > { %v1763_v3 = vmul.f32 0.2, %v1691_v58  ;;  %v1765_v35 = vmul.f32 0.2, %v1697_v22  ;;  %v1867_v39 = vsel %vm884_vm4, %v1866_v43, %v1862_v25 }
 0x38d   : > { %v1871_v58 = vrot.slane %v1763_v3, %v9558_v16  ;;  %v1880_v2 = vrot.slane %v1765_v35, %v9552_v7  ;;  %v1876_v3 = vrot.slane %v1764_v62, %v9549_v52 }
 0x38e   : > { %v1706_v63 = vpop.xlane.xlu1 %1705  ;;  %v1700_v46 = vpop.xlane.xlu0 %1699 }
 0x38f   : > { %v1768_v34 = vmul.f32 0.2, %v1706_v63  ;;  %v1766_v32 = vmul.f32 0.2, %v1700_v46  ;;  %v1872_v50 = vsel %vm891_vm5, %v1871_v58, %v1867_v39  ;;  %v1881_v46 = vsel %vm877_vm3, %v1880_v2, %v1876_v3 }
 0x391   : > { %v1895_v63 = vrot.slane %v1768_v34, %v9549_v52 }
 0x392   : > { %v1703_v24 = vpop.xlane.xlu1 %1702  ;;  %v1709_v10 = vpop.xlane.xlu0 %1708 }
 0x393   : > { %v1769_v20 = vmul.f32 0.2, %v1709_v10  ;;  %v1767_v33 = vmul.f32 0.2, %v1703_v24  ;;  %v1885_v24 = vrot.slane %v1766_v32, %v9555_v11 }
 0x395   : > { %v1899_v22 = vrot.slane %v1769_v20, %v9552_v7  ;;  %v1886_v2 = vsel %vm884_vm4, %v1885_v24, %v1881_v46 }
 0x396   : > { %v1718_v51 = vpop.xlane.xlu1 %1717  ;;  %v1712_v49 = vpop.xlane.xlu0 %1711 }
 0x397   : > { %v1770_v40 = vmul.f32 0.2, %v1712_v49  ;;  %v1772_v6 = vmul.f32 0.2, %v1718_v51  ;;  %v1900_v49 = vsel %vm877_vm3, %v1899_v22, %v1895_v63 }
 0x399   : > { %v1904_v20 = vrot.slane %v1770_v40, %v9555_v11  ;;  %v1914_v25 = vrot.slane %v1772_v6, %v9549_v52 }
 0x39a   : > { %v1715_v45 = vpop.xlane.xlu1 %1714  ;;  %v1721_v23 = vpop.xlane.xlu0 %1720 }
 0x39b   : > { %v1771_v10 = vmul.f32 0.2, %v1715_v45  ;;  %v1773_v48 = vmul.f32 0.2, %v1721_v23  ;;  %v1890_v23 = vrot.slane %v1767_v33, %v9558_v16  ;;  %v1905_v32 = vsel %vm884_vm4, %v1904_v20, %v1900_v49 }
 0x39d   : > { %v1909_v43 = vrot.slane %v1771_v10, %v9558_v16  ;;  %v1891_v22 = vsel %vm891_vm5, %v1890_v23, %v1886_v2 }
 0x39e   : > { %v1730_v37 = vpop.xlane.xlu1 %1729  ;;  %v1724_v8 = vpop.xlane.xlu0 %1723 }
 0x39f   : > { %v1774_v9 = vmul.f32 0.2, %v1724_v8  ;;  %v1776_v45 = vmul.f32 0.2, %v1730_v37  ;;  %v1918_v8 = vrot.slane %v1773_v48, %v9552_v7  ;;  %v1910_v10 = vsel %vm891_vm5, %v1909_v43, %v1905_v32 }
 0x3a0   : > { %v1986_v32 = vmul.f32 0.95122945, %v9632_v47 }
 0x3a1   : > { %v1923_v51 = vrot.slane %v1774_v9, %v9555_v11  ;;  %v1933_v40 = vrot.slane %v1776_v45, %v9549_v52  ;;  %v1919_v48 = vsel %vm877_vm3, %v1918_v8, %v1914_v25 }
 0x3a2   : > { %v1727_v41 = vpop.xlane.xlu1 %1726  ;;  %v1733_v59 = vpop.xlane.xlu0 %1732 }
 0x3a3   : > { %v1777_v44 = vmul.f32 0.2, %v1733_v59  ;;  %v1775_v61 = vmul.f32 0.2, %v1727_v41  ;;  %v1924_v9 = vsel %vm884_vm4, %v1923_v51, %v1919_v48 }
 0x3a5   : > { %v1937_v41 = vrot.slane %v1777_v44, %v9552_v7  ;;  %v1928_v37 = vrot.slane %v1775_v61, %v9558_v16  ;;  %v1969_v61 = vsel %vm1028_vm7, %v1872_v50, %v1968_v13 }
 0x3a6   : > { %v1742_v21 = vpop.xlane.xlu1 %1741  ;;  %v1736_v30 = vpop.xlane.xlu0 %1735  ;;  %v1970_v20 = vsel %vm1030_vm8, %v1891_v22, %v1969_v61 }
 0x3a7   : > { %v1778_v1 = vmul.f32 0.2, %v1736_v30  ;;  %v1780_v34 = vmul.f32 0.2, %v1742_v21  ;;  %v1938_v44 = vsel %vm877_vm3, %v1937_v41, %v1933_v40  ;;  %v1971_v43 = vsel %vm1032_vm9, %v1910_v10, %v1970_v20 }
 0x3a8   : > { %v1977_v41 = vmul.f32 0.9048374, %v9626_v53 }
 0x3a9   : > { %v1942_v39 = vrot.slane %v1778_v1, %v9555_v11  ;;  %v1929_v1 = vsel %vm891_vm5, %v1928_v37, %v1924_v9  ;;  %v1952_v46 = vrot.slane %v1780_v34, %v9549_v52  ;;  %v1979_v37 = vmul.f32 0.95122945, %v9629_v0 }
 0x3aa   : > { %v1739_v35 = vpop.xlane.xlu1 %1738  ;;  %v1745_v59 = vpop.xlane.xlu0 %1744  ;;  %v1972_v13 = vsel %vm1034_vm10, %v1929_v1, %v1971_v43 }
 0x3ab   : > { %v1779_v62 = vmul.f32 0.2, %v1739_v35  ;;  %v1781_v58 = vmul.f32 0.2, %v1745_v59  ;;  %v1943_v24 = vsel %vm884_vm4, %v1942_v39, %v1938_v44 }
 0x3ad   : > { %v1947_v33 = vrot.slane %v1779_v62, %v9558_v16  ;;  %v1956_v30 = vrot.slane %v1781_v58, %v9552_v7  ;;  %v8560_v62 = vld [vmem:[#allocation2 + $0x8] sm:$0xff] }
 0x3ae   : > { %v1751_v3 = vpop.xlane.xlu1 %1750  ;;  %v1748_v21 = vpop.xlane.xlu0 %1747 }
 0x3af   : > { %v1783_v63 = vmul.f32 0.2, %v1751_v3  ;;  %v1782_v6 = vmul.f32 0.2, %v1748_v21  ;;  %v1948_v45 = vsel %vm891_vm5, %v1947_v33, %v1943_v24  ;;  %v1957_v8 = vsel %vm877_vm3, %v1956_v30, %v1952_v46  ;;  %v13998_v21 = vld [vmem:[#allocation21_spill] sm:$0xff] }
 0x3b0   : > { %v1973_v35 = vsel %vm1036_vm11, %v1948_v45, %v1972_v13  ;;  %v2189_v9 = vrot.slane %v13998_v21, %v9304_v17  ;;  %v13999_v45 = vld [vmem:[#allocation22_spill] sm:$0xff] }
 0x3b1   : > { %v1966_v23 = vrot.slane %v1783_v63, %v9558_v16  ;;  %v1961_v49 = vrot.slane %v1782_v6, %v9555_v11 }
 0x3b2   : > { %v2205_v44 = vrot.slane %v2189_v9, %v9304_v17  ;;  %v2197_v63 = vcombine.high %v2189_v9, %v2189_v9 }
 0x3b3   : > { %v1962_v50 = vsel %vm884_vm4, %v1961_v49, %v1957_v8 }
 0x3b4   : > { %v1967_v59 = vsel %vm891_vm5, %v1966_v23, %v1962_v50  ;;  %v10208_v1 = vrot.slane %v2205_v44, %v9314_v26  ;;  %v10213_v20 = vrot.slane %v2197_v63, %v9304_v17  ;;  %v2482_v23 = vrot.slane %v13999_v45, %v9304_v17 }
 0x3b5   : > { %v1974_v51 = vsel %vm1038_vm12, %v1967_v59, %v1973_v35 }
 0x3b6   : > { %v1976_v58 = vadd.f32 %v8560_v62, %v1974_v51  ;;  %v10223_v51 = vrot.slane %v10213_v20, %v9314_v26 }
 0x3b8   : > { %v10174_v25 = vadd.f32 %v1977_v41, %v1976_v58  ;;  %v2227_v58 = vcombine.high %v2205_v44, %v2205_v44 }
 0x3ba   : > { %v1980_v34 = vmul.f32 0.048770577, %v10174_v25  ;;  %v10241_v44 = vrot.slane %v2227_v58, %v9314_v26  ;;  %v8564_v58 = vld [vmem:[%s9190_s13 + $0x28] sm:$0xff] }
 0x3bc   : > { %v10178_v39 = vadd.f32 %v1980_v34, %v1979_v37  ;;  %v2490_v37 = vcombine.high %v2482_v23, %v2482_v23  ;;  %v8561_v34 = vld [vmem:[%s9190_s13 + $0x8] sm:$0xff] }
 0x3be   : > { %8528 = vtanh.f32 %v10178_v39 }
 0x3c8   : > { %v8529_v2 = vpop.eup %8528 }
 0x3c9   : > { %v1987_v40 = vmul.f32 0.048770577, %v8529_v2  ;;  %v2431_v33 = vsel %vm319_vm0, %v9479_v12, %v8529_v2 }
 0x3ca   : > { %8339 = vst.msk [vmem:[%s9638_s26 + $0x8] sm:$0xff] %vm473_vm2, %v2431_v33 }
 0x3cb   : > { %v10186_v53 = vadd.f32 %v1987_v40, %v1986_v32  ;;  %v8562_v32 = vld [vmem:[%s9190_s13] sm:$0xff] }
 0x3cd   : > { %v1992_v0 = vrot.slane %v10186_v53, %v9314_v26  ;;  %v2012_v22 = vrot.slane %v10186_v53, %v9645_v15  ;;  %v2032_v47 = vrot.slane %v10186_v53, %v9650_v31  ;;  %v2052_v12 = vrot.slane %v10186_v53, %v9655_v42 }
 0x3ce   : > { %v2072_v10 = vrot.slane %v10186_v53, %v9660_v29  ;;  %v2092_v48 = vrot.slane %v10186_v53, %v9665_v4  ;;  %v2112_v30 = vrot.slane %v10186_v53, %v9670_v55  ;;  %v2132_v3 = vrot.slane %v10186_v53, %v9675_v27 }
 0x3cf   : > { %1999 = vbcast.lane.b32.xlu1 %v1992_v0, 296  ;;  %1995 = vbcast.lane.b32.xlu0 %v1992_v0, 288 }
 0x3d3   : > { %2015 = vbcast.lane.b32.xlu1 %v2012_v22, 288  ;;  %2003 = vbcast.lane.b32.xlu0 %v1992_v0, 304 }
 0x3d7   : > { %2019 = vbcast.lane.b32.xlu1 %v2012_v22, 296  ;;  %2035 = vbcast.lane.b32.xlu0 %v2032_v47, 288 }
 0x3db   : > { %2023 = vbcast.lane.b32.xlu1 %v2012_v22, 304  ;;  %2007 = vbcast.lane.b32.xlu0 %v1992_v0, 312 }
 0x3df   : > { %2039 = vbcast.lane.b32.xlu1 %v2032_v47, 296  ;;  %2043 = vbcast.lane.b32.xlu0 %v2032_v47, 304 }
 0x3e3   : > { %2027 = vbcast.lane.b32.xlu1 %v2012_v22, 312  ;;  %2059 = vbcast.lane.b32.xlu0 %v2052_v12, 296 }
 0x3e7   : > { %2055 = vbcast.lane.b32.xlu1 %v2052_v12, 288  ;;  %2063 = vbcast.lane.b32.xlu0 %v2052_v12, 304 }
 0x3eb   : > { %2047 = vbcast.lane.b32.xlu1 %v2032_v47, 312  ;;  %2079 = vbcast.lane.b32.xlu0 %v2072_v10, 296 }
 0x3ef   : > { %2075 = vbcast.lane.b32.xlu1 %v2072_v10, 288  ;;  %2083 = vbcast.lane.b32.xlu0 %v2072_v10, 304 }
 0x3f3   : > { %2067 = vbcast.lane.b32.xlu1 %v2052_v12, 312  ;;  %2099 = vbcast.lane.b32.xlu0 %v2092_v48, 296 }
 0x3f7   : > { %2095 = vbcast.lane.b32.xlu1 %v2092_v48, 288  ;;  %2103 = vbcast.lane.b32.xlu0 %v2092_v48, 304 }
 0x3fb   : > { %2087 = vbcast.lane.b32.xlu1 %v2072_v10, 312  ;;  %2119 = vbcast.lane.b32.xlu0 %v2112_v30, 296 }
 0x3ff   : > { %2115 = vbcast.lane.b32.xlu1 %v2112_v30, 288  ;;  %2123 = vbcast.lane.b32.xlu0 %v2112_v30, 304 }
 0x403   : > { %2107 = vbcast.lane.b32.xlu1 %v2092_v48, 312  ;;  %2139 = vbcast.lane.b32.xlu0 %v2132_v3, 296 }
 0x407   : > { %2135 = vbcast.lane.b32.xlu1 %v2132_v3, 288  ;;  %2143 = vbcast.lane.b32.xlu0 %v2132_v3, 304 }
 0x40b   : > { %2127 = vbcast.lane.b32.xlu1 %v2112_v30, 312 }
 0x40f   : > { %2147 = vbcast.lane.b32.xlu1 %v2132_v3, 312 }
 0x441   : > { %v2000_v6 = vpop.permute.xlu1 %1999  ;;  %v1996_v61 = vpop.permute.xlu0 %1995 }
 0x442   : > { %v2232_v46 = vmul.f32 %v2000_v6, %v9749_v36  ;;  %v2231_v24 = vmul.f32 %v1996_v61, %v9752_v18  ;;  %v2150_v49 = vmul.f32 0.05, %v2000_v6  ;;  %v2149_v8 = vmul.f32 0.05, %v1996_v61  ;;  %v8563_v61 = vld [vmem:[%s9190_s13 + $0x20] sm:$0xff] }
 0x443   : > { %v2475_v36 = vcombine.high %v13999_v45, %v13999_v45  ;;  %v10245_v6 = vrot.slane %v2490_v37, %v9304_v17 }
 0x444   : > { %v2304_v43 = vsub.f32 %v10208_v1, %v2232_v46  ;;  %v2303_v13 = vsub.f32 %v10208_v1, %v2231_v24 }
 0x445   : > { %v2016_v50 = vpop.permute.xlu1 %2015  ;;  %v2004_v35 = vpop.permute.xlu0 %2003  ;;  %v10238_v3 = vrot.slane %v2475_v36, %v9304_v17 }
 0x446   : > { %v2336_v18 = vmul.f32 %v2304_v43, %v2150_v49  ;;  %v2335_v59 = vmul.f32 %v2303_v13, %v2149_v8  ;;  %v2235_v41 = vmul.f32 %v2016_v50, %v9780_v5  ;;  %v2233_v62 = vmul.f32 %v2004_v35, %v9809_v14 }
 0x447   : > { %v2153_v33 = vmul.f32 0.05, %v2016_v50  ;;  %v2151_v22 = vmul.f32 0.05, %v2004_v35  ;;  %v2498_v5 = vrot.slane %v2482_v23, %v9304_v17 }
 0x448   : > { %v2368_v2 = vadd.f32 %v8561_v34, %v2336_v18  ;;  %v2367_v40 = vadd.f32 %v8562_v32, %v2335_v59  ;;  %v2307_v0 = vsub.f32 %v10223_v51, %v2235_v41  ;;  %v2305_v47 = vsub.f32 %v10208_v1, %v2233_v62 }
 0x449   : > { %v2020_v12 = vpop.permute.xlu1 %2019  ;;  %v2036_v10 = vpop.permute.xlu0 %2035  ;;  %v2520_v35 = vcombine.high %v2498_v5, %v2498_v5  ;;  %v10257_v59 = vrot.slane %v2498_v5, %v9314_v26  ;;  %v10268_v62 = vrot.slane %v10245_v6, %v9314_v26 }
 0x44a   : > { %2400 = vst.msk [vmem:[%s9190_s13 + $0x8] sm:$0xff] %vm319_vm0, %v2368_v2  ;;  %2399 = vst.msk [vmem:[%s9190_s13] sm:$0xff] %vm319_vm0, %v2367_v40  ;;  %v2339_v48 = vmul.f32 %v2307_v0, %v2153_v33  ;;  %v2236_v30 = vmul.f32 %v2020_v12, %v9806_v60  ;;  %v2337_v9 = vmul.f32 %v2305_v47, %v2151_v22  ;;  %v2154_v24 = vmul.f32 0.05, %v2020_v12 }
 0x44b   : > { %v2239_v63 = vmul.f32 %v2036_v10, %v9831_v57  ;;  %v2182_v60 = vcombine.high %v13998_v21, %v13998_v21  ;;  %v2157_v43 = vmul.f32 0.05, %v2036_v10  ;;  %v10261_v21 = vrot.slane %v10238_v3, %v9304_v17 }
 0x44c   : > { %v2371_v46 = vadd.f32 %v8563_v61, %v2339_v48  ;;  %v2308_v23 = vsub.f32 %v10223_v51, %v2236_v30  ;;  %v2369_v49 = vadd.f32 %v2337_v9, %v9809_v14  ;;  %v10286_v5 = vrot.slane %v2520_v35, %v9314_v26 }
 0x44d   : > { %v2311_v8 = vsub.f32 %v10241_v44, %v2239_v63  ;;  %v2024_v13 = vpop.permute.xlu1 %2023  ;;  %v2008_v50 = vpop.permute.xlu0 %2007  ;;  %v10275_v32 = vrot.slane %v2182_v60, %v9304_v17 }
 0x44e   : > { %2403 = vst.msk [vmem:[%s9190_s13 + $0x20] sm:$0xff] %vm319_vm0, %v2371_v46  ;;  %v2340_v36 = vmul.f32 %v2308_v23, %v2154_v24  ;;  %v2237_v18 = vmul.f32 %v2024_v13, %v9837_v19  ;;  %2401 = vst.msk [vmem:[%s9190_s13 + $0x10] sm:$0xff] %vm319_vm0, %v2369_v49  ;;  %v2234_v41 = vmul.f32 %v2008_v50, %v9866_v56  ;;  %v2155_v34 = vmul.f32 0.05, %v2024_v13  ;;  %v8565_v46 = vld [vmem:[%s9190_s13 + $0x30] sm:$0xff] }
 0x44f   : > { %v2343_v14 = vmul.f32 %v2311_v8, %v2157_v43  ;;  %v2522_v19 = vcombine.high %v10245_v6, %v10245_v6  ;;  %v2152_v33 = vmul.f32 0.05, %v2008_v50 }
 0x450   : > { %v2372_v37 = vadd.f32 %v8564_v58, %v2340_v36  ;;  %v2309_v2 = vsub.f32 %v10223_v51, %v2237_v18  ;;  %v2306_v0 = vsub.f32 %v10208_v1, %v2234_v41  ;;  %v10295_v1 = vrot.slane %v10261_v21, %v9314_v26 }
 0x451   : > { %v2375_v40 = vadd.f32 %v2343_v14, %v9831_v57  ;;  %v2040_v22 = vpop.permute.xlu1 %2039  ;;  %v2044_v47 = vpop.permute.xlu0 %2043  ;;  %v10280_v12 = vld [vmem:[%s9190_s13 + $0x8] sm:$0xff]  ;;  %v10283_v10 = vld [vmem:[%s9190_s13] sm:$0xff]  ;;  %v2229_v57 = vcombine.high %v10213_v20, %v10213_v20 }
 0x452   : > { %2404 = vst.msk [vmem:[%s9190_s13 + $0x28] sm:$0xff] %vm319_vm0, %v2372_v37  ;;  %v2341_v48 = vmul.f32 %v2309_v2, %v2155_v34  ;;  %v2240_v30 = vmul.f32 %v2040_v22, %v9863_v38  ;;  %v2338_v9 = vmul.f32 %v2306_v0, %v2152_v33  ;;  %v2241_v63 = vmul.f32 %v2044_v47, %v9886_v28  ;;  %v14000_v37 = vld [vmem:[#allocation17_spill] sm:$0xff] }
 0x453   : > { %2407 = vst.msk [vmem:[%s9190_s13 + $0x40] sm:$0xff] %vm319_vm0, %v2375_v40  ;;  %v2565_v61 = vmul.f32 %v10257_v59, %v10280_v12  ;;  %v2564_v38 = vmul.f32 %v10257_v59, %v10283_v10  ;;  %v2158_v20 = vmul.f32 0.05, %v2040_v22  ;;  %v2159_v60 = vmul.f32 0.05, %v2044_v47 }
 0x454   : > { %v2373_v24 = vadd.f32 %v8565_v46, %v2341_v48  ;;  %v2312_v23 = vsub.f32 %v10241_v44, %v2240_v30  ;;  %v2370_v49 = vadd.f32 %v2338_v9, %v9866_v56  ;;  %v2313_v43 = vsub.f32 %v10241_v44, %v2241_v63 }
 0x455   : > { %v2028_v8 = vpop.permute.xlu1 %2027  ;;  %v2060_v13 = vpop.permute.xlu0 %2059  ;;  %v2599_v50 = vsel %vm319_vm0, %v2565_v61, 0.0  ;;  %v2596_v35 = vsel %vm319_vm0, %v2564_v38, 0.0  ;;  %v10311_v36 = vld [vmem:[%s9190_s13 + $0x20] sm:$0xff]  ;;  %v2491_v56 = vcombine.high %v10238_v3, %v10238_v3  ;;  %v10321_v58 = vrot.slane %v2229_v57, %v9314_v26  ;;  %v10339_v61 = vld [vmem:[%s9190_s13 + $0x10] sm:$0xff] }
 0x456   : > { %2405 = vst.msk [vmem:[%s9190_s13 + $0x30] sm:$0xff] %vm319_vm0, %v2373_v24  ;;  %v2344_v18 = vmul.f32 %v2312_v23, %v2158_v20  ;;  %v2238_v14 = vmul.f32 %v2028_v8, %v9892_v54  ;;  %2600 = vadd.xlane.f32.xlu1 %v2599_v50  ;;  %2597 = vadd.xlane.f32.xlu0 %v2596_v35  ;;  %2402 = vst.msk [vmem:[%s9190_s13 + $0x18] sm:$0xff] %vm319_vm0, %v2370_v49  ;;  %v8566_v54 = vld [vmem:[%s9190_s13 + $0x48] sm:$0xff]  ;;  %v2156_v33 = vmul.f32 0.05, %v2028_v8  ;;  %v14001_v38 = vld [vmem:[#allocation16_spill] sm:$0xff] }
 0x457   : > { %v2345_v41 = vmul.f32 %v2313_v43, %v2159_v60  ;;  %v2244_v34 = vmul.f32 %v2060_v13, %v14000_v37  ;;  %v2568_v2 = vmul.f32 %v10268_v62, %v10311_v36  ;;  %v10330_v3 = vrot.slane %v10275_v32, %v9304_v17  ;;  %v14002_v23 = vld [vmem:[#allocation18_spill] sm:$0xff] }
 0x458   : > { %v2376_v40 = vadd.f32 %v8566_v54, %v2344_v18  ;;  %v2310_v0 = vsub.f32 %v10223_v51, %v2238_v14  ;;  %v2162_v47 = vmul.f32 0.05, %v2060_v13  ;;  %v10350_v24 = vrot.slane %v2522_v19, %v9314_v26 }
 0x459   : > { %v2377_v22 = vadd.f32 %v2345_v41, %v9886_v28  ;;  %v2316_v48 = vsub.f32 %v10321_v58, %v2244_v34  ;;  %v2056_v30 = vpop.permute.xlu1 %2055  ;;  %v2064_v57 = vpop.permute.xlu0 %2063  ;;  %v2608_v9 = vsel %vm319_vm0, %v2568_v2, 0.0  ;;  %v10336_v63 = vld [vmem:[%s9190_s13 + $0x28] sm:$0xff]  ;;  %v2198_v28 = vcombine.high %v10275_v32, %v10275_v32  ;;  %v8567_v32 = vld [vmem:[%s9190_s13 + $0x38] sm:$0xff] }
 0x45a   : > { %2408 = vst.msk [vmem:[%s9190_s13 + $0x48] sm:$0xff] %vm319_vm0, %v2376_v40  ;;  %v2342_v51 = vmul.f32 %v2310_v0, %v2156_v33  ;;  %v2243_v46 = vmul.f32 %v2056_v30, %v14001_v38  ;;  %2609 = vadd.xlane.f32.xlu0 %v2608_v9  ;;  %v2245_v60 = vmul.f32 %v2064_v57, %v14002_v23  ;;  %v2161_v13 = vmul.f32 0.05, %v2056_v30  ;;  %v10365_v50 = vld [vmem:[%s9190_s13 + $0x40] sm:$0xff]  ;;  %v14003_v40 = vld [vmem:[#allocation19_spill] sm:$0xff] }
 0x45b   : > { %2409 = vst.msk [vmem:[%s9190_s13 + $0x50] sm:$0xff] %vm319_vm0, %v2377_v22  ;;  %v2348_v20 = vmul.f32 %v2316_v48, %v2162_v47  ;;  %v2569_v49 = vmul.f32 %v10268_v62, %v10336_v63  ;;  %v10358_v43 = vrot.slane %v2491_v56, %v9304_v17  ;;  %v2566_v19 = vmul.f32 %v10257_v59, %v10339_v61  ;;  %v14004_v47 = vld [vmem:[#allocation34_spill] sm:$0xff]  ;;  %v8568_v9 = vld [vmem:[%s9190_s13 + $0x60] sm:$0xff] }
 0x45c   : > { %v2374_v8 = vadd.f32 %v8567_v32, %v2342_v51  ;;  %v2315_v6 = vsub.f32 %v10321_v58, %v2243_v46  ;;  %v2163_v18 = vmul.f32 0.05, %v2064_v57  ;;  %v2317_v14 = vsub.f32 %v10321_v58, %v2245_v60 }
 0x45d   : > { %v2380_v35 = vadd.f32 %v2348_v20, %v14000_v37  ;;  %v2048_v41 = vpop.permute.xlu1 %2047  ;;  %v2080_v56 = vpop.permute.xlu0 %2079  ;;  %v2611_v34 = vsel %vm319_vm0, %v2569_v49, 0.0  ;;  %v10371_v2 = vld [vmem:[%s9190_s13 + $0x30] sm:$0xff]  ;;  %v10378_v0 = vrot.slane %v10330_v3, %v9314_v26  ;;  %v10381_v37 = vrot.slane %v2198_v28, %v9304_v17 }
 0x45e   : > { %2406 = vst.msk [vmem:[%s9190_s13 + $0x38] sm:$0xff] %vm319_vm0, %v2374_v8  ;;  %v2347_v54 = vmul.f32 %v2315_v6, %v2161_v13  ;;  %v2242_v33 = vmul.f32 %v2048_v41, %v14003_v40  ;;  %2612 = vadd.xlane.f32.xlu0 %v2611_v34  ;;  %v2349_v22 = vmul.f32 %v2317_v14, %v2163_v18  ;;  %v2160_v38 = vmul.f32 0.05, %v2048_v41  ;;  %v14005_v18 = vld [vmem:[#allocation20_spill] sm:$0xff]  ;;  %v14006_v41 = vld [vmem:[#allocation35_spill] sm:$0xff] }
 0x45f   : > { %2412 = vst.msk [vmem:[%s9190_s13 + $0x68] sm:$0xff] %vm319_vm0, %v2380_v35  ;;  %v2248_v48 = vmul.f32 %v2080_v56, %v14004_v47  ;;  %v2570_v30 = vmul.f32 %v10268_v62, %v10371_v2  ;;  %v2572_v57 = vmul.f32 %v10286_v5, %v10365_v50  ;;  %v2602_v28 = vsel %vm319_vm0, %v2566_v19, 0.0  ;;  %v10400_v35 = vld [vmem:[%s9190_s13 + $0x18] sm:$0xff] }
 0x460   : > { %v2379_v51 = vadd.f32 %v8568_v9, %v2347_v54  ;;  %v2314_v46 = vsub.f32 %v10241_v44, %v2242_v33  ;;  %v2381_v20 = vadd.f32 %v2349_v22, %v14002_v23  ;;  %v2166_v60 = vmul.f32 0.05, %v2080_v56  ;;  %v8569_v40 = vld [vmem:[%s9190_s13 + $0x58] sm:$0xff] }
 0x461   : > { %v2320_v49 = vsub.f32 %v10378_v0, %v2248_v48  ;;  %v2076_v32 = vpop.permute.xlu1 %2075  ;;  %v2084_v8 = vpop.permute.xlu0 %2083  ;;  %v2614_v13 = vsel %vm319_vm0, %v2570_v30, 0.0  ;;  %v10397_v6 = vld [vmem:[%s9190_s13 + $0x48] sm:$0xff]  ;;  %v2228_v23 = vcombine.high %v10330_v3, %v10330_v3  ;;  %v2620_v54 = vsel %vm319_vm0, %v2572_v57, 0.0 }
 0x462   : > { %2411 = vst.msk [vmem:[%s9190_s13 + $0x60] sm:$0xff] %vm319_vm0, %v2379_v51  ;;  %v2346_v44 = vmul.f32 %v2314_v46, %v2160_v38  ;;  %v2247_v19 = vmul.f32 %v2076_v32, %v14005_v18  ;;  %2615 = vadd.xlane.f32.xlu1 %v2614_v13  ;;  %2603 = vadd.xlane.f32.xlu0 %v2602_v28  ;;  %2413 = vst.msk [vmem:[%s9190_s13 + $0x70] sm:$0xff] %vm319_vm0, %v2381_v20  ;;  %v2165_v22 = vmul.f32 0.05, %v2076_v32  ;;  %v10418_v9 = vld [vmem:[%s9190_s13 + $0x50] sm:$0xff]  ;;  %v14008_v32 = vld [vmem:[#allocation36_spill] sm:$0xff] }
 0x463   : > { %v2352_v14 = vmul.f32 %v2320_v49, %v2166_v60  ;;  %v2249_v56 = vmul.f32 %v2084_v8, %v14006_v41  ;;  %v2573_v34 = vmul.f32 %v10286_v5, %v10397_v6  ;;  %v2567_v30 = vmul.f32 %v10257_v59, %v10400_v35 }
 0x464   : > { %v2378_v33 = vadd.f32 %v8569_v40, %v2346_v44  ;;  %v2319_v48 = vsub.f32 %v10378_v0, %v2247_v19  ;;  %v2167_v38 = vmul.f32 0.05, %v2084_v8  ;;  %v10431_v59 = vrot.slane %v10381_v37, %v9314_v26  ;;  %v14009_v8 = vld [vmem:[#allocation38_spill] sm:$0xff] }
 0x465   : > { %v2384_v51 = vadd.f32 %v2352_v14, %v14004_v47  ;;  %v2321_v46 = vsub.f32 %v10378_v0, %v2249_v56  ;;  %v2068_v28 = vpop.permute.xlu1 %2067  ;;  %v2100_v20 = vpop.permute.xlu0 %2099  ;;  %v2623_v57 = vsel %vm319_vm0, %v2573_v34, 0.0  ;;  %v10424_v60 = vld [vmem:[%s9190_s13 + $0x38] sm:$0xff]  ;;  %v2574_v19 = vmul.f32 %v10286_v5, %v10418_v9  ;;  %v8570_v14 = vld [vmem:[%s9190_s13 + $0x80] sm:$0xff] }
 0x466   : > { %14007 = vst [vmem:[#allocation21_spill] sm:$0xff] %v10424_v60  ;;  %2410 = vst.msk [vmem:[%s9190_s13 + $0x58] sm:$0xff] %vm319_vm0, %v2378_v33  ;;  %v2351_v49 = vmul.f32 %v2319_v48, %v2165_v22  ;;  %v2246_v13 = vmul.f32 %v2068_v28, %v14008_v32  ;;  %2624 = vadd.xlane.f32.xlu1 %v2623_v57  ;;  %2621 = vadd.xlane.f32.xlu0 %v2620_v54  ;;  %v2164_v34 = vmul.f32 0.05, %v2068_v28  ;;  %v10450_v57 = vld [vmem:[%s9190_s13 + $0x68] sm:$0xff] }
 0x467   : > { %2416 = vst.msk [vmem:[%s9190_s13 + $0x88] sm:$0xff] %vm319_vm0, %v2384_v51  ;;  %v2353_v47 = vmul.f32 %v2321_v46, %v2167_v38  ;;  %v2252_v44 = vmul.f32 %v2100_v20, %v14009_v8  ;;  %v2571_v18 = vmul.f32 %v10268_v62, %v10424_v60  ;;  %v2605_v54 = vsel %vm319_vm0, %v2567_v30, 0.0  ;;  %14011 = vst [vmem:[#allocation17_spill] sm:$0xff] %v10450_v57  ;;  %v14012_v28 = vld [vmem:[#allocation37_spill] sm:$0xff] }
 0x468   : > { %v2383_v56 = vadd.f32 %v8570_v14, %v2351_v49  ;;  %v2318_v40 = vsub.f32 %v10321_v58, %v2246_v13  ;;  %v2170_v22 = vmul.f32 0.05, %v2100_v20  ;;  %v14013_v49 = vld [vmem:[#allocation40_spill] sm:$0xff]  ;;  %v2626_v13 = vsel %vm319_vm0, %v2574_v19, 0.0 }
 0x469   : > { %v2385_v33 = vadd.f32 %v2353_v47, %v14006_v41  ;;  %v2324_v48 = vsub.f32 %v10431_v59, %v2252_v44  ;;  %v2096_v51 = vpop.permute.xlu1 %2095  ;;  %v2104_v38 = vpop.permute.xlu0 %2103  ;;  %v2617_v62 = vsel %vm319_vm0, %v2571_v18, 0.0  ;;  %v10447_v46 = vld [vmem:[%s9190_s13 + $0x60] sm:$0xff]  ;;  %v10457_v41 = vrot.slane %v10358_v43, %v9314_v26  ;;  %v8571_v44 = vld [vmem:[%s9190_s13 + $0x78] sm:$0xff] }
 0x46a   : > { %14010 = vst [vmem:[#allocation22_spill] sm:$0xff] %v10447_v46  ;;  %2415 = vst.msk [vmem:[%s9190_s13 + $0x80] sm:$0xff] %vm319_vm0, %v2383_v56  ;;  %v2350_v58 = vmul.f32 %v2318_v40, %v2164_v34  ;;  %v2251_v30 = vmul.f32 %v2096_v51, %v14012_v28  ;;  %2618 = vadd.xlane.f32.xlu1 %v2617_v62  ;;  %2606 = vadd.xlane.f32.xlu0 %v2605_v54  ;;  %v2169_v14 = vmul.f32 0.05, %v2096_v51  ;;  %v10470_v40 = vld [vmem:[%s9190_s13 + $0x70] sm:$0xff]  ;;  %v14016_v28 = vld [vmem:[#allocation39_spill] sm:$0xff] }
 0x46b   : > { %2417 = vst.msk [vmem:[%s9190_s13 + $0x90] sm:$0xff] %vm319_vm0, %v2385_v33  ;;  %v2356_v20 = vmul.f32 %v2324_v48, %v2170_v22  ;;  %v2253_v32 = vmul.f32 %v2104_v38, %v14013_v49  ;;  %v2576_v47 = vmul.f32 %v10350_v24, %v10447_v46  ;;  %v2577_v34 = vmul.f32 %v10350_v24, %v10450_v57 }
 0x46c   : > { %v2382_v18 = vadd.f32 %v8571_v44, %v2350_v58  ;;  %v2323_v56 = vsub.f32 %v10431_v59, %v2251_v30  ;;  %14014 = vst [vmem:[#allocation16_spill] sm:$0xff] %v10470_v40  ;;  %v2171_v33 = vmul.f32 0.05, %v2104_v38  ;;  %v2578_v44 = vmul.f32 %v10350_v24, %v10470_v40 }
 0x46d   : > { %v2388_v54 = vadd.f32 %v2356_v20, %v14009_v8  ;;  %v2325_v22 = vsub.f32 %v10431_v59, %v2253_v32  ;;  %v2088_v19 = vpop.permute.xlu1 %2087  ;;  %v2120_v48 = vpop.permute.xlu0 %2119  ;;  %v2632_v62 = vsel %vm319_vm0, %v2576_v47, 0.0  ;;  %v10476_v58 = vld [vmem:[%s9190_s13 + $0x58] sm:$0xff]  ;;  %v10485_v8 = vrot.slane %v2228_v23, %v9314_v26  ;;  %v14017_v20 = vld [vmem:[#allocation42_spill] sm:$0xff] }
 0x46e   : > { %14015 = vst [vmem:[#allocation18_spill] sm:$0xff] %v10476_v58  ;;  %2414 = vst.msk [vmem:[%s9190_s13 + $0x78] sm:$0xff] %vm319_vm0, %v2382_v18  ;;  %v2355_v51 = vmul.f32 %v2323_v56, %v2169_v14  ;;  %v2250_v30 = vmul.f32 %v2088_v19, %v14016_v28  ;;  %2627 = vadd.xlane.f32.xlu0 %v2626_v13  ;;  %2633 = vadd.xlane.f32.xlu1 %v2632_v62  ;;  %v8572_v18 = vld [vmem:[%s9190_s13 + $0xa0] sm:$0xff]  ;;  %v2168_v23 = vmul.f32 0.05, %v2088_v19  ;;  %v14020_v19 = vld [vmem:[#allocation41_spill] sm:$0xff] }
 0x46f   : > { %2420 = vst.msk [vmem:[%s9190_s13 + $0xa8] sm:$0xff] %vm319_vm0, %v2388_v54  ;;  %v2357_v38 = vmul.f32 %v2325_v22, %v2171_v33  ;;  %v2256_v32 = vmul.f32 %v2120_v48, %v14017_v20  ;;  %v2575_v47 = vmul.f32 %v10286_v5, %v10476_v58  ;;  %v2635_v14 = vsel %vm319_vm0, %v2577_v34, 0.0  ;;  %v10504_v58 = vld [vmem:[%s9190_s13 + $0x88] sm:$0xff] }
 0x470   : > { %v2387_v3 = vadd.f32 %v8572_v18, %v2355_v51  ;;  %v2322_v13 = vsub.f32 %v10378_v0, %v2250_v30  ;;  %v2174_v54 = vmul.f32 0.05, %v2120_v48  ;;  %14019 = vst [vmem:[#allocation34_spill] sm:$0xff] %v10504_v58  ;;  %v14021_v51 = vld [vmem:[#allocation44_spill] sm:$0xff] }
 0x471   : > { %v2389_v56 = vadd.f32 %v2357_v38, %v14013_v49  ;;  %v2328_v33 = vsub.f32 %v10485_v8, %v2256_v32  ;;  %v2116_v22 = vpop.permute.xlu1 %2115  ;;  %v2124_v62 = vpop.permute.xlu0 %2123  ;;  %v2629_v5 = vsel %vm319_vm0, %v2575_v47, 0.0  ;;  %v10501_v28 = vld [vmem:[%s9190_s13 + $0x80] sm:$0xff]  ;;  %v2230_v49 = vcombine.high %v10381_v37, %v10381_v37  ;;  %v8573_v47 = vld [vmem:[%s9190_s13 + $0x98] sm:$0xff] }
 0x472   : > { %14018 = vst [vmem:[#allocation19_spill] sm:$0xff] %v10501_v28  ;;  %2419 = vst.msk [vmem:[%s9190_s13 + $0xa0] sm:$0xff] %vm319_vm0, %v2387_v3  ;;  %v2354_v0 = vmul.f32 %v2322_v13, %v2168_v23  ;;  %v2255_v34 = vmul.f32 %v2116_v22, %v14020_v19  ;;  %2636 = vadd.xlane.f32.xlu0 %v2635_v14  ;;  %2630 = vadd.xlane.f32.xlu1 %v2629_v5  ;;  %v2638_v38 = vsel %vm319_vm0, %v2578_v44, 0.0  ;;  %v10522_v13 = vld [vmem:[%s9190_s13 + $0x90] sm:$0xff]  ;;  %v14024_v19 = vld [vmem:[#allocation43_spill] sm:$0xff] }
 0x473   : > { %2421 = vst.msk [vmem:[%s9190_s13 + $0xb0] sm:$0xff] %vm319_vm0, %v2389_v56  ;;  %v2360_v48 = vmul.f32 %v2328_v33, %v2174_v54  ;;  %v2257_v30 = vmul.f32 %v2124_v62, %v14021_v51  ;;  %v2580_v32 = vmul.f32 %v10295_v1, %v10501_v28  ;;  %v2173_v3 = vmul.f32 0.05, %v2116_v22  ;;  %14022 = vst [vmem:[#allocation20_spill] sm:$0xff] %v10522_v13 }
 0x474   : > { %v2386_v18 = vadd.f32 %v8573_v47, %v2354_v0  ;;  %v2327_v23 = vsub.f32 %v10485_v8, %v2255_v34  ;;  %v2581_v37 = vmul.f32 %v10295_v1, %v10504_v58  ;;  %v2175_v56 = vmul.f32 0.05, %v2124_v62  ;;  %v14025_v62 = vld [vmem:[#allocation46_spill] sm:$0xff] }
 0x475   : > { %v2392_v14 = vadd.f32 %v2360_v48, %v14017_v20  ;;  %v2329_v54 = vsub.f32 %v10485_v8, %v2257_v30  ;;  %v2108_v44 = vpop.permute.xlu1 %2107  ;;  %v2140_v33 = vpop.permute.xlu0 %2139  ;;  %v2644_v5 = vsel %vm319_vm0, %v2580_v32, 0.0  ;;  %v10528_v0 = vld [vmem:[%s9190_s13 + $0x78] sm:$0xff]  ;;  %v10534_v47 = vrot.slane %v2230_v49, %v9314_v26 }
 0x476   : > { %14023 = vst [vmem:[#allocation35_spill] sm:$0xff] %v10528_v0  ;;  %2418 = vst.msk [vmem:[%s9190_s13 + $0x98] sm:$0xff] %vm319_vm0, %v2386_v18  ;;  %v2359_v22 = vmul.f32 %v2327_v23, %v2173_v3  ;;  %v2254_v34 = vmul.f32 %v2108_v44, %v14024_v19  ;;  %2639 = vadd.xlane.f32.xlu0 %v2638_v38  ;;  %2645 = vadd.xlane.f32.xlu1 %v2644_v5  ;;  %v8574_v18 = vld [vmem:[%s9190_s13 + $0xc0] sm:$0xff]  ;;  %v2172_v49 = vmul.f32 0.05, %v2108_v44  ;;  %v14028_v44 = vld [vmem:[#allocation45_spill] sm:$0xff] }
 0x477   : > { %2424 = vst.msk [vmem:[%s9190_s13 + $0xc8] sm:$0xff] %vm319_vm0, %v2392_v14  ;;  %v2361_v20 = vmul.f32 %v2329_v54, %v2175_v56  ;;  %v2260_v48 = vmul.f32 %v2140_v33, %v14025_v62  ;;  %v2579_v30 = vmul.f32 %v10350_v24, %v10528_v0  ;;  %v2582_v32 = vmul.f32 %v10295_v1, %v10522_v13  ;;  %v10553_v0 = vld [vmem:[%s9190_s13 + $0xa8] sm:$0xff] }
 0x478   : > { %v2391_v3 = vadd.f32 %v8574_v18, %v2359_v22  ;;  %v2326_v38 = vsub.f32 %v10431_v59, %v2254_v34  ;;  %v2647_v23 = vsel %vm319_vm0, %v2581_v37, 0.0  ;;  %v2178_v56 = vmul.f32 0.05, %v2140_v33  ;;  %14027 = vst [vmem:[#allocation38_spill] sm:$0xff] %v10553_v0  ;;  %v14029_v22 = vld [vmem:[#allocation47_spill] sm:$0xff] }
 0x479   : > { %v2393_v14 = vadd.f32 %v2361_v20, %v14021_v51  ;;  %v2332_v54 = vsub.f32 %v10534_v47, %v2260_v48  ;;  %v2136_v5 = vpop.permute.xlu1 %2135  ;;  %v2144_v19 = vpop.permute.xlu0 %2143  ;;  %v2641_v24 = vsel %vm319_vm0, %v2579_v30, 0.0  ;;  %v10550_v62 = vld [vmem:[%s9190_s13 + $0xa0] sm:$0xff]  ;;  %v2521_v51 = vcombine.high %v10261_v21, %v10261_v21  ;;  %v8575_v30 = vld [vmem:[%s9190_s13 + $0xb8] sm:$0xff] }
 0x47a   : > { %14026 = vst [vmem:[#allocation36_spill] sm:$0xff] %v10550_v62  ;;  %2423 = vst.msk [vmem:[%s9190_s13 + $0xc0] sm:$0xff] %vm319_vm0, %v2391_v3  ;;  %v2358_v59 = vmul.f32 %v2326_v38, %v2172_v49  ;;  %v2259_v37 = vmul.f32 %v2136_v5, %v14028_v44  ;;  %2648 = vadd.xlane.f32.xlu0 %v2647_v23  ;;  %2642 = vadd.xlane.f32.xlu1 %v2641_v24  ;;  %v2650_v20 = vsel %vm319_vm0, %v2582_v32, 0.0  ;;  %v8576_v38 = vld [vmem:[%s9190_s13 + $0xe8] sm:$0xff] }
 0x47b   : > { %2425 = vst.msk [vmem:[%s9190_s13 + $0xd0] sm:$0xff] %vm319_vm0, %v2393_v14  ;;  %v2364_v33 = vmul.f32 %v2332_v54, %v2178_v56  ;;  %v2261_v34 = vmul.f32 %v2144_v19, %v14029_v22  ;;  %v2584_v48 = vmul.f32 %v10457_v41, %v10550_v62  ;;  %v2177_v3 = vmul.f32 0.05, %v2136_v5 }
 0x47c   : > { %v2390_v18 = vadd.f32 %v8575_v30, %v2358_v59  ;;  %v2331_v49 = vsub.f32 %v10534_v47, %v2259_v37  ;;  %v2585_v21 = vmul.f32 %v10457_v41, %v10553_v0  ;;  %v2179_v14 = vmul.f32 0.05, %v2144_v19  ;;  %v8577_v59 = vld [vmem:[%s9190_s13 + $0xd8] sm:$0xff]  ;;  %v10582_v37 = vld [vmem:[%s9190_s13 + $0xb0] sm:$0xff] }
 0x47d   : > { %v2396_v23 = vadd.f32 %v8576_v38, %v2364_v33  ;;  %v2333_v32 = vsub.f32 %v10534_v47, %v2261_v34  ;;  %v2128_v56 = vpop.permute.xlu1 %2127  ;;  %v2656_v54 = vsel %vm319_vm0, %v2584_v48, 0.0  ;;  %v10574_v24 = vld [vmem:[%s9190_s13 + $0x98] sm:$0xff]  ;;  %14031 = vst [vmem:[#allocation40_spill] sm:$0xff] %v10582_v37  ;;  %v2551_v22 = vrot.slane %v2521_v51, %v9314_v26  ;;  %v8578_v34 = vld [vmem:[%s9190_s13 + $0xe0] sm:$0xff] }
 0x47e   : > { %14030 = vst [vmem:[#allocation37_spill] sm:$0xff] %v10574_v24  ;;  %2422 = vst.msk [vmem:[%s9190_s13 + $0xb8] sm:$0xff] %vm319_vm0, %v2390_v18  ;;  %v2363_v5 = vmul.f32 %v2331_v49, %v2177_v3  ;;  %v2258_v44 = vmul.f32 %v8577_v59, %v2128_v56  ;;  %2651 = vadd.xlane.f32.xlu0 %v2650_v20  ;;  %2657 = vadd.xlane.f32.xlu1 %v2656_v54  ;;  %v2176_v30 = vmul.f32 0.05, %v2128_v56  ;;  %v8579_v3 = vld [vmem:[%s9190_s13 + $0xf0] sm:$0xff]  ;;  %v10602_v54 = vld [vmem:[%s9190_s13 + $0xc8] sm:$0xff] }
 0x47f   : > { %v2583_v19 = vmul.f32 %v10295_v1, %v10574_v24  ;;  %2428 = vst.msk [vmem:[%s9190_s13 + $0xe8] sm:$0xff] %vm319_vm0, %v2396_v23  ;;  %v2365_v33 = vmul.f32 %v2333_v32, %v2179_v14  ;;  %v2659_v38 = vsel %vm319_vm0, %v2585_v21, 0.0  ;;  %v2586_v23 = vmul.f32 %v10457_v41, %v10582_v37  ;;  %v8580_v32 = vld [vmem:[%s9190_s13 + $0xf8] sm:$0xff]  ;;  %14033 = vst [vmem:[#allocation42_spill] sm:$0xff] %v10602_v54 }
 0x480   : > { %v2395_v48 = vadd.f32 %v8578_v34, %v2363_v5  ;;  %v2330_v20 = vsub.f32 %v10485_v8, %v2258_v44  ;;  %v2523_v21 = vcombine.high %v10358_v43, %v10358_v43 }
 0x481   : > { %v2653_v18 = vsel %vm319_vm0, %v2583_v19, 0.0  ;;  %v2397_v1 = vadd.f32 %v8579_v3, %v2365_v33  ;;  %v2148_v49 = vpop.permute.xlu1 %2147  ;;  %v10595_v14 = vld [vmem:[%s9190_s13 + $0xc0] sm:$0xff]  ;;  %v2662_v34 = vsel %vm319_vm0, %v2586_v23, 0.0 }
 0x482   : > { %14032 = vst [vmem:[#allocation39_spill] sm:$0xff] %v10595_v14  ;;  %2427 = vst.msk [vmem:[%s9190_s13 + $0xe0] sm:$0xff] %vm319_vm0, %v2395_v48  ;;  %v2362_v51 = vmul.f32 %v2330_v20, %v2176_v30  ;;  %v2262_v8 = vmul.f32 %v8580_v32, %v2148_v49  ;;  %2660 = vadd.xlane.f32.xlu0 %v2659_v38  ;;  %2654 = vadd.xlane.f32.xlu1 %v2653_v18  ;;  %v2180_v44 = vmul.f32 0.05, %v2148_v49 }
 0x483   : > { %v2588_v56 = vmul.f32 %v2551_v22, %v10595_v14  ;;  %2429 = vst.msk [vmem:[%s9190_s13 + $0xf0] sm:$0xff] %vm319_vm0, %v2397_v1  ;;  %v2589_v48 = vmul.f32 %v2551_v22, %v10602_v54  ;;  %v2555_v3 = vrot.slane %v2523_v21, %v9314_v26 }
 0x484   : > { %v2394_v5 = vadd.f32 %v8577_v59, %v2362_v51  ;;  %v2334_v19 = vsub.f32 %v10534_v47, %v2262_v8  ;;  %v10620_v47 = vld [vmem:[%s9190_s13 + $0xd0] sm:$0xff] }
 0x485   : > { %v2668_v33 = vsel %vm319_vm0, %v2588_v56, 0.0  ;;  %v10613_v30 = vld [vmem:[%s9190_s13 + $0xb8] sm:$0xff]  ;;  %14035 = vst [vmem:[#allocation44_spill] sm:$0xff] %v10620_v47  ;;  %v2671_v1 = vsel %vm319_vm0, %v2589_v48, 0.0  ;;  %v2590_v49 = vmul.f32 %v2551_v22, %v10620_v47 }
 0x486   : > { %14034 = vst [vmem:[#allocation41_spill] sm:$0xff] %v10613_v30  ;;  %2426 = vst.msk [vmem:[%s9190_s13 + $0xd8] sm:$0xff] %vm319_vm0, %v2394_v5  ;;  %v2366_v20 = vmul.f32 %v2334_v19, %v2180_v44  ;;  %2663 = vadd.xlane.f32.xlu0 %v2662_v34  ;;  %2669 = vadd.xlane.f32.xlu1 %v2668_v33  ;;  %v2587_v43 = vmul.f32 %v10457_v41, %v10613_v30  ;;  %v10633_v23 = vld [vmem:[%s9190_s13 + $0xe8] sm:$0xff] }
 0x487   : > { %14037 = vst [vmem:[#allocation46_spill] sm:$0xff] %v10633_v23  ;;  %v2593_v8 = vmul.f32 %v2555_v3, %v10633_v23 }
 0x488   : > { %v2398_v59 = vadd.f32 %v8580_v32, %v2366_v20  ;;  %v2665_v18 = vsel %vm319_vm0, %v2587_v43, 0.0  ;;  %v2674_v32 = vsel %vm319_vm0, %v2590_v49, 0.0 }
 0x489   : > { %v10627_v38 = vld [vmem:[%s9190_s13 + $0xe0] sm:$0xff]  ;;  %v2683_v19 = vsel %vm319_vm0, %v2593_v8, 0.0 }
 0x48a   : > { %14036 = vst [vmem:[#allocation43_spill] sm:$0xff] %v10627_v38  ;;  %2430 = vst.msk [vmem:[%s9190_s13 + $0xf8] sm:$0xff] %vm319_vm0, %v2398_v59  ;;  %2672 = vadd.xlane.f32.xlu0 %v2671_v1  ;;  %2666 = vadd.xlane.f32.xlu1 %v2665_v18  ;;  %v2592_v41 = vmul.f32 %v2555_v3, %v10627_v38  ;;  %v10640_v5 = vld [vmem:[%s9190_s13 + $0xf0] sm:$0xff] }
 0x48b   : > { %14038 = vst [vmem:[#allocation45_spill] sm:$0xff] %v10640_v5  ;;  %v2594_v33 = vmul.f32 %v2555_v3, %v10640_v5 }
 0x48c   : > { %v2680_v51 = vsel %vm319_vm0, %v2592_v41, 0.0 }
 0x48d   : > { %v2469_v56 = vld [vmem:[%s9190_s13 + $0xd8] sm:$0xff]  ;;  %v2686_v43 = vsel %vm319_vm0, %v2594_v33, 0.0 }
 0x48e   : > { %2675 = vadd.xlane.f32.xlu0 %v2674_v32  ;;  %2681 = vadd.xlane.f32.xlu1 %v2680_v51  ;;  %v2591_v21 = vmul.f32 %v2551_v22, %v2469_v56 }
 0x490   : > { %v2677_v44 = vsel %vm319_vm0, %v2591_v21, 0.0 }
 0x491   : > { %v2473_v34 = vld [vmem:[%s9190_s13 + $0xf8] sm:$0xff] }
 0x492   : > { %2684 = vadd.xlane.f32.xlu0 %v2683_v19  ;;  %2678 = vadd.xlane.f32.xlu1 %v2677_v44  ;;  %v2595_v48 = vmul.f32 %v2555_v3, %v2473_v34 }
 0x494   : > { %v2689_v20 = vsel %vm319_vm0, %v2595_v48, 0.0 }
 0x496   : > { %2687 = vadd.xlane.f32.xlu0 %v2686_v43  ;;  %2690 = vadd.xlane.f32.xlu1 %v2689_v20 }
 0x4e3   : > { %v2598_v59 = vpop.xlane.xlu0 %2597  ;;  %v2601_v18 = vpop.xlane.xlu1 %2600 }
 0x4e4   : > { %v2693_v38 = vmul.f32 0.2, %v2601_v18  ;;  %v2692_v23 = vmul.f32 0.2, %v2598_v59 }
 0x4e6   : > { %v2763_v13 = vrot.slane %v2693_v38, %v9552_v7  ;;  %v2759_v28 = vrot.slane %v2692_v23, %v9549_v52 }
 0x4e7   : > { %v2610_v22 = vpop.xlane.xlu0 %2609 }
 0x4e8   : > { %v2696_v54 = vmul.f32 0.2, %v2610_v22  ;;  %v2764_v38 = vsel %vm877_vm3, %v2763_v13, %v2759_v28 }
 0x4eb   : > { %v2613_v1 = vpop.xlane.xlu0 %2612 }
 0x4ec   : > { %v2697_v30 = vmul.f32 0.2, %v2613_v1  ;;  %v2778_v1 = vrot.slane %v2696_v54, %v9549_v52 }
 0x4ee   : > { %v2782_v58 = vrot.slane %v2697_v30, %v9552_v7 }
 0x4ef   : > { %v2616_v49 = vpop.xlane.xlu1 %2615  ;;  %v2604_v41 = vpop.xlane.xlu0 %2603 }
 0x4f0   : > { %v2698_v47 = vmul.f32 0.2, %v2616_v49  ;;  %v2694_v14 = vmul.f32 0.2, %v2604_v41  ;;  %v2783_v23 = vsel %vm877_vm3, %v2782_v58, %v2778_v1 }
 0x4f2   : > { %v2787_v40 = vrot.slane %v2698_v47, %v9555_v11  ;;  %v2768_v46 = vrot.slane %v2694_v14, %v9555_v11 }
 0x4f3   : > { %v2625_v51 = vpop.xlane.xlu1 %2624  ;;  %v2622_v32 = vpop.xlane.xlu0 %2621 }
 0x4f4   : > { %v2701_v18 = vmul.f32 0.2, %v2625_v51  ;;  %v2700_v59 = vmul.f32 0.2, %v2622_v32  ;;  %v2788_v47 = vsel %vm884_vm4, %v2787_v40, %v2783_v23  ;;  %v2769_v14 = vsel %vm884_vm4, %v2768_v46, %v2764_v38 }
 0x4f6   : > { %v2801_v51 = vrot.slane %v2701_v18, %v9552_v7  ;;  %v2797_v54 = vrot.slane %v2700_v59, %v9549_v52 }
 0x4f7   : > { %v2619_v8 = vpop.xlane.xlu1 %2618  ;;  %v2607_v56 = vpop.xlane.xlu0 %2606 }
 0x4f8   : > { %v2699_v24 = vmul.f32 0.2, %v2619_v8  ;;  %v2695_v37 = vmul.f32 0.2, %v2607_v56  ;;  %v2802_v40 = vsel %vm877_vm3, %v2801_v51, %v2797_v54 }
 0x4fa   : > { %v2792_v22 = vrot.slane %v2699_v24, %v9558_v16  ;;  %v2773_v49 = vrot.slane %v2695_v37, %v9558_v16 }
 0x4fb   : > { %v2628_v21 = vpop.xlane.xlu0 %2627  ;;  %v2634_v19 = vpop.xlane.xlu1 %2633 }
 0x4fc   : > { %v2702_v56 = vmul.f32 0.2, %v2628_v21  ;;  %v2793_v24 = vsel %vm891_vm5, %v2792_v22, %v2788_v47  ;;  %v2774_v37 = vsel %vm891_vm5, %v2773_v49, %v2769_v14  ;;  %v2704_v32 = vmul.f32 0.2, %v2634_v19 }
 0x4fd   : > { %v2908_v46 = vsel %vm1026_vm6, %v2793_v24, %v2774_v37 }
 0x4fe   : > { %v2806_v58 = vrot.slane %v2702_v56, %v9555_v11  ;;  %v2816_v18 = vrot.slane %v2704_v32, %v9549_v52 }
 0x4ff   : > { %v2637_v44 = vpop.xlane.xlu0 %2636  ;;  %v2631_v3 = vpop.xlane.xlu1 %2630 }
 0x500   : > { %v2705_v30 = vmul.f32 0.2, %v2637_v44  ;;  %v2703_v57 = vmul.f32 0.2, %v2631_v3  ;;  %v2807_v56 = vsel %vm884_vm4, %v2806_v58, %v2802_v40 }
 0x502   : > { %v2820_v21 = vrot.slane %v2705_v30, %v9552_v7  ;;  %v2811_v59 = vrot.slane %v2703_v57, %v9558_v16 }
 0x503   : > { %v2640_v34 = vpop.xlane.xlu0 %2639  ;;  %v2646_v48 = vpop.xlane.xlu1 %2645 }
 0x504   : > { %v2708_v44 = vmul.f32 0.2, %v2646_v48  ;;  %v2706_v1 = vmul.f32 0.2, %v2640_v34  ;;  %v2821_v30 = vsel %vm877_vm3, %v2820_v21, %v2816_v18  ;;  %v2812_v34 = vsel %vm891_vm5, %v2811_v59, %v2807_v56 }
 0x506   : > { %v2835_v48 = vrot.slane %v2708_v44, %v9549_v52 }
 0x507   : > { %v2649_v5 = vpop.xlane.xlu0 %2648  ;;  %v2643_v33 = vpop.xlane.xlu1 %2642 }
 0x508   : > { %v2709_v60 = vmul.f32 0.2, %v2649_v5  ;;  %v2707_v5 = vmul.f32 0.2, %v2643_v33 }
 0x50a   : > { %v2839_v19 = vrot.slane %v2709_v60, %v9552_v7  ;;  %v2825_v60 = vrot.slane %v2706_v1, %v9555_v11 }
 0x50b   : > { %v2652_v43 = vpop.xlane.xlu0 %2651  ;;  %v2658_v20 = vpop.xlane.xlu1 %2657 }
 0x50c   : > { %v2710_v22 = vmul.f32 0.2, %v2652_v43  ;;  %v2712_v51 = vmul.f32 0.2, %v2658_v20  ;;  %v2840_v33 = vsel %vm877_vm3, %v2839_v19, %v2835_v48  ;;  %v2830_v43 = vrot.slane %v2707_v5, %v9558_v16 }
 0x50d   : > { %v2826_v18 = vsel %vm884_vm4, %v2825_v60, %v2821_v30  ;;  %v2909_v48 = vsel %vm1028_vm7, %v2812_v34, %v2908_v46 }
 0x50e   : > { %v2854_v21 = vrot.slane %v2712_v51, %v9549_v52  ;;  %v2831_v19 = vsel %vm891_vm5, %v2830_v43, %v2826_v18  ;;  %v2926_v18 = vmul.f32 0.95122945, %v10186_v53 }
 0x50f   : > { %v2661_v62 = vpop.xlane.xlu0 %2660  ;;  %v2655_v0 = vpop.xlane.xlu1 %2654  ;;  %v2910_v60 = vsel %vm1030_vm8, %v2831_v19, %v2909_v48 }
 0x510   : > { %v2713_v3 = vmul.f32 0.2, %v2661_v62  ;;  %v2711_v49 = vmul.f32 0.2, %v2655_v0  ;;  %v2844_v62 = vrot.slane %v2710_v22, %v9555_v11 }
 0x512   : > { %v2858_v24 = vrot.slane %v2713_v3, %v9552_v7  ;;  %v2845_v59 = vsel %vm884_vm4, %v2844_v62, %v2840_v33 }
 0x513   : > { %v2664_v41 = vpop.xlane.xlu0 %2663  ;;  %v2670_v8 = vpop.xlane.xlu1 %2669 }
 0x514   : > { %v2714_v47 = vmul.f32 0.2, %v2664_v41  ;;  %v2716_v0 = vmul.f32 0.2, %v2670_v8  ;;  %v2849_v41 = vrot.slane %v2711_v49, %v9558_v16  ;;  %v2859_v5 = vsel %vm877_vm3, %v2858_v24, %v2854_v21 }
 0x515   : > { %v2919_v21 = vmul.f32 0.95122945, %v10178_v39 }
 0x516   : > { %v2863_v20 = vrot.slane %v2714_v47, %v9555_v11  ;;  %v2873_v1 = vrot.slane %v2716_v0, %v9549_v52  ;;  %v2850_v3 = vsel %vm891_vm5, %v2849_v41, %v2845_v59 }
 0x517   : > { %v2673_v28 = vpop.xlane.xlu0 %2672  ;;  %v2667_v13 = vpop.xlane.xlu1 %2666  ;;  %v2911_v43 = vsel %vm1032_vm9, %v2850_v3, %v2910_v60  ;;  %v14040_v60 = vld [vmem:[#allocation24_spill] sm:$0xff] }
 0x518   : > { %v2717_v14 = vmul.f32 0.2, %v2673_v28  ;;  %v2715_v54 = vmul.f32 0.2, %v2667_v13 }
 0x51a   : > { %v2877_v28 = vrot.slane %v2717_v14, %v9552_v7  ;;  %v2868_v8 = vrot.slane %v2715_v54, %v9558_v16 }
 0x51b   : > { %v2676_v38 = vpop.xlane.xlu0 %2675  ;;  %v2682_v23 = vpop.xlane.xlu1 %2681 }
 0x51c   : > { %v2718_v57 = vmul.f32 0.2, %v2676_v38  ;;  %v2720_v44 = vmul.f32 0.2, %v2682_v23  ;;  %v2864_v23 = vsel %vm884_vm4, %v2863_v20, %v2859_v5  ;;  %v2878_v30 = vsel %vm877_vm3, %v2877_v28, %v2873_v1  ;;  %v8581_v28 = vld [vmem:[#allocation2 + $0x10] sm:$0xff] }
 0x51d   : > { %v2869_v51 = vsel %vm891_vm5, %v2868_v8, %v2864_v23  ;;  %v2917_v20 = vmul.f32 0.9048374, %v10174_v25 }
 0x51e   : > { %v2882_v40 = vrot.slane %v2718_v57, %v9555_v11  ;;  %v2892_v57 = vrot.slane %v2720_v44, %v9549_v52  ;;  %v2912_v46 = vsel %vm1034_vm10, %v2869_v51, %v2911_v43 }
 0x51f   : > { %v2685_v37 = vpop.xlane.xlu0 %2684  ;;  %v2679_v32 = vpop.xlane.xlu1 %2678 }
 0x520   : > { %v2721_v13 = vmul.f32 0.2, %v2685_v37  ;;  %v2719_v58 = vmul.f32 0.2, %v2679_v32  ;;  %v2883_v54 = vsel %vm884_vm4, %v2882_v40, %v2878_v30 }
 0x522   : > { %v2887_v22 = vrot.slane %v2719_v58, %v9558_v16  ;;  %v2896_v49 = vrot.slane %v2721_v13, %v9552_v7 }
 0x523   : > { %v2688_v38 = vpop.xlane.xlu0 %2687  ;;  %v2691_v56 = vpop.xlane.xlu1 %2690 }
 0x524   : > { %v2722_v47 = vmul.f32 0.2, %v2688_v38  ;;  %v2723_v14 = vmul.f32 0.2, %v2691_v56  ;;  %v2888_v62 = vsel %vm891_vm5, %v2887_v22, %v2883_v54  ;;  %v2897_v24 = vsel %vm877_vm3, %v2896_v49, %v2892_v57  ;;  %v14039_v38 = vld [vmem:[#allocation23_spill] sm:$0xff] }
 0x525   : > { %v2913_v41 = vsel %vm1036_vm11, %v2888_v62, %v2912_v46  ;;  %v3129_v56 = vrot.slane %v14039_v38, %v9304_v17  ;;  %v3422_v62 = vrot.slane %v14040_v60, %v9304_v17 }
 0x526   : > { %v2901_v0 = vrot.slane %v2722_v47, %v9555_v11  ;;  %v2906_v33 = vrot.slane %v2723_v14, %v9558_v16 }
 0x527   : > { %v3145_v23 = vrot.slane %v3129_v56, %v9304_v17  ;;  %v3137_v30 = vcombine.high %v3129_v56, %v3129_v56 }
 0x528   : > { %v2902_v34 = vsel %vm884_vm4, %v2901_v0, %v2897_v24 }
 0x529   : > { %v2907_v37 = vsel %vm891_vm5, %v2906_v33, %v2902_v34  ;;  %v10746_v48 = vrot.slane %v3145_v23, %v9314_v26  ;;  %v10751_v57 = vrot.slane %v3137_v30, %v9304_v17  ;;  %v3122_v30 = vcombine.high %v14039_v38, %v14039_v38 }
 0x52a   : > { %v2914_v32 = vsel %vm1038_vm12, %v2907_v37, %v2913_v41 }
 0x52b   : > { %v2916_v13 = vadd.f32 %v8581_v28, %v2914_v32  ;;  %v10761_v37 = vrot.slane %v10751_v57, %v9314_v26  ;;  %v3167_v28 = vcombine.high %v3145_v23, %v3145_v23 }
 0x52d   : > { %v10712_v58 = vadd.f32 %v2917_v20, %v2916_v13  ;;  %v3430_v13 = vcombine.high %v3422_v62, %v3422_v62  ;;  %v10779_v56 = vrot.slane %v3167_v28, %v9314_v26 }
 0x52f   : > { %v2920_v8 = vmul.f32 0.048770577, %v10712_v58 }
 0x531   : > { %v10716_v40 = vadd.f32 %v2920_v8, %v2919_v21  ;;  %v8582_v21 = vld [vmem:[%s9190_s13 + $0x8] sm:$0xff] }
 0x533   : > { %8530 = vtanh.f32 %v10716_v40 }
 0x53d   : > { %v8531_v44 = vpop.eup %8530 }
 0x53e   : > { %v2927_v59 = vmul.f32 0.048770577, %v8531_v44  ;;  %v3371_v1 = vsel %vm319_vm0, %v13999_v45, %v8531_v44  ;;  %v8583_v44 = vld [vmem:[%s9190_s13] sm:$0xff] }
 0x53f   : > { %8340 = vst.msk [vmem:[%s9638_s26 + $0x10] sm:$0xff] %vm473_vm2, %v3371_v1 }
 0x540   : > { %v10724_v25 = vadd.f32 %v2927_v59, %v2926_v18 }
 0x542   : > { %v2932_v39 = vrot.slane %v10724_v25, %v9314_v26  ;;  %v2952_v22 = vrot.slane %v10724_v25, %v9645_v15  ;;  %v2972_v53 = vrot.slane %v10724_v25, %v9650_v31  ;;  %v2992_v45 = vrot.slane %v10724_v25, %v9655_v42 }
 0x543   : > { %v3012_v19 = vrot.slane %v10724_v25, %v9660_v29  ;;  %v3032_v5 = vrot.slane %v10724_v25, %v9665_v4  ;;  %v3052_v3 = vrot.slane %v10724_v25, %v9670_v55  ;;  %v3072_v49 = vrot.slane %v10724_v25, %v9675_v27 }
 0x544   : > { %2939 = vbcast.lane.b32.xlu1 %v2932_v39, 296  ;;  %2935 = vbcast.lane.b32.xlu0 %v2932_v39, 288 }
 0x548   : > { %2955 = vbcast.lane.b32.xlu1 %v2952_v22, 288  ;;  %2943 = vbcast.lane.b32.xlu0 %v2932_v39, 304 }
 0x54c   : > { %2959 = vbcast.lane.b32.xlu1 %v2952_v22, 296  ;;  %2975 = vbcast.lane.b32.xlu0 %v2972_v53, 288 }
 0x550   : > { %2963 = vbcast.lane.b32.xlu1 %v2952_v22, 304  ;;  %2947 = vbcast.lane.b32.xlu0 %v2932_v39, 312 }
 0x554   : > { %2979 = vbcast.lane.b32.xlu1 %v2972_v53, 296  ;;  %2983 = vbcast.lane.b32.xlu0 %v2972_v53, 304 }
 0x558   : > { %2967 = vbcast.lane.b32.xlu1 %v2952_v22, 312  ;;  %2999 = vbcast.lane.b32.xlu0 %v2992_v45, 296 }
 0x55c   : > { %2995 = vbcast.lane.b32.xlu1 %v2992_v45, 288  ;;  %3003 = vbcast.lane.b32.xlu0 %v2992_v45, 304 }
 0x560   : > { %2987 = vbcast.lane.b32.xlu1 %v2972_v53, 312  ;;  %3019 = vbcast.lane.b32.xlu0 %v3012_v19, 296 }
 0x564   : > { %3015 = vbcast.lane.b32.xlu1 %v3012_v19, 288  ;;  %3023 = vbcast.lane.b32.xlu0 %v3012_v19, 304 }
 0x568   : > { %3007 = vbcast.lane.b32.xlu1 %v2992_v45, 312  ;;  %3039 = vbcast.lane.b32.xlu0 %v3032_v5, 296 }
 0x56c   : > { %3035 = vbcast.lane.b32.xlu1 %v3032_v5, 288  ;;  %3043 = vbcast.lane.b32.xlu0 %v3032_v5, 304 }
 0x570   : > { %3027 = vbcast.lane.b32.xlu1 %v3012_v19, 312  ;;  %3059 = vbcast.lane.b32.xlu0 %v3052_v3, 296 }
 0x574   : > { %3055 = vbcast.lane.b32.xlu1 %v3052_v3, 288  ;;  %3063 = vbcast.lane.b32.xlu0 %v3052_v3, 304 }
 0x578   : > { %3047 = vbcast.lane.b32.xlu1 %v3032_v5, 312  ;;  %3079 = vbcast.lane.b32.xlu0 %v3072_v49, 296 }
 0x57c   : > { %3075 = vbcast.lane.b32.xlu1 %v3072_v49, 288  ;;  %3083 = vbcast.lane.b32.xlu0 %v3072_v49, 304 }
 0x580   : > { %3067 = vbcast.lane.b32.xlu1 %v3052_v3, 312 }
 0x584   : > { %3087 = vbcast.lane.b32.xlu1 %v3072_v49, 312 }
 0x5b6   : > { %v2940_v47 = vpop.permute.xlu1 %2939  ;;  %v2936_v14 = vpop.permute.xlu0 %2935 }
 0x5b7   : > { %v3172_v51 = vmul.f32 %v2940_v47, %v10280_v12  ;;  %v3171_v54 = vmul.f32 %v2936_v14, %v10283_v10  ;;  %v3090_v0 = vmul.f32 0.05, %v2940_v47  ;;  %v3089_v43 = vmul.f32 0.05, %v2936_v14  ;;  %v8584_v47 = vld [vmem:[%s9190_s13 + $0x20] sm:$0xff] }
 0x5b8   : > { %v3415_v12 = vcombine.high %v14040_v60, %v14040_v60 }
 0x5b9   : > { %v3244_v33 = vsub.f32 %v10746_v48, %v3172_v51  ;;  %v3243_v24 = vsub.f32 %v10746_v48, %v3171_v54 }
 0x5ba   : > { %v2956_v46 = vpop.permute.xlu1 %2955  ;;  %v2944_v34 = vpop.permute.xlu0 %2943  ;;  %v10776_v3 = vrot.slane %v3415_v12, %v9304_v17 }
 0x5bb   : > { %v3276_v10 = vmul.f32 %v3244_v33, %v3090_v0  ;;  %v3275_v41 = vmul.f32 %v3243_v24, %v3089_v43  ;;  %v3175_v32 = vmul.f32 %v2956_v46, %v10311_v36  ;;  %v3173_v20 = vmul.f32 %v2944_v34, %v10339_v61 }
 0x5bc   : > { %v3093_v59 = vmul.f32 0.05, %v2956_v46  ;;  %v3091_v39 = vmul.f32 0.05, %v2944_v34  ;;  %v3438_v36 = vrot.slane %v3422_v62, %v9304_v17 }
 0x5bd   : > { %v3308_v8 = vadd.f32 %v8582_v21, %v3276_v10  ;;  %v3307_v18 = vadd.f32 %v8583_v44, %v3275_v41  ;;  %v3247_v1 = vsub.f32 %v10761_v37, %v3175_v32  ;;  %v3245_v22 = vsub.f32 %v10746_v48, %v3173_v20  ;;  %v8585_v20 = vld [vmem:[%s9190_s13 + $0x28] sm:$0xff] }
 0x5be   : > { %v2960_v53 = vpop.permute.xlu1 %2959  ;;  %v2976_v45 = vpop.permute.xlu0 %2975  ;;  %v3460_v46 = vcombine.high %v3438_v36, %v3438_v36  ;;  %v10795_v12 = vrot.slane %v3438_v36, %v9314_v26  ;;  %v10799_v10 = vrot.slane %v10776_v3, %v9304_v17  ;;  %v10805_v32 = vrot.slane %v3122_v30, %v9304_v17 }
 0x5bf   : > { %3340 = vst.msk [vmem:[%s9190_s13 + $0x8] sm:$0xff] %vm319_vm0, %v3308_v8  ;;  %3339 = vst.msk [vmem:[%s9190_s13] sm:$0xff] %vm319_vm0, %v3307_v18  ;;  %v3279_v19 = vmul.f32 %v3247_v1, %v3093_v59  ;;  %v3176_v5 = vmul.f32 %v2960_v53, %v10336_v63  ;;  %v3277_v49 = vmul.f32 %v3245_v22, %v3091_v39  ;;  %v3094_v51 = vmul.f32 0.05, %v2960_v53 }
 0x5c0   : > { %v3179_v23 = vmul.f32 %v2976_v45, %v10365_v50  ;;  %v10787_v63 = vrot.slane %v3430_v13, %v9304_v17  ;;  %v3097_v0 = vmul.f32 0.05, %v2976_v45  ;;  %v10824_v45 = vrot.slane %v3460_v46, %v9314_v26 }
 0x5c1   : > { %v3311_v14 = vadd.f32 %v8584_v47, %v3279_v19  ;;  %v3248_v54 = vsub.f32 %v10761_v37, %v3176_v5  ;;  %v3309_v62 = vadd.f32 %v3277_v49, %v10339_v61 }
 0x5c2   : > { %v3251_v33 = vsub.f32 %v10779_v56, %v3179_v23  ;;  %v2964_v43 = vpop.permute.xlu1 %2963  ;;  %v2948_v24 = vpop.permute.xlu0 %2947  ;;  %v10813_v8 = vrot.slane %v10787_v63, %v9314_v26 }
 0x5c3   : > { %3343 = vst.msk [vmem:[%s9190_s13 + $0x20] sm:$0xff] %vm319_vm0, %v3311_v14  ;;  %v3280_v38 = vmul.f32 %v3248_v54, %v3094_v51  ;;  %v3177_v34 = vmul.f32 %v2964_v43, %v10371_v2  ;;  %3341 = vst.msk [vmem:[%s9190_s13 + $0x10] sm:$0xff] %vm319_vm0, %v3309_v62  ;;  %v3174_v41 = vmul.f32 %v2948_v24, %v10400_v35  ;;  %v3095_v13 = vmul.f32 0.05, %v2964_v43 }
 0x5c4   : > { %v3283_v61 = vmul.f32 %v3251_v33, %v3097_v0  ;;  %v3431_v2 = vcombine.high %v10776_v3, %v10776_v3  ;;  %v3092_v18 = vmul.f32 0.05, %v2948_v24 }
 0x5c5   : > { %v3312_v28 = vadd.f32 %v8585_v20, %v3280_v38  ;;  %v3249_v21 = vsub.f32 %v10761_v37, %v3177_v34  ;;  %v3246_v59 = vsub.f32 %v10746_v48, %v3174_v41  ;;  %v3462_v48 = vcombine.high %v10787_v63, %v10787_v63  ;;  %v14041_v38 = vld [vmem:[#allocation21_spill] sm:$0xff] }
 0x5c6   : > { %v3315_v44 = vadd.f32 %v3283_v61, %v10365_v50  ;;  %v2980_v1 = vpop.permute.xlu1 %2979  ;;  %v2984_v39 = vpop.permute.xlu0 %2983  ;;  %v10818_v22 = vld [vmem:[%s9190_s13 + $0x8] sm:$0xff]  ;;  %v10821_v53 = vld [vmem:[%s9190_s13] sm:$0xff]  ;;  %v3169_v50 = vcombine.high %v10751_v57, %v10751_v57 }
 0x5c7   : > { %3344 = vst.msk [vmem:[%s9190_s13 + $0x28] sm:$0xff] %vm319_vm0, %v3312_v28  ;;  %v3281_v36 = vmul.f32 %v3249_v21, %v3095_v13  ;;  %v3180_v19 = vmul.f32 %v2980_v1, %v10397_v6  ;;  %v3278_v5 = vmul.f32 %v3246_v59, %v3092_v18  ;;  %v3181_v49 = vmul.f32 %v2984_v39, %v10418_v9  ;;  %v8586_v6 = vld [vmem:[%s9190_s13 + $0x30] sm:$0xff]  ;;  %v14042_v20 = vld [vmem:[#allocation17_spill] sm:$0xff] }
 0x5c8   : > { %3347 = vst.msk [vmem:[%s9190_s13 + $0x40] sm:$0xff] %vm319_vm0, %v3315_v44  ;;  %v3505_v23 = vmul.f32 %v10795_v12, %v10818_v22  ;;  %v3504_v30 = vmul.f32 %v10795_v12, %v10821_v53  ;;  %v3098_v14 = vmul.f32 0.05, %v2980_v1  ;;  %v3099_v51 = vmul.f32 0.05, %v2984_v39  ;;  %v8587_v21 = vld [vmem:[%s9190_s13 + $0x48] sm:$0xff] }
 0x5c9   : > { %v3313_v47 = vadd.f32 %v8586_v6, %v3281_v36  ;;  %v3252_v57 = vsub.f32 %v10779_v56, %v3180_v19  ;;  %v3310_v54 = vadd.f32 %v3278_v5, %v10400_v35  ;;  %v3253_v63 = vsub.f32 %v10779_v56, %v3181_v49  ;;  %v14043_v6 = vld [vmem:[#allocation22_spill] sm:$0xff] }
 0x5ca   : > { %v3539_v62 = vsel %vm319_vm0, %v3505_v23, 0.0  ;;  %v2968_v0 = vpop.permute.xlu1 %2967  ;;  %v3536_v33 = vsel %vm319_vm0, %v3504_v30, 0.0  ;;  %v3000_v43 = vpop.permute.xlu0 %2999  ;;  %v10847_v24 = vld [vmem:[%s9190_s13 + $0x20] sm:$0xff]  ;;  %v10854_v35 = vrot.slane %v10799_v10, %v9314_v26  ;;  %v10859_v41 = vrot.slane %v3169_v50, %v9314_v26  ;;  %v10877_v30 = vld [vmem:[%s9190_s13 + $0x10] sm:$0xff] }
 0x5cb   : > { %3345 = vst.msk [vmem:[%s9190_s13 + $0x30] sm:$0xff] %vm319_vm0, %v3313_v47  ;;  %v3284_v46 = vmul.f32 %v3252_v57, %v3098_v14  ;;  %3540 = vadd.xlane.f32.xlu1 %v3539_v62  ;;  %v3178_v34 = vmul.f32 %v2968_v0, %v14041_v38  ;;  %3537 = vadd.xlane.f32.xlu0 %v3536_v33  ;;  %3342 = vst.msk [vmem:[%s9190_s13 + $0x18] sm:$0xff] %vm319_vm0, %v3310_v54  ;;  %v3096_v18 = vmul.f32 0.05, %v2968_v0 }
 0x5cc   : > { %v3285_v61 = vmul.f32 %v3253_v63, %v3099_v51  ;;  %v3184_v28 = vmul.f32 %v3000_v43, %v14042_v20  ;;  %v3508_v13 = vmul.f32 %v10813_v8, %v10847_v24  ;;  %v10868_v1 = vrot.slane %v10805_v32, %v9304_v17  ;;  %v14044_v51 = vld [vmem:[#allocation16_spill] sm:$0xff] }
 0x5cd   : > { %v3316_v44 = vadd.f32 %v8587_v21, %v3284_v46  ;;  %v3250_v59 = vsub.f32 %v10761_v37, %v3178_v34  ;;  %v3102_v36 = vmul.f32 0.05, %v3000_v43  ;;  %v10885_v14 = vrot.slane %v3462_v48, %v9314_v26 }
 0x5ce   : > { %v3317_v39 = vadd.f32 %v3285_v61, %v10418_v9  ;;  %v3256_v19 = vsub.f32 %v10859_v41, %v3184_v28  ;;  %v2996_v50 = vpop.permute.xlu1 %2995  ;;  %v3548_v5 = vsel %vm319_vm0, %v3508_v13, 0.0  ;;  %v3004_v49 = vpop.permute.xlu0 %3003  ;;  %v10874_v23 = vld [vmem:[%s9190_s13 + $0x28] sm:$0xff]  ;;  %v3138_v9 = vcombine.high %v10805_v32, %v10805_v32  ;;  %v8588_v32 = vld [vmem:[%s9190_s13 + $0x38] sm:$0xff] }
 0x5cf   : > { %3348 = vst.msk [vmem:[%s9190_s13 + $0x48] sm:$0xff] %vm319_vm0, %v3316_v44  ;;  %v3282_v37 = vmul.f32 %v3250_v59, %v3096_v18  ;;  %v3183_v47 = vmul.f32 %v2996_v50, %v14043_v6  ;;  %3549 = vadd.xlane.f32.xlu0 %v3548_v5  ;;  %v3185_v54 = vmul.f32 %v3004_v49, %v14044_v51  ;;  %v3101_v48 = vmul.f32 0.05, %v2996_v50  ;;  %v10903_v46 = vld [vmem:[%s9190_s13 + $0x40] sm:$0xff]  ;;  %v14045_v44 = vld [vmem:[#allocation18_spill] sm:$0xff] }
 0x5d0   : > { %3349 = vst.msk [vmem:[%s9190_s13 + $0x50] sm:$0xff] %vm319_vm0, %v3317_v39  ;;  %v3288_v57 = vmul.f32 %v3256_v19, %v3102_v36  ;;  %v3509_v63 = vmul.f32 %v10813_v8, %v10874_v23  ;;  %v10896_v62 = vrot.slane %v3431_v2, %v9304_v17  ;;  %v3506_v43 = vmul.f32 %v10795_v12, %v10877_v30  ;;  %v14046_v36 = vld [vmem:[#allocation34_spill] sm:$0xff] }
 0x5d1   : > { %v3314_v0 = vadd.f32 %v8588_v32, %v3282_v37  ;;  %v3255_v33 = vsub.f32 %v10859_v41, %v3183_v47  ;;  %v3103_v34 = vmul.f32 0.05, %v3004_v49  ;;  %v3257_v61 = vsub.f32 %v10859_v41, %v3185_v54  ;;  %v8589_v49 = vld [vmem:[%s9190_s13 + $0x60] sm:$0xff] }
 0x5d2   : > { %v3320_v38 = vadd.f32 %v3288_v57, %v14042_v20  ;;  %v2988_v3 = vpop.permute.xlu1 %2987  ;;  %v3551_v2 = vsel %vm319_vm0, %v3509_v63, 0.0  ;;  %v3020_v28 = vpop.permute.xlu0 %3019  ;;  %v10909_v13 = vld [vmem:[%s9190_s13 + $0x30] sm:$0xff]  ;;  %v10916_v59 = vrot.slane %v10868_v1, %v9314_v26  ;;  %v10919_v20 = vrot.slane %v3138_v9, %v9304_v17 }
 0x5d3   : > { %3346 = vst.msk [vmem:[%s9190_s13 + $0x38] sm:$0xff] %vm319_vm0, %v3314_v0  ;;  %v3287_v21 = vmul.f32 %v3255_v33, %v3101_v48  ;;  %v3182_v18 = vmul.f32 %v2988_v3, %v14045_v44  ;;  %3552 = vadd.xlane.f32.xlu0 %v3551_v2  ;;  %v3289_v39 = vmul.f32 %v3257_v61, %v3103_v34  ;;  %v3100_v6 = vmul.f32 0.05, %v2988_v3  ;;  %v14048_v3 = vld [vmem:[#allocation20_spill] sm:$0xff]  ;;  %v8590_v44 = vld [vmem:[%s9190_s13 + $0x58] sm:$0xff] }
 0x5d4   : > { %3352 = vst.msk [vmem:[%s9190_s13 + $0x68] sm:$0xff] %vm319_vm0, %v3320_v38  ;;  %v3188_v19 = vmul.f32 %v3020_v28, %v14046_v36  ;;  %v3510_v50 = vmul.f32 %v10813_v8, %v10909_v13  ;;  %v3512_v5 = vmul.f32 %v10824_v45, %v10903_v46  ;;  %v3542_v9 = vsel %vm319_vm0, %v3506_v43, 0.0  ;;  %v10938_v38 = vld [vmem:[%s9190_s13 + $0x18] sm:$0xff] }
 0x5d5   : > { %v3319_v37 = vadd.f32 %v8589_v49, %v3287_v21  ;;  %v3254_v47 = vsub.f32 %v10779_v56, %v3182_v18  ;;  %v3321_v57 = vadd.f32 %v3289_v39, %v14044_v51  ;;  %v3106_v54 = vmul.f32 0.05, %v3020_v28  ;;  %v14047_v43 = vld [vmem:[#allocation19_spill] sm:$0xff] }
 0x5d6   : > { %v3260_v63 = vsub.f32 %v10916_v59, %v3188_v19  ;;  %v3554_v32 = vsel %vm319_vm0, %v3510_v50, 0.0  ;;  %v3016_v0 = vpop.permute.xlu1 %3015  ;;  %v3024_v48 = vpop.permute.xlu0 %3023  ;;  %v10935_v33 = vld [vmem:[%s9190_s13 + $0x48] sm:$0xff]  ;;  %v3168_v51 = vcombine.high %v10868_v1, %v10868_v1  ;;  %v3560_v21 = vsel %vm319_vm0, %v3512_v5, 0.0 }
 0x5d7   : > { %3351 = vst.msk [vmem:[%s9190_s13 + $0x60] sm:$0xff] %vm319_vm0, %v3319_v37  ;;  %v3286_v56 = vmul.f32 %v3254_v47, %v3100_v6  ;;  %3555 = vadd.xlane.f32.xlu1 %v3554_v32  ;;  %v3187_v34 = vmul.f32 %v3016_v0, %v14047_v43  ;;  %3543 = vadd.xlane.f32.xlu0 %v3542_v9  ;;  %3353 = vst.msk [vmem:[%s9190_s13 + $0x70] sm:$0xff] %vm319_vm0, %v3321_v57  ;;  %v3105_v39 = vmul.f32 0.05, %v3016_v0  ;;  %v10956_v49 = vld [vmem:[%s9190_s13 + $0x50] sm:$0xff]  ;;  %v14049_v32 = vld [vmem:[#allocation35_spill] sm:$0xff] }
 0x5d8   : > { %v3292_v61 = vmul.f32 %v3260_v63, %v3106_v54  ;;  %v3189_v2 = vmul.f32 %v3024_v48, %v14048_v3  ;;  %v3513_v28 = vmul.f32 %v10824_v45, %v10935_v33  ;;  %v3507_v50 = vmul.f32 %v10795_v12, %v10938_v38 }
 0x5d9   : > { %v3318_v18 = vadd.f32 %v8590_v44, %v3286_v56  ;;  %v3259_v19 = vsub.f32 %v10916_v59, %v3187_v34  ;;  %v3107_v6 = vmul.f32 0.05, %v3024_v48  ;;  %v14050_v48 = vld [vmem:[#allocation38_spill] sm:$0xff]  ;;  %v3514_v34 = vmul.f32 %v10824_v45, %v10956_v49 }
 0x5da   : > { %v3324_v37 = vadd.f32 %v3292_v61, %v14046_v36  ;;  %v3261_v47 = vsub.f32 %v10916_v59, %v3189_v2  ;;  %v3563_v9 = vsel %vm319_vm0, %v3513_v28, 0.0  ;;  %v3008_v5 = vpop.permute.xlu1 %3007  ;;  %v3040_v57 = vpop.permute.xlu0 %3039  ;;  %v10962_v54 = vld [vmem:[%s9190_s13 + $0x38] sm:$0xff]  ;;  %v10969_v36 = vrot.slane %v10919_v20, %v9314_v26  ;;  %v8591_v61 = vld [vmem:[%s9190_s13 + $0x80] sm:$0xff] }
 0x5db   : > { %3350 = vst.msk [vmem:[%s9190_s13 + $0x58] sm:$0xff] %vm319_vm0, %v3318_v18  ;;  %v3291_v63 = vmul.f32 %v3259_v19, %v3105_v39  ;;  %3564 = vadd.xlane.f32.xlu1 %v3563_v9  ;;  %v3186_v12 = vmul.f32 %v3008_v5, %v14049_v32  ;;  %3561 = vadd.xlane.f32.xlu0 %v3560_v21  ;;  %v3104_v28 = vmul.f32 0.05, %v3008_v5  ;;  %v3545_v44 = vsel %vm319_vm0, %v3507_v50, 0.0  ;;  %v10988_v9 = vld [vmem:[%s9190_s13 + $0x68] sm:$0xff]  ;;  %v14053_v50 = vld [vmem:[#allocation36_spill] sm:$0xff] }
 0x5dc   : > { %3356 = vst.msk [vmem:[%s9190_s13 + $0x88] sm:$0xff] %vm319_vm0, %v3324_v37  ;;  %v3293_v0 = vmul.f32 %v3261_v47, %v3107_v6  ;;  %v3192_v56 = vmul.f32 %v3040_v57, %v14050_v48  ;;  %v3511_v43 = vmul.f32 %v10813_v8, %v10962_v54  ;;  %v3110_v39 = vmul.f32 0.05, %v3040_v57  ;;  %14052 = vst [vmem:[#allocation23_spill] sm:$0xff] %v10988_v9 }
 0x5dd   : > { %v3323_v2 = vadd.f32 %v8591_v61, %v3291_v63  ;;  %v3258_v21 = vsub.f32 %v10859_v41, %v3186_v12  ;;  %v14054_v63 = vld [vmem:[#allocation40_spill] sm:$0xff] }
 0x5de   : > { %v3325_v18 = vadd.f32 %v3293_v0, %v14048_v3  ;;  %v3264_v19 = vsub.f32 %v10969_v36, %v3192_v56  ;;  %v3557_v37 = vsel %vm319_vm0, %v3511_v43, 0.0  ;;  %v3036_v8 = vpop.permute.xlu1 %3035  ;;  %v3044_v6 = vpop.permute.xlu0 %3043  ;;  %v10985_v47 = vld [vmem:[%s9190_s13 + $0x60] sm:$0xff]  ;;  %v10995_v3 = vrot.slane %v10896_v62, %v9314_v26  ;;  %v8592_v56 = vld [vmem:[%s9190_s13 + $0x78] sm:$0xff] }
 0x5df   : > { %14051 = vst [vmem:[#allocation47_spill] sm:$0xff] %v10985_v47  ;;  %3355 = vst.msk [vmem:[%s9190_s13 + $0x80] sm:$0xff] %vm319_vm0, %v3323_v2  ;;  %v3290_v41 = vmul.f32 %v3258_v21, %v3104_v28  ;;  %3558 = vadd.xlane.f32.xlu1 %v3557_v37  ;;  %v3191_v5 = vmul.f32 %v3036_v8, %v14053_v50  ;;  %3546 = vadd.xlane.f32.xlu0 %v3545_v44  ;;  %v3566_v0 = vsel %vm319_vm0, %v3514_v34, 0.0  ;;  %v11008_v21 = vld [vmem:[%s9190_s13 + $0x70] sm:$0xff]  ;;  %v14057_v50 = vld [vmem:[#allocation37_spill] sm:$0xff] }
 0x5e0   : > { %3357 = vst.msk [vmem:[%s9190_s13 + $0x90] sm:$0xff] %vm319_vm0, %v3325_v18  ;;  %v3296_v57 = vmul.f32 %v3264_v19, %v3110_v39  ;;  %v3193_v32 = vmul.f32 %v3044_v6, %v14054_v63  ;;  %v3516_v12 = vmul.f32 %v10885_v14, %v10985_v47  ;;  %v3109_v61 = vmul.f32 0.05, %v3036_v8  ;;  %14055 = vst [vmem:[#allocation24_spill] sm:$0xff] %v11008_v21 }
 0x5e1   : > { %v3322_v43 = vadd.f32 %v8592_v56, %v3290_v41  ;;  %v3263_v2 = vsub.f32 %v10969_v36, %v3191_v5  ;;  %v3517_v28 = vmul.f32 %v10885_v14, %v10988_v9  ;;  %v3111_v18 = vmul.f32 0.05, %v3044_v6  ;;  %v8593_v56 = vld [vmem:[%s9190_s13 + $0xa0] sm:$0xff] }
 0x5e2   : > { %v3328_v44 = vadd.f32 %v3296_v57, %v14050_v48  ;;  %v3265_v39 = vsub.f32 %v10969_v36, %v3193_v32  ;;  %v3572_v19 = vsel %vm319_vm0, %v3516_v12, 0.0  ;;  %v3028_v34 = vpop.permute.xlu1 %3027  ;;  %v3060_v37 = vpop.permute.xlu0 %3059  ;;  %v11014_v41 = vld [vmem:[%s9190_s13 + $0x58] sm:$0xff]  ;;  %v11023_v48 = vrot.slane %v3168_v51, %v9314_v26  ;;  %v14058_v57 = vld [vmem:[#allocation42_spill] sm:$0xff] }
 0x5e3   : > { %14056 = vst [vmem:[#allocation21_spill] sm:$0xff] %v11014_v41  ;;  %3354 = vst.msk [vmem:[%s9190_s13 + $0x78] sm:$0xff] %vm319_vm0, %v3322_v43  ;;  %v3295_v8 = vmul.f32 %v3263_v2, %v3109_v61  ;;  %3573 = vadd.xlane.f32.xlu1 %v3572_v19  ;;  %v3190_v5 = vmul.f32 %v3028_v34, %v14057_v50  ;;  %3567 = vadd.xlane.f32.xlu0 %v3566_v0  ;;  %v3108_v61 = vmul.f32 0.05, %v3028_v34 }
 0x5e4   : > { %3360 = vst.msk [vmem:[%s9190_s13 + $0xa8] sm:$0xff] %vm319_vm0, %v3328_v44  ;;  %v3297_v6 = vmul.f32 %v3265_v39, %v3111_v18  ;;  %v3196_v32 = vmul.f32 %v3060_v37, %v14058_v57  ;;  %v3515_v12 = vmul.f32 %v10824_v45, %v11014_v41  ;;  %v3518_v0 = vmul.f32 %v10885_v14, %v11008_v21  ;;  %v11042_v41 = vld [vmem:[%s9190_s13 + $0x88] sm:$0xff] }
 0x5e5   : > { %v3327_v43 = vadd.f32 %v8593_v56, %v3295_v8  ;;  %v3262_v1 = vsub.f32 %v10916_v59, %v3190_v5  ;;  %v3575_v51 = vsel %vm319_vm0, %v3517_v28, 0.0  ;;  %v3114_v44 = vmul.f32 0.05, %v3060_v37  ;;  %14060 = vst [vmem:[#allocation22_spill] sm:$0xff] %v11042_v41  ;;  %v14061_v28 = vld [vmem:[#allocation39_spill] sm:$0xff]  ;;  %v14062_v8 = vld [vmem:[#allocation44_spill] sm:$0xff] }
 0x5e6   : > { %v3329_v2 = vadd.f32 %v3297_v6, %v14054_v63  ;;  %v3268_v18 = vsub.f32 %v11023_v48, %v3196_v32  ;;  %v3569_v39 = vsel %vm319_vm0, %v3515_v12, 0.0  ;;  %v3056_v45 = vpop.permute.xlu1 %3055  ;;  %v3064_v19 = vpop.permute.xlu0 %3063  ;;  %v11039_v50 = vld [vmem:[%s9190_s13 + $0x80] sm:$0xff]  ;;  %v3170_v63 = vcombine.high %v10919_v20, %v10919_v20  ;;  %v8594_v12 = vld [vmem:[%s9190_s13 + $0x98] sm:$0xff] }
 0x5e7   : > { %14059 = vst [vmem:[#allocation17_spill] sm:$0xff] %v11039_v50  ;;  %3359 = vst.msk [vmem:[%s9190_s13 + $0xa0] sm:$0xff] %vm319_vm0, %v3327_v43  ;;  %v3294_v59 = vmul.f32 %v3262_v1, %v3108_v61  ;;  %3570 = vadd.xlane.f32.xlu1 %v3569_v39  ;;  %v3195_v34 = vmul.f32 %v3056_v45, %v14061_v28  ;;  %3576 = vadd.xlane.f32.xlu0 %v3575_v51  ;;  %v3578_v32 = vsel %vm319_vm0, %v3518_v0, 0.0  ;;  %v11060_v1 = vld [vmem:[%s9190_s13 + $0x90] sm:$0xff]  ;;  %v14065_v28 = vld [vmem:[#allocation41_spill] sm:$0xff] }
 0x5e8   : > { %3361 = vst.msk [vmem:[%s9190_s13 + $0xb0] sm:$0xff] %vm319_vm0, %v3329_v2  ;;  %v3300_v37 = vmul.f32 %v3268_v18, %v3114_v44  ;;  %v3197_v5 = vmul.f32 %v3064_v19, %v14062_v8  ;;  %v3520_v6 = vmul.f32 %v10854_v35, %v11039_v50  ;;  %v3113_v43 = vmul.f32 0.05, %v3056_v45  ;;  %14063 = vst [vmem:[#allocation16_spill] sm:$0xff] %v11060_v1 }
 0x5e9   : > { %v3326_v56 = vadd.f32 %v8594_v12, %v3294_v59  ;;  %v3267_v61 = vsub.f32 %v11023_v48, %v3195_v34  ;;  %v3521_v20 = vmul.f32 %v10854_v35, %v11042_v41  ;;  %v3115_v2 = vmul.f32 0.05, %v3064_v19  ;;  %v14066_v19 = vld [vmem:[#allocation46_spill] sm:$0xff] }
 0x5ea   : > { %v3332_v51 = vadd.f32 %v3300_v37, %v14058_v57  ;;  %v3269_v44 = vsub.f32 %v11023_v48, %v3197_v5  ;;  %v3584_v18 = vsel %vm319_vm0, %v3520_v6, 0.0  ;;  %v3048_v0 = vpop.permute.xlu1 %3047  ;;  %v3080_v39 = vpop.permute.xlu0 %3079  ;;  %v11066_v59 = vld [vmem:[%s9190_s13 + $0x78] sm:$0xff]  ;;  %v11072_v12 = vrot.slane %v3170_v63, %v9314_v26 }
 0x5eb   : > { %14064 = vst [vmem:[#allocation18_spill] sm:$0xff] %v11066_v59  ;;  %3358 = vst.msk [vmem:[%s9190_s13 + $0x98] sm:$0xff] %vm319_vm0, %v3326_v56  ;;  %v3299_v45 = vmul.f32 %v3267_v61, %v3113_v43  ;;  %3585 = vadd.xlane.f32.xlu1 %v3584_v18  ;;  %v3194_v34 = vmul.f32 %v3048_v0, %v14065_v28  ;;  %3579 = vadd.xlane.f32.xlu0 %v3578_v32  ;;  %v8595_v56 = vld [vmem:[%s9190_s13 + $0xc0] sm:$0xff]  ;;  %v3112_v32 = vmul.f32 0.05, %v3048_v0 }
 0x5ec   : > { %3364 = vst.msk [vmem:[%s9190_s13 + $0xc8] sm:$0xff] %vm319_vm0, %v3332_v51  ;;  %v3301_v57 = vmul.f32 %v3269_v44, %v3115_v2  ;;  %v3200_v37 = vmul.f32 %v3080_v39, %v14066_v19  ;;  %v3519_v5 = vmul.f32 %v10885_v14, %v11066_v59  ;;  %v3522_v6 = vmul.f32 %v10854_v35, %v11060_v1  ;;  %v11091_v59 = vld [vmem:[%s9190_s13 + $0xa8] sm:$0xff] }
 0x5ed   : > { %v3331_v43 = vadd.f32 %v8595_v56, %v3299_v45  ;;  %v3266_v63 = vsub.f32 %v10969_v36, %v3194_v34  ;;  %v3587_v61 = vsel %vm319_vm0, %v3521_v20, 0.0  ;;  %v3118_v2 = vmul.f32 0.05, %v3080_v39  ;;  %14068 = vst [vmem:[#allocation19_spill] sm:$0xff] %v11091_v59  ;;  %v14069_v20 = vld [vmem:[#allocation43_spill] sm:$0xff]  ;;  %v14070_v45 = vld [vmem:[#allocation45_spill] sm:$0xff] }
 0x5ee   : > { %v3333_v51 = vadd.f32 %v3301_v57, %v14062_v8  ;;  %v3272_v44 = vsub.f32 %v11072_v12, %v3200_v37  ;;  %v3581_v18 = vsel %vm319_vm0, %v3519_v5, 0.0  ;;  %v3076_v14 = vpop.permute.xlu1 %3075  ;;  %v3084_v28 = vpop.permute.xlu0 %3083  ;;  %v11088_v19 = vld [vmem:[%s9190_s13 + $0xa0] sm:$0xff]  ;;  %v3461_v8 = vcombine.high %v10799_v10, %v10799_v10  ;;  %v8596_v5 = vld [vmem:[%s9190_s13 + $0xb8] sm:$0xff] }
 0x5ef   : > { %14067 = vst [vmem:[#allocation34_spill] sm:$0xff] %v11088_v19  ;;  %3363 = vst.msk [vmem:[%s9190_s13 + $0xc0] sm:$0xff] %vm319_vm0, %v3331_v43  ;;  %v3298_v36 = vmul.f32 %v3266_v63, %v3112_v32  ;;  %3582 = vadd.xlane.f32.xlu1 %v3581_v18  ;;  %v3199_v0 = vmul.f32 %v3076_v14, %v14069_v20  ;;  %3588 = vadd.xlane.f32.xlu0 %v3587_v61  ;;  %v3590_v37 = vsel %vm319_vm0, %v3522_v6, 0.0  ;;  %v8597_v63 = vld [vmem:[%s9190_s13 + $0xe8] sm:$0xff] }
 0x5f0   : > { %3365 = vst.msk [vmem:[%s9190_s13 + $0xd0] sm:$0xff] %vm319_vm0, %v3333_v51  ;;  %v3304_v39 = vmul.f32 %v3272_v44, %v3118_v2  ;;  %v3201_v34 = vmul.f32 %v3084_v28, %v14070_v45  ;;  %v3524_v57 = vmul.f32 %v10995_v3, %v11088_v19  ;;  %v3117_v43 = vmul.f32 0.05, %v3076_v14 }
 0x5f1   : > { %v3330_v56 = vadd.f32 %v8596_v5, %v3298_v36  ;;  %v3271_v32 = vsub.f32 %v11072_v12, %v3199_v0  ;;  %v3525_v10 = vmul.f32 %v10995_v3, %v11091_v59  ;;  %v3119_v51 = vmul.f32 0.05, %v3084_v28  ;;  %v8598_v36 = vld [vmem:[%s9190_s13 + $0xd8] sm:$0xff]  ;;  %v11120_v0 = vld [vmem:[%s9190_s13 + $0xb0] sm:$0xff] }
 0x5f2   : > { %v3336_v61 = vadd.f32 %v8597_v63, %v3304_v39  ;;  %v3273_v2 = vsub.f32 %v11072_v12, %v3201_v34  ;;  %v3596_v44 = vsel %vm319_vm0, %v3524_v57, 0.0  ;;  %v3068_v6 = vpop.permute.xlu1 %3067  ;;  %v11112_v18 = vld [vmem:[%s9190_s13 + $0x98] sm:$0xff]  ;;  %14072 = vst [vmem:[#allocation35_spill] sm:$0xff] %v11120_v0  ;;  %v3491_v45 = vrot.slane %v3461_v8, %v9314_v26  ;;  %v8599_v34 = vld [vmem:[%s9190_s13 + $0xe0] sm:$0xff] }
 0x5f3   : > { %14071 = vst [vmem:[#allocation20_spill] sm:$0xff] %v11112_v18  ;;  %3362 = vst.msk [vmem:[%s9190_s13 + $0xb8] sm:$0xff] %vm319_vm0, %v3330_v56  ;;  %v3303_v14 = vmul.f32 %v3271_v32, %v3117_v43  ;;  %3597 = vadd.xlane.f32.xlu1 %v3596_v44  ;;  %v3198_v20 = vmul.f32 %v8598_v36, %v3068_v6  ;;  %3591 = vadd.xlane.f32.xlu0 %v3590_v37  ;;  %v3116_v5 = vmul.f32 0.05, %v3068_v6  ;;  %v8600_v43 = vld [vmem:[%s9190_s13 + $0xf0] sm:$0xff]  ;;  %v11140_v6 = vld [vmem:[%s9190_s13 + $0xc8] sm:$0xff] }
 0x5f4   : > { %v3523_v28 = vmul.f32 %v10854_v35, %v11112_v18  ;;  %3368 = vst.msk [vmem:[%s9190_s13 + $0xe8] sm:$0xff] %vm319_vm0, %v3336_v61  ;;  %v3305_v39 = vmul.f32 %v3273_v2, %v3119_v51  ;;  %v3599_v63 = vsel %vm319_vm0, %v3525_v10, 0.0  ;;  %v3526_v61 = vmul.f32 %v10995_v3, %v11120_v0  ;;  %14074 = vst [vmem:[#allocation36_spill] sm:$0xff] %v11140_v6 }
 0x5f5   : > { %v3335_v57 = vadd.f32 %v8599_v34, %v3303_v14  ;;  %v3270_v56 = vsub.f32 %v11023_v48, %v3198_v20  ;;  %v8601_v48 = vld [vmem:[%s9190_s13 + $0xf8] sm:$0xff]  ;;  %v3463_v10 = vcombine.high %v10896_v62, %v10896_v62 }
 0x5f6   : > { %v3593_v37 = vsel %vm319_vm0, %v3523_v28, 0.0  ;;  %v3337_v35 = vadd.f32 %v8600_v43, %v3305_v39  ;;  %v3088_v32 = vpop.permute.xlu1 %3087  ;;  %v11131_v44 = vld [vmem:[%s9190_s13 + $0xc0] sm:$0xff]  ;;  %v3602_v34 = vsel %vm319_vm0, %v3526_v61, 0.0 }
 0x5f7   : > { %14073 = vst [vmem:[#allocation38_spill] sm:$0xff] %v11131_v44  ;;  %3367 = vst.msk [vmem:[%s9190_s13 + $0xe0] sm:$0xff] %vm319_vm0, %v3335_v57  ;;  %v3302_v8 = vmul.f32 %v3270_v56, %v3116_v5  ;;  %3594 = vadd.xlane.f32.xlu1 %v3593_v37  ;;  %v3202_v51 = vmul.f32 %v8601_v48, %v3088_v32  ;;  %3600 = vadd.xlane.f32.xlu0 %v3599_v63  ;;  %v3120_v20 = vmul.f32 0.05, %v3088_v32 }
 0x5f8   : > { %v3528_v2 = vmul.f32 %v3491_v45, %v11131_v44  ;;  %3369 = vst.msk [vmem:[%s9190_s13 + $0xf0] sm:$0xff] %vm319_vm0, %v3337_v35  ;;  %v3529_v5 = vmul.f32 %v3491_v45, %v11140_v6  ;;  %v3495_v43 = vrot.slane %v3463_v10, %v9314_v26 }
 0x5f9   : > { %v3334_v14 = vadd.f32 %v8598_v36, %v3302_v8  ;;  %v3274_v28 = vsub.f32 %v11072_v12, %v3202_v51  ;;  %v11158_v12 = vld [vmem:[%s9190_s13 + $0xd0] sm:$0xff] }
 0x5fa   : > { %v3608_v39 = vsel %vm319_vm0, %v3528_v2, 0.0  ;;  %v11150_v57 = vld [vmem:[%s9190_s13 + $0xb8] sm:$0xff]  ;;  %14076 = vst [vmem:[#allocation37_spill] sm:$0xff] %v11158_v12  ;;  %v3611_v35 = vsel %vm319_vm0, %v3529_v5, 0.0  ;;  %v3530_v63 = vmul.f32 %v3491_v45, %v11158_v12 }
 0x5fb   : > { %14075 = vst [vmem:[#allocation40_spill] sm:$0xff] %v11150_v57  ;;  %3366 = vst.msk [vmem:[%s9190_s13 + $0xd8] sm:$0xff] %vm319_vm0, %v3334_v14  ;;  %v3306_v56 = vmul.f32 %v3274_v28, %v3120_v20  ;;  %3609 = vadd.xlane.f32.xlu1 %v3608_v39  ;;  %3603 = vadd.xlane.f32.xlu0 %v3602_v34  ;;  %v3527_v62 = vmul.f32 %v10995_v3, %v11150_v57  ;;  %v11171_v61 = vld [vmem:[%s9190_s13 + $0xe8] sm:$0xff] }
 0x5fc   : > { %14078 = vst [vmem:[#allocation39_spill] sm:$0xff] %v11171_v61  ;;  %v3533_v2 = vmul.f32 %v3495_v43, %v11171_v61 }
 0x5fd   : > { %v3338_v36 = vadd.f32 %v8601_v48, %v3306_v56  ;;  %v3605_v37 = vsel %vm319_vm0, %v3527_v62, 0.0  ;;  %v3614_v48 = vsel %vm319_vm0, %v3530_v63, 0.0 }
 0x5fe   : > { %v11164_v32 = vld [vmem:[%s9190_s13 + $0xe0] sm:$0xff]  ;;  %v3623_v28 = vsel %vm319_vm0, %v3533_v2, 0.0 }
 0x5ff   : > { %14077 = vst [vmem:[#allocation42_spill] sm:$0xff] %v11164_v32  ;;  %3370 = vst.msk [vmem:[%s9190_s13 + $0xf8] sm:$0xff] %vm319_vm0, %v3338_v36  ;;  %3606 = vadd.xlane.f32.xlu1 %v3605_v37  ;;  %3612 = vadd.xlane.f32.xlu0 %v3611_v35  ;;  %v3532_v3 = vmul.f32 %v3495_v43, %v11164_v32  ;;  %v11178_v14 = vld [vmem:[%s9190_s13 + $0xf0] sm:$0xff] }
 0x600   : > { %14079 = vst [vmem:[#allocation44_spill] sm:$0xff] %v11178_v14  ;;  %v3534_v34 = vmul.f32 %v3495_v43, %v11178_v14 }
 0x601   : > { %v3620_v8 = vsel %vm319_vm0, %v3532_v3, 0.0 }
 0x602   : > { %v3409_v51 = vld [vmem:[%s9190_s13 + $0xd8] sm:$0xff]  ;;  %v3626_v62 = vsel %vm319_vm0, %v3534_v34, 0.0 }
 0x603   : > { %3621 = vadd.xlane.f32.xlu1 %v3620_v8  ;;  %3615 = vadd.xlane.f32.xlu0 %v3614_v48  ;;  %v3531_v10 = vmul.f32 %v3491_v45, %v3409_v51 }
 0x605   : > { %v3617_v20 = vsel %vm319_vm0, %v3531_v10, 0.0 }
 0x606   : > { %v3413_v39 = vld [vmem:[%s9190_s13 + $0xf8] sm:$0xff] }
 0x607   : > { %3618 = vadd.xlane.f32.xlu1 %v3617_v20  ;;  %3624 = vadd.xlane.f32.xlu0 %v3623_v28  ;;  %v3535_v5 = vmul.f32 %v3495_v43, %v3413_v39 }
 0x609   : > { %v3629_v56 = vsel %vm319_vm0, %v3535_v5, 0.0 }
 0x60b   : > { %3630 = vadd.xlane.f32.xlu1 %v3629_v56  ;;  %3627 = vadd.xlane.f32.xlu0 %v3626_v62 }
 0x658   : > { %v3538_v36 = vpop.xlane.xlu0 %3537  ;;  %v3541_v37 = vpop.xlane.xlu1 %3540 }
 0x659   : > { %v3633_v32 = vmul.f32 0.2, %v3541_v37  ;;  %v3632_v61 = vmul.f32 0.2, %v3538_v36 }
 0x65b   : > { %v3703_v1 = vrot.slane %v3633_v32, %v9552_v7  ;;  %v3699_v50 = vrot.slane %v3632_v61, %v9549_v52 }
 0x65c   : > { %v3550_v45 = vpop.xlane.xlu0 %3549 }
 0x65d   : > { %v3636_v6 = vmul.f32 0.2, %v3550_v45  ;;  %v3704_v32 = vsel %vm877_vm3, %v3703_v1, %v3699_v50 }
 0x660   : > { %v3553_v35 = vpop.xlane.xlu0 %3552 }
 0x661   : > { %v3637_v57 = vmul.f32 0.2, %v3553_v35  ;;  %v3718_v35 = vrot.slane %v3636_v6, %v9549_v52 }
 0x663   : > { %v3722_v41 = vrot.slane %v3637_v57, %v9552_v7 }
 0x664   : > { %v3556_v63 = vpop.xlane.xlu1 %3555  ;;  %v3544_v3 = vpop.xlane.xlu0 %3543 }
 0x665   : > { %v3638_v12 = vmul.f32 0.2, %v3556_v63  ;;  %v3634_v44 = vmul.f32 0.2, %v3544_v3  ;;  %v3723_v61 = vsel %vm877_vm3, %v3722_v41, %v3718_v35 }
 0x667   : > { %v3727_v21 = vrot.slane %v3638_v12, %v9555_v11  ;;  %v3708_v47 = vrot.slane %v3634_v44, %v9555_v11 }
 0x668   : > { %v3565_v8 = vpop.xlane.xlu1 %3564  ;;  %v3562_v48 = vpop.xlane.xlu0 %3561 }
 0x669   : > { %v3641_v37 = vmul.f32 0.2, %v3565_v8  ;;  %v3640_v36 = vmul.f32 0.2, %v3562_v48  ;;  %v3728_v12 = vsel %vm884_vm4, %v3727_v21, %v3723_v61  ;;  %v3709_v44 = vsel %vm884_vm4, %v3708_v47, %v3704_v32 }
 0x66b   : > { %v3741_v8 = vrot.slane %v3641_v37, %v9552_v7  ;;  %v3737_v6 = vrot.slane %v3640_v36, %v9549_v52 }
 0x66c   : > { %v3559_v51 = vpop.xlane.xlu1 %3558  ;;  %v3547_v2 = vpop.xlane.xlu0 %3546 }
 0x66d   : > { %v3639_v18 = vmul.f32 0.2, %v3559_v51  ;;  %v3635_v0 = vmul.f32 0.2, %v3547_v2  ;;  %v3742_v21 = vsel %vm877_vm3, %v3741_v8, %v3737_v6 }
 0x66f   : > { %v3732_v45 = vrot.slane %v3639_v18, %v9558_v16  ;;  %v3713_v63 = vrot.slane %v3635_v0, %v9558_v16 }
 0x670   : > { %v3574_v10 = vpop.xlane.xlu1 %3573  ;;  %v3568_v20 = vpop.xlane.xlu0 %3567 }
 0x671   : > { %v3642_v3 = vmul.f32 0.2, %v3568_v20  ;;  %v3733_v18 = vsel %vm891_vm5, %v3732_v45, %v3728_v12  ;;  %v3714_v0 = vsel %vm891_vm5, %v3713_v63, %v3709_v44  ;;  %v3644_v41 = vmul.f32 0.2, %v3574_v10 }
 0x672   : > { %v3848_v47 = vsel %vm1026_vm6, %v3733_v18, %v3714_v0 }
 0x673   : > { %v3746_v48 = vrot.slane %v3642_v3, %v9555_v11 }
 0x674   : > { %v3571_v28 = vpop.xlane.xlu1 %3570  ;;  %v3577_v43 = vpop.xlane.xlu0 %3576 }
 0x675   : > { %v3643_v57 = vmul.f32 0.2, %v3571_v28  ;;  %v3645_v20 = vmul.f32 0.2, %v3577_v43  ;;  %v3747_v36 = vsel %vm884_vm4, %v3746_v48, %v3742_v21 }
 0x677   : > { %v3751_v28 = vrot.slane %v3643_v57, %v9558_v16  ;;  %v3760_v35 = vrot.slane %v3645_v20, %v9552_v7  ;;  %v3756_v57 = vrot.slane %v3644_v41, %v9549_v52 }
 0x678   : > { %v3586_v39 = vpop.xlane.xlu1 %3585  ;;  %v3580_v5 = vpop.xlane.xlu0 %3579 }
 0x679   : > { %v3648_v37 = vmul.f32 0.2, %v3586_v39  ;;  %v3646_v45 = vmul.f32 0.2, %v3580_v5  ;;  %v3752_v12 = vsel %vm891_vm5, %v3751_v28, %v3747_v36  ;;  %v3761_v5 = vsel %vm877_vm3, %v3760_v35, %v3756_v57 }
 0x67b   : > { %v3775_v39 = vrot.slane %v3648_v37, %v9549_v52 }
 0x67c   : > { %v3583_v14 = vpop.xlane.xlu1 %3582  ;;  %v3589_v34 = vpop.xlane.xlu0 %3588 }
 0x67d   : > { %v3649_v9 = vmul.f32 0.2, %v3589_v34  ;;  %v3647_v32 = vmul.f32 0.2, %v3583_v14  ;;  %v3765_v14 = vrot.slane %v3646_v45, %v9555_v11 }
 0x67f   : > { %v3779_v43 = vrot.slane %v3649_v9, %v9552_v7  ;;  %v3766_v35 = vsel %vm884_vm4, %v3765_v14, %v3761_v5 }
 0x680   : > { %v3598_v56 = vpop.xlane.xlu1 %3597  ;;  %v3592_v62 = vpop.xlane.xlu0 %3591 }
 0x681   : > { %v3650_v63 = vmul.f32 0.2, %v3592_v62  ;;  %v3652_v6 = vmul.f32 0.2, %v3598_v56  ;;  %v3780_v62 = vsel %vm877_vm3, %v3779_v43, %v3775_v39 }
 0x683   : > { %v3784_v9 = vrot.slane %v3650_v63, %v9555_v11  ;;  %v3794_v21 = vrot.slane %v3652_v6, %v9549_v52 }
 0x684   : > { %v3595_v19 = vpop.xlane.xlu1 %3594  ;;  %v3601_v59 = vpop.xlane.xlu0 %3600 }
 0x685   : > { %v3651_v34 = vmul.f32 0.2, %v3595_v19  ;;  %v3653_v3 = vmul.f32 0.2, %v3601_v59  ;;  %v3770_v19 = vrot.slane %v3647_v32, %v9558_v16  ;;  %v3785_v45 = vsel %vm884_vm4, %v3784_v9, %v3780_v62 }
 0x687   : > { %v3789_v48 = vrot.slane %v3651_v34, %v9558_v16  ;;  %v3771_v43 = vsel %vm891_vm5, %v3770_v19, %v3766_v35 }
 0x688   : > { %v3610_v51 = vpop.xlane.xlu1 %3609  ;;  %v3604_v2 = vpop.xlane.xlu0 %3603 }
 0x689   : > { %v3654_v44 = vmul.f32 0.2, %v3604_v2  ;;  %v3656_v59 = vmul.f32 0.2, %v3610_v51  ;;  %v3798_v2 = vrot.slane %v3653_v3, %v9552_v7  ;;  %v3790_v34 = vsel %vm891_vm5, %v3789_v48, %v3785_v45 }
 0x68a   : > { %v3866_v45 = vmul.f32 0.95122945, %v10724_v25 }
 0x68b   : > { %v3803_v56 = vrot.slane %v3654_v44, %v9555_v11  ;;  %v3813_v63 = vrot.slane %v3656_v59, %v9549_v52  ;;  %v3799_v3 = vsel %vm877_vm3, %v3798_v2, %v3794_v21 }
 0x68c   : > { %v3607_v50 = vpop.xlane.xlu1 %3606  ;;  %v3613_v1 = vpop.xlane.xlu0 %3612 }
 0x68d   : > { %v3657_v8 = vmul.f32 0.2, %v3613_v1  ;;  %v3655_v18 = vmul.f32 0.2, %v3607_v50  ;;  %v3804_v44 = vsel %vm884_vm4, %v3803_v56, %v3799_v3 }
 0x68f   : > { %v3817_v50 = vrot.slane %v3657_v8, %v9552_v7  ;;  %v3808_v51 = vrot.slane %v3655_v18, %v9558_v16  ;;  %v3849_v18 = vsel %vm1028_vm7, %v3752_v12, %v3848_v47 }
 0x690   : > { %v3622_v61 = vpop.xlane.xlu1 %3621  ;;  %v3616_v10 = vpop.xlane.xlu0 %3615  ;;  %v3850_v9 = vsel %vm1030_vm8, %v3771_v43, %v3849_v18 }
 0x691   : > { %v3658_v0 = vmul.f32 0.2, %v3616_v10  ;;  %v3660_v37 = vmul.f32 0.2, %v3622_v61  ;;  %v3818_v8 = vsel %vm877_vm3, %v3817_v50, %v3813_v63  ;;  %v3851_v48 = vsel %vm1032_vm9, %v3790_v34, %v3850_v9 }
 0x692   : > { %v3857_v50 = vmul.f32 0.9048374, %v10712_v58 }
 0x693   : > { %v3822_v36 = vrot.slane %v3658_v0, %v9555_v11  ;;  %v3809_v0 = vsel %vm891_vm5, %v3808_v51, %v3804_v44  ;;  %v3832_v5 = vrot.slane %v3660_v37, %v9549_v52  ;;  %v3859_v51 = vmul.f32 0.95122945, %v10716_v40 }
 0x694   : > { %v3619_v20 = vpop.xlane.xlu1 %3618  ;;  %v3625_v1 = vpop.xlane.xlu0 %3624  ;;  %v3852_v47 = vsel %vm1034_vm10, %v3809_v0, %v3851_v48  ;;  %v14081_v0 = vld [vmem:[#allocation26_spill] sm:$0xff] }
 0x695   : > { %v3659_v41 = vmul.f32 0.2, %v3619_v20  ;;  %v3661_v28 = vmul.f32 0.2, %v3625_v1  ;;  %v3823_v14 = vsel %vm884_vm4, %v3822_v36, %v3818_v8 }
 0x697   : > { %v3827_v32 = vrot.slane %v3659_v41, %v9558_v16  ;;  %v3836_v10 = vrot.slane %v3661_v28, %v9552_v7  ;;  %v8602_v41 = vld [vmem:[#allocation2 + $0x18] sm:$0xff] }
 0x698   : > { %v3631_v57 = vpop.xlane.xlu1 %3630  ;;  %v3628_v61 = vpop.xlane.xlu0 %3627 }
 0x699   : > { %v3663_v39 = vmul.f32 0.2, %v3631_v57  ;;  %v3662_v6 = vmul.f32 0.2, %v3628_v61  ;;  %v3828_v59 = vsel %vm891_vm5, %v3827_v32, %v3823_v14  ;;  %v3837_v2 = vsel %vm877_vm3, %v3836_v10, %v3832_v5  ;;  %v14080_v61 = vld [vmem:[#allocation25_spill] sm:$0xff] }
 0x69a   : > { %v3853_v20 = vsel %vm1036_vm11, %v3828_v59, %v3852_v47  ;;  %v4069_v44 = vrot.slane %v14080_v61, %v9304_v17  ;;  %v4362_v5 = vrot.slane %v14081_v0, %v9304_v17 }
 0x69b   : > { %v3846_v19 = vrot.slane %v3663_v39, %v9558_v16  ;;  %v3841_v62 = vrot.slane %v3662_v6, %v9555_v11 }
 0x69c   : > { %v4085_v8 = vrot.slane %v4069_v44, %v9304_v17  ;;  %v4077_v39 = vcombine.high %v4069_v44, %v4069_v44 }
 0x69d   : > { %v3842_v12 = vsel %vm884_vm4, %v3841_v62, %v3837_v2 }
 0x69e   : > { %v3847_v1 = vsel %vm891_vm5, %v3846_v19, %v3842_v12  ;;  %v11286_v14 = vrot.slane %v4085_v8, %v9314_v26  ;;  %v11291_v19 = vrot.slane %v4077_v39, %v9304_v17 }
 0x69f   : > { %v3854_v56 = vsel %vm1038_vm12, %v3847_v1, %v3853_v20  ;;  %v4378_v1 = vrot.slane %v4362_v5, %v9304_v17 }
 0x6a0   : > { %v3856_v28 = vadd.f32 %v8602_v41, %v3854_v56 }
 0x6a1   : > { %v4400_v44 = vcombine.high %v4378_v1, %v4378_v1 }
 0x6a2   : > { %v11250_v21 = vadd.f32 %v3857_v50, %v3856_v28  ;;  %v4107_v28 = vcombine.high %v4085_v8, %v4085_v8 }
 0x6a4   : > { %v3860_v37 = vmul.f32 0.048770577, %v11250_v21  ;;  %v11316_v39 = vrot.slane %v4107_v28, %v9314_v26  ;;  %v11342_v28 = vrot.slane %v4400_v44, %v9314_v26 }
 0x6a6   : > { %v11254_v36 = vadd.f32 %v3860_v37, %v3859_v51  ;;  %v4355_v51 = vcombine.high %v14081_v0, %v14081_v0  ;;  %v8603_v37 = vld [vmem:[%s9190_s13 + $0x8] sm:$0xff] }
 0x6a8   : > { %8532 = vtanh.f32 %v11254_v36 }
 0x6b2   : > { %v8533_v35 = vpop.eup %8532 }
 0x6b3   : > { %v3867_v63 = vmul.f32 0.048770577, %v8533_v35  ;;  %v4311_v32 = vsel %vm319_vm0, %v14040_v60, %v8533_v35 }
 0x6b4   : > { %8341 = vst.msk [vmem:[%s9638_s26 + $0x18] sm:$0xff] %vm473_vm2, %v4311_v32 }
 0x6b5   : > { %v11262_v58 = vadd.f32 %v3867_v63, %v3866_v45  ;;  %v8604_v45 = vld [vmem:[%s9190_s13] sm:$0xff] }
 0x6b7   : > { %v3872_v40 = vrot.slane %v11262_v58, %v9314_v26  ;;  %v3892_v43 = vrot.slane %v11262_v58, %v9645_v15  ;;  %v3912_v25 = vrot.slane %v11262_v58, %v9650_v31  ;;  %v3932_v60 = vrot.slane %v11262_v58, %v9655_v42 }
 0x6b8   : > { %v3952_v34 = vrot.slane %v11262_v58, %v9660_v29  ;;  %v3972_v3 = vrot.slane %v11262_v58, %v9665_v4  ;;  %v3992_v10 = vrot.slane %v11262_v58, %v9670_v55  ;;  %v4012_v57 = vrot.slane %v11262_v58, %v9675_v27 }
 0x6b9   : > { %3879 = vbcast.lane.b32.xlu1 %v3872_v40, 296  ;;  %3875 = vbcast.lane.b32.xlu0 %v3872_v40, 288 }
 0x6bd   : > { %3895 = vbcast.lane.b32.xlu1 %v3892_v43, 288  ;;  %3883 = vbcast.lane.b32.xlu0 %v3872_v40, 304 }
 0x6c1   : > { %3899 = vbcast.lane.b32.xlu1 %v3892_v43, 296  ;;  %3915 = vbcast.lane.b32.xlu0 %v3912_v25, 288 }
 0x6c5   : > { %3903 = vbcast.lane.b32.xlu1 %v3892_v43, 304  ;;  %3887 = vbcast.lane.b32.xlu0 %v3872_v40, 312 }
 0x6c9   : > { %3919 = vbcast.lane.b32.xlu1 %v3912_v25, 296  ;;  %3923 = vbcast.lane.b32.xlu0 %v3912_v25, 304 }
 0x6cd   : > { %3907 = vbcast.lane.b32.xlu1 %v3892_v43, 312  ;;  %3939 = vbcast.lane.b32.xlu0 %v3932_v60, 296 }
 0x6d1   : > { %3935 = vbcast.lane.b32.xlu1 %v3932_v60, 288  ;;  %3943 = vbcast.lane.b32.xlu0 %v3932_v60, 304 }
 0x6d5   : > { %3927 = vbcast.lane.b32.xlu1 %v3912_v25, 312  ;;  %3959 = vbcast.lane.b32.xlu0 %v3952_v34, 296 }
 0x6d9   : > { %3955 = vbcast.lane.b32.xlu1 %v3952_v34, 288  ;;  %3963 = vbcast.lane.b32.xlu0 %v3952_v34, 304 }
 0x6dd   : > { %3947 = vbcast.lane.b32.xlu1 %v3932_v60, 312  ;;  %3979 = vbcast.lane.b32.xlu0 %v3972_v3, 296 }
 0x6e1   : > { %3975 = vbcast.lane.b32.xlu1 %v3972_v3, 288  ;;  %3983 = vbcast.lane.b32.xlu0 %v3972_v3, 304 }
 0x6e5   : > { %3967 = vbcast.lane.b32.xlu1 %v3952_v34, 312  ;;  %3999 = vbcast.lane.b32.xlu0 %v3992_v10, 296  ;;  %v4370_v34 = vcombine.high %v4362_v5, %v4362_v5  ;;  %v8605_v5 = vld [vmem:[%s9190_s13 + $0x20] sm:$0xff] }
 0x6e9   : > { %3995 = vbcast.lane.b32.xlu1 %v3992_v10, 288  ;;  %4003 = vbcast.lane.b32.xlu0 %v3992_v10, 304 }
 0x6ed   : > { %3987 = vbcast.lane.b32.xlu1 %v3972_v3, 312  ;;  %4019 = vbcast.lane.b32.xlu0 %v4012_v57, 296 }
 0x6f1   : > { %4015 = vbcast.lane.b32.xlu1 %v4012_v57, 288  ;;  %4023 = vbcast.lane.b32.xlu0 %v4012_v57, 304 }
 0x6f5   : > { %4007 = vbcast.lane.b32.xlu1 %v3992_v10, 312 }
 0x6f9   : > { %4027 = vbcast.lane.b32.xlu1 %v4012_v57, 312  ;;  %v4062_v57 = vcombine.high %v14080_v61, %v14080_v61 }
 0x72b   : > { %v3880_v6 = vpop.permute.xlu1 %3879  ;;  %v3876_v18 = vpop.permute.xlu0 %3875 }
 0x72c   : > { %v4112_v9 = vmul.f32 %v3880_v6, %v10818_v22  ;;  %v4111_v59 = vmul.f32 %v3876_v18, %v10821_v53  ;;  %v4030_v62 = vmul.f32 0.05, %v3880_v6  ;;  %v4029_v2 = vmul.f32 0.05, %v3876_v18 }
 0x72d   : > { %v11298_v22 = vrot.slane %v11291_v19, %v9314_v26  ;;  %v11320_v18 = vrot.slane %v4355_v51, %v9304_v17 }
 0x72e   : > { %v4184_v48 = vsub.f32 %v11286_v14, %v4112_v9  ;;  %v4183_v47 = vsub.f32 %v11286_v14, %v4111_v59 }
 0x72f   : > { %v3896_v12 = vpop.permute.xlu1 %3895  ;;  %v3884_v20 = vpop.permute.xlu0 %3883 }
 0x730   : > { %v4216_v56 = vmul.f32 %v4184_v48, %v4030_v62  ;;  %v4215_v50 = vmul.f32 %v4183_v47, %v4029_v2  ;;  %v4115_v53 = vmul.f32 %v3896_v12, %v10847_v24  ;;  %v4113_v41 = vmul.f32 %v3884_v20, %v10877_v30 }
 0x731   : > { %v4033_v32 = vmul.f32 0.05, %v3896_v12  ;;  %v4031_v43 = vmul.f32 0.05, %v3884_v20  ;;  %v11327_v12 = vrot.slane %v4370_v34, %v9304_v17 }
 0x732   : > { %v4248_v35 = vadd.f32 %v8603_v37, %v4216_v56  ;;  %v4247_v63 = vadd.f32 %v8604_v45, %v4215_v50  ;;  %v4187_v40 = vsub.f32 %v11298_v22, %v4115_v53  ;;  %v4185_v25 = vsub.f32 %v11286_v14, %v4113_v41 }
 0x733   : > { %v3900_v60 = vpop.permute.xlu1 %3899  ;;  %v3916_v24 = vpop.permute.xlu0 %3915  ;;  %v11333_v50 = vrot.slane %v4378_v1, %v9314_v26  ;;  %v11336_v53 = vrot.slane %v4062_v57, %v9304_v17  ;;  %v8606_v1 = vld [vmem:[%s9190_s13 + $0x28] sm:$0xff]  ;;  %v4371_v45 = vcombine.high %v11320_v18, %v11320_v18  ;;  %v11362_v34 = vrot.slane %v11327_v12, %v9314_v26 }
 0x734   : > { %4280 = vst.msk [vmem:[%s9190_s13 + $0x8] sm:$0xff] %vm319_vm0, %v4248_v35  ;;  %4279 = vst.msk [vmem:[%s9190_s13] sm:$0xff] %vm319_vm0, %v4247_v63  ;;  %v4219_v3 = vmul.f32 %v4187_v40, %v4033_v32  ;;  %v4116_v10 = vmul.f32 %v3900_v60, %v10874_v23  ;;  %v4217_v8 = vmul.f32 %v4185_v25, %v4031_v43  ;;  %v4034_v59 = vmul.f32 0.05, %v3900_v60 }
 0x735   : > { %v4119_v6 = vmul.f32 %v3916_v24, %v10903_v46  ;;  %v4037_v61 = vmul.f32 0.05, %v3916_v24 }
 0x736   : > { %v4251_v9 = vadd.f32 %v8605_v5, %v4219_v3  ;;  %v4188_v23 = vsub.f32 %v11298_v22, %v4116_v10  ;;  %v4249_v62 = vadd.f32 %v4217_v8, %v10877_v30 }
 0x737   : > { %v4191_v48 = vsub.f32 %v11316_v39, %v4119_v6  ;;  %v3904_v2 = vpop.permute.xlu1 %3903  ;;  %v3888_v47 = vpop.permute.xlu0 %3887  ;;  %v8607_v6 = vld [vmem:[%s9190_s13 + $0x30] sm:$0xff] }
 0x738   : > { %4283 = vst.msk [vmem:[%s9190_s13 + $0x20] sm:$0xff] %vm319_vm0, %v4251_v9  ;;  %v4220_v20 = vmul.f32 %v4188_v23, %v4034_v59  ;;  %v4117_v56 = vmul.f32 %v3904_v2, %v10909_v13  ;;  %4281 = vst.msk [vmem:[%s9190_s13 + $0x10] sm:$0xff] %vm319_vm0, %v4249_v62  ;;  %v4114_v41 = vmul.f32 %v3888_v47, %v10938_v38  ;;  %v4035_v37 = vmul.f32 0.05, %v3904_v2 }
 0x739   : > { %v4223_v30 = vmul.f32 %v4191_v48, %v4037_v61  ;;  %v11346_v13 = vrot.slane %v11320_v18, %v9304_v17  ;;  %v4032_v32 = vmul.f32 0.05, %v3888_v47 }
 0x73a   : > { %v4252_v51 = vadd.f32 %v8606_v1, %v4220_v20  ;;  %v4189_v35 = vsub.f32 %v11298_v22, %v4117_v56  ;;  %v4186_v40 = vsub.f32 %v11286_v14, %v4114_v41  ;;  %v11371_v14 = vrot.slane %v11336_v53, %v9304_v17  ;;  %v14082_v1 = vld [vmem:[#allocation23_spill] sm:$0xff] }
 0x73b   : > { %v4255_v63 = vadd.f32 %v4223_v30, %v10903_v46  ;;  %v3920_v43 = vpop.permute.xlu1 %3919  ;;  %v3924_v25 = vpop.permute.xlu0 %3923  ;;  %v11355_v60 = vld [vmem:[%s9190_s13 + $0x8] sm:$0xff]  ;;  %v11358_v24 = vld [vmem:[%s9190_s13] sm:$0xff]  ;;  %v4109_v46 = vcombine.high %v11291_v19, %v11291_v19 }
 0x73c   : > { %4284 = vst.msk [vmem:[%s9190_s13 + $0x28] sm:$0xff] %vm319_vm0, %v4252_v51  ;;  %v4221_v3 = vmul.f32 %v4189_v35, %v4035_v37  ;;  %v4120_v10 = vmul.f32 %v3920_v43, %v10935_v33  ;;  %v4218_v57 = vmul.f32 %v4186_v40, %v4032_v32  ;;  %v4121_v44 = vmul.f32 %v3924_v25, %v10956_v49  ;;  %v8608_v35 = vld [vmem:[%s9190_s13 + $0x48] sm:$0xff] }
 0x73d   : > { %4287 = vst.msk [vmem:[%s9190_s13 + $0x40] sm:$0xff] %vm319_vm0, %v4255_v63  ;;  %v4445_v8 = vmul.f32 %v11333_v50, %v11355_v60  ;;  %v4444_v33 = vmul.f32 %v11333_v50, %v11358_v24  ;;  %v4038_v19 = vmul.f32 0.05, %v3920_v43  ;;  %v4039_v9 = vmul.f32 0.05, %v3924_v25 }
 0x73e   : > { %v4253_v18 = vadd.f32 %v8607_v6, %v4221_v3  ;;  %v4192_v5 = vsub.f32 %v11316_v39, %v4120_v10  ;;  %v4250_v59 = vadd.f32 %v4218_v57, %v10938_v38  ;;  %v4193_v23 = vsub.f32 %v11316_v39, %v4121_v44 }
 0x73f   : > { %v4479_v62 = vsel %vm319_vm0, %v4445_v8, 0.0  ;;  %v3908_v61 = vpop.permute.xlu1 %3907  ;;  %v4476_v48 = vsel %vm319_vm0, %v4444_v33, 0.0  ;;  %v3940_v2 = vpop.permute.xlu0 %3939  ;;  %v11387_v47 = vld [vmem:[%s9190_s13 + $0x20] sm:$0xff]  ;;  %v4078_v38 = vcombine.high %v11336_v53, %v11336_v53  ;;  %v11397_v41 = vrot.slane %v4109_v46, %v9314_v26  ;;  %v11413_v44 = vld [vmem:[%s9190_s13 + $0x10] sm:$0xff]  ;;  %v14083_v8 = vld [vmem:[#allocation47_spill] sm:$0xff] }
 0x740   : > { %4285 = vst.msk [vmem:[%s9190_s13 + $0x30] sm:$0xff] %vm319_vm0, %v4253_v18  ;;  %v4224_v20 = vmul.f32 %v4192_v5, %v4038_v19  ;;  %4480 = vadd.xlane.f32.xlu1 %v4479_v62  ;;  %v4118_v56 = vmul.f32 %v3908_v61, %v10962_v54  ;;  %4477 = vadd.xlane.f32.xlu0 %v4476_v48  ;;  %4282 = vst.msk [vmem:[%s9190_s13 + $0x18] sm:$0xff] %vm319_vm0, %v4250_v59  ;;  %v4036_v63 = vmul.f32 0.05, %v3908_v61  ;;  %v14084_v18 = vld [vmem:[#allocation24_spill] sm:$0xff]  ;;  %v8609_v59 = vld [vmem:[%s9190_s13 + $0x38] sm:$0xff] }
 0x741   : > { %v4225_v30 = vmul.f32 %v4193_v23, %v4039_v9  ;;  %v4124_v51 = vmul.f32 %v3940_v2, %v14082_v1  ;;  %v4448_v37 = vmul.f32 %v11362_v34, %v11387_v47  ;;  %v4402_v53 = vcombine.high %v11327_v12, %v11327_v12 }
 0x742   : > { %v4256_v54 = vadd.f32 %v8608_v35, %v4224_v20  ;;  %v4190_v32 = vsub.f32 %v11298_v22, %v4118_v56  ;;  %v4042_v43 = vmul.f32 0.05, %v3940_v2  ;;  %v11423_v33 = vrot.slane %v4371_v45, %v9304_v17 }
 0x743   : > { %v4257_v40 = vadd.f32 %v4225_v30, %v10956_v49  ;;  %v4196_v25 = vsub.f32 %v11397_v41, %v4124_v51  ;;  %v3936_v3 = vpop.permute.xlu1 %3935  ;;  %v4488_v10 = vsel %vm319_vm0, %v4448_v37, 0.0  ;;  %v3944_v46 = vpop.permute.xlu0 %3943  ;;  %v11410_v57 = vld [vmem:[%s9190_s13 + $0x28] sm:$0xff]  ;;  %v11420_v49 = vrot.slane %v11346_v13, %v9314_v26 }
 0x744   : > { %4288 = vst.msk [vmem:[%s9190_s13 + $0x48] sm:$0xff] %vm319_vm0, %v4256_v54  ;;  %v4222_v22 = vmul.f32 %v4190_v32, %v4036_v63  ;;  %v4123_v12 = vmul.f32 %v3936_v3, %v14083_v8  ;;  %4489 = vadd.xlane.f32.xlu0 %v4488_v10  ;;  %v4125_v19 = vmul.f32 %v3944_v46, %v14084_v18  ;;  %v4041_v62 = vmul.f32 0.05, %v3936_v3  ;;  %v11439_v48 = vld [vmem:[%s9190_s13 + $0x40] sm:$0xff]  ;;  %v14085_v63 = vld [vmem:[#allocation21_spill] sm:$0xff] }
 0x745   : > { %4289 = vst.msk [vmem:[%s9190_s13 + $0x50] sm:$0xff] %vm319_vm0, %v4257_v40  ;;  %v4228_v6 = vmul.f32 %v4196_v25, %v4042_v43  ;;  %v4449_v5 = vmul.f32 %v11362_v34, %v11410_v57  ;;  %v11432_v9 = vrot.slane %v11371_v14, %v9314_v26  ;;  %v4446_v61 = vmul.f32 %v11333_v50, %v11413_v44  ;;  %v14086_v25 = vld [vmem:[#allocation22_spill] sm:$0xff] }
 0x746   : > { %v4254_v23 = vadd.f32 %v8609_v59, %v4222_v22  ;;  %v4195_v45 = vsub.f32 %v11397_v41, %v4123_v12  ;;  %v4043_v20 = vmul.f32 0.05, %v3944_v46  ;;  %v4197_v56 = vsub.f32 %v11397_v41, %v4125_v19  ;;  %v8610_v22 = vld [vmem:[%s9190_s13 + $0x60] sm:$0xff] }
 0x747   : > { %v4260_v2 = vadd.f32 %v4228_v6, %v14082_v1  ;;  %v3928_v30 = vpop.permute.xlu1 %3927  ;;  %v4491_v51 = vsel %vm319_vm0, %v4449_v5, 0.0  ;;  %v3960_v37 = vpop.permute.xlu0 %3959  ;;  %v11445_v35 = vld [vmem:[%s9190_s13 + $0x30] sm:$0xff]  ;;  %v11451_v40 = vrot.slane %v4078_v38, %v9304_v17  ;;  %v11454_v1 = vrot.slane %v4402_v53, %v9314_v26 }
 0x748   : > { %4286 = vst.msk [vmem:[%s9190_s13 + $0x38] sm:$0xff] %vm319_vm0, %v4254_v23  ;;  %v4227_v54 = vmul.f32 %v4195_v45, %v4041_v62  ;;  %v4122_v32 = vmul.f32 %v3928_v30, %v14085_v63  ;;  %4492 = vadd.xlane.f32.xlu0 %v4491_v51  ;;  %v4229_v43 = vmul.f32 %v4197_v56, %v4043_v20  ;;  %v4040_v8 = vmul.f32 0.05, %v3928_v30  ;;  %v14088_v30 = vld [vmem:[#allocation16_spill] sm:$0xff]  ;;  %v8611_v63 = vld [vmem:[%s9190_s13 + $0x58] sm:$0xff] }
 0x749   : > { %4292 = vst.msk [vmem:[%s9190_s13 + $0x68] sm:$0xff] %vm319_vm0, %v4260_v2  ;;  %v4128_v3 = vmul.f32 %v3960_v37, %v14086_v25  ;;  %v4450_v10 = vmul.f32 %v11362_v34, %v11445_v35  ;;  %v4452_v46 = vmul.f32 %v11342_v28, %v11439_v48  ;;  %v4482_v12 = vsel %vm319_vm0, %v4446_v61, 0.0  ;;  %v11473_v2 = vld [vmem:[%s9190_s13 + $0x18] sm:$0xff]  ;;  %v14087_v61 = vld [vmem:[#allocation17_spill] sm:$0xff] }
 0x74a   : > { %v4259_v38 = vadd.f32 %v8610_v22, %v4227_v54  ;;  %v4194_v53 = vsub.f32 %v11316_v39, %v4122_v32  ;;  %v4261_v6 = vadd.f32 %v4229_v43, %v14084_v18  ;;  %v4046_v19 = vmul.f32 0.05, %v3960_v37 }
 0x74b   : > { %v4200_v5 = vsub.f32 %v11432_v9, %v4128_v3  ;;  %v4494_v59 = vsel %vm319_vm0, %v4450_v10, 0.0  ;;  %v3956_v23 = vpop.permute.xlu1 %3955  ;;  %v3964_v62 = vpop.permute.xlu0 %3963  ;;  %v11470_v45 = vld [vmem:[%s9190_s13 + $0x48] sm:$0xff]  ;;  %v4108_v18 = vcombine.high %v11371_v14, %v11371_v14  ;;  %v4500_v54 = vsel %vm319_vm0, %v4452_v46, 0.0 }
 0x74c   : > { %4291 = vst.msk [vmem:[%s9190_s13 + $0x60] sm:$0xff] %vm319_vm0, %v4259_v38  ;;  %v4226_v39 = vmul.f32 %v4194_v53, %v4040_v8  ;;  %4495 = vadd.xlane.f32.xlu1 %v4494_v59  ;;  %v4127_v20 = vmul.f32 %v3956_v23, %v14087_v61  ;;  %4483 = vadd.xlane.f32.xlu0 %v4482_v12  ;;  %4293 = vst.msk [vmem:[%s9190_s13 + $0x70] sm:$0xff] %vm319_vm0, %v4261_v6  ;;  %v4045_v43 = vmul.f32 0.05, %v3956_v23  ;;  %v11491_v22 = vld [vmem:[%s9190_s13 + $0x50] sm:$0xff] }
 0x74d   : > { %v4232_v56 = vmul.f32 %v4200_v5, %v4046_v19  ;;  %v4129_v51 = vmul.f32 %v3964_v62, %v14088_v30  ;;  %v4453_v37 = vmul.f32 %v11342_v28, %v11470_v45  ;;  %v4447_v10 = vmul.f32 %v11333_v50, %v11473_v2  ;;  %v14089_v59 = vld [vmem:[#allocation18_spill] sm:$0xff] }
 0x74e   : > { %v4258_v32 = vadd.f32 %v8611_v63, %v4226_v39  ;;  %v4199_v3 = vsub.f32 %v11432_v9, %v4127_v20  ;;  %v4047_v8 = vmul.f32 0.05, %v3964_v62  ;;  %v14090_v62 = vld [vmem:[#allocation19_spill] sm:$0xff]  ;;  %v4454_v20 = vmul.f32 %v11342_v28, %v11491_v22 }
 0x74f   : > { %v4264_v38 = vadd.f32 %v4232_v56, %v14086_v25  ;;  %v4201_v53 = vsub.f32 %v11432_v9, %v4129_v51  ;;  %v4503_v12 = vsel %vm319_vm0, %v4453_v37, 0.0  ;;  %v3948_v46 = vpop.permute.xlu1 %3947  ;;  %v3980_v6 = vpop.permute.xlu0 %3979  ;;  %v11497_v19 = vld [vmem:[%s9190_s13 + $0x38] sm:$0xff]  ;;  %v11504_v25 = vrot.slane %v11451_v40, %v9314_v26  ;;  %v8612_v56 = vld [vmem:[%s9190_s13 + $0x80] sm:$0xff] }
 0x750   : > { %4290 = vst.msk [vmem:[%s9190_s13 + $0x58] sm:$0xff] %vm319_vm0, %v4258_v32  ;;  %v4231_v5 = vmul.f32 %v4199_v3, %v4045_v43  ;;  %4504 = vadd.xlane.f32.xlu1 %v4503_v12  ;;  %v4126_v50 = vmul.f32 %v3948_v46, %v14089_v59  ;;  %4501 = vadd.xlane.f32.xlu0 %v4500_v54  ;;  %v4044_v37 = vmul.f32 0.05, %v3948_v46  ;;  %v4485_v63 = vsel %vm319_vm0, %v4447_v10, 0.0  ;;  %v11523_v12 = vld [vmem:[%s9190_s13 + $0x68] sm:$0xff]  ;;  %v14093_v10 = vld [vmem:[#allocation34_spill] sm:$0xff] }
 0x751   : > { %4296 = vst.msk [vmem:[%s9190_s13 + $0x88] sm:$0xff] %vm319_vm0, %v4264_v38  ;;  %v4233_v23 = vmul.f32 %v4201_v53, %v4047_v8  ;;  %v4132_v39 = vmul.f32 %v3980_v6, %v14090_v62  ;;  %v4451_v61 = vmul.f32 %v11362_v34, %v11497_v19  ;;  %v4050_v43 = vmul.f32 0.05, %v3980_v6  ;;  %14092 = vst [vmem:[#allocation46_spill] sm:$0xff] %v11523_v12 }
 0x752   : > { %v4263_v51 = vadd.f32 %v8612_v56, %v4231_v5  ;;  %v4198_v54 = vsub.f32 %v11397_v41, %v4126_v50  ;;  %v14094_v5 = vld [vmem:[#allocation35_spill] sm:$0xff] }
 0x753   : > { %v4265_v32 = vadd.f32 %v4233_v23, %v14088_v30  ;;  %v4204_v3 = vsub.f32 %v11504_v25, %v4132_v39  ;;  %v4497_v38 = vsel %vm319_vm0, %v4451_v61, 0.0  ;;  %v3976_v34 = vpop.permute.xlu1 %3975  ;;  %v3984_v8 = vpop.permute.xlu0 %3983  ;;  %v11520_v53 = vld [vmem:[%s9190_s13 + $0x60] sm:$0xff]  ;;  %v11530_v30 = vrot.slane %v11423_v33, %v9314_v26  ;;  %v8613_v39 = vld [vmem:[%s9190_s13 + $0x78] sm:$0xff] }
 0x754   : > { %14091 = vst [vmem:[#allocation41_spill] sm:$0xff] %v11520_v53  ;;  %4295 = vst.msk [vmem:[%s9190_s13 + $0x80] sm:$0xff] %vm319_vm0, %v4263_v51  ;;  %v4230_v41 = vmul.f32 %v4198_v54, %v4044_v37  ;;  %4498 = vadd.xlane.f32.xlu1 %v4497_v38  ;;  %v4131_v46 = vmul.f32 %v3976_v34, %v14093_v10  ;;  %4486 = vadd.xlane.f32.xlu0 %v4485_v63  ;;  %v4506_v23 = vsel %vm319_vm0, %v4454_v20, 0.0  ;;  %v11543_v54 = vld [vmem:[%s9190_s13 + $0x70] sm:$0xff]  ;;  %v14097_v10 = vld [vmem:[#allocation20_spill] sm:$0xff] }
 0x755   : > { %4297 = vst.msk [vmem:[%s9190_s13 + $0x90] sm:$0xff] %vm319_vm0, %v4265_v32  ;;  %v4236_v6 = vmul.f32 %v4204_v3, %v4050_v43  ;;  %v4133_v59 = vmul.f32 %v3984_v8, %v14094_v5  ;;  %v4456_v50 = vmul.f32 %v11454_v1, %v11520_v53  ;;  %v4049_v56 = vmul.f32 0.05, %v3976_v34  ;;  %14095 = vst [vmem:[#allocation43_spill] sm:$0xff] %v11543_v54 }
 0x756   : > { %v4262_v61 = vadd.f32 %v8613_v39, %v4230_v41  ;;  %v4203_v51 = vsub.f32 %v11504_v25, %v4131_v46  ;;  %v4457_v37 = vmul.f32 %v11454_v1, %v11523_v12  ;;  %v4051_v32 = vmul.f32 0.05, %v3984_v8  ;;  %v8614_v39 = vld [vmem:[%s9190_s13 + $0xa0] sm:$0xff] }
 0x757   : > { %v4268_v63 = vadd.f32 %v4236_v6, %v14090_v62  ;;  %v4205_v43 = vsub.f32 %v11504_v25, %v4133_v59  ;;  %v4512_v3 = vsel %vm319_vm0, %v4456_v50, 0.0  ;;  %v3968_v20 = vpop.permute.xlu1 %3967  ;;  %v4000_v38 = vpop.permute.xlu0 %3999  ;;  %v11549_v41 = vld [vmem:[%s9190_s13 + $0x58] sm:$0xff]  ;;  %v11558_v62 = vrot.slane %v4108_v18, %v9314_v26  ;;  %v14098_v6 = vld [vmem:[#allocation36_spill] sm:$0xff] }
 0x758   : > { %14096 = vst [vmem:[#allocation45_spill] sm:$0xff] %v11549_v41  ;;  %4294 = vst.msk [vmem:[%s9190_s13 + $0x78] sm:$0xff] %vm319_vm0, %v4262_v61  ;;  %v4235_v34 = vmul.f32 %v4203_v51, %v4049_v56  ;;  %4513 = vadd.xlane.f32.xlu1 %v4512_v3  ;;  %v4130_v46 = vmul.f32 %v3968_v20, %v14097_v10  ;;  %4507 = vadd.xlane.f32.xlu0 %v4506_v23  ;;  %v4048_v56 = vmul.f32 0.05, %v3968_v20 }
 0x759   : > { %4300 = vst.msk [vmem:[%s9190_s13 + $0xa8] sm:$0xff] %vm319_vm0, %v4268_v63  ;;  %v4237_v8 = vmul.f32 %v4205_v43, %v4051_v32  ;;  %v4136_v59 = vmul.f32 %v4000_v38, %v14098_v6  ;;  %v4455_v50 = vmul.f32 %v11342_v28, %v11549_v41  ;;  %v4458_v23 = vmul.f32 %v11454_v1, %v11543_v54  ;;  %v11577_v41 = vld [vmem:[%s9190_s13 + $0x88] sm:$0xff] }
 0x75a   : > { %v4267_v61 = vadd.f32 %v8614_v39, %v4235_v34  ;;  %v4202_v14 = vsub.f32 %v11432_v9, %v4130_v46  ;;  %v4515_v18 = vsel %vm319_vm0, %v4457_v37, 0.0  ;;  %v4054_v63 = vmul.f32 0.05, %v4000_v38  ;;  %14100 = vst [vmem:[#allocation26_spill] sm:$0xff] %v11577_v41  ;;  %v14101_v37 = vld [vmem:[#allocation38_spill] sm:$0xff]  ;;  %v14102_v34 = vld [vmem:[#allocation37_spill] sm:$0xff] }
 0x75b   : > { %v4269_v51 = vadd.f32 %v4237_v8, %v14094_v5  ;;  %v4208_v32 = vsub.f32 %v11558_v62, %v4136_v59  ;;  %v4509_v43 = vsel %vm319_vm0, %v4455_v50, 0.0  ;;  %v3996_v28 = vpop.permute.xlu1 %3995  ;;  %v4004_v3 = vpop.permute.xlu0 %4003  ;;  %v11574_v10 = vld [vmem:[%s9190_s13 + $0x80] sm:$0xff]  ;;  %v4110_v5 = vcombine.high %v11451_v40, %v11451_v40  ;;  %v8615_v50 = vld [vmem:[%s9190_s13 + $0x98] sm:$0xff] }
 0x75c   : > { %14099 = vst [vmem:[#allocation25_spill] sm:$0xff] %v11574_v10  ;;  %4299 = vst.msk [vmem:[%s9190_s13 + $0xa0] sm:$0xff] %vm319_vm0, %v4267_v61  ;;  %v4234_v9 = vmul.f32 %v4202_v14, %v4048_v56  ;;  %4510 = vadd.xlane.f32.xlu1 %v4509_v43  ;;  %v4135_v20 = vmul.f32 %v3996_v28, %v14101_v37  ;;  %4516 = vadd.xlane.f32.xlu0 %v4515_v18  ;;  %v4518_v59 = vsel %vm319_vm0, %v4458_v23, 0.0  ;;  %v11595_v14 = vld [vmem:[%s9190_s13 + $0x90] sm:$0xff]  ;;  %v14105_v37 = vld [vmem:[#allocation40_spill] sm:$0xff] }
 0x75d   : > { %4301 = vst.msk [vmem:[%s9190_s13 + $0xb0] sm:$0xff] %vm319_vm0, %v4269_v51  ;;  %v4240_v38 = vmul.f32 %v4208_v32, %v4054_v63  ;;  %v4137_v46 = vmul.f32 %v4004_v3, %v14102_v34  ;;  %v4460_v8 = vmul.f32 %v11420_v49, %v11574_v10  ;;  %v4053_v61 = vmul.f32 0.05, %v3996_v28  ;;  %14103 = vst [vmem:[#allocation23_spill] sm:$0xff] %v11595_v14 }
 0x75e   : > { %v4266_v39 = vadd.f32 %v8615_v50, %v4234_v9  ;;  %v4207_v56 = vsub.f32 %v11558_v62, %v4135_v20  ;;  %v4461_v40 = vmul.f32 %v11420_v49, %v11577_v41  ;;  %v4055_v51 = vmul.f32 0.05, %v4004_v3  ;;  %v14106_v3 = vld [vmem:[#allocation39_spill] sm:$0xff] }
 0x75f   : > { %v4272_v18 = vadd.f32 %v4240_v38, %v14098_v6  ;;  %v4209_v63 = vsub.f32 %v11558_v62, %v4137_v46  ;;  %v4524_v32 = vsel %vm319_vm0, %v4460_v8, 0.0  ;;  %v3988_v23 = vpop.permute.xlu1 %3987  ;;  %v4020_v43 = vpop.permute.xlu0 %4019  ;;  %v11601_v9 = vld [vmem:[%s9190_s13 + $0x78] sm:$0xff]  ;;  %v11607_v50 = vrot.slane %v4110_v5, %v9314_v26 }
 0x760   : > { %14104 = vst [vmem:[#allocation47_spill] sm:$0xff] %v11601_v9  ;;  %4298 = vst.msk [vmem:[%s9190_s13 + $0x98] sm:$0xff] %vm319_vm0, %v4266_v39  ;;  %v4239_v28 = vmul.f32 %v4207_v56, %v4053_v61  ;;  %4525 = vadd.xlane.f32.xlu1 %v4524_v32  ;;  %v4134_v20 = vmul.f32 %v3988_v23, %v14105_v37  ;;  %4519 = vadd.xlane.f32.xlu0 %v4518_v59  ;;  %v8616_v39 = vld [vmem:[%s9190_s13 + $0xc0] sm:$0xff]  ;;  %v4052_v59 = vmul.f32 0.05, %v3988_v23 }
 0x761   : > { %4304 = vst.msk [vmem:[%s9190_s13 + $0xc8] sm:$0xff] %vm319_vm0, %v4272_v18  ;;  %v4241_v6 = vmul.f32 %v4209_v63, %v4055_v51  ;;  %v4140_v38 = vmul.f32 %v4020_v43, %v14106_v3  ;;  %v4459_v46 = vmul.f32 %v11454_v1, %v11601_v9  ;;  %v4462_v8 = vmul.f32 %v11420_v49, %v11595_v14  ;;  %v11626_v9 = vld [vmem:[%s9190_s13 + $0xa8] sm:$0xff] }
 0x762   : > { %v4271_v61 = vadd.f32 %v8616_v39, %v4239_v28  ;;  %v4206_v5 = vsub.f32 %v11504_v25, %v4134_v20  ;;  %v4527_v56 = vsel %vm319_vm0, %v4461_v40, 0.0  ;;  %v4058_v51 = vmul.f32 0.05, %v4020_v43  ;;  %14108 = vst [vmem:[#allocation21_spill] sm:$0xff] %v11626_v9  ;;  %v14109_v40 = vld [vmem:[#allocation42_spill] sm:$0xff]  ;;  %v14110_v28 = vld [vmem:[#allocation44_spill] sm:$0xff] }
 0x763   : > { %v4273_v18 = vadd.f32 %v4241_v6, %v14102_v34  ;;  %v4212_v63 = vsub.f32 %v11607_v50, %v4140_v38  ;;  %v4521_v32 = vsel %vm319_vm0, %v4459_v46, 0.0  ;;  %v4016_v1 = vpop.permute.xlu1 %4015  ;;  %v4024_v37 = vpop.permute.xlu0 %4023  ;;  %v11623_v3 = vld [vmem:[%s9190_s13 + $0xa0] sm:$0xff]  ;;  %v4401_v34 = vcombine.high %v11346_v13, %v11346_v13  ;;  %v8617_v46 = vld [vmem:[%s9190_s13 + $0xb8] sm:$0xff] }
 0x764   : > { %14107 = vst [vmem:[#allocation24_spill] sm:$0xff] %v11623_v3  ;;  %4303 = vst.msk [vmem:[%s9190_s13 + $0xc0] sm:$0xff] %vm319_vm0, %v4271_v61  ;;  %v4238_v25 = vmul.f32 %v4206_v5, %v4052_v59  ;;  %4522 = vadd.xlane.f32.xlu1 %v4521_v32  ;;  %v4139_v23 = vmul.f32 %v4016_v1, %v14109_v40  ;;  %4528 = vadd.xlane.f32.xlu0 %v4527_v56  ;;  %v4530_v38 = vsel %vm319_vm0, %v4462_v8, 0.0  ;;  %v8618_v5 = vld [vmem:[%s9190_s13 + $0xe8] sm:$0xff] }
 0x765   : > { %4305 = vst.msk [vmem:[%s9190_s13 + $0xd0] sm:$0xff] %vm319_vm0, %v4273_v18  ;;  %v4244_v43 = vmul.f32 %v4212_v63, %v4058_v51  ;;  %v4141_v20 = vmul.f32 %v4024_v37, %v14110_v28  ;;  %v4464_v6 = vmul.f32 %v11530_v30, %v11623_v3  ;;  %v4057_v61 = vmul.f32 0.05, %v4016_v1 }
 0x766   : > { %v4270_v39 = vadd.f32 %v8617_v46, %v4238_v25  ;;  %v4211_v59 = vsub.f32 %v11607_v50, %v4139_v23  ;;  %v4465_v13 = vmul.f32 %v11530_v30, %v11626_v9  ;;  %v4059_v18 = vmul.f32 0.05, %v4024_v37  ;;  %v8619_v25 = vld [vmem:[%s9190_s13 + $0xd8] sm:$0xff]  ;;  %v11655_v23 = vld [vmem:[%s9190_s13 + $0xb0] sm:$0xff] }
 0x767   : > { %v4276_v56 = vadd.f32 %v8618_v5, %v4244_v43  ;;  %v4213_v51 = vsub.f32 %v11607_v50, %v4141_v20  ;;  %v4536_v63 = vsel %vm319_vm0, %v4464_v6, 0.0  ;;  %v4008_v8 = vpop.permute.xlu1 %4007  ;;  %v11647_v32 = vld [vmem:[%s9190_s13 + $0x98] sm:$0xff]  ;;  %14112 = vst [vmem:[#allocation17_spill] sm:$0xff] %v11655_v23  ;;  %v4431_v28 = vrot.slane %v4401_v34, %v9314_v26  ;;  %v8620_v20 = vld [vmem:[%s9190_s13 + $0xe0] sm:$0xff] }
 0x768   : > { %14111 = vst [vmem:[#allocation22_spill] sm:$0xff] %v11647_v32  ;;  %4302 = vst.msk [vmem:[%s9190_s13 + $0xb8] sm:$0xff] %vm319_vm0, %v4270_v39  ;;  %v4243_v1 = vmul.f32 %v4211_v59, %v4057_v61  ;;  %4537 = vadd.xlane.f32.xlu1 %v4536_v63  ;;  %v4138_v40 = vmul.f32 %v8619_v25, %v4008_v8  ;;  %4531 = vadd.xlane.f32.xlu0 %v4530_v38  ;;  %v4056_v46 = vmul.f32 0.05, %v4008_v8  ;;  %v8621_v61 = vld [vmem:[%s9190_s13 + $0xf0] sm:$0xff]  ;;  %v11675_v8 = vld [vmem:[%s9190_s13 + $0xc8] sm:$0xff] }
 0x769   : > { %v4463_v37 = vmul.f32 %v11420_v49, %v11647_v32  ;;  %4308 = vst.msk [vmem:[%s9190_s13 + $0xe8] sm:$0xff] %vm319_vm0, %v4276_v56  ;;  %v4245_v43 = vmul.f32 %v4213_v51, %v4059_v18  ;;  %v4539_v5 = vsel %vm319_vm0, %v4465_v13, 0.0  ;;  %v4466_v56 = vmul.f32 %v11530_v30, %v11655_v23  ;;  %14114 = vst [vmem:[#allocation18_spill] sm:$0xff] %v11675_v8 }
 0x76a   : > { %v4275_v6 = vadd.f32 %v8620_v20, %v4243_v1  ;;  %v4210_v39 = vsub.f32 %v11558_v62, %v4138_v40  ;;  %v8622_v62 = vld [vmem:[%s9190_s13 + $0xf8] sm:$0xff]  ;;  %v4403_v13 = vcombine.high %v11423_v33, %v11423_v33 }
 0x76b   : > { %v4533_v38 = vsel %vm319_vm0, %v4463_v37, 0.0  ;;  %v4277_v49 = vadd.f32 %v8621_v61, %v4245_v43  ;;  %v4028_v59 = vpop.permute.xlu1 %4027  ;;  %v11666_v63 = vld [vmem:[%s9190_s13 + $0xc0] sm:$0xff]  ;;  %v4542_v20 = vsel %vm319_vm0, %v4466_v56, 0.0 }
 0x76c   : > { %14113 = vst [vmem:[#allocation16_spill] sm:$0xff] %v11666_v63  ;;  %4307 = vst.msk [vmem:[%s9190_s13 + $0xe0] sm:$0xff] %vm319_vm0, %v4275_v6  ;;  %v4242_v34 = vmul.f32 %v4210_v39, %v4056_v46  ;;  %4534 = vadd.xlane.f32.xlu1 %v4533_v38  ;;  %v4142_v18 = vmul.f32 %v8622_v62, %v4028_v59  ;;  %4540 = vadd.xlane.f32.xlu0 %v4539_v5  ;;  %v4060_v40 = vmul.f32 0.05, %v4028_v59 }
 0x76d   : > { %v4468_v51 = vmul.f32 %v4431_v28, %v11666_v63  ;;  %4309 = vst.msk [vmem:[%s9190_s13 + $0xf0] sm:$0xff] %vm319_vm0, %v4277_v49  ;;  %v4469_v46 = vmul.f32 %v4431_v28, %v11675_v8  ;;  %v4435_v61 = vrot.slane %v4403_v13, %v9314_v26 }
 0x76e   : > { %v4274_v1 = vadd.f32 %v8619_v25, %v4242_v34  ;;  %v4214_v37 = vsub.f32 %v11607_v50, %v4142_v18  ;;  %v11693_v50 = vld [vmem:[%s9190_s13 + $0xd0] sm:$0xff] }
 0x76f   : > { %v4548_v43 = vsel %vm319_vm0, %v4468_v51, 0.0  ;;  %v11685_v6 = vld [vmem:[%s9190_s13 + $0xb8] sm:$0xff]  ;;  %14116 = vst [vmem:[#allocation34_spill] sm:$0xff] %v11693_v50  ;;  %v4551_v49 = vsel %vm319_vm0, %v4469_v46, 0.0  ;;  %v4470_v5 = vmul.f32 %v4431_v28, %v11693_v50 }
 0x770   : > { %14115 = vst [vmem:[#allocation19_spill] sm:$0xff] %v11685_v6  ;;  %4306 = vst.msk [vmem:[%s9190_s13 + $0xd8] sm:$0xff] %vm319_vm0, %v4274_v1  ;;  %v4246_v39 = vmul.f32 %v4214_v37, %v4060_v40  ;;  %4549 = vadd.xlane.f32.xlu1 %v4548_v43  ;;  %4543 = vadd.xlane.f32.xlu0 %v4542_v20  ;;  %v4467_v33 = vmul.f32 %v11530_v30, %v11685_v6  ;;  %v11706_v56 = vld [vmem:[%s9190_s13 + $0xe8] sm:$0xff] }
 0x771   : > { %14118 = vst [vmem:[#allocation20_spill] sm:$0xff] %v11706_v56  ;;  %v4473_v51 = vmul.f32 %v4435_v61, %v11706_v56 }
 0x772   : > { %v4278_v25 = vadd.f32 %v8622_v62, %v4246_v39  ;;  %v4545_v38 = vsel %vm319_vm0, %v4467_v33, 0.0  ;;  %v4554_v62 = vsel %vm319_vm0, %v4470_v5, 0.0 }
 0x773   : > { %v11699_v59 = vld [vmem:[%s9190_s13 + $0xe0] sm:$0xff]  ;;  %v4563_v37 = vsel %vm319_vm0, %v4473_v51, 0.0 }
 0x774   : > { %14117 = vst [vmem:[#allocation35_spill] sm:$0xff] %v11699_v59  ;;  %4310 = vst.msk [vmem:[%s9190_s13 + $0xf8] sm:$0xff] %vm319_vm0, %v4278_v25  ;;  %4546 = vadd.xlane.f32.xlu1 %v4545_v38  ;;  %4552 = vadd.xlane.f32.xlu0 %v4551_v49  ;;  %v4472_v30 = vmul.f32 %v4435_v61, %v11699_v59  ;;  %v11713_v1 = vld [vmem:[%s9190_s13 + $0xf0] sm:$0xff] }
 0x775   : > { %14119 = vst [vmem:[#allocation36_spill] sm:$0xff] %v11713_v1  ;;  %v4474_v20 = vmul.f32 %v4435_v61, %v11713_v1 }
 0x776   : > { %v4560_v34 = vsel %vm319_vm0, %v4472_v30, 0.0 }
 0x777   : > { %v4349_v18 = vld [vmem:[%s9190_s13 + $0xd8] sm:$0xff]  ;;  %v4566_v33 = vsel %vm319_vm0, %v4474_v20, 0.0 }
 0x778   : > { %4561 = vadd.xlane.f32.xlu1 %v4560_v34  ;;  %4555 = vadd.xlane.f32.xlu0 %v4554_v62  ;;  %v4471_v13 = vmul.f32 %v4431_v28, %v4349_v18 }
 0x77a   : > { %v4557_v40 = vsel %vm319_vm0, %v4471_v13, 0.0 }
 0x77b   : > { %v4353_v43 = vld [vmem:[%s9190_s13 + $0xf8] sm:$0xff] }
 0x77c   : > { %4558 = vadd.xlane.f32.xlu1 %v4557_v40  ;;  %4564 = vadd.xlane.f32.xlu0 %v4563_v37  ;;  %v4475_v46 = vmul.f32 %v4435_v61, %v4353_v43 }
 0x77e   : > { %v4569_v39 = vsel %vm319_vm0, %v4475_v46, 0.0 }
 0x780   : > { %4570 = vadd.xlane.f32.xlu1 %v4569_v39  ;;  %4567 = vadd.xlane.f32.xlu0 %v4566_v33 }
 0x7cd   : > { %v4478_v25 = vpop.xlane.xlu0 %4477  ;;  %v4481_v38 = vpop.xlane.xlu1 %4480 }
 0x7ce   : > { %v4573_v59 = vmul.f32 0.2, %v4481_v38  ;;  %v4572_v56 = vmul.f32 0.2, %v4478_v25 }
 0x7d0   : > { %v4643_v14 = vrot.slane %v4573_v59, %v9552_v7  ;;  %v4639_v10 = vrot.slane %v4572_v56, %v9549_v52 }
 0x7d1   : > { %v4490_v28 = vpop.xlane.xlu0 %4489 }
 0x7d2   : > { %v4576_v8 = vmul.f32 0.2, %v4490_v28  ;;  %v4644_v59 = vsel %vm877_vm3, %v4643_v14, %v4639_v10 }
 0x7d5   : > { %v4493_v49 = vpop.xlane.xlu0 %4492 }
 0x7d6   : > { %v4577_v6 = vmul.f32 0.2, %v4493_v49  ;;  %v4658_v49 = vrot.slane %v4576_v8, %v9549_v52 }
 0x7d8   : > { %v4662_v41 = vrot.slane %v4577_v6, %v9552_v7 }
 0x7d9   : > { %v4496_v5 = vpop.xlane.xlu1 %4495  ;;  %v4484_v30 = vpop.xlane.xlu0 %4483 }
 0x7da   : > { %v4578_v50 = vmul.f32 0.2, %v4496_v5  ;;  %v4574_v63 = vmul.f32 0.2, %v4484_v30  ;;  %v4663_v56 = vsel %vm877_vm3, %v4662_v41, %v4658_v49 }
 0x7dc   : > { %v4667_v54 = vrot.slane %v4578_v50, %v9555_v11  ;;  %v4648_v53 = vrot.slane %v4574_v63, %v9555_v11 }
 0x7dd   : > { %v4505_v34 = vpop.xlane.xlu1 %4504  ;;  %v4502_v62 = vpop.xlane.xlu0 %4501 }
 0x7de   : > { %v4581_v38 = vmul.f32 0.2, %v4505_v34  ;;  %v4580_v25 = vmul.f32 0.2, %v4502_v62  ;;  %v4668_v50 = vsel %vm884_vm4, %v4667_v54, %v4663_v56  ;;  %v4649_v63 = vsel %vm884_vm4, %v4648_v53, %v4644_v59 }
 0x7e0   : > { %v4681_v34 = vrot.slane %v4581_v38, %v9552_v7  ;;  %v4677_v8 = vrot.slane %v4580_v25, %v9549_v52 }
 0x7e1   : > { %v4499_v18 = vpop.xlane.xlu1 %4498  ;;  %v4487_v51 = vpop.xlane.xlu0 %4486 }
 0x7e2   : > { %v4579_v32 = vmul.f32 0.2, %v4499_v18  ;;  %v4575_v23 = vmul.f32 0.2, %v4487_v51  ;;  %v4682_v54 = vsel %vm877_vm3, %v4681_v34, %v4677_v8 }
 0x7e4   : > { %v4672_v28 = vrot.slane %v4579_v32, %v9558_v16  ;;  %v4653_v5 = vrot.slane %v4575_v23, %v9558_v16 }
 0x7e5   : > { %v4514_v13 = vpop.xlane.xlu1 %4513  ;;  %v4508_v40 = vpop.xlane.xlu0 %4507 }
 0x7e6   : > { %v4582_v30 = vmul.f32 0.2, %v4508_v40  ;;  %v4673_v32 = vsel %vm891_vm5, %v4672_v28, %v4668_v50  ;;  %v4654_v23 = vsel %vm891_vm5, %v4653_v5, %v4649_v63  ;;  %v4584_v41 = vmul.f32 0.2, %v4514_v13 }
 0x7e7   : > { %v4788_v53 = vsel %vm1026_vm6, %v4673_v32, %v4654_v23 }
 0x7e8   : > { %v4686_v62 = vrot.slane %v4582_v30, %v9555_v11 }
 0x7e9   : > { %v4511_v37 = vpop.xlane.xlu1 %4510  ;;  %v4517_v61 = vpop.xlane.xlu0 %4516 }
 0x7ea   : > { %v4583_v6 = vmul.f32 0.2, %v4511_v37  ;;  %v4585_v40 = vmul.f32 0.2, %v4517_v61  ;;  %v4687_v25 = vsel %vm884_vm4, %v4686_v62, %v4682_v54 }
 0x7ec   : > { %v4691_v37 = vrot.slane %v4583_v6, %v9558_v16  ;;  %v4700_v49 = vrot.slane %v4585_v40, %v9552_v7  ;;  %v4696_v6 = vrot.slane %v4584_v41, %v9549_v52 }
 0x7ed   : > { %v4526_v43 = vpop.xlane.xlu1 %4525  ;;  %v4520_v46 = vpop.xlane.xlu0 %4519 }
 0x7ee   : > { %v4588_v38 = vmul.f32 0.2, %v4526_v43  ;;  %v4586_v28 = vmul.f32 0.2, %v4520_v46  ;;  %v4692_v50 = vsel %vm891_vm5, %v4691_v37, %v4687_v25  ;;  %v4701_v46 = vsel %vm877_vm3, %v4700_v49, %v4696_v6 }
 0x7f0   : > { %v4715_v43 = vrot.slane %v4588_v38, %v9549_v52 }
 0x7f1   : > { %v4523_v1 = vpop.xlane.xlu1 %4522  ;;  %v4529_v20 = vpop.xlane.xlu0 %4528 }
 0x7f2   : > { %v4589_v12 = vmul.f32 0.2, %v4529_v20  ;;  %v4587_v59 = vmul.f32 0.2, %v4523_v1  ;;  %v4705_v1 = vrot.slane %v4586_v28, %v9555_v11 }
 0x7f4   : > { %v4719_v61 = vrot.slane %v4589_v12, %v9552_v7  ;;  %v4706_v49 = vsel %vm884_vm4, %v4705_v1, %v4701_v46 }
 0x7f5   : > { %v4538_v39 = vpop.xlane.xlu1 %4537  ;;  %v4532_v33 = vpop.xlane.xlu0 %4531 }
 0x7f6   : > { %v4590_v5 = vmul.f32 0.2, %v4532_v33  ;;  %v4592_v8 = vmul.f32 0.2, %v4538_v39  ;;  %v4720_v33 = vsel %vm877_vm3, %v4719_v61, %v4715_v43 }
 0x7f8   : > { %v4724_v12 = vrot.slane %v4590_v5, %v9555_v11  ;;  %v4734_v54 = vrot.slane %v4592_v8, %v9549_v52 }
 0x7f9   : > { %v4535_v3 = vpop.xlane.xlu1 %4534  ;;  %v4541_v9 = vpop.xlane.xlu0 %4540 }
 0x7fa   : > { %v4591_v20 = vmul.f32 0.2, %v4535_v3  ;;  %v4593_v30 = vmul.f32 0.2, %v4541_v9  ;;  %v4710_v3 = vrot.slane %v4587_v59, %v9558_v16  ;;  %v4725_v28 = vsel %vm884_vm4, %v4724_v12, %v4720_v33 }
 0x7fc   : > { %v4729_v62 = vrot.slane %v4591_v20, %v9558_v16  ;;  %v4711_v61 = vsel %vm891_vm5, %v4710_v3, %v4706_v49 }
 0x7fd   : > { %v4550_v18 = vpop.xlane.xlu1 %4549  ;;  %v4544_v51 = vpop.xlane.xlu0 %4543 }
 0x7fe   : > { %v4594_v63 = vmul.f32 0.2, %v4544_v51  ;;  %v4596_v9 = vmul.f32 0.2, %v4550_v18  ;;  %v4738_v51 = vrot.slane %v4593_v30, %v9552_v7  ;;  %v4730_v20 = vsel %vm891_vm5, %v4729_v62, %v4725_v28 }
 0x7ff   : > { %v4806_v28 = vmul.f32 0.95122945, %v11262_v58 }
 0x800   : > { %v4743_v39 = vrot.slane %v4594_v63, %v9555_v11  ;;  %v4753_v5 = vrot.slane %v4596_v9, %v9549_v52  ;;  %v4739_v30 = vsel %vm877_vm3, %v4738_v51, %v4734_v54 }
 0x801   : > { %v4547_v10 = vpop.xlane.xlu1 %4546  ;;  %v4553_v14 = vpop.xlane.xlu0 %4552 }
 0x802   : > { %v4597_v34 = vmul.f32 0.2, %v4553_v14  ;;  %v4595_v32 = vmul.f32 0.2, %v4547_v10  ;;  %v4744_v63 = vsel %vm884_vm4, %v4743_v39, %v4739_v30 }
 0x804   : > { %v4757_v10 = vrot.slane %v4597_v34, %v9552_v7  ;;  %v4748_v18 = vrot.slane %v4595_v32, %v9558_v16  ;;  %v4789_v32 = vsel %vm1028_vm7, %v4692_v50, %v4788_v53 }
 0x805   : > { %v4562_v56 = vpop.xlane.xlu1 %4561  ;;  %v4556_v13 = vpop.xlane.xlu0 %4555  ;;  %v4790_v12 = vsel %vm1030_vm8, %v4711_v61, %v4789_v32 }
 0x806   : > { %v4598_v23 = vmul.f32 0.2, %v4556_v13  ;;  %v4600_v38 = vmul.f32 0.2, %v4562_v56  ;;  %v4758_v34 = vsel %vm877_vm3, %v4757_v10, %v4753_v5  ;;  %v4791_v62 = vsel %vm1032_vm9, %v4730_v20, %v4790_v12 }
 0x807   : > { %v4797_v10 = vmul.f32 0.9048374, %v11250_v21 }
 0x808   : > { %v4762_v25 = vrot.slane %v4598_v23, %v9555_v11  ;;  %v4749_v23 = vsel %vm891_vm5, %v4748_v18, %v4744_v63  ;;  %v4772_v46 = vrot.slane %v4600_v38, %v9549_v52  ;;  %v4799_v18 = vmul.f32 0.95122945, %v11254_v36 }
 0x809   : > { %v4559_v40 = vpop.xlane.xlu1 %4558  ;;  %v4565_v14 = vpop.xlane.xlu0 %4564  ;;  %v4792_v53 = vsel %vm1034_vm10, %v4749_v23, %v4791_v62 }
 0x80a   : > { %v4599_v41 = vmul.f32 0.2, %v4559_v40  ;;  %v4601_v37 = vmul.f32 0.2, %v4565_v14  ;;  %v4763_v1 = vsel %vm884_vm4, %v4762_v25, %v4758_v34 }
 0x80c   : > { %v4767_v59 = vrot.slane %v4599_v41, %v9558_v16  ;;  %v4776_v13 = vrot.slane %v4601_v37, %v9552_v7  ;;  %v8623_v41 = vld [vmem:[#allocation2 + $0x20] sm:$0xff] }
 0x80d   : > { %v4571_v6 = vpop.xlane.xlu1 %4570  ;;  %v4568_v56 = vpop.xlane.xlu0 %4567 }
 0x80e   : > { %v4603_v43 = vmul.f32 0.2, %v4571_v6  ;;  %v4602_v8 = vmul.f32 0.2, %v4568_v56  ;;  %v4768_v9 = vsel %vm891_vm5, %v4767_v59, %v4763_v1  ;;  %v4777_v51 = vsel %vm877_vm3, %v4776_v13, %v4772_v46  ;;  %v14120_v56 = vld [vmem:[#allocation27_spill] sm:$0xff] }
 0x80f   : > { %v4793_v40 = vsel %vm1036_vm11, %v4768_v9, %v4792_v53  ;;  %v5009_v63 = vrot.slane %v14120_v56, %v9304_v17 }
 0x810   : > { %v4786_v3 = vrot.slane %v4603_v43, %v9558_v16  ;;  %v4781_v33 = vrot.slane %v4602_v8, %v9555_v11 }
 0x811   : > { %v5025_v34 = vrot.slane %v5009_v63, %v9304_v17  ;;  %v5017_v43 = vcombine.high %v5009_v63, %v5009_v63 }
 0x812   : > { %v4782_v50 = vsel %vm884_vm4, %v4781_v33, %v4777_v51 }
 0x813   : > { %v4787_v14 = vsel %vm891_vm5, %v4786_v3, %v4782_v50  ;;  %v11819_v23 = vrot.slane %v5025_v34, %v9314_v26  ;;  %v11824_v12 = vrot.slane %v5017_v43, %v9304_v17  ;;  %v14121_v50 = vld [vmem:[#allocation28_spill] sm:$0xff] }
 0x814   : > { %v4794_v39 = vsel %vm1038_vm12, %v4787_v14, %v4793_v40  ;;  %v5302_v40 = vrot.slane %v14121_v50, %v9304_v17 }
 0x815   : > { %v4796_v37 = vadd.f32 %v8623_v41, %v4794_v39  ;;  %v11834_v39 = vrot.slane %v11824_v12, %v9314_v26 }
 0x817   : > { %v11785_v54 = vadd.f32 %v4797_v10, %v4796_v37  ;;  %v5047_v37 = vcombine.high %v5025_v34, %v5025_v34 }
 0x819   : > { %v4800_v38 = vmul.f32 0.048770577, %v11785_v54  ;;  %v11854_v34 = vrot.slane %v5047_v37, %v9314_v26  ;;  %v5049_v37 = vcombine.high %v11824_v12, %v11824_v12 }
 0x81b   : > { %v11789_v25 = vadd.f32 %v4800_v38, %v4799_v18  ;;  %v5295_v18 = vcombine.high %v14121_v50, %v14121_v50  ;;  %v8624_v38 = vld [vmem:[%s9190_s13 + $0x8] sm:$0xff] }
 0x81d   : > { %8534 = vtanh.f32 %v11789_v25 }
 0x827   : > { %v8535_v49 = vpop.eup %8534 }
 0x828   : > { %v4807_v5 = vmul.f32 0.048770577, %v8535_v49  ;;  %v5251_v59 = vsel %vm319_vm0, %v14081_v0, %v8535_v49 }
 0x829   : > { %8342 = vst.msk [vmem:[%s9638_s26 + $0x20] sm:$0xff] %vm473_vm2, %v5251_v59 }
 0x82a   : > { %v11797_v21 = vadd.f32 %v4807_v5, %v4806_v28  ;;  %v8625_v28 = vld [vmem:[%s9190_s13] sm:$0xff] }
 0x82c   : > { %v4812_v36 = vrot.slane %v11797_v21, %v9314_v26  ;;  %v4832_v61 = vrot.slane %v11797_v21, %v9645_v15  ;;  %v4852_v58 = vrot.slane %v11797_v21, %v9650_v31  ;;  %v4872_v0 = vrot.slane %v11797_v21, %v9655_v42 }
 0x82d   : > { %v4892_v20 = vrot.slane %v11797_v21, %v9660_v29  ;;  %v4912_v30 = vrot.slane %v11797_v21, %v9665_v4  ;;  %v4932_v13 = vrot.slane %v11797_v21, %v9670_v55  ;;  %v4952_v6 = vrot.slane %v11797_v21, %v9675_v27 }
 0x82e   : > { %4819 = vbcast.lane.b32.xlu1 %v4812_v36, 296  ;;  %4815 = vbcast.lane.b32.xlu0 %v4812_v36, 288 }
 0x832   : > { %4835 = vbcast.lane.b32.xlu1 %v4832_v61, 288  ;;  %4823 = vbcast.lane.b32.xlu0 %v4812_v36, 304 }
 0x836   : > { %4839 = vbcast.lane.b32.xlu1 %v4832_v61, 296  ;;  %4855 = vbcast.lane.b32.xlu0 %v4852_v58, 288 }
 0x83a   : > { %4843 = vbcast.lane.b32.xlu1 %v4832_v61, 304  ;;  %4827 = vbcast.lane.b32.xlu0 %v4812_v36, 312 }
 0x83e   : > { %4859 = vbcast.lane.b32.xlu1 %v4852_v58, 296  ;;  %4863 = vbcast.lane.b32.xlu0 %v4852_v58, 304 }
 0x842   : > { %4847 = vbcast.lane.b32.xlu1 %v4832_v61, 312  ;;  %4879 = vbcast.lane.b32.xlu0 %v4872_v0, 296 }
 0x846   : > { %4875 = vbcast.lane.b32.xlu1 %v4872_v0, 288  ;;  %4883 = vbcast.lane.b32.xlu0 %v4872_v0, 304 }
 0x84a   : > { %4867 = vbcast.lane.b32.xlu1 %v4852_v58, 312  ;;  %4899 = vbcast.lane.b32.xlu0 %v4892_v20, 296 }
 0x84e   : > { %4895 = vbcast.lane.b32.xlu1 %v4892_v20, 288  ;;  %4903 = vbcast.lane.b32.xlu0 %v4892_v20, 304 }
 0x852   : > { %4887 = vbcast.lane.b32.xlu1 %v4872_v0, 312  ;;  %4919 = vbcast.lane.b32.xlu0 %v4912_v30, 296 }
 0x856   : > { %4915 = vbcast.lane.b32.xlu1 %v4912_v30, 288  ;;  %4923 = vbcast.lane.b32.xlu0 %v4912_v30, 304 }
 0x85a   : > { %4907 = vbcast.lane.b32.xlu1 %v4892_v20, 312  ;;  %4939 = vbcast.lane.b32.xlu0 %v4932_v13, 296  ;;  %v5310_v20 = vcombine.high %v5302_v40, %v5302_v40 }
 0x85e   : > { %4935 = vbcast.lane.b32.xlu1 %v4932_v13, 288  ;;  %4943 = vbcast.lane.b32.xlu0 %v4932_v13, 304 }
 0x862   : > { %4927 = vbcast.lane.b32.xlu1 %v4912_v30, 312  ;;  %4959 = vbcast.lane.b32.xlu0 %v4952_v6, 296 }
 0x866   : > { %4955 = vbcast.lane.b32.xlu1 %v4952_v6, 288  ;;  %4963 = vbcast.lane.b32.xlu0 %v4952_v6, 304 }
 0x86a   : > { %4947 = vbcast.lane.b32.xlu1 %v4932_v13, 312 }
 0x86e   : > { %4967 = vbcast.lane.b32.xlu1 %v4952_v6, 312  ;;  %v5318_v6 = vrot.slane %v5302_v40, %v9304_v17 }
 0x8a0   : > { %v4820_v8 = vpop.permute.xlu1 %4819  ;;  %v4816_v32 = vpop.permute.xlu0 %4815 }
 0x8a1   : > { %v5052_v46 = vmul.f32 %v4820_v8, %v11355_v60  ;;  %v5051_v1 = vmul.f32 %v4816_v32, %v11358_v24  ;;  %v4970_v9 = vmul.f32 0.05, %v4820_v8  ;;  %v4969_v33 = vmul.f32 0.05, %v4816_v32  ;;  %v8626_v8 = vld [vmem:[%s9190_s13 + $0x20] sm:$0xff] }
 0x8a2   : > { %v5002_v60 = vcombine.high %v14120_v56, %v14120_v56 }
 0x8a3   : > { %v5124_v3 = vsub.f32 %v11819_v23, %v5052_v46  ;;  %v5123_v62 = vsub.f32 %v11819_v23, %v5051_v1 }
 0x8a4   : > { %v4836_v51 = vpop.permute.xlu1 %4835  ;;  %v4824_v53 = vpop.permute.xlu0 %4823  ;;  %v11851_v56 = vrot.slane %v5002_v60, %v9304_v17 }
 0x8a5   : > { %v5156_v24 = vmul.f32 %v5124_v3, %v4970_v9  ;;  %v5155_v14 = vmul.f32 %v5123_v62, %v4969_v33  ;;  %v5055_v10 = vmul.f32 %v4836_v51, %v11387_v47  ;;  %v5053_v41 = vmul.f32 %v4824_v53, %v11413_v44 }
 0x8a6   : > { %v4973_v59 = vmul.f32 0.05, %v4836_v51  ;;  %v4971_v61 = vmul.f32 0.05, %v4824_v53  ;;  %v11865_v53 = vrot.slane %v5310_v20, %v9304_v17 }
 0x8a7   : > { %v5188_v49 = vadd.f32 %v8624_v38, %v5156_v24  ;;  %v5187_v5 = vadd.f32 %v8625_v28, %v5155_v14  ;;  %v5127_v36 = vsub.f32 %v11834_v39, %v5055_v10  ;;  %v5125_v58 = vsub.f32 %v11819_v23, %v5053_v41 }
 0x8a8   : > { %v4840_v0 = vpop.permute.xlu1 %4839  ;;  %v4856_v47 = vpop.permute.xlu0 %4855  ;;  %v11872_v24 = vrot.slane %v11851_v56, %v9304_v17  ;;  %v5340_v14 = vcombine.high %v5318_v6, %v5318_v6  ;;  %v11878_v41 = vrot.slane %v5318_v6, %v9314_v26  ;;  %v5018_v28 = vcombine.high %v11851_v56, %v11851_v56 }
 0x8a9   : > { %5220 = vst.msk [vmem:[%s9190_s13 + $0x8] sm:$0xff] %vm319_vm0, %v5188_v49  ;;  %5219 = vst.msk [vmem:[%s9190_s13] sm:$0xff] %vm319_vm0, %v5187_v5  ;;  %v5159_v30 = vmul.f32 %v5127_v36, %v4973_v59  ;;  %v5056_v13 = vmul.f32 %v4840_v0, %v11410_v57  ;;  %v5157_v63 = vmul.f32 %v5125_v58, %v4971_v61  ;;  %v4974_v46 = vmul.f32 0.05, %v4840_v0 }
 0x8aa   : > { %v5059_v43 = vmul.f32 %v4856_v47, %v11439_v48  ;;  %v11860_v57 = vrot.slane %v5295_v18, %v9304_v17  ;;  %v4977_v3 = vmul.f32 0.05, %v4856_v47  ;;  %v11896_v47 = vrot.slane %v11865_v53, %v9314_v26 }
 0x8ab   : > { %v5191_v32 = vadd.f32 %v8626_v8, %v5159_v30  ;;  %v5128_v1 = vsub.f32 %v11834_v39, %v5056_v13  ;;  %v5189_v9 = vadd.f32 %v5157_v63, %v11413_v44  ;;  %v8628_v63 = vld [vmem:[%s9190_s13 + $0x30] sm:$0xff] }
 0x8ac   : > { %v5131_v33 = vsub.f32 %v11854_v34, %v5059_v43  ;;  %v4844_v62 = vpop.permute.xlu1 %4843  ;;  %v4828_v51 = vpop.permute.xlu0 %4827 }
 0x8ad   : > { %5223 = vst.msk [vmem:[%s9190_s13 + $0x20] sm:$0xff] %vm319_vm0, %v5191_v32  ;;  %v5160_v40 = vmul.f32 %v5128_v1, %v4974_v46  ;;  %v5057_v60 = vmul.f32 %v4844_v62, %v11445_v35  ;;  %5221 = vst.msk [vmem:[%s9190_s13 + $0x10] sm:$0xff] %vm319_vm0, %v5189_v9  ;;  %v5054_v10 = vmul.f32 %v4828_v51, %v11473_v2  ;;  %v8627_v35 = vld [vmem:[%s9190_s13 + $0x28] sm:$0xff]  ;;  %v4975_v38 = vmul.f32 0.05, %v4844_v62 }
 0x8ae   : > { %v5163_v44 = vmul.f32 %v5131_v33, %v4977_v3  ;;  %v4972_v59 = vmul.f32 0.05, %v4828_v51 }
 0x8af   : > { %v5192_v18 = vadd.f32 %v8627_v35, %v5160_v40  ;;  %v5129_v49 = vsub.f32 %v11834_v39, %v5057_v60  ;;  %v5126_v36 = vsub.f32 %v11819_v23, %v5054_v10  ;;  %v11906_v23 = vrot.slane %v5340_v14, %v9314_v26  ;;  %v14122_v35 = vld [vmem:[#allocation46_spill] sm:$0xff] }
 0x8b0   : > { %v5195_v5 = vadd.f32 %v5163_v44, %v11439_v48  ;;  %v4860_v61 = vpop.permute.xlu1 %4859  ;;  %v4864_v58 = vpop.permute.xlu0 %4863  ;;  %v11889_v0 = vld [vmem:[%s9190_s13 + $0x8] sm:$0xff]  ;;  %v11892_v12 = vld [vmem:[%s9190_s13] sm:$0xff]  ;;  %v11903_v48 = vrot.slane %v11872_v24, %v9314_v26  ;;  %v11932_v10 = vrot.slane %v5049_v37, %v9314_v26 }
 0x8b1   : > { %5224 = vst.msk [vmem:[%s9190_s13 + $0x28] sm:$0xff] %vm319_vm0, %v5192_v18  ;;  %v5161_v20 = vmul.f32 %v5129_v49, %v4975_v38  ;;  %v5060_v30 = vmul.f32 %v4860_v61, %v11470_v45  ;;  %v5158_v13 = vmul.f32 %v5126_v36, %v4972_v59  ;;  %v5061_v6 = vmul.f32 %v4864_v58, %v11491_v22  ;;  %v8629_v49 = vld [vmem:[%s9190_s13 + $0x48] sm:$0xff] }
 0x8b2   : > { %5227 = vst.msk [vmem:[%s9190_s13 + $0x40] sm:$0xff] %vm319_vm0, %v5195_v5  ;;  %v5385_v56 = vmul.f32 %v11878_v41, %v11889_v0  ;;  %v5384_v45 = vmul.f32 %v11878_v41, %v11892_v12  ;;  %v4978_v8 = vmul.f32 0.05, %v4860_v61  ;;  %v4979_v46 = vmul.f32 0.05, %v4864_v58 }
 0x8b3   : > { %v5193_v43 = vadd.f32 %v8628_v63, %v5161_v20  ;;  %v5132_v32 = vsub.f32 %v11854_v34, %v5060_v30  ;;  %v5190_v1 = vadd.f32 %v5158_v13, %v11473_v2  ;;  %v5133_v9 = vsub.f32 %v11854_v34, %v5061_v6 }
 0x8b4   : > { %v5419_v3 = vsel %vm319_vm0, %v5385_v56, 0.0  ;;  %v4848_v33 = vpop.permute.xlu1 %4847  ;;  %v5416_v62 = vsel %vm319_vm0, %v5384_v45, 0.0  ;;  %v4880_v51 = vpop.permute.xlu0 %4879  ;;  %v11922_v40 = vld [vmem:[%s9190_s13 + $0x20] sm:$0xff]  ;;  %v5342_v2 = vcombine.high %v11865_v53, %v11865_v53  ;;  %v11940_v53 = vrot.slane %v5018_v28, %v9304_v17  ;;  %v11949_v6 = vld [vmem:[%s9190_s13 + $0x10] sm:$0xff]  ;;  %v14123_v28 = vld [vmem:[#allocation41_spill] sm:$0xff] }
 0x8b5   : > { %5225 = vst.msk [vmem:[%s9190_s13 + $0x30] sm:$0xff] %vm319_vm0, %v5193_v43  ;;  %v5164_v60 = vmul.f32 %v5132_v32, %v4978_v8  ;;  %5420 = vadd.xlane.f32.xlu1 %v5419_v3  ;;  %v5058_v14 = vmul.f32 %v4848_v33, %v11497_v19  ;;  %5417 = vadd.xlane.f32.xlu0 %v5416_v62  ;;  %5222 = vst.msk [vmem:[%s9190_s13 + $0x18] sm:$0xff] %vm319_vm0, %v5190_v1  ;;  %v4976_v5 = vmul.f32 0.05, %v4848_v33  ;;  %v14124_v43 = vld [vmem:[#allocation43_spill] sm:$0xff] }
 0x8b6   : > { %v5165_v44 = vmul.f32 %v5133_v9, %v4979_v46  ;;  %v5064_v18 = vmul.f32 %v4880_v51, %v14122_v35  ;;  %v5388_v38 = vmul.f32 %v11896_v47, %v11922_v40  ;;  %v4982_v61 = vmul.f32 0.05, %v4880_v51  ;;  %v8630_v1 = vld [vmem:[%s9190_s13 + $0x38] sm:$0xff] }
 0x8b7   : > { %v5196_v19 = vadd.f32 %v8629_v49, %v5164_v60  ;;  %v5130_v59 = vsub.f32 %v11834_v39, %v5058_v14  ;;  %v11958_v45 = vrot.slane %v11860_v57, %v9304_v17  ;;  %v11966_v46 = vrot.slane %v5342_v2, %v9314_v26 }
 0x8b8   : > { %v5197_v36 = vadd.f32 %v5165_v44, %v11491_v22  ;;  %v5136_v37 = vsub.f32 %v11932_v10, %v5064_v18  ;;  %v4876_v58 = vpop.permute.xlu1 %4875  ;;  %v5428_v20 = vsel %vm319_vm0, %v5388_v38, 0.0  ;;  %v4884_v30 = vpop.permute.xlu0 %4883  ;;  %v11946_v13 = vld [vmem:[%s9190_s13 + $0x28] sm:$0xff]  ;;  %v5048_v22 = vcombine.high %v11872_v24, %v11872_v24 }
 0x8b9   : > { %5228 = vst.msk [vmem:[%s9190_s13 + $0x48] sm:$0xff] %vm319_vm0, %v5196_v19  ;;  %v5162_v39 = vmul.f32 %v5130_v59, %v4976_v5  ;;  %v5063_v56 = vmul.f32 %v4876_v58, %v14123_v28  ;;  %5429 = vadd.xlane.f32.xlu0 %v5428_v20  ;;  %v5065_v8 = vmul.f32 %v4884_v30, %v14124_v43  ;;  %v4981_v24 = vmul.f32 0.05, %v4876_v58  ;;  %v11973_v62 = vld [vmem:[%s9190_s13 + $0x40] sm:$0xff]  ;;  %v14125_v19 = vld [vmem:[#allocation45_spill] sm:$0xff] }
 0x8ba   : > { %5229 = vst.msk [vmem:[%s9190_s13 + $0x50] sm:$0xff] %vm319_vm0, %v5197_v36  ;;  %v5168_v63 = vmul.f32 %v5136_v37, %v4982_v61  ;;  %v5389_v32 = vmul.f32 %v11896_v47, %v11946_v13  ;;  %v5386_v33 = vmul.f32 %v11878_v41, %v11949_v6  ;;  %v4983_v60 = vmul.f32 0.05, %v4884_v30  ;;  %v14126_v61 = vld [vmem:[#allocation26_spill] sm:$0xff]  ;;  %v8631_v30 = vld [vmem:[%s9190_s13 + $0x60] sm:$0xff] }
 0x8bb   : > { %v5194_v9 = vadd.f32 %v8630_v1, %v5162_v39  ;;  %v5135_v3 = vsub.f32 %v11932_v10, %v5063_v56  ;;  %v5137_v14 = vsub.f32 %v11932_v10, %v5065_v8  ;;  %v11986_v59 = vrot.slane %v11940_v53, %v9314_v26 }
 0x8bc   : > { %v5200_v51 = vadd.f32 %v5168_v63, %v14122_v35  ;;  %v4868_v44 = vpop.permute.xlu1 %4867  ;;  %v5431_v2 = vsel %vm319_vm0, %v5389_v32, 0.0  ;;  %v4900_v18 = vpop.permute.xlu0 %4899  ;;  %v11979_v38 = vld [vmem:[%s9190_s13 + $0x30] sm:$0xff]  ;;  %v5311_v35 = vcombine.high %v11860_v57, %v11860_v57  ;;  %v5392_v20 = vmul.f32 %v11906_v23, %v11973_v62 }
 0x8bd   : > { %5226 = vst.msk [vmem:[%s9190_s13 + $0x38] sm:$0xff] %vm319_vm0, %v5194_v9  ;;  %v5167_v49 = vmul.f32 %v5135_v3, %v4981_v24  ;;  %v5062_v5 = vmul.f32 %v4868_v44, %v14125_v19  ;;  %5432 = vadd.xlane.f32.xlu0 %v5431_v2  ;;  %v5169_v36 = vmul.f32 %v5137_v14, %v4983_v60  ;;  %v4980_v28 = vmul.f32 0.05, %v4868_v44  ;;  %v12007_v60 = vld [vmem:[%s9190_s13 + $0x18] sm:$0xff] }
 0x8be   : > { %5232 = vst.msk [vmem:[%s9190_s13 + $0x68] sm:$0xff] %vm319_vm0, %v5200_v51  ;;  %v5068_v37 = vmul.f32 %v4900_v18, %v14126_v61  ;;  %v5390_v58 = vmul.f32 %v11896_v47, %v11979_v38  ;;  %v5422_v63 = vsel %vm319_vm0, %v5386_v33, 0.0  ;;  %v4986_v32 = vmul.f32 0.05, %v4900_v18  ;;  %v14127_v33 = vld [vmem:[#allocation25_spill] sm:$0xff]  ;;  %v14128_v2 = vld [vmem:[#allocation23_spill] sm:$0xff] }
 0x8bf   : > { %v5199_v39 = vadd.f32 %v8631_v30, %v5167_v49  ;;  %v5134_v56 = vsub.f32 %v11854_v34, %v5062_v5  ;;  %v5201_v8 = vadd.f32 %v5169_v36, %v14124_v43  ;;  %v12013_v43 = vrot.slane %v5048_v22, %v9314_v26  ;;  %v8632_v5 = vld [vmem:[%s9190_s13 + $0x58] sm:$0xff] }
 0x8c0   : > { %v5140_v1 = vsub.f32 %v11903_v48, %v5068_v37  ;;  %v5434_v9 = vsel %vm319_vm0, %v5390_v58, 0.0  ;;  %v4896_v24 = vpop.permute.xlu1 %4895  ;;  %v4904_v3 = vpop.permute.xlu0 %4903  ;;  %v12004_v51 = vld [vmem:[%s9190_s13 + $0x48] sm:$0xff]  ;;  %v5440_v19 = vsel %vm319_vm0, %v5392_v20, 0.0  ;;  %v5387_v22 = vmul.f32 %v11878_v41, %v12007_v60 }
 0x8c1   : > { %5231 = vst.msk [vmem:[%s9190_s13 + $0x60] sm:$0xff] %vm319_vm0, %v5199_v39  ;;  %v5166_v34 = vmul.f32 %v5134_v56, %v4980_v28  ;;  %5435 = vadd.xlane.f32.xlu1 %v5434_v9  ;;  %v5067_v14 = vmul.f32 %v4896_v24, %v14127_v33  ;;  %5423 = vadd.xlane.f32.xlu0 %v5422_v63  ;;  %5233 = vst.msk [vmem:[%s9190_s13 + $0x70] sm:$0xff] %vm319_vm0, %v5201_v8  ;;  %v4985_v37 = vmul.f32 0.05, %v4896_v24  ;;  %v12026_v30 = vld [vmem:[%s9190_s13 + $0x50] sm:$0xff]  ;;  %v14129_v9 = vld [vmem:[#allocation47_spill] sm:$0xff] }
 0x8c2   : > { %v5172_v44 = vmul.f32 %v5140_v1, %v4986_v32  ;;  %v5069_v18 = vmul.f32 %v4904_v3, %v14128_v2  ;;  %v5393_v49 = vmul.f32 %v11906_v23, %v12004_v51  ;;  %v4987_v28 = vmul.f32 0.05, %v4904_v3  ;;  %v14130_v3 = vld [vmem:[#allocation21_spill] sm:$0xff] }
 0x8c3   : > { %v5198_v36 = vadd.f32 %v8632_v5, %v5166_v34  ;;  %v5139_v58 = vsub.f32 %v11903_v48, %v5067_v14  ;;  %v5394_v14 = vmul.f32 %v11906_v23, %v12026_v30  ;;  %v5425_v5 = vsel %vm319_vm0, %v5387_v22, 0.0  ;;  %v14133_v22 = vld [vmem:[#allocation24_spill] sm:$0xff] }
 0x8c4   : > { %v5204_v39 = vadd.f32 %v5172_v44, %v14126_v61  ;;  %v5141_v56 = vsub.f32 %v11903_v48, %v5069_v18  ;;  %v5443_v63 = vsel %vm319_vm0, %v5393_v49, 0.0  ;;  %v4888_v20 = vpop.permute.xlu1 %4887  ;;  %v4920_v8 = vpop.permute.xlu0 %4919  ;;  %v12032_v32 = vld [vmem:[%s9190_s13 + $0x38] sm:$0xff]  ;;  %v12039_v61 = vrot.slane %v11958_v45, %v9314_v26  ;;  %v8633_v44 = vld [vmem:[%s9190_s13 + $0x80] sm:$0xff] }
 0x8c5   : > { %5230 = vst.msk [vmem:[%s9190_s13 + $0x58] sm:$0xff] %vm319_vm0, %v5198_v36  ;;  %v5171_v1 = vmul.f32 %v5139_v58, %v4985_v37  ;;  %5444 = vadd.xlane.f32.xlu1 %v5443_v63  ;;  %v5066_v41 = vmul.f32 %v4888_v20, %v14129_v9  ;;  %5441 = vadd.xlane.f32.xlu0 %v5440_v19  ;;  %v4984_v49 = vmul.f32 0.05, %v4888_v20  ;;  %v4990_v37 = vmul.f32 0.05, %v4920_v8  ;;  %v12058_v63 = vld [vmem:[%s9190_s13 + $0x68] sm:$0xff] }
 0x8c6   : > { %5236 = vst.msk [vmem:[%s9190_s13 + $0x88] sm:$0xff] %vm319_vm0, %v5204_v39  ;;  %v5173_v24 = vmul.f32 %v5141_v56, %v4987_v28  ;;  %v5072_v34 = vmul.f32 %v4920_v8, %v14130_v3  ;;  %v5391_v33 = vmul.f32 %v11896_v47, %v12032_v32  ;;  %14132 = vst [vmem:[#allocation37_spill] sm:$0xff] %v12058_v63 }
 0x8c7   : > { %v5203_v18 = vadd.f32 %v8633_v44, %v5171_v1  ;;  %v5138_v19 = vsub.f32 %v11932_v10, %v5066_v41  ;;  %v14134_v1 = vld [vmem:[#allocation17_spill] sm:$0xff] }
 0x8c8   : > { %v5205_v36 = vadd.f32 %v5173_v24, %v14128_v2  ;;  %v5144_v58 = vsub.f32 %v11986_v59, %v5072_v34  ;;  %v5437_v39 = vsel %vm319_vm0, %v5391_v33, 0.0  ;;  %v4916_v47 = vpop.permute.xlu1 %4915  ;;  %v4924_v28 = vpop.permute.xlu0 %4923  ;;  %v12055_v56 = vld [vmem:[%s9190_s13 + $0x60] sm:$0xff]  ;;  %v5050_v2 = vcombine.high %v11940_v53, %v11940_v53  ;;  %v8634_v34 = vld [vmem:[%s9190_s13 + $0x78] sm:$0xff] }
 0x8c9   : > { %14131 = vst [vmem:[#allocation38_spill] sm:$0xff] %v12055_v56  ;;  %5235 = vst.msk [vmem:[%s9190_s13 + $0x80] sm:$0xff] %vm319_vm0, %v5203_v18  ;;  %v5170_v10 = vmul.f32 %v5138_v19, %v4984_v49  ;;  %5438 = vadd.xlane.f32.xlu1 %v5437_v39  ;;  %v5071_v20 = vmul.f32 %v4916_v47, %v14133_v22  ;;  %5426 = vadd.xlane.f32.xlu0 %v5425_v5  ;;  %v5446_v24 = vsel %vm319_vm0, %v5394_v14, 0.0  ;;  %v12076_v49 = vld [vmem:[%s9190_s13 + $0x70] sm:$0xff] }
 0x8ca   : > { %5237 = vst.msk [vmem:[%s9190_s13 + $0x90] sm:$0xff] %vm319_vm0, %v5205_v36  ;;  %v5176_v8 = vmul.f32 %v5144_v58, %v4990_v37  ;;  %v5073_v9 = vmul.f32 %v4924_v28, %v14134_v1  ;;  %v5396_v41 = vmul.f32 %v11966_v46, %v12055_v56  ;;  %v4989_v44 = vmul.f32 0.05, %v4916_v47  ;;  %14135 = vst [vmem:[#allocation40_spill] sm:$0xff] %v12076_v49 }
 0x8cb   : > { %v5202_v33 = vadd.f32 %v8634_v34, %v5170_v10  ;;  %v5143_v18 = vsub.f32 %v11986_v59, %v5071_v20  ;;  %v5397_v53 = vmul.f32 %v11966_v46, %v12058_v63  ;;  %v4991_v5 = vmul.f32 0.05, %v4924_v28  ;;  %v14137_v10 = vld [vmem:[#allocation22_spill] sm:$0xff] }
 0x8cc   : > { %v5208_v19 = vadd.f32 %v5176_v8, %v14130_v3  ;;  %v5145_v36 = vsub.f32 %v11986_v59, %v5073_v9  ;;  %v5452_v37 = vsel %vm319_vm0, %v5396_v41, 0.0  ;;  %v4908_v14 = vpop.permute.xlu1 %4907  ;;  %v4940_v58 = vpop.permute.xlu0 %4939  ;;  %v12082_v39 = vld [vmem:[%s9190_s13 + $0x58] sm:$0xff]  ;;  %v12091_v3 = vrot.slane %v5311_v35, %v9304_v17  ;;  %v14138_v20 = vld [vmem:[#allocation18_spill] sm:$0xff] }
 0x8cd   : > { %14136 = vst [vmem:[#allocation39_spill] sm:$0xff] %v12082_v39  ;;  %5234 = vst.msk [vmem:[%s9190_s13 + $0x78] sm:$0xff] %vm319_vm0, %v5202_v33  ;;  %v5175_v47 = vmul.f32 %v5143_v18, %v4989_v44  ;;  %5453 = vadd.xlane.f32.xlu1 %v5452_v37  ;;  %v5070_v22 = vmul.f32 %v4908_v14, %v14137_v10  ;;  %5447 = vadd.xlane.f32.xlu0 %v5446_v24  ;;  %v8635_v24 = vld [vmem:[%s9190_s13 + $0xa0] sm:$0xff]  ;;  %v4988_v33 = vmul.f32 0.05, %v4908_v14  ;;  %v12110_v10 = vld [vmem:[%s9190_s13 + $0x88] sm:$0xff] }
 0x8ce   : > { %5240 = vst.msk [vmem:[%s9190_s13 + $0xa8] sm:$0xff] %vm319_vm0, %v5208_v19  ;;  %v5177_v28 = vmul.f32 %v5145_v36, %v4991_v5  ;;  %v5076_v8 = vmul.f32 %v4940_v58, %v14138_v20  ;;  %v5395_v9 = vmul.f32 %v11906_v23, %v12082_v39  ;;  %v5398_v41 = vmul.f32 %v11966_v46, %v12076_v49 }
 0x8cf   : > { %v5207_v34 = vadd.f32 %v8635_v24, %v5175_v47  ;;  %v5142_v57 = vsub.f32 %v11903_v48, %v5070_v22  ;;  %v5455_v35 = vsel %vm319_vm0, %v5397_v53, 0.0  ;;  %v4994_v18 = vmul.f32 0.05, %v4940_v58  ;;  %14140 = vst [vmem:[#allocation44_spill] sm:$0xff] %v12110_v10  ;;  %v14141_v53 = vld [vmem:[#allocation16_spill] sm:$0xff]  ;;  %v14142_v47 = vld [vmem:[#allocation34_spill] sm:$0xff] }
 0x8d0   : > { %v5209_v44 = vadd.f32 %v5177_v28, %v14134_v1  ;;  %v5148_v19 = vsub.f32 %v12013_v43, %v5076_v8  ;;  %v5449_v5 = vsel %vm319_vm0, %v5395_v9, 0.0  ;;  %v4936_v23 = vpop.permute.xlu1 %4935  ;;  %v4944_v36 = vpop.permute.xlu0 %4943  ;;  %v12107_v37 = vld [vmem:[%s9190_s13 + $0x80] sm:$0xff]  ;;  %v12116_v1 = vrot.slane %v5050_v2, %v9314_v26  ;;  %v8636_v9 = vld [vmem:[%s9190_s13 + $0x98] sm:$0xff] }
 0x8d1   : > { %14139 = vst [vmem:[#allocation42_spill] sm:$0xff] %v12107_v37  ;;  %5239 = vst.msk [vmem:[%s9190_s13 + $0xa0] sm:$0xff] %vm319_vm0, %v5207_v34  ;;  %v5174_v48 = vmul.f32 %v5142_v57, %v4988_v33  ;;  %5450 = vadd.xlane.f32.xlu1 %v5449_v5  ;;  %v5075_v14 = vmul.f32 %v4936_v23, %v14141_v53  ;;  %5456 = vadd.xlane.f32.xlu0 %v5455_v35  ;;  %v5458_v8 = vsel %vm319_vm0, %v5398_v41, 0.0  ;;  %v12129_v57 = vld [vmem:[%s9190_s13 + $0x90] sm:$0xff]  ;;  %v14145_v53 = vld [vmem:[#allocation19_spill] sm:$0xff] }
 0x8d2   : > { %5241 = vst.msk [vmem:[%s9190_s13 + $0xb0] sm:$0xff] %vm319_vm0, %v5209_v44  ;;  %v5180_v58 = vmul.f32 %v5148_v19, %v4994_v18  ;;  %v5077_v22 = vmul.f32 %v4944_v36, %v14142_v47  ;;  %v5400_v28 = vmul.f32 %v12039_v61, %v12107_v37  ;;  %v4993_v34 = vmul.f32 0.05, %v4936_v23  ;;  %14143 = vst [vmem:[#allocation27_spill] sm:$0xff] %v12129_v57 }
 0x8d3   : > { %v5206_v24 = vadd.f32 %v8636_v9, %v5174_v48  ;;  %v5147_v33 = vsub.f32 %v12013_v43, %v5075_v14  ;;  %v5401_v2 = vmul.f32 %v12039_v61, %v12110_v10  ;;  %v4995_v44 = vmul.f32 0.05, %v4944_v36 }
 0x8d4   : > { %v5212_v35 = vadd.f32 %v5180_v58, %v14138_v20  ;;  %v5149_v18 = vsub.f32 %v12013_v43, %v5077_v22  ;;  %v5464_v19 = vsel %vm319_vm0, %v5400_v28, 0.0  ;;  %v4928_v41 = vpop.permute.xlu1 %4927  ;;  %v4960_v5 = vpop.permute.xlu0 %4959  ;;  %v12135_v48 = vld [vmem:[%s9190_s13 + $0x78] sm:$0xff]  ;;  %v12142_v20 = vrot.slane %v12091_v3, %v9314_v26  ;;  %v14146_v58 = vld [vmem:[#allocation20_spill] sm:$0xff] }
 0x8d5   : > { %14144 = vst [vmem:[#allocation28_spill] sm:$0xff] %v12135_v48  ;;  %5238 = vst.msk [vmem:[%s9190_s13 + $0x98] sm:$0xff] %vm319_vm0, %v5206_v24  ;;  %v5179_v23 = vmul.f32 %v5147_v33, %v4993_v34  ;;  %5465 = vadd.xlane.f32.xlu1 %v5464_v19  ;;  %v5074_v14 = vmul.f32 %v4928_v41, %v14145_v53  ;;  %5459 = vadd.xlane.f32.xlu0 %v5458_v8  ;;  %v8637_v24 = vld [vmem:[%s9190_s13 + $0xc0] sm:$0xff]  ;;  %v4992_v34 = vmul.f32 0.05, %v4928_v41 }
 0x8d6   : > { %5244 = vst.msk [vmem:[%s9190_s13 + $0xc8] sm:$0xff] %vm319_vm0, %v5212_v35  ;;  %v5181_v36 = vmul.f32 %v5149_v18, %v4995_v44  ;;  %v5080_v22 = vmul.f32 %v4960_v5, %v14146_v58  ;;  %v5399_v28 = vmul.f32 %v11966_v46, %v12135_v48  ;;  %v5402_v9 = vmul.f32 %v12039_v61, %v12129_v57  ;;  %v12161_v57 = vld [vmem:[%s9190_s13 + $0xa8] sm:$0xff] }
 0x8d7   : > { %v5211_v8 = vadd.f32 %v8637_v24, %v5179_v23  ;;  %v5146_v33 = vsub.f32 %v11986_v59, %v5074_v14  ;;  %v5467_v35 = vsel %vm319_vm0, %v5401_v2, 0.0  ;;  %v4998_v18 = vmul.f32 0.05, %v4960_v5  ;;  %14148 = vst [vmem:[#allocation41_spill] sm:$0xff] %v12161_v57  ;;  %v14149_v2 = vld [vmem:[#allocation35_spill] sm:$0xff]  ;;  %v14150_v23 = vld [vmem:[#allocation36_spill] sm:$0xff] }
 0x8d8   : > { %v5213_v44 = vadd.f32 %v5181_v36, %v14142_v47  ;;  %v5152_v19 = vsub.f32 %v12116_v1, %v5080_v22  ;;  %v5461_v53 = vsel %vm319_vm0, %v5399_v28, 0.0  ;;  %v4956_v46 = vpop.permute.xlu1 %4955  ;;  %v4964_v58 = vpop.permute.xlu0 %4963  ;;  %v12158_v48 = vld [vmem:[%s9190_s13 + $0xa0] sm:$0xff]  ;;  %v5341_v47 = vcombine.high %v11958_v45, %v11958_v45  ;;  %v8638_v28 = vld [vmem:[%s9190_s13 + $0xb8] sm:$0xff] }
 0x8d9   : > { %14147 = vst [vmem:[#allocation46_spill] sm:$0xff] %v12158_v48  ;;  %5243 = vst.msk [vmem:[%s9190_s13 + $0xc0] sm:$0xff] %vm319_vm0, %v5211_v8  ;;  %v5178_v59 = vmul.f32 %v5146_v33, %v4992_v34  ;;  %5462 = vadd.xlane.f32.xlu1 %v5461_v53  ;;  %v5079_v41 = vmul.f32 %v4956_v46, %v14149_v2  ;;  %5468 = vadd.xlane.f32.xlu0 %v5467_v35  ;;  %v5470_v22 = vsel %vm319_vm0, %v5402_v9, 0.0  ;;  %v8639_v33 = vld [vmem:[%s9190_s13 + $0xe8] sm:$0xff] }
 0x8da   : > { %5245 = vst.msk [vmem:[%s9190_s13 + $0xd0] sm:$0xff] %vm319_vm0, %v5213_v44  ;;  %v5184_v5 = vmul.f32 %v5152_v19, %v4998_v18  ;;  %v5081_v14 = vmul.f32 %v4964_v58, %v14150_v23  ;;  %v5404_v36 = vmul.f32 %v12142_v20, %v12158_v48  ;;  %v4997_v8 = vmul.f32 0.05, %v4956_v46 }
 0x8db   : > { %v5210_v24 = vadd.f32 %v8638_v28, %v5178_v59  ;;  %v5151_v34 = vsub.f32 %v12116_v1, %v5079_v41  ;;  %v5405_v45 = vmul.f32 %v12142_v20, %v12161_v57  ;;  %v4999_v44 = vmul.f32 0.05, %v4964_v58  ;;  %v8640_v59 = vld [vmem:[%s9190_s13 + $0xd8] sm:$0xff]  ;;  %v12190_v41 = vld [vmem:[%s9190_s13 + $0xb0] sm:$0xff] }
 0x8dc   : > { %v5216_v35 = vadd.f32 %v8639_v33, %v5184_v5  ;;  %v5153_v18 = vsub.f32 %v12116_v1, %v5081_v14  ;;  %v5476_v19 = vsel %vm319_vm0, %v5404_v36, 0.0  ;;  %v4948_v9 = vpop.permute.xlu1 %4947  ;;  %v12182_v53 = vld [vmem:[%s9190_s13 + $0x98] sm:$0xff]  ;;  %14152 = vst [vmem:[#allocation45_spill] sm:$0xff] %v12190_v41  ;;  %v5371_v23 = vrot.slane %v5341_v47, %v9314_v26  ;;  %v8641_v14 = vld [vmem:[%s9190_s13 + $0xe0] sm:$0xff] }
 0x8dd   : > { %14151 = vst [vmem:[#allocation43_spill] sm:$0xff] %v12182_v53  ;;  %5242 = vst.msk [vmem:[%s9190_s13 + $0xb8] sm:$0xff] %vm319_vm0, %v5210_v24  ;;  %v5183_v46 = vmul.f32 %v5151_v34, %v4997_v8  ;;  %5477 = vadd.xlane.f32.xlu1 %v5476_v19  ;;  %v5078_v2 = vmul.f32 %v8640_v59, %v4948_v9  ;;  %5471 = vadd.xlane.f32.xlu0 %v5470_v22  ;;  %v4996_v28 = vmul.f32 0.05, %v4948_v9  ;;  %v8642_v8 = vld [vmem:[%s9190_s13 + $0xf0] sm:$0xff]  ;;  %v12210_v9 = vld [vmem:[%s9190_s13 + $0xc8] sm:$0xff] }
 0x8de   : > { %v5403_v58 = vmul.f32 %v12039_v61, %v12182_v53  ;;  %5248 = vst.msk [vmem:[%s9190_s13 + $0xe8] sm:$0xff] %vm319_vm0, %v5216_v35  ;;  %v5185_v5 = vmul.f32 %v5153_v18, %v4999_v44  ;;  %v5479_v33 = vsel %vm319_vm0, %v5405_v45, 0.0  ;;  %v5406_v35 = vmul.f32 %v12142_v20, %v12190_v41  ;;  %14154 = vst [vmem:[#allocation25_spill] sm:$0xff] %v12210_v9 }
 0x8df   : > { %v5215_v36 = vadd.f32 %v8641_v14, %v5183_v46  ;;  %v5150_v24 = vsub.f32 %v12013_v43, %v5078_v2  ;;  %v8643_v43 = vld [vmem:[%s9190_s13 + $0xf8] sm:$0xff]  ;;  %v5343_v45 = vcombine.high %v12091_v3, %v12091_v3 }
 0x8e0   : > { %v5473_v22 = vsel %vm319_vm0, %v5403_v58, 0.0  ;;  %v5217_v61 = vadd.f32 %v8642_v8, %v5185_v5  ;;  %v4968_v34 = vpop.permute.xlu1 %4967  ;;  %v12201_v19 = vld [vmem:[%s9190_s13 + $0xc0] sm:$0xff]  ;;  %v5482_v14 = vsel %vm319_vm0, %v5406_v35, 0.0 }
 0x8e1   : > { %14153 = vst [vmem:[#allocation26_spill] sm:$0xff] %v12201_v19  ;;  %5247 = vst.msk [vmem:[%s9190_s13 + $0xe0] sm:$0xff] %vm319_vm0, %v5215_v36  ;;  %v5182_v47 = vmul.f32 %v5150_v24, %v4996_v28  ;;  %5474 = vadd.xlane.f32.xlu1 %v5473_v22  ;;  %v5082_v44 = vmul.f32 %v8643_v43, %v4968_v34  ;;  %5480 = vadd.xlane.f32.xlu0 %v5479_v33  ;;  %v5000_v2 = vmul.f32 0.05, %v4968_v34 }
 0x8e2   : > { %v5408_v18 = vmul.f32 %v5371_v23, %v12201_v19  ;;  %5249 = vst.msk [vmem:[%s9190_s13 + $0xf0] sm:$0xff] %vm319_vm0, %v5217_v61  ;;  %v5409_v28 = vmul.f32 %v5371_v23, %v12210_v9  ;;  %v5375_v8 = vrot.slane %v5343_v45, %v9314_v26 }
 0x8e3   : > { %v5214_v46 = vadd.f32 %v8640_v59, %v5182_v47  ;;  %v5154_v58 = vsub.f32 %v12116_v1, %v5082_v44  ;;  %v12228_v1 = vld [vmem:[%s9190_s13 + $0xd0] sm:$0xff] }
 0x8e4   : > { %v5488_v5 = vsel %vm319_vm0, %v5408_v18, 0.0  ;;  %v12220_v36 = vld [vmem:[%s9190_s13 + $0xb8] sm:$0xff]  ;;  %14156 = vst [vmem:[#allocation47_spill] sm:$0xff] %v12228_v1  ;;  %v5491_v61 = vsel %vm319_vm0, %v5409_v28, 0.0  ;;  %v5410_v33 = vmul.f32 %v5371_v23, %v12228_v1 }
 0x8e5   : > { %14155 = vst [vmem:[#allocation23_spill] sm:$0xff] %v12220_v36  ;;  %5246 = vst.msk [vmem:[%s9190_s13 + $0xd8] sm:$0xff] %vm319_vm0, %v5214_v46  ;;  %v5186_v24 = vmul.f32 %v5154_v58, %v5000_v2  ;;  %5489 = vadd.xlane.f32.xlu1 %v5488_v5  ;;  %5483 = vadd.xlane.f32.xlu0 %v5482_v14  ;;  %v5407_v3 = vmul.f32 %v12142_v20, %v12220_v36  ;;  %v12241_v35 = vld [vmem:[%s9190_s13 + $0xe8] sm:$0xff] }
 0x8e6   : > { %14158 = vst [vmem:[#allocation24_spill] sm:$0xff] %v12241_v35  ;;  %v5413_v18 = vmul.f32 %v5375_v8, %v12241_v35 }
 0x8e7   : > { %v5218_v59 = vadd.f32 %v8643_v43, %v5186_v24  ;;  %v5485_v22 = vsel %vm319_vm0, %v5407_v3, 0.0  ;;  %v5494_v43 = vsel %vm319_vm0, %v5410_v33, 0.0 }
 0x8e8   : > { %v12234_v34 = vld [vmem:[%s9190_s13 + $0xe0] sm:$0xff]  ;;  %v5503_v58 = vsel %vm319_vm0, %v5413_v18, 0.0 }
 0x8e9   : > { %14157 = vst [vmem:[#allocation21_spill] sm:$0xff] %v12234_v34  ;;  %5250 = vst.msk [vmem:[%s9190_s13 + $0xf8] sm:$0xff] %vm319_vm0, %v5218_v59  ;;  %5486 = vadd.xlane.f32.xlu1 %v5485_v22  ;;  %5492 = vadd.xlane.f32.xlu0 %v5491_v61  ;;  %v5412_v20 = vmul.f32 %v5375_v8, %v12234_v34  ;;  %v12248_v46 = vld [vmem:[%s9190_s13 + $0xf0] sm:$0xff] }
 0x8ea   : > { %14159 = vst [vmem:[#allocation17_spill] sm:$0xff] %v12248_v46  ;;  %v5414_v14 = vmul.f32 %v5375_v8, %v12248_v46 }
 0x8eb   : > { %v5500_v47 = vsel %vm319_vm0, %v5412_v20, 0.0 }
 0x8ec   : > { %v5289_v44 = vld [vmem:[%s9190_s13 + $0xd8] sm:$0xff]  ;;  %v5506_v3 = vsel %vm319_vm0, %v5414_v14, 0.0 }
 0x8ed   : > { %5501 = vadd.xlane.f32.xlu1 %v5500_v47  ;;  %5495 = vadd.xlane.f32.xlu0 %v5494_v43  ;;  %v5411_v45 = vmul.f32 %v5371_v23, %v5289_v44 }
 0x8ef   : > { %v5497_v2 = vsel %vm319_vm0, %v5411_v45, 0.0 }
 0x8f0   : > { %v5293_v5 = vld [vmem:[%s9190_s13 + $0xf8] sm:$0xff] }
 0x8f1   : > { %5498 = vadd.xlane.f32.xlu1 %v5497_v2  ;;  %5504 = vadd.xlane.f32.xlu0 %v5503_v58  ;;  %v5415_v28 = vmul.f32 %v5375_v8, %v5293_v5 }
 0x8f3   : > { %v5509_v24 = vsel %vm319_vm0, %v5415_v28, 0.0 }
 0x8f5   : > { %5510 = vadd.xlane.f32.xlu1 %v5509_v24  ;;  %5507 = vadd.xlane.f32.xlu0 %v5506_v3 }
 0x942   : > { %v5418_v59 = vpop.xlane.xlu0 %5417  ;;  %v5421_v22 = vpop.xlane.xlu1 %5420 }
 0x943   : > { %v5513_v34 = vmul.f32 0.2, %v5421_v22  ;;  %v5512_v35 = vmul.f32 0.2, %v5418_v59 }
 0x945   : > { %v5583_v37 = vrot.slane %v5513_v34, %v9552_v7  ;;  %v5579_v10 = vrot.slane %v5512_v35, %v9549_v52 }
 0x946   : > { %v5430_v23 = vpop.xlane.xlu0 %5429 }
 0x947   : > { %v5516_v9 = vmul.f32 0.2, %v5430_v23  ;;  %v5584_v34 = vsel %vm877_vm3, %v5583_v37, %v5579_v10 }
 0x94a   : > { %v5433_v61 = vpop.xlane.xlu0 %5432 }
 0x94b   : > { %v5517_v36 = vmul.f32 0.2, %v5433_v61  ;;  %v5598_v61 = vrot.slane %v5516_v9, %v9549_v52 }
 0x94d   : > { %v5602_v39 = vrot.slane %v5517_v36, %v9552_v7 }
 0x94e   : > { %v5436_v33 = vpop.xlane.xlu1 %5435  ;;  %v5424_v20 = vpop.xlane.xlu0 %5423 }
 0x94f   : > { %v5518_v1 = vmul.f32 0.2, %v5436_v33  ;;  %v5514_v19 = vmul.f32 0.2, %v5424_v20  ;;  %v5603_v35 = vsel %vm877_vm3, %v5602_v39, %v5598_v61 }
 0x951   : > { %v5607_v49 = vrot.slane %v5518_v1, %v9555_v11  ;;  %v5588_v56 = vrot.slane %v5514_v19, %v9555_v11 }
 0x952   : > { %v5445_v47 = vpop.xlane.xlu1 %5444  ;;  %v5442_v43 = vpop.xlane.xlu0 %5441 }
 0x953   : > { %v5521_v22 = vmul.f32 0.2, %v5445_v47  ;;  %v5520_v59 = vmul.f32 0.2, %v5442_v43  ;;  %v5608_v1 = vsel %vm884_vm4, %v5607_v49, %v5603_v35  ;;  %v5589_v19 = vsel %vm884_vm4, %v5588_v56, %v5584_v34 }
 0x955   : > { %v5621_v47 = vrot.slane %v5521_v22, %v9552_v7  ;;  %v5617_v9 = vrot.slane %v5520_v59, %v9549_v52 }
 0x956   : > { %v5439_v44 = vpop.xlane.xlu1 %5438  ;;  %v5427_v18 = vpop.xlane.xlu0 %5426 }
 0x957   : > { %v5519_v53 = vmul.f32 0.2, %v5439_v44  ;;  %v5515_v41 = vmul.f32 0.2, %v5427_v18  ;;  %v5622_v49 = vsel %vm877_vm3, %v5621_v47, %v5617_v9 }
 0x959   : > { %v5612_v23 = vrot.slane %v5519_v53, %v9558_v16  ;;  %v5593_v33 = vrot.slane %v5515_v41, %v9558_v16 }
 0x95a   : > { %v5454_v45 = vpop.xlane.xlu1 %5453  ;;  %v5448_v2 = vpop.xlane.xlu0 %5447 }
 0x95b   : > { %v5522_v20 = vmul.f32 0.2, %v5448_v2  ;;  %v5613_v53 = vsel %vm891_vm5, %v5612_v23, %v5608_v1  ;;  %v5594_v41 = vsel %vm891_vm5, %v5593_v33, %v5589_v19  ;;  %v5524_v39 = vmul.f32 0.2, %v5454_v45 }
 0x95c   : > { %v5728_v56 = vsel %vm1026_vm6, %v5613_v53, %v5594_v41 }
 0x95d   : > { %v5626_v43 = vrot.slane %v5522_v20, %v9555_v11 }
 0x95e   : > { %v5451_v58 = vpop.xlane.xlu1 %5450  ;;  %v5457_v8 = vpop.xlane.xlu0 %5456 }
 0x95f   : > { %v5523_v36 = vmul.f32 0.2, %v5451_v58  ;;  %v5525_v2 = vmul.f32 0.2, %v5457_v8  ;;  %v5627_v59 = vsel %vm884_vm4, %v5626_v43, %v5622_v49 }
 0x961   : > { %v5631_v58 = vrot.slane %v5523_v36, %v9558_v16  ;;  %v5640_v61 = vrot.slane %v5525_v2, %v9552_v7  ;;  %v5636_v36 = vrot.slane %v5524_v39, %v9549_v52 }
 0x962   : > { %v5466_v5 = vpop.xlane.xlu1 %5465  ;;  %v5460_v28 = vpop.xlane.xlu0 %5459 }
 0x963   : > { %v5528_v22 = vmul.f32 0.2, %v5466_v5  ;;  %v5526_v23 = vmul.f32 0.2, %v5460_v28  ;;  %v5632_v1 = vsel %vm891_vm5, %v5631_v58, %v5627_v59  ;;  %v5641_v28 = vsel %vm877_vm3, %v5640_v61, %v5636_v36 }
 0x965   : > { %v5655_v5 = vrot.slane %v5528_v22, %v9549_v52 }
 0x966   : > { %v5463_v46 = vpop.xlane.xlu1 %5462  ;;  %v5469_v14 = vpop.xlane.xlu0 %5468 }
 0x967   : > { %v5529_v63 = vmul.f32 0.2, %v5469_v14  ;;  %v5527_v34 = vmul.f32 0.2, %v5463_v46  ;;  %v5645_v46 = vrot.slane %v5526_v23, %v9555_v11 }
 0x969   : > { %v5659_v8 = vrot.slane %v5529_v63, %v9552_v7  ;;  %v5646_v61 = vsel %vm884_vm4, %v5645_v46, %v5641_v28 }
 0x96a   : > { %v5478_v24 = vpop.xlane.xlu1 %5477  ;;  %v5472_v3 = vpop.xlane.xlu0 %5471 }
 0x96b   : > { %v5530_v33 = vmul.f32 0.2, %v5472_v3  ;;  %v5532_v9 = vmul.f32 0.2, %v5478_v24  ;;  %v5660_v3 = vsel %vm877_vm3, %v5659_v8, %v5655_v5 }
 0x96d   : > { %v5664_v63 = vrot.slane %v5530_v33, %v9555_v11  ;;  %v5674_v49 = vrot.slane %v5532_v9, %v9549_v52 }
 0x96e   : > { %v5475_v48 = vpop.xlane.xlu1 %5474  ;;  %v5481_v57 = vpop.xlane.xlu0 %5480 }
 0x96f   : > { %v5531_v14 = vmul.f32 0.2, %v5475_v48  ;;  %v5533_v20 = vmul.f32 0.2, %v5481_v57  ;;  %v5650_v48 = vrot.slane %v5527_v34, %v9558_v16  ;;  %v5665_v23 = vsel %vm884_vm4, %v5664_v63, %v5660_v3 }
 0x971   : > { %v5669_v43 = vrot.slane %v5531_v14, %v9558_v16  ;;  %v5651_v8 = vsel %vm891_vm5, %v5650_v48, %v5646_v61 }
 0x972   : > { %v5490_v44 = vpop.xlane.xlu1 %5489  ;;  %v5484_v18 = vpop.xlane.xlu0 %5483 }
 0x973   : > { %v5534_v19 = vmul.f32 0.2, %v5484_v18  ;;  %v5536_v57 = vmul.f32 0.2, %v5490_v44  ;;  %v5678_v18 = vrot.slane %v5533_v20, %v9552_v7  ;;  %v5670_v14 = vsel %vm891_vm5, %v5669_v43, %v5665_v23 }
 0x974   : > { %v5746_v23 = vmul.f32 0.95122945, %v11797_v21 }
 0x975   : > { %v5683_v24 = vrot.slane %v5534_v19, %v9555_v11  ;;  %v5693_v33 = vrot.slane %v5536_v57, %v9549_v52  ;;  %v5679_v20 = vsel %vm877_vm3, %v5678_v18, %v5674_v49 }
 0x976   : > { %v5487_v37 = vpop.xlane.xlu1 %5486  ;;  %v5493_v10 = vpop.xlane.xlu0 %5492 }
 0x977   : > { %v5537_v47 = vmul.f32 0.2, %v5493_v10  ;;  %v5535_v53 = vmul.f32 0.2, %v5487_v37  ;;  %v5684_v19 = vsel %vm884_vm4, %v5683_v24, %v5679_v20 }
 0x979   : > { %v5697_v37 = vrot.slane %v5537_v47, %v9552_v7  ;;  %v5688_v44 = vrot.slane %v5535_v53, %v9558_v16  ;;  %v5729_v53 = vsel %vm1028_vm7, %v5632_v1, %v5728_v56 }
 0x97a   : > { %v5502_v35 = vpop.xlane.xlu1 %5501  ;;  %v5496_v45 = vpop.xlane.xlu0 %5495  ;;  %v5730_v63 = vsel %vm1030_vm8, %v5651_v8, %v5729_v53 }
 0x97b   : > { %v5538_v41 = vmul.f32 0.2, %v5496_v45  ;;  %v5540_v22 = vmul.f32 0.2, %v5502_v35  ;;  %v5698_v47 = vsel %vm877_vm3, %v5697_v37, %v5693_v33  ;;  %v5731_v43 = vsel %vm1032_vm9, %v5670_v14, %v5730_v63 }
 0x97c   : > { %v5737_v37 = vmul.f32 0.9048374, %v11785_v54 }
 0x97d   : > { %v5702_v59 = vrot.slane %v5538_v41, %v9555_v11  ;;  %v5689_v41 = vsel %vm891_vm5, %v5688_v44, %v5684_v19  ;;  %v5712_v28 = vrot.slane %v5540_v22, %v9549_v52  ;;  %v5739_v44 = vmul.f32 0.95122945, %v11789_v25 }
 0x97e   : > { %v5499_v2 = vpop.xlane.xlu1 %5498  ;;  %v5505_v10 = vpop.xlane.xlu0 %5504  ;;  %v5732_v56 = vsel %vm1034_vm10, %v5689_v41, %v5731_v43  ;;  %v14161_v41 = vld [vmem:[#allocation30_spill] sm:$0xff] }
 0x97f   : > { %v5539_v39 = vmul.f32 0.2, %v5499_v2  ;;  %v5541_v58 = vmul.f32 0.2, %v5505_v10  ;;  %v5703_v46 = vsel %vm884_vm4, %v5702_v59, %v5698_v47 }
 0x981   : > { %v5707_v34 = vrot.slane %v5539_v39, %v9558_v16  ;;  %v5716_v45 = vrot.slane %v5541_v58, %v9552_v7  ;;  %v8644_v39 = vld [vmem:[#allocation2 + $0x28] sm:$0xff] }
 0x982   : > { %v5511_v36 = vpop.xlane.xlu1 %5510  ;;  %v5508_v35 = vpop.xlane.xlu0 %5507 }
 0x983   : > { %v5543_v5 = vmul.f32 0.2, %v5511_v36  ;;  %v5542_v9 = vmul.f32 0.2, %v5508_v35  ;;  %v5708_v57 = vsel %vm891_vm5, %v5707_v34, %v5703_v46  ;;  %v5717_v18 = vsel %vm877_vm3, %v5716_v45, %v5712_v28  ;;  %v14160_v35 = vld [vmem:[#allocation29_spill] sm:$0xff] }
 0x984   : > { %v5733_v2 = vsel %vm1036_vm11, %v5708_v57, %v5732_v56  ;;  %v5949_v19 = vrot.slane %v14160_v35, %v9304_v17  ;;  %v6242_v28 = vrot.slane %v14161_v41, %v9304_v17 }
 0x985   : > { %v5726_v48 = vrot.slane %v5543_v5, %v9558_v16  ;;  %v5721_v3 = vrot.slane %v5542_v9, %v9555_v11 }
 0x986   : > { %v5965_v47 = vrot.slane %v5949_v19, %v9304_v17  ;;  %v5957_v5 = vcombine.high %v5949_v19, %v5949_v19 }
 0x987   : > { %v5722_v1 = vsel %vm884_vm4, %v5721_v3, %v5717_v18 }
 0x988   : > { %v5727_v10 = vsel %vm891_vm5, %v5726_v48, %v5722_v1  ;;  %v12356_v46 = vrot.slane %v5965_v47, %v9314_v26  ;;  %v12361_v48 = vrot.slane %v5957_v5, %v9304_v17 }
 0x989   : > { %v5734_v24 = vsel %vm1038_vm12, %v5727_v10, %v5733_v2  ;;  %v6250_v10 = vcombine.high %v6242_v28, %v6242_v28 }
 0x98a   : > { %v5736_v58 = vadd.f32 %v8644_v39, %v5734_v24  ;;  %v5942_v24 = vcombine.high %v14160_v35, %v14160_v35 }
 0x98c   : > { %v12320_v49 = vadd.f32 %v5737_v37, %v5736_v58  ;;  %v12387_v35 = vrot.slane %v5942_v24, %v9304_v17 }
 0x98e   : > { %v5740_v22 = vmul.f32 0.048770577, %v12320_v49 }
 0x990   : > { %v12324_v59 = vadd.f32 %v5740_v22, %v5739_v44  ;;  %v5987_v44 = vcombine.high %v5965_v47, %v5965_v47  ;;  %v6258_v22 = vrot.slane %v6242_v28, %v9304_v17 }
 0x992   : > { %8536 = vtanh.f32 %v12324_v59  ;;  %v12390_v47 = vrot.slane %v5987_v44, %v9314_v26 }
 0x99c   : > { %v8537_v61 = vpop.eup %8536 }
 0x99d   : > { %v5747_v33 = vmul.f32 0.048770577, %v8537_v61  ;;  %v6191_v34 = vsel %vm319_vm0, %v14121_v50, %v8537_v61  ;;  %v8645_v61 = vld [vmem:[%s9190_s13 + $0x8] sm:$0xff] }
 0x99e   : > { %8343 = vst.msk [vmem:[%s9638_s26 + $0x28] sm:$0xff] %vm473_vm2, %v6191_v34 }
 0x99f   : > { %v12332_v54 = vadd.f32 %v5747_v33, %v5746_v23  ;;  %v8646_v33 = vld [vmem:[%s9190_s13] sm:$0xff] }
 0x9a1   : > { %v5752_v25 = vrot.slane %v12332_v54, %v9314_v26  ;;  %v5772_v8 = vrot.slane %v12332_v54, %v9645_v15  ;;  %v5792_v21 = vrot.slane %v12332_v54, %v9650_v31  ;;  %v5812_v50 = vrot.slane %v12332_v54, %v9655_v42 }
 0x9a2   : > { %v5832_v14 = vrot.slane %v12332_v54, %v9660_v29  ;;  %v5852_v20 = vrot.slane %v12332_v54, %v9665_v4  ;;  %v5872_v45 = vrot.slane %v12332_v54, %v9670_v55  ;;  %v5892_v36 = vrot.slane %v12332_v54, %v9675_v27 }
 0x9a3   : > { %5759 = vbcast.lane.b32.xlu1 %v5752_v25, 296  ;;  %5755 = vbcast.lane.b32.xlu0 %v5752_v25, 288 }
 0x9a7   : > { %5775 = vbcast.lane.b32.xlu1 %v5772_v8, 288  ;;  %5763 = vbcast.lane.b32.xlu0 %v5752_v25, 304 }
 0x9ab   : > { %5779 = vbcast.lane.b32.xlu1 %v5772_v8, 296  ;;  %5795 = vbcast.lane.b32.xlu0 %v5792_v21, 288 }
 0x9af   : > { %5783 = vbcast.lane.b32.xlu1 %v5772_v8, 304  ;;  %5767 = vbcast.lane.b32.xlu0 %v5752_v25, 312 }
 0x9b3   : > { %5799 = vbcast.lane.b32.xlu1 %v5792_v21, 296  ;;  %5803 = vbcast.lane.b32.xlu0 %v5792_v21, 304 }
 0x9b7   : > { %5787 = vbcast.lane.b32.xlu1 %v5772_v8, 312  ;;  %5819 = vbcast.lane.b32.xlu0 %v5812_v50, 296 }
 0x9bb   : > { %5815 = vbcast.lane.b32.xlu1 %v5812_v50, 288  ;;  %5823 = vbcast.lane.b32.xlu0 %v5812_v50, 304 }
 0x9bf   : > { %5807 = vbcast.lane.b32.xlu1 %v5792_v21, 312  ;;  %5839 = vbcast.lane.b32.xlu0 %v5832_v14, 296 }
 0x9c3   : > { %5835 = vbcast.lane.b32.xlu1 %v5832_v14, 288  ;;  %5843 = vbcast.lane.b32.xlu0 %v5832_v14, 304 }
 0x9c7   : > { %5827 = vbcast.lane.b32.xlu1 %v5812_v50, 312  ;;  %5859 = vbcast.lane.b32.xlu0 %v5852_v20, 296 }
 0x9cb   : > { %5855 = vbcast.lane.b32.xlu1 %v5852_v20, 288  ;;  %5863 = vbcast.lane.b32.xlu0 %v5852_v20, 304 }
 0x9cf   : > { %5847 = vbcast.lane.b32.xlu1 %v5832_v14, 312  ;;  %5879 = vbcast.lane.b32.xlu0 %v5872_v45, 296 }
 0x9d3   : > { %5875 = vbcast.lane.b32.xlu1 %v5872_v45, 288  ;;  %5883 = vbcast.lane.b32.xlu0 %v5872_v45, 304 }
 0x9d7   : > { %5867 = vbcast.lane.b32.xlu1 %v5852_v20, 312  ;;  %5899 = vbcast.lane.b32.xlu0 %v5892_v36, 296 }
 0x9db   : > { %5895 = vbcast.lane.b32.xlu1 %v5892_v36, 288  ;;  %5903 = vbcast.lane.b32.xlu0 %v5892_v36, 304 }
 0x9df   : > { %5887 = vbcast.lane.b32.xlu1 %v5872_v45, 312 }
 0x9e3   : > { %5907 = vbcast.lane.b32.xlu1 %v5892_v36, 312  ;;  %v12384_v36 = vrot.slane %v6250_v10, %v9304_v17 }
 0x9e5   : > { %v12405_v24 = vrot.slane %v12384_v36, %v9314_v26 }
 0xa15   : > { %v5760_v9 = vpop.permute.xlu1 %5759  ;;  %v5756_v53 = vpop.permute.xlu0 %5755 }
 0xa16   : > { %v5992_v63 = vmul.f32 %v5760_v9, %v11889_v0  ;;  %v5991_v57 = vmul.f32 %v5756_v53, %v11892_v12  ;;  %v5910_v3 = vmul.f32 0.05, %v5760_v9  ;;  %v5909_v18 = vmul.f32 0.05, %v5756_v53  ;;  %v8647_v53 = vld [vmem:[%s9190_s13 + $0x20] sm:$0xff] }
 0xa17   : > { %v12369_v12 = vrot.slane %v12361_v48, %v9314_v26  ;;  %v6280_v9 = vcombine.high %v6258_v22, %v6258_v22 }
 0xa18   : > { %v6064_v43 = vsub.f32 %v12356_v46, %v5992_v63  ;;  %v6063_v56 = vsub.f32 %v12356_v46, %v5991_v57 }
 0xa19   : > { %v5776_v1 = vpop.permute.xlu1 %5775  ;;  %v5764_v2 = vpop.permute.xlu0 %5763 }
 0xa1a   : > { %v6096_v0 = vmul.f32 %v6064_v43, %v5910_v3  ;;  %v6095_v37 = vmul.f32 %v6063_v56, %v5909_v18  ;;  %v5995_v39 = vmul.f32 %v5776_v1, %v11922_v40  ;;  %v5993_v58 = vmul.f32 %v5764_v2, %v11949_v6 }
 0xa1b   : > { %v5913_v25 = vmul.f32 0.05, %v5776_v1  ;;  %v5911_v21 = vmul.f32 0.05, %v5764_v2  ;;  %v12398_v1 = vrot.slane %v6258_v22, %v9314_v26 }
 0xa1c   : > { %v6128_v23 = vadd.f32 %v8645_v61, %v6096_v0  ;;  %v6127_v34 = vadd.f32 %v8646_v33, %v6095_v37  ;;  %v6067_v8 = vsub.f32 %v12369_v12, %v5995_v39  ;;  %v6065_v50 = vsub.f32 %v12356_v46, %v5993_v58  ;;  %v8648_v58 = vld [vmem:[%s9190_s13 + $0x28] sm:$0xff] }
 0xa1d   : > { %v5780_v14 = vpop.permute.xlu1 %5779  ;;  %v5796_v20 = vpop.permute.xlu0 %5795  ;;  %v12415_v39 = vrot.slane %v6280_v9, %v9314_v26 }
 0xa1e   : > { %6160 = vst.msk [vmem:[%s9190_s13 + $0x8] sm:$0xff] %vm319_vm0, %v6128_v23  ;;  %6159 = vst.msk [vmem:[%s9190_s13] sm:$0xff] %vm319_vm0, %v6127_v34  ;;  %v6099_v40 = vmul.f32 %v6067_v8, %v5913_v25  ;;  %v5996_v45 = vmul.f32 %v5780_v14, %v11946_v13  ;;  %v6097_v19 = vmul.f32 %v6065_v50, %v5911_v21  ;;  %v5914_v63 = vmul.f32 0.05, %v5780_v14 }
 0xa1f   : > { %v5999_v5 = vmul.f32 %v5796_v20, %v11973_v62  ;;  %v5917_v3 = vmul.f32 0.05, %v5796_v20  ;;  %v6282_v23 = vcombine.high %v12384_v36, %v12384_v36  ;;  %v6235_v20 = vcombine.high %v14161_v41, %v14161_v41 }
 0xa20   : > { %v6131_v28 = vadd.f32 %v8647_v53, %v6099_v40  ;;  %v6068_v13 = vsub.f32 %v12369_v12, %v5996_v45  ;;  %v6129_v57 = vadd.f32 %v6097_v19, %v11949_v6  ;;  %v12409_v6 = vrot.slane %v12387_v35, %v9304_v17 }
 0xa21   : > { %v6071_v43 = vsub.f32 %v12390_v47, %v5999_v5  ;;  %v5784_v18 = vpop.permute.xlu1 %5783  ;;  %v5768_v56 = vpop.permute.xlu0 %5767  ;;  %v8649_v5 = vld [vmem:[%s9190_s13 + $0x30] sm:$0xff] }
 0xa22   : > { %6163 = vst.msk [vmem:[%s9190_s13 + $0x20] sm:$0xff] %vm319_vm0, %v6131_v28  ;;  %v6100_v2 = vmul.f32 %v6068_v13, %v5914_v63  ;;  %v5997_v10 = vmul.f32 %v5784_v18, %v11979_v38  ;;  %6161 = vst.msk [vmem:[%s9190_s13 + $0x10] sm:$0xff] %vm319_vm0, %v6129_v57  ;;  %v5994_v37 = vmul.f32 %v5768_v56, %v12007_v60  ;;  %v5915_v22 = vmul.f32 0.05, %v5784_v18 }
 0xa23   : > { %v6103_v0 = vmul.f32 %v6071_v43, %v5917_v3  ;;  %v5958_v38 = vcombine.high %v12387_v35, %v12387_v35  ;;  %v5912_v34 = vmul.f32 0.05, %v5768_v56 }
 0xa24   : > { %v6132_v44 = vadd.f32 %v8648_v58, %v6100_v2  ;;  %v6069_v61 = vsub.f32 %v12369_v12, %v5997_v10  ;;  %v6066_v25 = vsub.f32 %v12356_v46, %v5994_v37  ;;  %v12440_v46 = vrot.slane %v12409_v6, %v9314_v26  ;;  %v14162_v58 = vld [vmem:[#allocation37_spill] sm:$0xff] }
 0xa25   : > { %v6135_v33 = vadd.f32 %v6103_v0, %v11973_v62  ;;  %v5800_v8 = vpop.permute.xlu1 %5799  ;;  %v5804_v21 = vpop.permute.xlu0 %5803  ;;  %v12426_v50 = vld [vmem:[%s9190_s13 + $0x8] sm:$0xff]  ;;  %v12429_v14 = vld [vmem:[%s9190_s13] sm:$0xff]  ;;  %v5989_v62 = vcombine.high %v12361_v48, %v12361_v48 }
 0xa26   : > { %6164 = vst.msk [vmem:[%s9190_s13 + $0x28] sm:$0xff] %vm319_vm0, %v6132_v44  ;;  %v6101_v40 = vmul.f32 %v6069_v61, %v5915_v22  ;;  %v6000_v45 = vmul.f32 %v5800_v8, %v12004_v51  ;;  %v6098_v36 = vmul.f32 %v6066_v25, %v5912_v34  ;;  %v6001_v35 = vmul.f32 %v5804_v21, %v12026_v30  ;;  %v8650_v61 = vld [vmem:[%s9190_s13 + $0x48] sm:$0xff] }
 0xa27   : > { %6167 = vst.msk [vmem:[%s9190_s13 + $0x40] sm:$0xff] %vm319_vm0, %v6135_v33  ;;  %v6325_v19 = vmul.f32 %v12398_v1, %v12426_v50  ;;  %v6324_v51 = vmul.f32 %v12398_v1, %v12429_v14  ;;  %v5918_v48 = vmul.f32 0.05, %v5800_v8  ;;  %v5919_v28 = vmul.f32 0.05, %v5804_v21 }
 0xa28   : > { %v6133_v9 = vadd.f32 %v8649_v5, %v6101_v40  ;;  %v6072_v53 = vsub.f32 %v12390_v47, %v6000_v45  ;;  %v6130_v63 = vadd.f32 %v6098_v36, %v12007_v60  ;;  %v6073_v13 = vsub.f32 %v12390_v47, %v6001_v35 }
 0xa29   : > { %v6359_v57 = vsel %vm319_vm0, %v6325_v19, 0.0  ;;  %v5788_v3 = vpop.permute.xlu1 %5787  ;;  %v6356_v43 = vsel %vm319_vm0, %v6324_v51, 0.0  ;;  %v5820_v18 = vpop.permute.xlu0 %5819  ;;  %v12456_v56 = vld [vmem:[%s9190_s13 + $0x20] sm:$0xff]  ;;  %v12462_v60 = vrot.slane %v5958_v38, %v9304_v17  ;;  %v12467_v37 = vrot.slane %v5989_v62, %v9314_v26  ;;  %v12484_v35 = vld [vmem:[%s9190_s13 + $0x10] sm:$0xff] }
 0xa2a   : > { %6165 = vst.msk [vmem:[%s9190_s13 + $0x30] sm:$0xff] %vm319_vm0, %v6133_v9  ;;  %v6104_v2 = vmul.f32 %v6072_v53, %v5918_v48  ;;  %6360 = vadd.xlane.f32.xlu1 %v6359_v57  ;;  %v5998_v10 = vmul.f32 %v5788_v3, %v12032_v32  ;;  %6357 = vadd.xlane.f32.xlu0 %v6356_v43  ;;  %6162 = vst.msk [vmem:[%s9190_s13 + $0x18] sm:$0xff] %vm319_vm0, %v6130_v63  ;;  %v5916_v33 = vmul.f32 0.05, %v5788_v3  ;;  %v14164_v9 = vld [vmem:[#allocation40_spill] sm:$0xff]  ;;  %v8651_v63 = vld [vmem:[%s9190_s13 + $0x38] sm:$0xff] }
 0xa2b   : > { %v6105_v0 = vmul.f32 %v6073_v13, %v5919_v28  ;;  %v6004_v44 = vmul.f32 %v5820_v18, %v14162_v58  ;;  %v6328_v22 = vmul.f32 %v12405_v24, %v12456_v56  ;;  %v12475_v34 = vrot.slane %v6282_v23, %v9314_v26  ;;  %v14163_v23 = vld [vmem:[#allocation38_spill] sm:$0xff] }
 0xa2c   : > { %v6136_v32 = vadd.f32 %v8650_v61, %v6104_v2  ;;  %v6070_v38 = vsub.f32 %v12369_v12, %v5998_v10  ;;  %v5922_v8 = vmul.f32 0.05, %v5820_v18  ;;  %v12492_v51 = vrot.slane %v6235_v20, %v9304_v17 }
 0xa2d   : > { %v6137_v25 = vadd.f32 %v6105_v0, %v12026_v30  ;;  %v6076_v21 = vsub.f32 %v12467_v37, %v6004_v44  ;;  %v5816_v40 = vpop.permute.xlu1 %5815  ;;  %v6368_v45 = vsel %vm319_vm0, %v6328_v22, 0.0  ;;  %v5824_v62 = vpop.permute.xlu0 %5823  ;;  %v12481_v36 = vld [vmem:[%s9190_s13 + $0x28] sm:$0xff]  ;;  %v5988_v30 = vcombine.high %v12409_v6, %v12409_v6 }
 0xa2e   : > { %6168 = vst.msk [vmem:[%s9190_s13 + $0x48] sm:$0xff] %vm319_vm0, %v6136_v32  ;;  %v6102_v12 = vmul.f32 %v6070_v38, %v5916_v33  ;;  %v6003_v19 = vmul.f32 %v5816_v40, %v14163_v23  ;;  %6369 = vadd.xlane.f32.xlu0 %v6368_v45  ;;  %v6005_v48 = vmul.f32 %v5824_v62, %v14164_v9  ;;  %v5921_v6 = vmul.f32 0.05, %v5816_v40  ;;  %v12508_v3 = vld [vmem:[%s9190_s13 + $0x40] sm:$0xff]  ;;  %v14165_v32 = vld [vmem:[#allocation39_spill] sm:$0xff] }
 0xa2f   : > { %6169 = vst.msk [vmem:[%s9190_s13 + $0x50] sm:$0xff] %vm319_vm0, %v6137_v25  ;;  %v6108_v5 = vmul.f32 %v6076_v21, %v5922_v8  ;;  %v6329_v53 = vmul.f32 %v12405_v24, %v12481_v36  ;;  %v12501_v28 = vrot.slane %v12462_v60, %v9314_v26  ;;  %v6326_v57 = vmul.f32 %v12398_v1, %v12484_v35  ;;  %v14166_v8 = vld [vmem:[#allocation44_spill] sm:$0xff] }
 0xa30   : > { %v6134_v13 = vadd.f32 %v8651_v63, %v6102_v12  ;;  %v6075_v20 = vsub.f32 %v12467_v37, %v6003_v19  ;;  %v5923_v18 = vmul.f32 0.05, %v5824_v62  ;;  %v6077_v2 = vsub.f32 %v12467_v37, %v6005_v48  ;;  %v8652_v62 = vld [vmem:[%s9190_s13 + $0x60] sm:$0xff] }
 0xa31   : > { %v6140_v43 = vadd.f32 %v6108_v5, %v14162_v58  ;;  %v5808_v10 = vpop.permute.xlu1 %5807  ;;  %v6371_v0 = vsel %vm319_vm0, %v6329_v53, 0.0  ;;  %v5840_v44 = vpop.permute.xlu0 %5839  ;;  %v12514_v22 = vld [vmem:[%s9190_s13 + $0x30] sm:$0xff]  ;;  %v12520_v38 = vrot.slane %v5988_v30, %v9314_v26  ;;  %v5990_v58 = vcombine.high %v12462_v60, %v12462_v60 }
 0xa32   : > { %6166 = vst.msk [vmem:[%s9190_s13 + $0x38] sm:$0xff] %vm319_vm0, %v6134_v13  ;;  %v6107_v61 = vmul.f32 %v6075_v20, %v5921_v6  ;;  %v6002_v33 = vmul.f32 %v5808_v10, %v14165_v32  ;;  %6372 = vadd.xlane.f32.xlu0 %v6371_v0  ;;  %v6109_v25 = vmul.f32 %v6077_v2, %v5923_v18  ;;  %v5920_v23 = vmul.f32 0.05, %v5808_v10  ;;  %v14168_v10 = vld [vmem:[#allocation27_spill] sm:$0xff] }
 0xa33   : > { %6172 = vst.msk [vmem:[%s9190_s13 + $0x68] sm:$0xff] %vm319_vm0, %v6140_v43  ;;  %v6008_v21 = vmul.f32 %v5840_v44, %v14166_v8  ;;  %v6330_v40 = vmul.f32 %v12405_v24, %v12514_v22  ;;  %v6332_v45 = vmul.f32 %v12415_v39, %v12508_v3  ;;  %v6362_v30 = vsel %vm319_vm0, %v6326_v57, 0.0  ;;  %v12541_v43 = vld [vmem:[%s9190_s13 + $0x18] sm:$0xff]  ;;  %v14167_v57 = vld [vmem:[#allocation42_spill] sm:$0xff] }
 0xa34   : > { %v6139_v12 = vadd.f32 %v8652_v62, %v6107_v61  ;;  %v6074_v19 = vsub.f32 %v12390_v47, %v6002_v33  ;;  %v6141_v5 = vadd.f32 %v6109_v25, %v14164_v9  ;;  %v5926_v48 = vmul.f32 0.05, %v5840_v44  ;;  %v8653_v32 = vld [vmem:[%s9190_s13 + $0x58] sm:$0xff] }
 0xa35   : > { %v6080_v53 = vsub.f32 %v12440_v46, %v6008_v21  ;;  %v6374_v63 = vsel %vm319_vm0, %v6330_v40, 0.0  ;;  %v5836_v13 = vpop.permute.xlu1 %5835  ;;  %v5844_v6 = vpop.permute.xlu0 %5843  ;;  %v12538_v20 = vld [vmem:[%s9190_s13 + $0x48] sm:$0xff]  ;;  %v12548_v9 = vrot.slane %v12492_v51, %v9304_v17  ;;  %v6380_v61 = vsel %vm319_vm0, %v6332_v45, 0.0 }
 0xa36   : > { %6171 = vst.msk [vmem:[%s9190_s13 + $0x60] sm:$0xff] %vm319_vm0, %v6139_v12  ;;  %v6106_v47 = vmul.f32 %v6074_v19, %v5920_v23  ;;  %6375 = vadd.xlane.f32.xlu1 %v6374_v63  ;;  %v6007_v18 = vmul.f32 %v5836_v13, %v14167_v57  ;;  %6363 = vadd.xlane.f32.xlu0 %v6362_v30  ;;  %6173 = vst.msk [vmem:[%s9190_s13 + $0x70] sm:$0xff] %vm319_vm0, %v6141_v5  ;;  %v5925_v25 = vmul.f32 0.05, %v5836_v13  ;;  %v12561_v62 = vld [vmem:[%s9190_s13 + $0x50] sm:$0xff]  ;;  %v14169_v63 = vld [vmem:[#allocation28_spill] sm:$0xff] }
 0xa37   : > { %v6112_v2 = vmul.f32 %v6080_v53, %v5926_v48  ;;  %v6009_v0 = vmul.f32 %v5844_v6, %v14168_v10  ;;  %v6333_v44 = vmul.f32 %v12415_v39, %v12538_v20  ;;  %v6327_v40 = vmul.f32 %v12398_v1, %v12541_v43 }
 0xa38   : > { %v6138_v33 = vadd.f32 %v8653_v32, %v6106_v47  ;;  %v6079_v21 = vsub.f32 %v12440_v46, %v6007_v18  ;;  %v5927_v23 = vmul.f32 0.05, %v5844_v6  ;;  %v14170_v6 = vld [vmem:[#allocation41_spill] sm:$0xff]  ;;  %v6334_v18 = vmul.f32 %v12415_v39, %v12561_v62 }
 0xa39   : > { %v6144_v12 = vadd.f32 %v6112_v2, %v14166_v8  ;;  %v6081_v19 = vsub.f32 %v12440_v46, %v6009_v0  ;;  %v6383_v30 = vsel %vm319_vm0, %v6333_v44, 0.0  ;;  %v5828_v45 = vpop.permute.xlu1 %5827  ;;  %v5860_v5 = vpop.permute.xlu0 %5859  ;;  %v12567_v48 = vld [vmem:[%s9190_s13 + $0x38] sm:$0xff]  ;;  %v8654_v2 = vld [vmem:[%s9190_s13 + $0x80] sm:$0xff]  ;;  %v6365_v32 = vsel %vm319_vm0, %v6327_v40, 0.0  ;;  %v14173_v40 = vld [vmem:[#allocation46_spill] sm:$0xff] }
 0xa3a   : > { %6170 = vst.msk [vmem:[%s9190_s13 + $0x58] sm:$0xff] %vm319_vm0, %v6138_v33  ;;  %v6111_v53 = vmul.f32 %v6079_v21, %v5925_v25  ;;  %6384 = vadd.xlane.f32.xlu1 %v6383_v30  ;;  %v6006_v1 = vmul.f32 %v5828_v45, %v14169_v63  ;;  %6381 = vadd.xlane.f32.xlu0 %v6380_v61  ;;  %v5924_v44 = vmul.f32 0.05, %v5828_v45  ;;  %v5930_v25 = vmul.f32 0.05, %v5860_v5  ;;  %v12591_v30 = vld [vmem:[%s9190_s13 + $0x68] sm:$0xff] }
 0xa3b   : > { %6176 = vst.msk [vmem:[%s9190_s13 + $0x88] sm:$0xff] %vm319_vm0, %v6144_v12  ;;  %v6113_v13 = vmul.f32 %v6081_v19, %v5927_v23  ;;  %v6012_v47 = vmul.f32 %v5860_v5, %v14170_v6  ;;  %v6331_v57 = vmul.f32 %v12405_v24, %v12567_v48  ;;  %14172 = vst [vmem:[#allocation18_spill] sm:$0xff] %v12591_v30 }
 0xa3c   : > { %v6143_v0 = vadd.f32 %v8654_v2, %v6111_v53  ;;  %v6078_v61 = vsub.f32 %v12467_v37, %v6006_v1  ;;  %v14174_v53 = vld [vmem:[#allocation45_spill] sm:$0xff]  ;;  %v6337_v60 = vmul.f32 %v12475_v34, %v12591_v30 }
 0xa3d   : > { %v6145_v33 = vadd.f32 %v6113_v13, %v14168_v10  ;;  %v6084_v21 = vsub.f32 %v12501_v28, %v6012_v47  ;;  %v6377_v12 = vsel %vm319_vm0, %v6331_v57, 0.0  ;;  %v5856_v24 = vpop.permute.xlu1 %5855  ;;  %v5864_v23 = vpop.permute.xlu0 %5863  ;;  %v12588_v19 = vld [vmem:[%s9190_s13 + $0x60] sm:$0xff]  ;;  %v12600_v10 = vrot.slane %v5990_v58, %v9314_v26  ;;  %v8655_v47 = vld [vmem:[%s9190_s13 + $0x78] sm:$0xff]  ;;  %v12613_v58 = vld [vmem:[%s9190_s13 + $0x70] sm:$0xff] }
 0xa3e   : > { %14171 = vst [vmem:[#allocation22_spill] sm:$0xff] %v12588_v19  ;;  %6175 = vst.msk [vmem:[%s9190_s13 + $0x80] sm:$0xff] %vm319_vm0, %v6143_v0  ;;  %v6110_v37 = vmul.f32 %v6078_v61, %v5924_v44  ;;  %6378 = vadd.xlane.f32.xlu1 %v6377_v12  ;;  %v6011_v45 = vmul.f32 %v5856_v24, %v14173_v40  ;;  %6366 = vadd.xlane.f32.xlu0 %v6365_v32  ;;  %v6386_v13 = vsel %vm319_vm0, %v6334_v18, 0.0  ;;  %v14178_v40 = vld [vmem:[#allocation25_spill] sm:$0xff] }
 0xa3f   : > { %6177 = vst.msk [vmem:[%s9190_s13 + $0x90] sm:$0xff] %vm319_vm0, %v6145_v33  ;;  %v6116_v5 = vmul.f32 %v6084_v21, %v5930_v25  ;;  %v6013_v63 = vmul.f32 %v5864_v23, %v14174_v53  ;;  %v6336_v1 = vmul.f32 %v12475_v34, %v12588_v19  ;;  %v5929_v2 = vmul.f32 0.05, %v5856_v24  ;;  %14175 = vst [vmem:[#allocation16_spill] sm:$0xff] %v12613_v58  ;;  %v14177_v24 = vld [vmem:[#allocation43_spill] sm:$0xff] }
 0xa40   : > { %v6142_v57 = vadd.f32 %v8655_v47, %v6110_v37  ;;  %v6083_v0 = vsub.f32 %v12501_v28, %v6011_v45  ;;  %v5931_v61 = vmul.f32 0.05, %v5864_v23 }
 0xa41   : > { %v6148_v44 = vadd.f32 %v6116_v5, %v14170_v6  ;;  %v6085_v32 = vsub.f32 %v12501_v28, %v6013_v63  ;;  %v6392_v33 = vsel %vm319_vm0, %v6336_v1, 0.0  ;;  %v5848_v18 = vpop.permute.xlu1 %5847  ;;  %v5880_v25 = vpop.permute.xlu0 %5879  ;;  %v12619_v21 = vld [vmem:[%s9190_s13 + $0x58] sm:$0xff]  ;;  %v12626_v6 = vrot.slane %v12548_v9, %v9314_v26  ;;  %v8656_v1 = vld [vmem:[%s9190_s13 + $0xa0] sm:$0xff] }
 0xa42   : > { %14176 = vst [vmem:[#allocation34_spill] sm:$0xff] %v12619_v21  ;;  %6174 = vst.msk [vmem:[%s9190_s13 + $0x78] sm:$0xff] %vm319_vm0, %v6142_v57  ;;  %v6115_v12 = vmul.f32 %v6083_v0, %v5929_v2  ;;  %6393 = vadd.xlane.f32.xlu1 %v6392_v33  ;;  %v6010_v37 = vmul.f32 %v5848_v18, %v14177_v24  ;;  %6387 = vadd.xlane.f32.xlu0 %v6386_v13  ;;  %v5928_v47 = vmul.f32 0.05, %v5848_v18  ;;  %v12645_v8 = vld [vmem:[%s9190_s13 + $0x88] sm:$0xff] }
 0xa43   : > { %6180 = vst.msk [vmem:[%s9190_s13 + $0xa8] sm:$0xff] %vm319_vm0, %v6148_v44  ;;  %v6117_v23 = vmul.f32 %v6085_v32, %v5931_v61  ;;  %v6016_v45 = vmul.f32 %v5880_v25, %v14178_v40  ;;  %v6335_v5 = vmul.f32 %v12415_v39, %v12619_v21  ;;  %v6338_v63 = vmul.f32 %v12475_v34, %v12613_v58 }
 0xa44   : > { %v6147_v13 = vadd.f32 %v8656_v1, %v6115_v12  ;;  %v6082_v57 = vsub.f32 %v12440_v46, %v6010_v37  ;;  %v6395_v2 = vsel %vm319_vm0, %v6337_v60, 0.0  ;;  %v5934_v44 = vmul.f32 0.05, %v5880_v25  ;;  %14180 = vst [vmem:[#allocation20_spill] sm:$0xff] %v12645_v8  ;;  %v14181_v60 = vld [vmem:[#allocation26_spill] sm:$0xff]  ;;  %v14183_v37 = vld [vmem:[#allocation47_spill] sm:$0xff] }
 0xa45   : > { %v6149_v0 = vadd.f32 %v6117_v23, %v14174_v53  ;;  %v6088_v61 = vsub.f32 %v12520_v38, %v6016_v45  ;;  %v6389_v32 = vsel %vm319_vm0, %v6335_v5, 0.0  ;;  %v5876_v39 = vpop.permute.xlu1 %5875  ;;  %v5884_v33 = vpop.permute.xlu0 %5883  ;;  %v12642_v24 = vld [vmem:[%s9190_s13 + $0x80] sm:$0xff]  ;;  %v14182_v53 = vcombine.high %v12492_v51, %v12492_v51  ;;  %v8657_v1 = vld [vmem:[%s9190_s13 + $0x98] sm:$0xff] }
 0xa46   : > { %14179 = vst [vmem:[#allocation19_spill] sm:$0xff] %v12642_v24  ;;  %6179 = vst.msk [vmem:[%s9190_s13 + $0xa0] sm:$0xff] %vm319_vm0, %v6147_v13  ;;  %v6114_v46 = vmul.f32 %v6082_v57, %v5928_v47  ;;  %6390 = vadd.xlane.f32.xlu1 %v6389_v32  ;;  %v6015_v18 = vmul.f32 %v5876_v39, %v14181_v60  ;;  %6396 = vadd.xlane.f32.xlu0 %v6395_v2  ;;  %v6398_v5 = vsel %vm319_vm0, %v6338_v63, 0.0  ;;  %v12667_v2 = vld [vmem:[%s9190_s13 + $0x90] sm:$0xff] }
 0xa47   : > { %v12654_v25 = vrot.slane %v14182_v53, %v9304_v17  ;;  %6181 = vst.msk [vmem:[%s9190_s13 + $0xb0] sm:$0xff] %vm319_vm0, %v6149_v0  ;;  %v6120_v12 = vmul.f32 %v6088_v61, %v5934_v44  ;;  %v6017_v23 = vmul.f32 %v5884_v33, %v14183_v37  ;;  %v6340_v45 = vmul.f32 %v12626_v6, %v12642_v24 }
 0xa48   : > { %v6146_v13 = vadd.f32 %v8657_v1, %v6114_v46  ;;  %v5933_v47 = vmul.f32 0.05, %v5876_v39  ;;  %v6087_v57 = vsub.f32 %v12520_v38, %v6015_v18  ;;  %v6341_v51 = vmul.f32 %v12626_v6, %v12645_v8  ;;  %14184 = vst [vmem:[#allocation35_spill] sm:$0xff] %v12667_v2  ;;  %v14186_v18 = vld [vmem:[#allocation23_spill] sm:$0xff] }
 0xa49   : > { %v6152_v0 = vadd.f32 %v6120_v12, %v14178_v40  ;;  %v5935_v44 = vmul.f32 0.05, %v5884_v33  ;;  %v6089_v61 = vsub.f32 %v12520_v38, %v6017_v23  ;;  %v6404_v32 = vsel %vm319_vm0, %v6340_v45, 0.0  ;;  %v5868_v63 = vpop.permute.xlu1 %5867  ;;  %v5900_v60 = vpop.permute.xlu0 %5899  ;;  %v12673_v46 = vld [vmem:[%s9190_s13 + $0x78] sm:$0xff]  ;;  %v14187_v12 = vld [vmem:[#allocation24_spill] sm:$0xff] }
 0xa4a   : > { %14185 = vst [vmem:[#allocation36_spill] sm:$0xff] %v12673_v46  ;;  %6178 = vst.msk [vmem:[%s9190_s13 + $0x98] sm:$0xff] %vm319_vm0, %v6146_v13  ;;  %v6119_v39 = vmul.f32 %v6087_v57, %v5933_v47  ;;  %6405 = vadd.xlane.f32.xlu1 %v6404_v32  ;;  %v6014_v53 = vmul.f32 %v5868_v63, %v14186_v18  ;;  %6399 = vadd.xlane.f32.xlu0 %v6398_v5  ;;  %v8658_v13 = vld [vmem:[%s9190_s13 + $0xc0] sm:$0xff]  ;;  %v5932_v47 = vmul.f32 0.05, %v5868_v63 }
 0xa4b   : > { %v12680_v40 = vrot.slane %v12654_v25, %v9314_v26  ;;  %6184 = vst.msk [vmem:[%s9190_s13 + $0xc8] sm:$0xff] %vm319_vm0, %v6152_v0  ;;  %v6121_v33 = vmul.f32 %v6089_v61, %v5935_v44  ;;  %v6020_v23 = vmul.f32 %v5900_v60, %v14187_v12  ;;  %v6339_v45 = vmul.f32 %v12475_v34, %v12673_v46 }
 0xa4c   : > { %v6342_v1 = vmul.f32 %v12626_v6, %v12667_v2  ;;  %v6151_v5 = vadd.f32 %v8658_v13, %v6119_v39  ;;  %v6086_v57 = vsub.f32 %v12501_v28, %v6014_v53  ;;  %v6407_v0 = vsel %vm319_vm0, %v6341_v51, 0.0  ;;  %v12699_v2 = vld [vmem:[%s9190_s13 + $0xa8] sm:$0xff] }
 0xa4d   : > { %v6153_v44 = vadd.f32 %v6121_v33, %v14183_v37  ;;  %v5938_v61 = vmul.f32 0.05, %v5900_v60  ;;  %v6092_v32 = vsub.f32 %v12600_v10, %v6020_v23  ;;  %v6401_v18 = vsel %vm319_vm0, %v6339_v45, 0.0  ;;  %v5896_v34 = vpop.permute.xlu1 %5895  ;;  %v5904_v12 = vpop.permute.xlu0 %5903  ;;  %v12696_v46 = vld [vmem:[%s9190_s13 + $0xa0] sm:$0xff]  ;;  %14189 = vst [vmem:[#allocation30_spill] sm:$0xff] %v12699_v2  ;;  %v14190_v51 = vld [vmem:[#allocation21_spill] sm:$0xff] }
 0xa4e   : > { %14188 = vst [vmem:[#allocation29_spill] sm:$0xff] %v12696_v46  ;;  %6183 = vst.msk [vmem:[%s9190_s13 + $0xc0] sm:$0xff] %vm319_vm0, %v6151_v5  ;;  %v6118_v28 = vmul.f32 %v6086_v57, %v5932_v47  ;;  %6402 = vadd.xlane.f32.xlu1 %v6401_v18  ;;  %v6019_v63 = vmul.f32 %v5896_v34, %v14190_v51  ;;  %6408 = vadd.xlane.f32.xlu0 %v6407_v0  ;;  %v14191_v39 = vld [vmem:[#allocation17_spill] sm:$0xff]  ;;  %v6410_v23 = vsel %vm319_vm0, %v6342_v1, 0.0  ;;  %v8659_v45 = vld [vmem:[%s9190_s13 + $0xb8] sm:$0xff] }
 0xa4f   : > { %v6281_v37 = vcombine.high %v12548_v9, %v12548_v9  ;;  %6185 = vst.msk [vmem:[%s9190_s13 + $0xd0] sm:$0xff] %vm319_vm0, %v6153_v44  ;;  %v6124_v60 = vmul.f32 %v6092_v32, %v5938_v61  ;;  %v6021_v53 = vmul.f32 %v5904_v12, %v14191_v39  ;;  %v6344_v33 = vmul.f32 %v12680_v40, %v12696_v46  ;;  %v8660_v57 = vld [vmem:[%s9190_s13 + $0xe8] sm:$0xff] }
 0xa50   : > { %v6150_v13 = vadd.f32 %v8659_v45, %v6118_v28  ;;  %v5937_v5 = vmul.f32 0.05, %v5896_v34  ;;  %v6091_v47 = vsub.f32 %v12600_v10, %v6019_v63  ;;  %v6345_v9 = vmul.f32 %v12680_v40, %v12699_v2  ;;  %v8661_v28 = vld [vmem:[%s9190_s13 + $0xd8] sm:$0xff]  ;;  %v12728_v63 = vld [vmem:[%s9190_s13 + $0xb0] sm:$0xff] }
 0xa51   : > { %v6156_v0 = vadd.f32 %v8660_v57, %v6124_v60  ;;  %v5939_v44 = vmul.f32 0.05, %v5904_v12  ;;  %v6093_v61 = vsub.f32 %v12600_v10, %v6021_v53  ;;  %v6416_v32 = vsel %vm319_vm0, %v6344_v33, 0.0  ;;  %v5888_v1 = vpop.permute.xlu1 %5887  ;;  %v12720_v18 = vld [vmem:[%s9190_s13 + $0x98] sm:$0xff]  ;;  %14193 = vst [vmem:[#allocation38_spill] sm:$0xff] %v12728_v63  ;;  %v8662_v53 = vld [vmem:[%s9190_s13 + $0xe0] sm:$0xff] }
 0xa52   : > { %14192 = vst [vmem:[#allocation37_spill] sm:$0xff] %v12720_v18  ;;  %6182 = vst.msk [vmem:[%s9190_s13 + $0xb8] sm:$0xff] %vm319_vm0, %v6150_v13  ;;  %v6123_v34 = vmul.f32 %v6091_v47, %v5937_v5  ;;  %6417 = vadd.xlane.f32.xlu1 %v6416_v32  ;;  %v6018_v51 = vmul.f32 %v8661_v28, %v5888_v1  ;;  %6411 = vadd.xlane.f32.xlu0 %v6410_v23  ;;  %v5936_v45 = vmul.f32 0.05, %v5888_v1  ;;  %v8663_v5 = vld [vmem:[%s9190_s13 + $0xf0] sm:$0xff]  ;;  %v12748_v1 = vld [vmem:[%s9190_s13 + $0xc8] sm:$0xff] }
 0xa53   : > { %v6343_v12 = vmul.f32 %v12626_v6, %v12720_v18  ;;  %6188 = vst.msk [vmem:[%s9190_s13 + $0xe8] sm:$0xff] %vm319_vm0, %v6156_v0  ;;  %v6125_v60 = vmul.f32 %v6093_v61, %v5939_v44  ;;  %v6311_v39 = vrot.slane %v6281_v37, %v9314_v26  ;;  %v6419_v57 = vsel %vm319_vm0, %v6345_v9, 0.0  ;;  %14195 = vst [vmem:[#allocation39_spill] sm:$0xff] %v12748_v1 }
 0xa54   : > { %v6155_v33 = vadd.f32 %v8662_v53, %v6123_v34  ;;  %v6090_v13 = vsub.f32 %v12520_v38, %v6018_v51  ;;  %v6346_v0 = vmul.f32 %v12680_v40, %v12728_v63  ;;  %v8664_v38 = vld [vmem:[%s9190_s13 + $0xf8] sm:$0xff]  ;;  %v6283_v9 = vcombine.high %v12654_v25, %v12654_v25 }
 0xa55   : > { %v6413_v23 = vsel %vm319_vm0, %v6343_v12, 0.0  ;;  %v6157_v6 = vadd.f32 %v8663_v5, %v6125_v60  ;;  %v5908_v47 = vpop.permute.xlu1 %5907  ;;  %v12739_v32 = vld [vmem:[%s9190_s13 + $0xc0] sm:$0xff] }
 0xa56   : > { %14194 = vst [vmem:[#allocation40_spill] sm:$0xff] %v12739_v32  ;;  %6187 = vst.msk [vmem:[%s9190_s13 + $0xe0] sm:$0xff] %vm319_vm0, %v6155_v33  ;;  %v6122_v37 = vmul.f32 %v6090_v13, %v5936_v45  ;;  %6414 = vadd.xlane.f32.xlu1 %v6413_v23  ;;  %v6022_v44 = vmul.f32 %v8664_v38, %v5908_v47  ;;  %6420 = vadd.xlane.f32.xlu0 %v6419_v57  ;;  %v5940_v51 = vmul.f32 0.05, %v5908_v47 }
 0xa57   : > { %v6348_v61 = vmul.f32 %v6311_v39, %v12739_v32  ;;  %6189 = vst.msk [vmem:[%s9190_s13 + $0xf0] sm:$0xff] %vm319_vm0, %v6157_v6  ;;  %v6422_v53 = vsel %vm319_vm0, %v6346_v0, 0.0  ;;  %v6349_v45 = vmul.f32 %v6311_v39, %v12748_v1  ;;  %v6315_v5 = vrot.slane %v6283_v9, %v9314_v26 }
 0xa58   : > { %v6154_v34 = vadd.f32 %v8661_v28, %v6122_v37  ;;  %v6094_v12 = vsub.f32 %v12600_v10, %v6022_v44  ;;  %v12766_v10 = vld [vmem:[%s9190_s13 + $0xd0] sm:$0xff] }
 0xa59   : > { %v6428_v60 = vsel %vm319_vm0, %v6348_v61, 0.0  ;;  %v12758_v33 = vld [vmem:[%s9190_s13 + $0xb8] sm:$0xff]  ;;  %14197 = vst [vmem:[#allocation42_spill] sm:$0xff] %v12766_v10  ;;  %v6431_v6 = vsel %vm319_vm0, %v6349_v45, 0.0  ;;  %v6350_v57 = vmul.f32 %v6311_v39, %v12766_v10 }
 0xa5a   : > { %14196 = vst [vmem:[#allocation44_spill] sm:$0xff] %v12758_v33  ;;  %6186 = vst.msk [vmem:[%s9190_s13 + $0xd8] sm:$0xff] %vm319_vm0, %v6154_v34  ;;  %v6126_v13 = vmul.f32 %v6094_v12, %v5940_v51  ;;  %6429 = vadd.xlane.f32.xlu1 %v6428_v60  ;;  %6423 = vadd.xlane.f32.xlu0 %v6422_v53  ;;  %v6347_v25 = vmul.f32 %v12680_v40, %v12758_v33  ;;  %v12779_v0 = vld [vmem:[%s9190_s13 + $0xe8] sm:$0xff] }
 0xa5b   : > { %14199 = vst [vmem:[#allocation28_spill] sm:$0xff] %v12779_v0  ;;  %v6353_v61 = vmul.f32 %v6315_v5, %v12779_v0 }
 0xa5c   : > { %v6158_v28 = vadd.f32 %v8664_v38, %v6126_v13  ;;  %v6425_v23 = vsel %vm319_vm0, %v6347_v25, 0.0  ;;  %v6434_v38 = vsel %vm319_vm0, %v6350_v57, 0.0 }
 0xa5d   : > { %v12772_v47 = vld [vmem:[%s9190_s13 + $0xe0] sm:$0xff]  ;;  %v6443_v12 = vsel %vm319_vm0, %v6353_v61, 0.0 }
 0xa5e   : > { %14198 = vst [vmem:[#allocation27_spill] sm:$0xff] %v12772_v47  ;;  %6190 = vst.msk [vmem:[%s9190_s13 + $0xf8] sm:$0xff] %vm319_vm0, %v6158_v28  ;;  %6426 = vadd.xlane.f32.xlu1 %v6425_v23  ;;  %6432 = vadd.xlane.f32.xlu0 %v6431_v6  ;;  %v6352_v40 = vmul.f32 %v6315_v5, %v12772_v47  ;;  %v12786_v34 = vld [vmem:[%s9190_s13 + $0xf0] sm:$0xff] }
 0xa5f   : > { %14200 = vst [vmem:[#allocation41_spill] sm:$0xff] %v12786_v34  ;;  %v6354_v53 = vmul.f32 %v6315_v5, %v12786_v34 }
 0xa60   : > { %v6440_v37 = vsel %vm319_vm0, %v6352_v40, 0.0 }
 0xa61   : > { %v6229_v44 = vld [vmem:[%s9190_s13 + $0xd8] sm:$0xff]  ;;  %v6446_v25 = vsel %vm319_vm0, %v6354_v53, 0.0 }
 0xa62   : > { %6441 = vadd.xlane.f32.xlu1 %v6440_v37  ;;  %6435 = vadd.xlane.f32.xlu0 %v6434_v38  ;;  %v6351_v9 = vmul.f32 %v6311_v39, %v6229_v44 }
 0xa64   : > { %v6437_v51 = vsel %vm319_vm0, %v6351_v9, 0.0 }
 0xa65   : > { %v6233_v60 = vld [vmem:[%s9190_s13 + $0xf8] sm:$0xff] }
 0xa66   : > { %6438 = vadd.xlane.f32.xlu1 %v6437_v51  ;;  %6444 = vadd.xlane.f32.xlu0 %v6443_v12  ;;  %v6355_v45 = vmul.f32 %v6315_v5, %v6233_v60 }
 0xa68   : > { %v6449_v13 = vsel %vm319_vm0, %v6355_v45, 0.0 }
 0xa6a   : > { %6450 = vadd.xlane.f32.xlu1 %v6449_v13  ;;  %6447 = vadd.xlane.f32.xlu0 %v6446_v25 }
 0xab7   : > { %v6358_v28 = vpop.xlane.xlu0 %6357  ;;  %v6361_v23 = vpop.xlane.xlu1 %6360 }
 0xab8   : > { %v6453_v47 = vmul.f32 0.2, %v6361_v23  ;;  %v6452_v0 = vmul.f32 0.2, %v6358_v28 }
 0xaba   : > { %v6523_v24 = vrot.slane %v6453_v47, %v9552_v7  ;;  %v6519_v8 = vrot.slane %v6452_v0, %v9549_v52 }
 0xabb   : > { %v6370_v39 = vpop.xlane.xlu0 %6369 }
 0xabc   : > { %v6456_v1 = vmul.f32 0.2, %v6370_v39  ;;  %v6524_v47 = vsel %vm877_vm3, %v6523_v24, %v6519_v8 }
 0xabf   : > { %v6373_v6 = vpop.xlane.xlu0 %6372 }
 0xac0   : > { %v6457_v33 = vmul.f32 0.2, %v6373_v6  ;;  %v6538_v6 = vrot.slane %v6456_v1, %v9549_v52 }
 0xac2   : > { %v6542_v21 = vrot.slane %v6457_v33, %v9552_v7 }
 0xac3   : > { %v6376_v57 = vpop.xlane.xlu1 %6375  ;;  %v6364_v40 = vpop.xlane.xlu0 %6363 }
 0xac4   : > { %v6458_v10 = vmul.f32 0.2, %v6376_v57  ;;  %v6454_v32 = vmul.f32 0.2, %v6364_v40  ;;  %v6543_v0 = vsel %vm877_vm3, %v6542_v21, %v6538_v6 }
 0xac6   : > { %v6547_v58 = vrot.slane %v6458_v10, %v9555_v11  ;;  %v6528_v19 = vrot.slane %v6454_v32, %v9555_v11 }
 0xac7   : > { %v6385_v37 = vpop.xlane.xlu1 %6384  ;;  %v6382_v38 = vpop.xlane.xlu0 %6381 }
 0xac8   : > { %v6461_v23 = vmul.f32 0.2, %v6385_v37  ;;  %v6460_v28 = vmul.f32 0.2, %v6382_v38  ;;  %v6548_v10 = vsel %vm884_vm4, %v6547_v58, %v6543_v0  ;;  %v6529_v32 = vsel %vm884_vm4, %v6528_v19, %v6524_v47 }
 0xaca   : > { %v6561_v37 = vrot.slane %v6461_v23, %v9552_v7  ;;  %v6557_v1 = vrot.slane %v6460_v28, %v9549_v52 }
 0xacb   : > { %v6379_v44 = vpop.xlane.xlu1 %6378  ;;  %v6367_v61 = vpop.xlane.xlu0 %6366 }
 0xacc   : > { %v6459_v18 = vmul.f32 0.2, %v6379_v44  ;;  %v6455_v63 = vmul.f32 0.2, %v6367_v61  ;;  %v6562_v58 = vsel %vm877_vm3, %v6561_v37, %v6557_v1 }
 0xace   : > { %v6552_v39 = vrot.slane %v6459_v18, %v9558_v16  ;;  %v6533_v57 = vrot.slane %v6455_v63, %v9558_v16 }
 0xacf   : > { %v6394_v9 = vpop.xlane.xlu1 %6393  ;;  %v6388_v51 = vpop.xlane.xlu0 %6387 }
 0xad0   : > { %v6462_v40 = vmul.f32 0.2, %v6388_v51  ;;  %v6553_v18 = vsel %vm891_vm5, %v6552_v39, %v6548_v10  ;;  %v6534_v63 = vsel %vm891_vm5, %v6533_v57, %v6529_v32  ;;  %v6464_v21 = vmul.f32 0.2, %v6394_v9 }
 0xad1   : > { %v6668_v19 = vsel %vm1026_vm6, %v6553_v18, %v6534_v63 }
 0xad2   : > { %v6566_v38 = vrot.slane %v6462_v40, %v9555_v11 }
 0xad3   : > { %v6391_v12 = vpop.xlane.xlu1 %6390  ;;  %v6397_v5 = vpop.xlane.xlu0 %6396 }
 0xad4   : > { %v6463_v33 = vmul.f32 0.2, %v6391_v12  ;;  %v6465_v51 = vmul.f32 0.2, %v6397_v5  ;;  %v6567_v28 = vsel %vm884_vm4, %v6566_v38, %v6562_v58 }
 0xad6   : > { %v6571_v12 = vrot.slane %v6463_v33, %v9558_v16  ;;  %v6580_v6 = vrot.slane %v6465_v51, %v9552_v7  ;;  %v6576_v33 = vrot.slane %v6464_v21, %v9549_v52 }
 0xad7   : > { %v6406_v60 = vpop.xlane.xlu1 %6405  ;;  %v6400_v45 = vpop.xlane.xlu0 %6399 }
 0xad8   : > { %v6468_v23 = vmul.f32 0.2, %v6406_v60  ;;  %v6466_v39 = vmul.f32 0.2, %v6400_v45  ;;  %v6572_v10 = vsel %vm891_vm5, %v6571_v12, %v6567_v28  ;;  %v6581_v45 = vsel %vm877_vm3, %v6580_v6, %v6576_v33 }
 0xada   : > { %v6595_v60 = vrot.slane %v6468_v23, %v9549_v52 }
 0xadb   : > { %v6403_v34 = vpop.xlane.xlu1 %6402  ;;  %v6409_v53 = vpop.xlane.xlu0 %6408 }
 0xadc   : > { %v6469_v30 = vmul.f32 0.2, %v6409_v53  ;;  %v6467_v47 = vmul.f32 0.2, %v6403_v34  ;;  %v6585_v34 = vrot.slane %v6466_v39, %v9555_v11 }
 0xade   : > { %v6599_v5 = vrot.slane %v6469_v30, %v9552_v7  ;;  %v6586_v6 = vsel %vm884_vm4, %v6585_v34, %v6581_v45 }
 0xadf   : > { %v6418_v13 = vpop.xlane.xlu1 %6417  ;;  %v6412_v25 = vpop.xlane.xlu0 %6411 }
 0xae0   : > { %v6470_v57 = vmul.f32 0.2, %v6412_v25  ;;  %v6472_v1 = vmul.f32 0.2, %v6418_v13  ;;  %v6600_v25 = vsel %vm877_vm3, %v6599_v5, %v6595_v60 }
 0xae2   : > { %v6604_v30 = vrot.slane %v6470_v57, %v9555_v11  ;;  %v6614_v58 = vrot.slane %v6472_v1, %v9549_v52 }
 0xae3   : > { %v6415_v46 = vpop.xlane.xlu1 %6414  ;;  %v6421_v2 = vpop.xlane.xlu0 %6420 }
 0xae4   : > { %v6471_v53 = vmul.f32 0.2, %v6415_v46  ;;  %v6473_v40 = vmul.f32 0.2, %v6421_v2  ;;  %v6590_v46 = vrot.slane %v6467_v47, %v9558_v16  ;;  %v6605_v39 = vsel %vm884_vm4, %v6604_v30, %v6600_v25 }
 0xae6   : > { %v6609_v38 = vrot.slane %v6471_v53, %v9558_v16  ;;  %v6591_v5 = vsel %vm891_vm5, %v6590_v46, %v6586_v6 }
 0xae7   : > { %v6430_v44 = vpop.xlane.xlu1 %6429  ;;  %v6424_v61 = vpop.xlane.xlu0 %6423 }
 0xae8   : > { %v6474_v32 = vmul.f32 0.2, %v6424_v61  ;;  %v6476_v2 = vmul.f32 0.2, %v6430_v44  ;;  %v6618_v61 = vrot.slane %v6473_v40, %v9552_v7  ;;  %v6610_v53 = vsel %vm891_vm5, %v6609_v38, %v6605_v39 }
 0xae9   : > { %v6686_v39 = vmul.f32 0.95122945, %v12332_v54 }
 0xaea   : > { %v6623_v13 = vrot.slane %v6474_v32, %v9555_v11  ;;  %v6633_v57 = vrot.slane %v6476_v2, %v9549_v52  ;;  %v6619_v40 = vsel %vm877_vm3, %v6618_v61, %v6614_v58 }
 0xaeb   : > { %v6427_v8 = vpop.xlane.xlu1 %6426  ;;  %v6433_v24 = vpop.xlane.xlu0 %6432 }
 0xaec   : > { %v6477_v37 = vmul.f32 0.2, %v6433_v24  ;;  %v6475_v18 = vmul.f32 0.2, %v6427_v8  ;;  %v6624_v32 = vsel %vm884_vm4, %v6623_v13, %v6619_v40 }
 0xaee   : > { %v6637_v8 = vrot.slane %v6477_v37, %v9552_v7  ;;  %v6628_v44 = vrot.slane %v6475_v18, %v9558_v16  ;;  %v6669_v18 = vsel %vm1028_vm7, %v6572_v10, %v6668_v19 }
 0xaef   : > { %v6442_v0 = vpop.xlane.xlu1 %6441  ;;  %v6436_v9 = vpop.xlane.xlu0 %6435  ;;  %v6670_v30 = vsel %vm1030_vm8, %v6591_v5, %v6669_v18 }
 0xaf0   : > { %v6478_v63 = vmul.f32 0.2, %v6436_v9  ;;  %v6480_v23 = vmul.f32 0.2, %v6442_v0  ;;  %v6638_v37 = vsel %vm877_vm3, %v6637_v8, %v6633_v57  ;;  %v6671_v38 = vsel %vm1032_vm9, %v6610_v53, %v6670_v30 }
 0xaf1   : > { %v6677_v8 = vmul.f32 0.9048374, %v12320_v49 }
 0xaf2   : > { %v6642_v28 = vrot.slane %v6478_v63, %v9555_v11  ;;  %v6629_v63 = vsel %vm891_vm5, %v6628_v44, %v6624_v32  ;;  %v6652_v45 = vrot.slane %v6480_v23, %v9549_v52  ;;  %v6679_v44 = vmul.f32 0.95122945, %v12324_v59 }
 0xaf3   : > { %v6439_v51 = vpop.xlane.xlu1 %6438  ;;  %v6445_v24 = vpop.xlane.xlu0 %6444  ;;  %v6672_v19 = vsel %vm1034_vm10, %v6629_v63, %v6671_v38 }
 0xaf4   : > { %v6479_v21 = vmul.f32 0.2, %v6439_v51  ;;  %v6481_v12 = vmul.f32 0.2, %v6445_v24  ;;  %v6643_v34 = vsel %vm884_vm4, %v6642_v28, %v6638_v37 }
 0xaf6   : > { %v6647_v47 = vrot.slane %v6479_v21, %v9558_v16  ;;  %v6656_v9 = vrot.slane %v6481_v12, %v9552_v7  ;;  %v8665_v21 = vld [vmem:[#allocation2 + $0x30] sm:$0xff] }
 0xaf7   : > { %v6451_v33 = vpop.xlane.xlu1 %6450  ;;  %v6448_v0 = vpop.xlane.xlu0 %6447 }
 0xaf8   : > { %v6483_v60 = vmul.f32 0.2, %v6451_v33  ;;  %v6482_v1 = vmul.f32 0.2, %v6448_v0  ;;  %v6648_v2 = vsel %vm891_vm5, %v6647_v47, %v6643_v34  ;;  %v6657_v61 = vsel %vm877_vm3, %v6656_v9, %v6652_v45  ;;  %v14201_v0 = vld [vmem:[#allocation32_spill] sm:$0xff] }
 0xaf9   : > { %v6673_v51 = vsel %vm1036_vm11, %v6648_v2, %v6672_v19  ;;  %v6889_v32 = vrot.slane %v14201_v0, %v9304_v17  ;;  %v14202_v2 = vld [vmem:[#allocation31_spill] sm:$0xff] }
 0xafa   : > { %v6666_v46 = vrot.slane %v6483_v60, %v9558_v16  ;;  %v6661_v25 = vrot.slane %v6482_v1, %v9555_v11 }
 0xafb   : > { %v6905_v37 = vrot.slane %v6889_v32, %v9304_v17  ;;  %v6897_v60 = vcombine.high %v6889_v32, %v6889_v32 }
 0xafc   : > { %v6662_v10 = vsel %vm884_vm4, %v6661_v25, %v6657_v61 }
 0xafd   : > { %v6667_v24 = vsel %vm891_vm5, %v6666_v46, %v6662_v10  ;;  %v12892_v63 = vrot.slane %v6905_v37, %v9314_v26  ;;  %v12897_v30 = vrot.slane %v6897_v60, %v9304_v17  ;;  %v7182_v46 = vrot.slane %v14202_v2, %v9304_v17 }
 0xafe   : > { %v6674_v13 = vsel %vm1038_vm12, %v6667_v24, %v6673_v51 }
 0xaff   : > { %v6676_v12 = vadd.f32 %v8665_v21, %v6674_v13  ;;  %v6927_v21 = vcombine.high %v6905_v37, %v6905_v37 }
 0xb01   : > { %v12858_v58 = vadd.f32 %v6677_v8, %v6676_v12  ;;  %v7190_v12 = vcombine.high %v7182_v46, %v7182_v46  ;;  %v12924_v37 = vrot.slane %v6927_v21, %v9314_v26 }
 0xb03   : > { %v6680_v23 = vmul.f32 0.048770577, %v12858_v58 }
 0xb05   : > { %v12862_v28 = vadd.f32 %v6680_v23, %v6679_v44  ;;  %v7175_v44 = vcombine.high %v14202_v2, %v14202_v2  ;;  %v8666_v23 = vld [vmem:[%s9190_s13 + $0x8] sm:$0xff] }
 0xb07   : > { %8538 = vtanh.f32 %v12862_v28 }
 0xb11   : > { %v8539_v6 = vpop.eup %8538 }
 0xb12   : > { %v6687_v57 = vmul.f32 0.048770577, %v8539_v6  ;;  %v7131_v47 = vsel %vm319_vm0, %v14161_v41, %v8539_v6 }
 0xb13   : > { %8344 = vst.msk [vmem:[%s9638_s26 + $0x30] sm:$0xff] %vm473_vm2, %v7131_v47 }
 0xb14   : > { %v12870_v49 = vadd.f32 %v6687_v57, %v6686_v39  ;;  %v8667_v39 = vld [vmem:[%s9190_s13] sm:$0xff] }
 0xb16   : > { %v6692_v59 = vrot.slane %v12870_v49, %v9314_v26  ;;  %v6712_v5 = vrot.slane %v12870_v49, %v9645_v15  ;;  %v6732_v54 = vrot.slane %v12870_v49, %v9650_v31  ;;  %v6752_v41 = vrot.slane %v12870_v49, %v9655_v42 }
 0xb17   : > { %v6772_v53 = vrot.slane %v12870_v49, %v9660_v29  ;;  %v6792_v40 = vrot.slane %v12870_v49, %v9665_v4  ;;  %v6812_v9 = vrot.slane %v12870_v49, %v9670_v55  ;;  %v6832_v33 = vrot.slane %v12870_v49, %v9675_v27 }
 0xb18   : > { %6699 = vbcast.lane.b32.xlu1 %v6692_v59, 296  ;;  %6695 = vbcast.lane.b32.xlu0 %v6692_v59, 288 }
 0xb1c   : > { %6715 = vbcast.lane.b32.xlu1 %v6712_v5, 288  ;;  %6703 = vbcast.lane.b32.xlu0 %v6692_v59, 304 }
 0xb20   : > { %6719 = vbcast.lane.b32.xlu1 %v6712_v5, 296  ;;  %6735 = vbcast.lane.b32.xlu0 %v6732_v54, 288 }
 0xb24   : > { %6723 = vbcast.lane.b32.xlu1 %v6712_v5, 304  ;;  %6707 = vbcast.lane.b32.xlu0 %v6692_v59, 312 }
 0xb28   : > { %6739 = vbcast.lane.b32.xlu1 %v6732_v54, 296  ;;  %6743 = vbcast.lane.b32.xlu0 %v6732_v54, 304 }
 0xb2c   : > { %6727 = vbcast.lane.b32.xlu1 %v6712_v5, 312  ;;  %6759 = vbcast.lane.b32.xlu0 %v6752_v41, 296 }
 0xb30   : > { %6755 = vbcast.lane.b32.xlu1 %v6752_v41, 288  ;;  %6763 = vbcast.lane.b32.xlu0 %v6752_v41, 304 }
 0xb34   : > { %6747 = vbcast.lane.b32.xlu1 %v6732_v54, 312  ;;  %6779 = vbcast.lane.b32.xlu0 %v6772_v53, 296 }
 0xb38   : > { %6775 = vbcast.lane.b32.xlu1 %v6772_v53, 288  ;;  %6783 = vbcast.lane.b32.xlu0 %v6772_v53, 304 }
 0xb3c   : > { %6767 = vbcast.lane.b32.xlu1 %v6752_v41, 312  ;;  %6799 = vbcast.lane.b32.xlu0 %v6792_v40, 296 }
 0xb40   : > { %6795 = vbcast.lane.b32.xlu1 %v6792_v40, 288  ;;  %6803 = vbcast.lane.b32.xlu0 %v6792_v40, 304 }
 0xb44   : > { %6787 = vbcast.lane.b32.xlu1 %v6772_v53, 312  ;;  %6819 = vbcast.lane.b32.xlu0 %v6812_v9, 296  ;;  %v6882_v53 = vcombine.high %v14201_v0, %v14201_v0  ;;  %v8668_v0 = vld [vmem:[%s9190_s13 + $0x20] sm:$0xff] }
 0xb48   : > { %6815 = vbcast.lane.b32.xlu1 %v6812_v9, 288  ;;  %6823 = vbcast.lane.b32.xlu0 %v6812_v9, 304 }
 0xb4c   : > { %6807 = vbcast.lane.b32.xlu1 %v6792_v40, 312  ;;  %6839 = vbcast.lane.b32.xlu0 %v6832_v33, 296 }
 0xb50   : > { %6835 = vbcast.lane.b32.xlu1 %v6832_v33, 288  ;;  %6843 = vbcast.lane.b32.xlu0 %v6832_v33, 304 }
 0xb54   : > { %6827 = vbcast.lane.b32.xlu1 %v6812_v9, 312 }
 0xb58   : > { %6847 = vbcast.lane.b32.xlu1 %v6832_v33, 312  ;;  %v7198_v33 = vrot.slane %v7182_v46, %v9304_v17 }
 0xb8a   : > { %v6700_v1 = vpop.permute.xlu1 %6699  ;;  %v6696_v18 = vpop.permute.xlu0 %6695 }
 0xb8b   : > { %v6932_v45 = vmul.f32 %v6700_v1, %v12426_v50  ;;  %v6931_v34 = vmul.f32 %v6696_v18, %v12429_v14  ;;  %v6850_v25 = vmul.f32 0.05, %v6700_v1  ;;  %v6849_v61 = vmul.f32 0.05, %v6696_v18 }
 0xb8c   : > { %v12905_v14 = vrot.slane %v12897_v30, %v9314_v26  ;;  %v12928_v1 = vrot.slane %v7175_v44, %v9304_v17 }
 0xb8d   : > { %v7004_v38 = vsub.f32 %v12892_v63, %v6932_v45  ;;  %v7003_v19 = vsub.f32 %v12892_v63, %v6931_v34 }
 0xb8e   : > { %v6716_v10 = vpop.permute.xlu1 %6715  ;;  %v6704_v51 = vpop.permute.xlu0 %6703  ;;  %v12951_v21 = vrot.slane %v12928_v1, %v9304_v17 }
 0xb8f   : > { %v7036_v24 = vmul.f32 %v7004_v38, %v6850_v25  ;;  %v7035_v50 = vmul.f32 %v7003_v19, %v6849_v61  ;;  %v6935_v13 = vmul.f32 %v6716_v10, %v12456_v56  ;;  %v6933_v8 = vmul.f32 %v6704_v51, %v12484_v35 }
 0xb90   : > { %v6853_v47 = vmul.f32 0.05, %v6716_v10  ;;  %v6851_v5 = vmul.f32 0.05, %v6704_v51  ;;  %v12938_v10 = vrot.slane %v6882_v53, %v9304_v17 }
 0xb91   : > { %v7068_v6 = vadd.f32 %v8666_v23, %v7036_v24  ;;  %v7067_v57 = vadd.f32 %v8667_v39, %v7035_v50  ;;  %v7007_v59 = vsub.f32 %v12905_v14, %v6935_v13  ;;  %v7005_v56 = vsub.f32 %v12892_v63, %v6933_v8 }
 0xb92   : > { %v6720_v54 = vpop.permute.xlu1 %6719  ;;  %v6736_v41 = vpop.permute.xlu0 %6735  ;;  %v12944_v50 = vrot.slane %v7198_v33, %v9314_v26  ;;  %v7220_v13 = vcombine.high %v7198_v33, %v7198_v33  ;;  %v12967_v53 = vrot.slane %v12938_v10, %v9304_v17 }
 0xb93   : > { %7100 = vst.msk [vmem:[%s9190_s13 + $0x8] sm:$0xff] %vm319_vm0, %v7068_v6  ;;  %7099 = vst.msk [vmem:[%s9190_s13] sm:$0xff] %vm319_vm0, %v7067_v57  ;;  %v7039_v40 = vmul.f32 %v7007_v59, %v6853_v47  ;;  %v6936_v9 = vmul.f32 %v6720_v54, %v12481_v36  ;;  %v7037_v32 = vmul.f32 %v7005_v56, %v6851_v5  ;;  %v6854_v45 = vmul.f32 0.05, %v6720_v54 }
 0xb94   : > { %v6939_v60 = vmul.f32 %v6736_v41, %v12508_v3  ;;  %v12933_v36 = vrot.slane %v7190_v12, %v9304_v17  ;;  %v6857_v25 = vmul.f32 0.05, %v6736_v41  ;;  %v7191_v12 = vcombine.high %v12928_v1, %v12928_v1 }
 0xb95   : > { %v7071_v18 = vadd.f32 %v8668_v0, %v7039_v40  ;;  %v7008_v34 = vsub.f32 %v12905_v14, %v6936_v9  ;;  %v7069_v46 = vadd.f32 %v7037_v32, %v12484_v35  ;;  %v12975_v33 = vrot.slane %v7220_v13, %v9314_v26 }
 0xb96   : > { %v7011_v38 = vsub.f32 %v12924_v37, %v6939_v60  ;;  %v6724_v61 = vpop.permute.xlu1 %6723  ;;  %v6708_v19 = vpop.permute.xlu0 %6707  ;;  %v12959_v39 = vrot.slane %v12933_v36, %v9314_v26 }
 0xb97   : > { %7103 = vst.msk [vmem:[%s9190_s13 + $0x20] sm:$0xff] %vm319_vm0, %v7071_v18  ;;  %v7040_v51 = vmul.f32 %v7008_v34, %v6854_v45  ;;  %v6937_v24 = vmul.f32 %v6724_v61, %v12514_v22  ;;  %7101 = vst.msk [vmem:[%s9190_s13 + $0x10] sm:$0xff] %vm319_vm0, %v7069_v46  ;;  %v6934_v8 = vmul.f32 %v6708_v19, %v12541_v43  ;;  %v8669_v22 = vld [vmem:[%s9190_s13 + $0x28] sm:$0xff]  ;;  %v6855_v23 = vmul.f32 0.05, %v6724_v61  ;;  %v8670_v18 = vld [vmem:[%s9190_s13 + $0x30] sm:$0xff] }
 0xb98   : > { %v7043_v35 = vmul.f32 %v7011_v38, %v6857_v25  ;;  %v6852_v47 = vmul.f32 0.05, %v6708_v19 }
 0xb99   : > { %v7072_v44 = vadd.f32 %v8669_v22, %v7040_v51  ;;  %v7009_v6 = vsub.f32 %v12905_v14, %v6937_v24  ;;  %v7006_v59 = vsub.f32 %v12892_v63, %v6934_v8 }
 0xb9a   : > { %v7075_v57 = vadd.f32 %v7043_v35, %v12508_v3  ;;  %v6740_v5 = vpop.permute.xlu1 %6739  ;;  %v6744_v56 = vpop.permute.xlu0 %6743  ;;  %v7143_v54 = vld [vmem:[%s9190_s13 + $0x8] sm:$0xff]  ;;  %v7142_v41 = vld [vmem:[%s9190_s13] sm:$0xff]  ;;  %v6929_v3 = vcombine.high %v12897_v30, %v12897_v30 }
 0xb9b   : > { %7104 = vst.msk [vmem:[%s9190_s13 + $0x28] sm:$0xff] %vm319_vm0, %v7072_v44  ;;  %v7041_v40 = vmul.f32 %v7009_v6, %v6855_v23  ;;  %v6940_v9 = vmul.f32 %v6740_v5, %v12538_v20  ;;  %v7038_v63 = vmul.f32 %v7006_v59, %v6852_v47  ;;  %v6941_v32 = vmul.f32 %v6744_v56, %v12561_v62  ;;  %v14203_v44 = vld [vmem:[#allocation18_spill] sm:$0xff] }
 0xb9c   : > { %7107 = vst.msk [vmem:[%s9190_s13 + $0x40] sm:$0xff] %vm319_vm0, %v7075_v57  ;;  %v7265_v60 = vmul.f32 %v12944_v50, %v7143_v54  ;;  %v7264_v0 = vmul.f32 %v12944_v50, %v7142_v41  ;;  %v6858_v20 = vmul.f32 0.05, %v6740_v5  ;;  %v6859_v34 = vmul.f32 0.05, %v6744_v56  ;;  %v8671_v57 = vld [vmem:[%s9190_s13 + $0x48] sm:$0xff] }
 0xb9d   : > { %v7073_v45 = vadd.f32 %v8670_v18, %v7041_v40  ;;  %v7012_v30 = vsub.f32 %v12924_v37, %v6940_v9  ;;  %v7070_v46 = vadd.f32 %v7038_v63, %v12541_v43  ;;  %v7013_v25 = vsub.f32 %v12924_v37, %v6941_v32  ;;  %v14204_v32 = vld [vmem:[#allocation22_spill] sm:$0xff]  ;;  %v14205_v18 = vld [vmem:[#allocation16_spill] sm:$0xff] }
 0xb9e   : > { %v7299_v38 = vsel %vm319_vm0, %v7265_v60, 0.0  ;;  %v6728_v61 = vpop.permute.xlu1 %6727  ;;  %v7296_v19 = vsel %vm319_vm0, %v7264_v0, 0.0  ;;  %v6760_v51 = vpop.permute.xlu0 %6759  ;;  %v7146_v24 = vld [vmem:[%s9190_s13 + $0x20] sm:$0xff]  ;;  %v6898_v43 = vcombine.high %v12938_v10, %v12938_v10  ;;  %v12997_v22 = vrot.slane %v6929_v3, %v9314_v26  ;;  %v13010_v63 = vld [vmem:[%s9190_s13 + $0x10] sm:$0xff] }
 0xb9f   : > { %7105 = vst.msk [vmem:[%s9190_s13 + $0x30] sm:$0xff] %vm319_vm0, %v7073_v45  ;;  %v7044_v13 = vmul.f32 %v7012_v30, %v6858_v20  ;;  %7300 = vadd.xlane.f32.xlu1 %v7299_v38  ;;  %v6938_v35 = vmul.f32 %v6728_v61, %v12567_v48  ;;  %7297 = vadd.xlane.f32.xlu0 %v7296_v19  ;;  %7102 = vst.msk [vmem:[%s9190_s13 + $0x18] sm:$0xff] %vm319_vm0, %v7070_v46  ;;  %v6856_v48 = vmul.f32 0.05, %v6728_v61 }
 0xba0   : > { %v7045_v8 = vmul.f32 %v7013_v25, %v6859_v34  ;;  %v6944_v23 = vmul.f32 %v6760_v51, %v14203_v44  ;;  %v7268_v6 = vmul.f32 %v12959_v39, %v7146_v24  ;;  %v7222_v10 = vcombine.high %v12933_v36, %v12933_v36  ;;  %v8672_v34 = vld [vmem:[%s9190_s13 + $0x38] sm:$0xff] }
 0xba1   : > { %v7076_v47 = vadd.f32 %v8671_v57, %v7044_v13  ;;  %v7010_v59 = vsub.f32 %v12905_v14, %v6938_v35  ;;  %v6862_v56 = vmul.f32 0.05, %v6760_v51  ;;  %v13021_v36 = vrot.slane %v12951_v21, %v9314_v26  ;;  %v14206_v57 = vld [vmem:[#allocation34_spill] sm:$0xff] }
 0xba2   : > { %v7077_v5 = vadd.f32 %v7045_v8, %v12561_v62  ;;  %v7016_v54 = vsub.f32 %v12997_v22, %v6944_v23  ;;  %v6756_v41 = vpop.permute.xlu1 %6755  ;;  %v7308_v40 = vsel %vm319_vm0, %v7268_v6, 0.0  ;;  %v6764_v9 = vpop.permute.xlu0 %6763  ;;  %v7147_v3 = vld [vmem:[%s9190_s13 + $0x28] sm:$0xff]  ;;  %v13017_v62 = vrot.slane %v12967_v53, %v9314_v26 }
 0xba3   : > { %7108 = vst.msk [vmem:[%s9190_s13 + $0x48] sm:$0xff] %vm319_vm0, %v7076_v47  ;;  %v7042_v14 = vmul.f32 %v7010_v59, %v6856_v48  ;;  %v6943_v60 = vmul.f32 %v6756_v41, %v14204_v32  ;;  %7309 = vadd.xlane.f32.xlu0 %v7308_v40  ;;  %v6945_v45 = vmul.f32 %v6764_v9, %v14205_v18  ;;  %v6861_v25 = vmul.f32 0.05, %v6756_v41  ;;  %v13035_v19 = vld [vmem:[%s9190_s13 + $0x40] sm:$0xff] }
 0xba4   : > { %7109 = vst.msk [vmem:[%s9190_s13 + $0x50] sm:$0xff] %vm319_vm0, %v7077_v5  ;;  %v7048_v0 = vmul.f32 %v7016_v54, %v6862_v56  ;;  %v7269_v20 = vmul.f32 %v12959_v39, %v7147_v3  ;;  %v13028_v30 = vrot.slane %v6898_v43, %v9304_v17  ;;  %v7266_v61 = vmul.f32 %v12944_v50, %v13010_v63  ;;  %v14207_v5 = vld [vmem:[#allocation20_spill] sm:$0xff] }
 0xba5   : > { %v7074_v46 = vadd.f32 %v8672_v34, %v7042_v14  ;;  %v7015_v38 = vsub.f32 %v12997_v22, %v6943_v60  ;;  %v6863_v24 = vmul.f32 0.05, %v6764_v9  ;;  %v7017_v13 = vsub.f32 %v12997_v22, %v6945_v45  ;;  %v8673_v40 = vld [vmem:[%s9190_s13 + $0x60] sm:$0xff] }
 0xba6   : > { %v7080_v51 = vadd.f32 %v7048_v0, %v14203_v44  ;;  %v6748_v35 = vpop.permute.xlu1 %6747  ;;  %v7311_v43 = vsel %vm319_vm0, %v7269_v20, 0.0  ;;  %v6780_v8 = vpop.permute.xlu0 %6779  ;;  %v13041_v23 = vld [vmem:[%s9190_s13 + $0x30] sm:$0xff]  ;;  %v13047_v48 = vrot.slane %v7222_v10, %v9314_v26  ;;  %v6928_v44 = vcombine.high %v12967_v53, %v12967_v53 }
 0xba7   : > { %7106 = vst.msk [vmem:[%s9190_s13 + $0x38] sm:$0xff] %vm319_vm0, %v7074_v46  ;;  %v7047_v6 = vmul.f32 %v7015_v38, %v6861_v25  ;;  %v6942_v47 = vmul.f32 %v6748_v35, %v14206_v57  ;;  %7312 = vadd.xlane.f32.xlu0 %v7311_v43  ;;  %v7049_v59 = vmul.f32 %v7017_v13, %v6863_v24  ;;  %v6860_v9 = vmul.f32 0.05, %v6748_v35  ;;  %v13068_v25 = vld [vmem:[%s9190_s13 + $0x18] sm:$0xff] }
 0xba8   : > { %7112 = vst.msk [vmem:[%s9190_s13 + $0x68] sm:$0xff] %vm319_vm0, %v7080_v51  ;;  %v6948_v56 = vmul.f32 %v6780_v8, %v14207_v5  ;;  %v7270_v54 = vmul.f32 %v12959_v39, %v13041_v23  ;;  %v7272_v41 = vmul.f32 %v12975_v33, %v13035_v19  ;;  %v7302_v14 = vsel %vm319_vm0, %v7266_v61, 0.0  ;;  %v14208_v38 = vld [vmem:[#allocation19_spill] sm:$0xff] }
 0xba9   : > { %v7079_v10 = vadd.f32 %v8673_v40, %v7047_v6  ;;  %v7014_v3 = vsub.f32 %v12924_v37, %v6942_v47  ;;  %v7081_v32 = vadd.f32 %v7049_v59, %v14205_v18  ;;  %v6866_v60 = vmul.f32 0.05, %v6780_v8  ;;  %v14209_v24 = vld [vmem:[#allocation35_spill] sm:$0xff] }
 0xbaa   : > { %v7020_v0 = vsub.f32 %v13017_v62, %v6948_v56  ;;  %v7314_v45 = vsel %vm319_vm0, %v7270_v54, 0.0  ;;  %v6776_v20 = vpop.permute.xlu1 %6775  ;;  %v6784_v34 = vpop.permute.xlu0 %6783  ;;  %v13065_v46 = vld [vmem:[%s9190_s13 + $0x48] sm:$0xff]  ;;  %v13077_v18 = vrot.slane %v7191_v12, %v9304_v17  ;;  %v7320_v43 = vsel %vm319_vm0, %v7272_v41, 0.0  ;;  %v8674_v8 = vld [vmem:[%s9190_s13 + $0x58] sm:$0xff] }
 0xbab   : > { %7111 = vst.msk [vmem:[%s9190_s13 + $0x60] sm:$0xff] %vm319_vm0, %v7079_v10  ;;  %v7046_v37 = vmul.f32 %v7014_v3, %v6860_v9  ;;  %7315 = vadd.xlane.f32.xlu1 %v7314_v45  ;;  %v6947_v61 = vmul.f32 %v6776_v20, %v14208_v38  ;;  %7303 = vadd.xlane.f32.xlu0 %v7302_v14  ;;  %7113 = vst.msk [vmem:[%s9190_s13 + $0x70] sm:$0xff] %vm319_vm0, %v7081_v32  ;;  %v6865_v57 = vmul.f32 0.05, %v6776_v20  ;;  %v13090_v12 = vld [vmem:[%s9190_s13 + $0x50] sm:$0xff]  ;;  %v14210_v14 = vld [vmem:[#allocation36_spill] sm:$0xff] }
 0xbac   : > { %v7052_v51 = vmul.f32 %v7020_v0, %v6866_v60  ;;  %v6949_v13 = vmul.f32 %v6784_v34, %v14209_v24  ;;  %v7273_v35 = vmul.f32 %v12975_v33, %v13065_v46  ;;  %v7267_v1 = vmul.f32 %v12944_v50, %v13068_v25  ;;  %v14211_v60 = vld [vmem:[#allocation30_spill] sm:$0xff] }
 0xbad   : > { %v7078_v6 = vadd.f32 %v8674_v8, %v7046_v37  ;;  %v7019_v47 = vsub.f32 %v13017_v62, %v6947_v61  ;;  %v6867_v56 = vmul.f32 0.05, %v6784_v34  ;;  %v7274_v20 = vmul.f32 %v12975_v33, %v13090_v12  ;;  %v8675_v34 = vld [vmem:[%s9190_s13 + $0x80] sm:$0xff] }
 0xbae   : > { %v7084_v59 = vadd.f32 %v7052_v51, %v14207_v5  ;;  %v7021_v54 = vsub.f32 %v13017_v62, %v6949_v13  ;;  %v7323_v40 = vsel %vm319_vm0, %v7273_v35, 0.0  ;;  %v6768_v41 = vpop.permute.xlu1 %6767  ;;  %v6800_v10 = vpop.permute.xlu0 %6799  ;;  %v13096_v9 = vld [vmem:[%s9190_s13 + $0x38] sm:$0xff]  ;;  %v13103_v5 = vrot.slane %v13028_v30, %v9314_v26 }
 0xbaf   : > { %7110 = vst.msk [vmem:[%s9190_s13 + $0x58] sm:$0xff] %vm319_vm0, %v7078_v6  ;;  %v7051_v3 = vmul.f32 %v7019_v47, %v6865_v57  ;;  %7324 = vadd.xlane.f32.xlu1 %v7323_v40  ;;  %v6946_v50 = vmul.f32 %v6768_v41, %v14210_v14  ;;  %7321 = vadd.xlane.f32.xlu0 %v7320_v43  ;;  %v6864_v38 = vmul.f32 0.05, %v6768_v41  ;;  %v7305_v51 = vsel %vm319_vm0, %v7267_v1, 0.0  ;;  %v13122_v47 = vld [vmem:[%s9190_s13 + $0x68] sm:$0xff] }
 0xbb0   : > { %7116 = vst.msk [vmem:[%s9190_s13 + $0x88] sm:$0xff] %vm319_vm0, %v7084_v59  ;;  %v7053_v32 = vmul.f32 %v7021_v54, %v6867_v56  ;;  %v6952_v0 = vmul.f32 %v6800_v10, %v14211_v60  ;;  %v7271_v45 = vmul.f32 %v12959_v39, %v13096_v9  ;;  %v6870_v35 = vmul.f32 0.05, %v6800_v10  ;;  %v14212_v1 = vld [vmem:[#allocation29_spill] sm:$0xff]  ;;  %v14213_v54 = vld [vmem:[#allocation38_spill] sm:$0xff] }
 0xbb1   : > { %v7083_v37 = vadd.f32 %v8675_v34, %v7051_v3  ;;  %v7018_v61 = vsub.f32 %v12997_v22, %v6946_v50  ;;  %v7326_v10 = vsel %vm319_vm0, %v7274_v20, 0.0  ;;  %v8676_v3 = vld [vmem:[%s9190_s13 + $0x78] sm:$0xff]  ;;  %v7277_v53 = vmul.f32 %v13047_v48, %v13122_v47 }
 0xbb2   : > { %v7085_v13 = vadd.f32 %v7053_v32, %v14209_v24  ;;  %v7024_v43 = vsub.f32 %v13103_v5, %v6952_v0  ;;  %v7317_v8 = vsel %vm319_vm0, %v7271_v45, 0.0  ;;  %v6796_v39 = vpop.permute.xlu1 %6795  ;;  %v6804_v6 = vpop.permute.xlu0 %6803  ;;  %v13119_v57 = vld [vmem:[%s9190_s13 + $0x60] sm:$0xff]  ;;  %v13131_v24 = vrot.slane %v6928_v44, %v9314_v26  ;;  %v13144_v44 = vld [vmem:[%s9190_s13 + $0x70] sm:$0xff] }
 0xbb3   : > { %7115 = vst.msk [vmem:[%s9190_s13 + $0x80] sm:$0xff] %vm319_vm0, %v7083_v37  ;;  %v7050_v22 = vmul.f32 %v7018_v61, %v6864_v38  ;;  %7318 = vadd.xlane.f32.xlu1 %v7317_v8  ;;  %v6951_v59 = vmul.f32 %v6796_v39, %v14212_v1  ;;  %7306 = vadd.xlane.f32.xlu0 %v7305_v51  ;;  %v6869_v50 = vmul.f32 0.05, %v6796_v39  ;;  %v6871_v45 = vmul.f32 0.05, %v6804_v6  ;;  %v14215_v8 = vld [vmem:[#allocation39_spill] sm:$0xff] }
 0xbb4   : > { %7117 = vst.msk [vmem:[%s9190_s13 + $0x90] sm:$0xff] %vm319_vm0, %v7085_v13  ;;  %v7056_v56 = vmul.f32 %v7024_v43, %v6870_v35  ;;  %v6953_v40 = vmul.f32 %v6804_v6, %v14213_v54  ;;  %v7276_v41 = vmul.f32 %v13047_v48, %v13119_v57  ;;  %v14214_v13 = vld [vmem:[#allocation37_spill] sm:$0xff]  ;;  %v8677_v1 = vld [vmem:[%s9190_s13 + $0xa0] sm:$0xff] }
 0xbb5   : > { %v7082_v14 = vadd.f32 %v8676_v3, %v7050_v22  ;;  %v7023_v32 = vsub.f32 %v13103_v5, %v6951_v59  ;;  %v7278_v22 = vmul.f32 %v13047_v48, %v13144_v44 }
 0xbb6   : > { %v7088_v0 = vadd.f32 %v7056_v56, %v14211_v60  ;;  %v7025_v34 = vsub.f32 %v13103_v5, %v6953_v40  ;;  %v7332_v37 = vsel %vm319_vm0, %v7276_v41, 0.0  ;;  %v6788_v20 = vpop.permute.xlu1 %6787  ;;  %v6820_v38 = vpop.permute.xlu0 %6819  ;;  %v13150_v61 = vld [vmem:[%s9190_s13 + $0x58] sm:$0xff]  ;;  %v6930_v60 = vcombine.high %v13028_v30, %v13028_v30 }
 0xbb7   : > { %7114 = vst.msk [vmem:[%s9190_s13 + $0x78] sm:$0xff] %vm319_vm0, %v7082_v14  ;;  %v7055_v51 = vmul.f32 %v7023_v32, %v6869_v50  ;;  %7333 = vadd.xlane.f32.xlu1 %v7332_v37  ;;  %v6950_v35 = vmul.f32 %v6788_v20, %v14214_v13  ;;  %7327 = vadd.xlane.f32.xlu0 %v7326_v10  ;;  %v6868_v56 = vmul.f32 0.05, %v6788_v20  ;;  %v7335_v30 = vsel %vm319_vm0, %v7277_v53, 0.0  ;;  %v14218_v53 = vld [vmem:[#allocation40_spill] sm:$0xff]  ;;  %v14219_v37 = vld [vmem:[#allocation42_spill] sm:$0xff] }
 0xbb8   : > { %7120 = vst.msk [vmem:[%s9190_s13 + $0xa8] sm:$0xff] %vm319_vm0, %v7088_v0  ;;  %v7057_v43 = vmul.f32 %v7025_v34, %v6871_v45  ;;  %v6956_v39 = vmul.f32 %v6820_v38, %v14215_v8  ;;  %v7275_v6 = vmul.f32 %v12975_v33, %v13150_v61  ;;  %v6874_v10 = vmul.f32 0.05, %v6820_v38  ;;  %v13174_v0 = vld [vmem:[%s9190_s13 + $0x88] sm:$0xff]  ;;  %v8678_v13 = vld [vmem:[%s9190_s13 + $0x98] sm:$0xff] }
 0xbb9   : > { %v7087_v59 = vadd.f32 %v8677_v1, %v7055_v51  ;;  %v7022_v40 = vsub.f32 %v13017_v62, %v6950_v35  ;;  %14217 = vst [vmem:[#allocation45_spill] sm:$0xff] %v13174_v0  ;;  %v7338_v51 = vsel %vm319_vm0, %v7278_v22, 0.0 }
 0xbba   : > { %v7089_v41 = vadd.f32 %v7057_v43, %v14213_v54  ;;  %v7028_v3 = vsub.f32 %v13131_v24, %v6956_v39  ;;  %v7329_v14 = vsel %vm319_vm0, %v7275_v6, 0.0  ;;  %v6816_v33 = vpop.permute.xlu1 %6815  ;;  %v6824_v50 = vpop.permute.xlu0 %6823  ;;  %v13171_v32 = vld [vmem:[%s9190_s13 + $0x80] sm:$0xff]  ;;  %v13181_v54 = vrot.slane %v13077_v18, %v9314_v26 }
 0xbbb   : > { %14216 = vst [vmem:[#allocation46_spill] sm:$0xff] %v13171_v32  ;;  %7119 = vst.msk [vmem:[%s9190_s13 + $0xa0] sm:$0xff] %vm319_vm0, %v7087_v59  ;;  %v7054_v62 = vmul.f32 %v7022_v40, %v6868_v56  ;;  %7330 = vadd.xlane.f32.xlu1 %v7329_v14  ;;  %v6955_v45 = vmul.f32 %v6816_v33, %v14218_v53  ;;  %7336 = vadd.xlane.f32.xlu0 %v7335_v30  ;;  %v6873_v43 = vmul.f32 0.05, %v6816_v33  ;;  %v13194_v1 = vld [vmem:[%s9190_s13 + $0x90] sm:$0xff]  ;;  %v14222_v14 = vld [vmem:[#allocation44_spill] sm:$0xff] }
 0xbbc   : > { %7121 = vst.msk [vmem:[%s9190_s13 + $0xb0] sm:$0xff] %vm319_vm0, %v7089_v41  ;;  %v7060_v34 = vmul.f32 %v7028_v3, %v6874_v10  ;;  %v6957_v20 = vmul.f32 %v6824_v50, %v14219_v37  ;;  %v7280_v38 = vmul.f32 %v13021_v36, %v13171_v32  ;;  %v7281_v6 = vmul.f32 %v13021_v36, %v13174_v0 }
 0xbbd   : > { %v7086_v35 = vadd.f32 %v8678_v13, %v7054_v62  ;;  %v7027_v39 = vsub.f32 %v13131_v24, %v6955_v45  ;;  %14220 = vst [vmem:[#allocation43_spill] sm:$0xff] %v13194_v1  ;;  %v6875_v56 = vmul.f32 0.05, %v6824_v50  ;;  %v13206_v62 = vrot.slane %v6930_v60, %v9314_v26  ;;  %v14223_v50 = vld [vmem:[#allocation28_spill] sm:$0xff] }
 0xbbe   : > { %v7092_v59 = vadd.f32 %v7060_v34, %v14215_v8  ;;  %v7029_v40 = vsub.f32 %v13131_v24, %v6957_v20  ;;  %v7344_v30 = vsel %vm319_vm0, %v7280_v38, 0.0  ;;  %v6808_v22 = vpop.permute.xlu1 %6807  ;;  %v6840_v41 = vpop.permute.xlu0 %6839  ;;  %v13200_v10 = vld [vmem:[%s9190_s13 + $0x78] sm:$0xff]  ;;  %v7282_v34 = vmul.f32 %v13021_v36, %v13194_v1  ;;  %v8679_v20 = vld [vmem:[%s9190_s13 + $0xc0] sm:$0xff] }
 0xbbf   : > { %14221 = vst [vmem:[#allocation25_spill] sm:$0xff] %v13200_v10  ;;  %7118 = vst.msk [vmem:[%s9190_s13 + $0x98] sm:$0xff] %vm319_vm0, %v7086_v35  ;;  %v7059_v3 = vmul.f32 %v7027_v39, %v6873_v43  ;;  %7345 = vadd.xlane.f32.xlu1 %v7344_v30  ;;  %v6954_v33 = vmul.f32 %v6808_v22, %v14222_v14  ;;  %7339 = vadd.xlane.f32.xlu0 %v7338_v51  ;;  %v6872_v51 = vmul.f32 0.05, %v6808_v22  ;;  %v13225_v30 = vld [vmem:[%s9190_s13 + $0xa8] sm:$0xff] }
 0xbc0   : > { %7124 = vst.msk [vmem:[%s9190_s13 + $0xc8] sm:$0xff] %vm319_vm0, %v7092_v59  ;;  %v7061_v8 = vmul.f32 %v7029_v40, %v6875_v56  ;;  %v6960_v53 = vmul.f32 %v6840_v41, %v14223_v50  ;;  %v7279_v45 = vmul.f32 %v13047_v48, %v13200_v10  ;;  %v7347_v13 = vsel %vm319_vm0, %v7281_v6, 0.0  ;;  %14225 = vst [vmem:[#allocation47_spill] sm:$0xff] %v13225_v30  ;;  %v14226_v6 = vld [vmem:[#allocation27_spill] sm:$0xff] }
 0xbc1   : > { %v7091_v38 = vadd.f32 %v8679_v20, %v7059_v3  ;;  %v7026_v60 = vsub.f32 %v13103_v5, %v6954_v33  ;;  %v6878_v43 = vmul.f32 0.05, %v6840_v41  ;;  %v14227_v3 = vld [vmem:[#allocation41_spill] sm:$0xff]  ;;  %v8680_v50 = vld [vmem:[%s9190_s13 + $0xb8] sm:$0xff] }
 0xbc2   : > { %v7093_v35 = vadd.f32 %v7061_v8, %v14219_v37  ;;  %v7032_v39 = vsub.f32 %v13206_v62, %v6960_v53  ;;  %v7341_v59 = vsel %vm319_vm0, %v7279_v45, 0.0  ;;  %v6836_v48 = vpop.permute.xlu1 %6835  ;;  %v6844_v56 = vpop.permute.xlu0 %6843  ;;  %v13222_v40 = vld [vmem:[%s9190_s13 + $0xa0] sm:$0xff]  ;;  %v7221_v37 = vcombine.high %v12951_v21, %v12951_v21 }
 0xbc3   : > { %14224 = vst [vmem:[#allocation26_spill] sm:$0xff] %v13222_v40  ;;  %7123 = vst.msk [vmem:[%s9190_s13 + $0xc0] sm:$0xff] %vm319_vm0, %v7091_v38  ;;  %v7058_v5 = vmul.f32 %v7026_v60, %v6872_v51  ;;  %7342 = vadd.xlane.f32.xlu1 %v7341_v59  ;;  %v6959_v22 = vmul.f32 %v6836_v48, %v14226_v6  ;;  %7348 = vadd.xlane.f32.xlu0 %v7347_v13  ;;  %v7350_v8 = vsel %vm319_vm0, %v7282_v34, 0.0  ;;  %v8681_v38 = vld [vmem:[%s9190_s13 + $0xe8] sm:$0xff]  ;;  %v8682_v59 = vld [vmem:[%s9190_s13 + $0xd8] sm:$0xff] }
 0xbc4   : > { %7125 = vst.msk [vmem:[%s9190_s13 + $0xd0] sm:$0xff] %vm319_vm0, %v7093_v35  ;;  %v7064_v41 = vmul.f32 %v7032_v39, %v6878_v43  ;;  %v6961_v14 = vmul.f32 %v6844_v56, %v14227_v3  ;;  %v7284_v33 = vmul.f32 %v13181_v54, %v13222_v40  ;;  %v6877_v45 = vmul.f32 0.05, %v6836_v48 }
 0xbc5   : > { %v7090_v53 = vadd.f32 %v8680_v50, %v7058_v5  ;;  %v7031_v20 = vsub.f32 %v13206_v62, %v6959_v22  ;;  %v7285_v21 = vmul.f32 %v13181_v54, %v13225_v30  ;;  %v6879_v60 = vmul.f32 0.05, %v6844_v56  ;;  %v13254_v5 = vld [vmem:[%s9190_s13 + $0xb0] sm:$0xff] }
 0xbc6   : > { %v7096_v51 = vadd.f32 %v8681_v38, %v7064_v41  ;;  %v7033_v13 = vsub.f32 %v13206_v62, %v6961_v14  ;;  %v7356_v35 = vsel %vm319_vm0, %v7284_v33, 0.0  ;;  %v6828_v34 = vpop.permute.xlu1 %6827  ;;  %v13246_v43 = vld [vmem:[%s9190_s13 + $0x98] sm:$0xff]  ;;  %14229 = vst [vmem:[#allocation24_spill] sm:$0xff] %v13254_v5  ;;  %v7251_v22 = vrot.slane %v7221_v37, %v9314_v26  ;;  %v8683_v41 = vld [vmem:[%s9190_s13 + $0xe0] sm:$0xff]  ;;  %v8684_v50 = vld [vmem:[%s9190_s13 + $0xf0] sm:$0xff] }
 0xbc7   : > { %14228 = vst [vmem:[#allocation23_spill] sm:$0xff] %v13246_v43  ;;  %7122 = vst.msk [vmem:[%s9190_s13 + $0xb8] sm:$0xff] %vm319_vm0, %v7090_v53  ;;  %v7063_v39 = vmul.f32 %v7031_v20, %v6877_v45  ;;  %7357 = vadd.xlane.f32.xlu1 %v7356_v35  ;;  %v6958_v48 = vmul.f32 %v8682_v59, %v6828_v34  ;;  %7351 = vadd.xlane.f32.xlu0 %v7350_v8  ;;  %v6876_v14 = vmul.f32 0.05, %v6828_v34 }
 0xbc8   : > { %v7283_v56 = vmul.f32 %v13021_v36, %v13246_v43  ;;  %7128 = vst.msk [vmem:[%s9190_s13 + $0xe8] sm:$0xff] %vm319_vm0, %v7096_v51  ;;  %v7065_v6 = vmul.f32 %v7033_v13, %v6879_v60  ;;  %v7359_v45 = vsel %vm319_vm0, %v7285_v21, 0.0  ;;  %v7286_v38 = vmul.f32 %v13181_v54, %v13254_v5  ;;  %v13274_v13 = vld [vmem:[%s9190_s13 + $0xc8] sm:$0xff] }
 0xbc9   : > { %v7095_v3 = vadd.f32 %v8683_v41, %v7063_v39  ;;  %v7030_v33 = vsub.f32 %v13131_v24, %v6958_v48  ;;  %v8685_v24 = vld [vmem:[%s9190_s13 + $0xf8] sm:$0xff]  ;;  %14231 = vst [vmem:[#allocation17_spill] sm:$0xff] %v13274_v13  ;;  %v7223_v21 = vcombine.high %v13077_v18, %v13077_v18  ;;  %v7289_v41 = vmul.f32 %v7251_v22, %v13274_v13 }
 0xbca   : > { %v7353_v8 = vsel %vm319_vm0, %v7283_v56, 0.0  ;;  %v7097_v36 = vadd.f32 %v8684_v50, %v7065_v6  ;;  %v6848_v53 = vpop.permute.xlu1 %6847  ;;  %v13265_v20 = vld [vmem:[%s9190_s13 + $0xc0] sm:$0xff]  ;;  %v7362_v56 = vsel %vm319_vm0, %v7286_v38, 0.0 }
 0xbcb   : > { %14230 = vst [vmem:[#allocation21_spill] sm:$0xff] %v13265_v20  ;;  %7127 = vst.msk [vmem:[%s9190_s13 + $0xe0] sm:$0xff] %vm319_vm0, %v7095_v3  ;;  %v7062_v37 = vmul.f32 %v7030_v33, %v6876_v14  ;;  %7354 = vadd.xlane.f32.xlu1 %v7353_v8  ;;  %v6962_v51 = vmul.f32 %v8685_v24, %v6848_v53  ;;  %7360 = vadd.xlane.f32.xlu0 %v7359_v45  ;;  %v6880_v34 = vmul.f32 0.05, %v6848_v53 }
 0xbcc   : > { %v7288_v60 = vmul.f32 %v7251_v22, %v13265_v20  ;;  %7129 = vst.msk [vmem:[%s9190_s13 + $0xf0] sm:$0xff] %vm319_vm0, %v7097_v36  ;;  %v7255_v33 = vrot.slane %v7223_v21, %v9314_v26  ;;  %v7371_v8 = vsel %vm319_vm0, %v7289_v41, 0.0 }
 0xbcd   : > { %v7094_v35 = vadd.f32 %v8682_v59, %v7062_v37  ;;  %v7034_v39 = vsub.f32 %v13206_v62, %v6962_v51  ;;  %v13292_v62 = vld [vmem:[%s9190_s13 + $0xd0] sm:$0xff] }
 0xbce   : > { %v7368_v48 = vsel %vm319_vm0, %v7288_v60, 0.0  ;;  %v13284_v6 = vld [vmem:[%s9190_s13 + $0xb8] sm:$0xff]  ;;  %14233 = vst [vmem:[#allocation31_spill] sm:$0xff] %v13292_v62  ;;  %v7290_v36 = vmul.f32 %v7251_v22, %v13292_v62 }
 0xbcf   : > { %14232 = vst [vmem:[#allocation32_spill] sm:$0xff] %v13284_v6  ;;  %7126 = vst.msk [vmem:[%s9190_s13 + $0xd8] sm:$0xff] %vm319_vm0, %v7094_v35  ;;  %v7066_v3 = vmul.f32 %v7034_v39, %v6880_v34  ;;  %7369 = vadd.xlane.f32.xlu1 %v7368_v48  ;;  %7363 = vadd.xlane.f32.xlu0 %v7362_v56  ;;  %v7287_v18 = vmul.f32 %v13181_v54, %v13284_v6  ;;  %v13305_v53 = vld [vmem:[%s9190_s13 + $0xe8] sm:$0xff] }
 0xbd0   : > { %14235 = vst [vmem:[#allocation22_spill] sm:$0xff] %v13305_v53  ;;  %v7374_v38 = vsel %vm319_vm0, %v7290_v36, 0.0 }
 0xbd1   : > { %v7098_v59 = vadd.f32 %v8685_v24, %v7066_v3  ;;  %v7365_v14 = vsel %vm319_vm0, %v7287_v18, 0.0  ;;  %v7293_v24 = vmul.f32 %v7255_v33, %v13305_v53 }
 0xbd2   : > { %v13298_v50 = vld [vmem:[%s9190_s13 + $0xe0] sm:$0xff] }
 0xbd3   : > { %14234 = vst [vmem:[#allocation18_spill] sm:$0xff] %v13298_v50  ;;  %7130 = vst.msk [vmem:[%s9190_s13 + $0xf8] sm:$0xff] %vm319_vm0, %v7098_v59  ;;  %7366 = vadd.xlane.f32.xlu1 %v7365_v14  ;;  %7372 = vadd.xlane.f32.xlu0 %v7371_v8  ;;  %v7292_v54 = vmul.f32 %v7255_v33, %v13298_v50  ;;  %v13315_v60 = vld [vmem:[%s9190_s13 + $0xf0] sm:$0xff]  ;;  %v7383_v35 = vsel %vm319_vm0, %v7293_v24, 0.0 }
 0xbd4   : > { %14237 = vst [vmem:[#allocation34_spill] sm:$0xff] %v13315_v60  ;;  %v7294_v39 = vmul.f32 %v7255_v33, %v13315_v60 }
 0xbd5   : > { %v7380_v45 = vsel %vm319_vm0, %v7292_v54, 0.0 }
 0xbd6   : > { %v13310_v37 = vld [vmem:[%s9190_s13 + $0xd8] sm:$0xff]  ;;  %v7386_v41 = vsel %vm319_vm0, %v7294_v39, 0.0 }
 0xbd7   : > { %14236 = vst [vmem:[#allocation16_spill] sm:$0xff] %v13310_v37  ;;  %7381 = vadd.xlane.f32.xlu1 %v7380_v45  ;;  %7375 = vadd.xlane.f32.xlu0 %v7374_v38  ;;  %v7291_v51 = vmul.f32 %v7251_v22, %v13310_v37 }
 0xbd9   : > { %v7377_v21 = vsel %vm319_vm0, %v7291_v51, 0.0 }
 0xbda   : > { %v13320_v34 = vld [vmem:[%s9190_s13 + $0xf8] sm:$0xff] }
 0xbdb   : > { %14238 = vst [vmem:[#allocation20_spill] sm:$0xff] %v13320_v34  ;;  %7378 = vadd.xlane.f32.xlu1 %v7377_v21  ;;  %7384 = vadd.xlane.f32.xlu0 %v7383_v35  ;;  %v7295_v48 = vmul.f32 %v7255_v33, %v13320_v34 }
 0xbdd   : > { %v7389_v56 = vsel %vm319_vm0, %v7295_v48, 0.0 }
 0xbdf   : > { %7390 = vadd.xlane.f32.xlu1 %v7389_v56  ;;  %7387 = vadd.xlane.f32.xlu0 %v7386_v41 }
 0xc2c   : > { %v7298_v22 = vpop.xlane.xlu0 %7297  ;;  %v7301_v18 = vpop.xlane.xlu1 %7300 }
 0xc2d   : > { %v7393_v53 = vmul.f32 0.2, %v7301_v18  ;;  %v7392_v60 = vmul.f32 0.2, %v7298_v22 }
 0xc2f   : > { %v7463_v43 = vrot.slane %v7393_v53, %v9552_v7  ;;  %v7459_v40 = vrot.slane %v7392_v60, %v9549_v52 }
 0xc30   : > { %v7310_v3 = vpop.xlane.xlu0 %7309 }
 0xc31   : > { %v7396_v62 = vmul.f32 0.2, %v7310_v3  ;;  %v7464_v53 = vsel %vm877_vm3, %v7463_v43, %v7459_v40 }
 0xc34   : > { %v7313_v59 = vpop.xlane.xlu0 %7312 }
 0xc35   : > { %v7397_v37 = vmul.f32 0.2, %v7313_v59  ;;  %v7478_v59 = vrot.slane %v7396_v62, %v9549_v52 }
 0xc37   : > { %v7482_v0 = vrot.slane %v7397_v37, %v9552_v7 }
 0xc38   : > { %v7316_v14 = vpop.xlane.xlu1 %7315  ;;  %v7304_v8 = vpop.xlane.xlu0 %7303 }
 0xc39   : > { %v7398_v50 = vmul.f32 0.2, %v7316_v14  ;;  %v7394_v13 = vmul.f32 0.2, %v7304_v8  ;;  %v7483_v60 = vsel %vm877_vm3, %v7482_v0, %v7478_v59 }
 0xc3b   : > { %v7487_v1 = vrot.slane %v7398_v50, %v9555_v11  ;;  %v7468_v10 = vrot.slane %v7394_v13, %v9555_v11 }
 0xc3c   : > { %v7325_v36 = vpop.xlane.xlu1 %7324  ;;  %v7322_v54 = vpop.xlane.xlu0 %7321 }
 0xc3d   : > { %v7401_v18 = vmul.f32 0.2, %v7325_v36  ;;  %v7400_v22 = vmul.f32 0.2, %v7322_v54  ;;  %v7488_v50 = vsel %vm884_vm4, %v7487_v1, %v7483_v60  ;;  %v7469_v13 = vsel %vm884_vm4, %v7468_v10, %v7464_v53 }
 0xc3f   : > { %v7501_v36 = vrot.slane %v7401_v18, %v9552_v7  ;;  %v7497_v62 = vrot.slane %v7400_v22, %v9549_v52 }
 0xc40   : > { %v7319_v45 = vpop.xlane.xlu1 %7318  ;;  %v7307_v38 = vpop.xlane.xlu0 %7306 }
 0xc41   : > { %v7399_v6 = vmul.f32 0.2, %v7319_v45  ;;  %v7395_v20 = vmul.f32 0.2, %v7307_v38  ;;  %v7502_v1 = vsel %vm877_vm3, %v7501_v36, %v7497_v62 }
 0xc43   : > { %v7492_v3 = vrot.slane %v7399_v6, %v9558_v16  ;;  %v7473_v14 = vrot.slane %v7395_v20, %v9558_v16 }
 0xc44   : > { %v7334_v24 = vpop.xlane.xlu1 %7333  ;;  %v7328_v51 = vpop.xlane.xlu0 %7327 }
 0xc45   : > { %v7402_v8 = vmul.f32 0.2, %v7328_v51  ;;  %v7493_v6 = vsel %vm891_vm5, %v7492_v3, %v7488_v50  ;;  %v7474_v20 = vsel %vm891_vm5, %v7473_v14, %v7469_v13  ;;  %v7404_v0 = vmul.f32 0.2, %v7334_v24 }
 0xc46   : > { %v7608_v10 = vsel %vm1026_vm6, %v7493_v6, %v7474_v20 }
 0xc47   : > { %v7506_v54 = vrot.slane %v7402_v8, %v9555_v11 }
 0xc48   : > { %v7331_v21 = vpop.xlane.xlu1 %7330  ;;  %v7337_v33 = vpop.xlane.xlu0 %7336 }
 0xc49   : > { %v7403_v37 = vmul.f32 0.2, %v7331_v21  ;;  %v7405_v51 = vmul.f32 0.2, %v7337_v33  ;;  %v7507_v22 = vsel %vm884_vm4, %v7506_v54, %v7502_v1 }
 0xc4b   : > { %v7511_v21 = vrot.slane %v7403_v37, %v9558_v16  ;;  %v7520_v59 = vrot.slane %v7405_v51, %v9552_v7  ;;  %v7516_v37 = vrot.slane %v7404_v0, %v9549_v52 }
 0xc4c   : > { %v7346_v35 = vpop.xlane.xlu1 %7345  ;;  %v7340_v48 = vpop.xlane.xlu0 %7339 }
 0xc4d   : > { %v7408_v18 = vmul.f32 0.2, %v7346_v35  ;;  %v7406_v3 = vmul.f32 0.2, %v7340_v48  ;;  %v7512_v50 = vsel %vm891_vm5, %v7511_v21, %v7507_v22  ;;  %v7521_v48 = vsel %vm877_vm3, %v7520_v59, %v7516_v37 }
 0xc4f   : > { %v7535_v35 = vrot.slane %v7408_v18, %v9549_v52 }
 0xc50   : > { %v7343_v34 = vpop.xlane.xlu1 %7342  ;;  %v7349_v39 = vpop.xlane.xlu0 %7348 }
 0xc51   : > { %v7409_v32 = vmul.f32 0.2, %v7349_v39  ;;  %v7407_v53 = vmul.f32 0.2, %v7343_v34  ;;  %v7525_v34 = vrot.slane %v7406_v3, %v9555_v11 }
 0xc53   : > { %v7539_v33 = vrot.slane %v7409_v32, %v9552_v7  ;;  %v7526_v59 = vsel %vm884_vm4, %v7525_v34, %v7521_v48 }
 0xc54   : > { %v7358_v56 = vpop.xlane.xlu1 %7357  ;;  %v7352_v41 = vpop.xlane.xlu0 %7351 }
 0xc55   : > { %v7410_v14 = vmul.f32 0.2, %v7352_v41  ;;  %v7412_v62 = vmul.f32 0.2, %v7358_v56  ;;  %v7540_v41 = vsel %vm877_vm3, %v7539_v33, %v7535_v35 }
 0xc57   : > { %v7544_v32 = vrot.slane %v7410_v14, %v9555_v11  ;;  %v7554_v1 = vrot.slane %v7412_v62, %v9549_v52 }
 0xc58   : > { %v7355_v30 = vpop.xlane.xlu1 %7354  ;;  %v7361_v5 = vpop.xlane.xlu0 %7360 }
 0xc59   : > { %v7411_v39 = vmul.f32 0.2, %v7355_v30  ;;  %v7413_v8 = vmul.f32 0.2, %v7361_v5  ;;  %v7530_v5 = vrot.slane %v7407_v53, %v9558_v16  ;;  %v7545_v3 = vsel %vm884_vm4, %v7544_v32, %v7540_v41 }
 0xc5b   : > { %v7549_v54 = vrot.slane %v7411_v39, %v9558_v16  ;;  %v7531_v33 = vsel %vm891_vm5, %v7530_v5, %v7526_v59 }
 0xc5c   : > { %v7370_v45 = vpop.xlane.xlu1 %7369  ;;  %v7364_v38 = vpop.xlane.xlu0 %7363 }
 0xc5d   : > { %v7414_v13 = vmul.f32 0.2, %v7364_v38  ;;  %v7416_v30 = vmul.f32 0.2, %v7370_v45  ;;  %v7558_v38 = vrot.slane %v7413_v8, %v9552_v7  ;;  %v7550_v39 = vsel %vm891_vm5, %v7549_v54, %v7545_v3 }
 0xc5f   : > { %v7563_v56 = vrot.slane %v7414_v13, %v9555_v11  ;;  %v7573_v14 = vrot.slane %v7416_v30, %v9549_v52  ;;  %v7559_v8 = vsel %vm877_vm3, %v7558_v38, %v7554_v1 }
 0xc60   : > { %v7367_v40 = vpop.xlane.xlu1 %7366  ;;  %v7373_v43 = vpop.xlane.xlu0 %7372 }
 0xc61   : > { %v7417_v36 = vmul.f32 0.2, %v7373_v43  ;;  %v7415_v6 = vmul.f32 0.2, %v7367_v40  ;;  %v7564_v13 = vsel %vm884_vm4, %v7563_v56, %v7559_v8 }
 0xc63   : > { %v7577_v40 = vrot.slane %v7417_v36, %v9552_v7  ;;  %v7568_v45 = vrot.slane %v7415_v6, %v9558_v16  ;;  %v7609_v6 = vsel %vm1028_vm7, %v7512_v50, %v7608_v10 }
 0xc64   : > { %v7382_v60 = vpop.xlane.xlu1 %7381  ;;  %v7376_v24 = vpop.xlane.xlu0 %7375  ;;  %v7610_v32 = vsel %vm1030_vm8, %v7531_v33, %v7609_v6 }
 0xc65   : > { %v7418_v20 = vmul.f32 0.2, %v7376_v24  ;;  %v7420_v18 = vmul.f32 0.2, %v7382_v60  ;;  %v7578_v36 = vsel %vm877_vm3, %v7577_v40, %v7573_v14  ;;  %v7611_v41 = vsel %vm1032_vm9, %v7550_v39, %v7610_v32 }
 0xc66   : > { %v7619_v40 = vmul.f32 0.95122945, %v12862_v28 }
 0xc67   : > { %v7582_v22 = vrot.slane %v7418_v20, %v9555_v11  ;;  %v7569_v20 = vsel %vm891_vm5, %v7568_v45, %v7564_v13  ;;  %v7592_v48 = vrot.slane %v7420_v18, %v9549_v52  ;;  %v7626_v45 = vmul.f32 0.95122945, %v12870_v49 }
 0xc68   : > { %v7379_v51 = vpop.xlane.xlu1 %7378  ;;  %v7385_v43 = vpop.xlane.xlu0 %7384  ;;  %v7612_v10 = vsel %vm1034_vm10, %v7569_v20, %v7611_v41 }
 0xc69   : > { %v7419_v0 = vmul.f32 0.2, %v7379_v51  ;;  %v7421_v21 = vmul.f32 0.2, %v7385_v43  ;;  %v7583_v34 = vsel %vm884_vm4, %v7582_v22, %v7578_v36  ;;  %v7617_v43 = vmul.f32 0.9048374, %v12858_v58 }
 0xc6b   : > { %v7587_v53 = vrot.slane %v7419_v0, %v9558_v16  ;;  %v7596_v24 = vrot.slane %v7421_v21, %v9552_v7 }
 0xc6c   : > { %v7391_v37 = vpop.xlane.xlu1 %7390  ;;  %v7388_v60 = vpop.xlane.xlu0 %7387 }
 0xc6d   : > { %v7423_v35 = vmul.f32 0.2, %v7391_v37  ;;  %v7422_v62 = vmul.f32 0.2, %v7388_v60  ;;  %v7588_v7 = vsel %vm891_vm5, %v7587_v53, %v7583_v34  ;;  %v7597_v54 = vsel %vm877_vm3, %v7596_v24, %v7592_v48 }
 0xc6e   : > { %v7613_v52 = vsel %vm1036_vm11, %v7588_v7, %v7612_v10 }
 0xc6f   : > { %v7606_v30 = vrot.slane %v7423_v35, %v9558_v16  ;;  %v7601_v5 = vrot.slane %v7422_v62, %v9555_v11  ;;  %v8686_v16 = vld [vmem:[#allocation2 + $0x38] sm:$0xff] }
 0xc71   : > { %v7602_v50 = vsel %vm884_vm4, %v7601_v5, %v7597_v54 }
 0xc72   : > { %v7607_v38 = vsel %vm891_vm5, %v7606_v30, %v7602_v50 }
 0xc73   : > { %v7614_v51 = vsel %vm1038_vm12, %v7607_v38, %v7613_v52 }
 0xc74   : > { %v7616_v56 = vadd.f32 %v8686_v16, %v7614_v51 }
 0xc76   : > { %v13390_v11 = vadd.f32 %v7617_v43, %v7616_v56 }
 0xc78   : > { %v7620_v0 = vmul.f32 0.048770577, %v13390_v11 }
 0xc7a   : > { %v7621_v21 = vadd.f32 %v7620_v0, %v7619_v40 }
 0xc7c   : > { %8540 = vtanh.f32 %v7621_v21 }
 0xc86   : > { %v8541_v1 = vpop.eup %8540 }
 0xc87   : > { %v7627_v18 = vmul.f32 0.048770577, %v8541_v1  ;;  %v8071_v22 = vsel %vm319_vm0, %v14202_v2, %v8541_v1 }
 0xc88   : > { %8345 = vst.msk [vmem:[%s9638_s26 + $0x38] sm:$0xff] %vm473_vm2, %v8071_v22 }
 0xc89   : > { %v7628_v58 = vadd.f32 %v7627_v18, %v7626_v45 }
 0xc8b   : > { %v7632_v59 = vrot.slane %v7628_v58, %v9314_v26  ;;  %v7652_v28 = vrot.slane %v7628_v58, %v9645_v15  ;;  %v7672_v3 = vrot.slane %v7628_v58, %v9650_v31  ;;  %v7692_v49 = vrot.slane %v7628_v58, %v9655_v42 }
 0xc8c   : > { %v7712_v2 = vrot.slane %v7628_v58, %v9660_v29  ;;  %v7732_v15 = vrot.slane %v7628_v58, %v9665_v4  ;;  %v7752_v31 = vrot.slane %v7628_v58, %v9670_v55  ;;  %v7772_v42 = vrot.slane %v7628_v58, %v9675_v27 }
 0xc8d   : > { %7639 = vbcast.lane.b32.xlu1 %v7632_v59, 296  ;;  %7635 = vbcast.lane.b32.xlu0 %v7632_v59, 288 }
 0xc91   : > { %7643 = vbcast.lane.b32.xlu1 %v7632_v59, 304  ;;  %7655 = vbcast.lane.b32.xlu0 %v7652_v28, 288 }
 0xc95   : > { %7647 = vbcast.lane.b32.xlu1 %v7632_v59, 312  ;;  %7663 = vbcast.lane.b32.xlu0 %v7652_v28, 304 }
 0xc99   : > { %7659 = vbcast.lane.b32.xlu1 %v7652_v28, 296  ;;  %7675 = vbcast.lane.b32.xlu0 %v7672_v3, 288 }
 0xc9d   : > { %7667 = vbcast.lane.b32.xlu1 %v7652_v28, 312  ;;  %7683 = vbcast.lane.b32.xlu0 %v7672_v3, 304 }
 0xca1   : > { %7679 = vbcast.lane.b32.xlu1 %v7672_v3, 296  ;;  %7695 = vbcast.lane.b32.xlu0 %v7692_v49, 288 }
 0xca5   : > { %7687 = vbcast.lane.b32.xlu1 %v7672_v3, 312  ;;  %7703 = vbcast.lane.b32.xlu0 %v7692_v49, 304 }
 0xca9   : > { %7699 = vbcast.lane.b32.xlu1 %v7692_v49, 296  ;;  %7715 = vbcast.lane.b32.xlu0 %v7712_v2, 288 }
 0xcad   : > { %7707 = vbcast.lane.b32.xlu1 %v7692_v49, 312  ;;  %7723 = vbcast.lane.b32.xlu0 %v7712_v2, 304 }
 0xcb1   : > { %7719 = vbcast.lane.b32.xlu1 %v7712_v2, 296  ;;  %7735 = vbcast.lane.b32.xlu0 %v7732_v15, 288 }
 0xcb5   : > { %7727 = vbcast.lane.b32.xlu1 %v7712_v2, 312  ;;  %7743 = vbcast.lane.b32.xlu0 %v7732_v15, 304 }
 0xcb9   : > { %7739 = vbcast.lane.b32.xlu1 %v7732_v15, 296  ;;  %7755 = vbcast.lane.b32.xlu0 %v7752_v31, 288 }
 0xcbd   : > { %7747 = vbcast.lane.b32.xlu1 %v7732_v15, 312  ;;  %7763 = vbcast.lane.b32.xlu0 %v7752_v31, 304 }
 0xcc1   : > { %7759 = vbcast.lane.b32.xlu1 %v7752_v31, 296  ;;  %7775 = vbcast.lane.b32.xlu0 %v7772_v42, 288 }
 0xcc5   : > { %7767 = vbcast.lane.b32.xlu1 %v7752_v31, 312  ;;  %7783 = vbcast.lane.b32.xlu0 %v7772_v42, 304 }
 0xcc9   : > { %7779 = vbcast.lane.b32.xlu1 %v7772_v42, 296  ;;  %8078 = vrot.lane.b32.xlu0 %v7621_v21, %s8891_s29 }
 0xccd   : > { %7787 = vbcast.lane.b32.xlu1 %v7772_v42, 312  ;;  %8092 = vrot.lane.b32.xlu0 %v7628_v58, %s8891_s29 }
 0xcce   : > { %8766 = shalt.err (!%p8763_p11)
}
 0xccf   : > { %s8767_s11 = scalar_lea.hbm %s13416_s15, 1024  ;;  %s8771_s16 = scalar_lea.hbm %s13711_s4, 2048 }
 0xcd0   : > { %p8768_p0 = scmp.ne.s32.totalorder %s13416_s15, %s8767_s11  ;;  %p8772_p3 = scmp.lt.u32.totalorder %s13416_s15, %s13711_s4 }
 0xcd1   : > { %p8773_p5 = scmp.lt.u32.totalorder %s8771_s16, %s8767_s11  ;;  %p8775_p13 = scmp.lt.u32.totalorder %s8767_s11, %s13416_s15 }
 0xcd2   : > { %p8769_p4 = pnand %p8768_p0, %p14239_p2 }
 0xcd3   : > { %p8774_p6 = por %p8773_p5, %p8772_p3 }
 0xcd4   : > { %p8770_p1 = pneg %p8769_p4 }
 0xcd5   : > { %p8776_p12 = por %p8775_p13, %p8774_p6 }
 0xcd7   : > { %p8777_p10 = pnand %p8776_p12, %p8770_p1 }
 0xcd9   : > { %8780 = shalt.err (!%p8777_p10)
}
 0xcda   : > { %s8893_s28 = smov 128   ;;  %s8894_s25 = smov 256   ;;  %8084 = vrot.lane.b32.xlu1 %v13390_v11, %s8891_s29  ;;  %v14240_v29 = vld [vmem:[#allocation33_spill] sm:$0xff]  ;;  %v8688_v24 = vld [vmem:[%s9190_s13] sm:$0xff] }
 0xcdb   : > { %s8895_s12 = smov 8   ;;  %v7829_v4 = vrot.slane %v14240_v29, %v9304_v17  ;;  %v8687_v39 = vld [vmem:[%s9190_s13 + $0x8] sm:$0xff]  ;;  %v8689_v30 = vld [vmem:[%s9190_s13 + $0x20] sm:$0xff]  ;;  %s8152_s29 = sshll.u32 %s9373_s0, 4  ;;  %s13606_s29 = int_to_ptr.vmem [resolvable:$true] %s8152_s29 }
 0xcdc   : > { %8446 = dma.vmem_to_hbm [thread:$0]  (%p14239_p2), %s13418_s8, 1024, %s13416_s15, %s13421_s7, %s8893_s28, %s8894_s25, %s8895_s12  }
 0xcdd   : > { %v7845_v55 = vrot.slane %v7829_v4, %v9304_v17  ;;  %v7837_v27 = vcombine.high %v7829_v4, %v7829_v4  ;;  %v8690_v49 = vld [vmem:[%s9190_s13 + $0x28] sm:$0xff]  ;;  %s13613_s11 = scalar_lea.hbm %s13712_s5, %s8356_s23  ;;  %s8363_s26 = sshll.u32 %s8949_s22, 12 }
 0xcde   : > { %s8781_s16 = scalar_lea.vmem %s13606_s29, 768  ;;  %s8896_s17 = smov [#allocation11]  }
 0xcdf   : > { %v7906_v33 = vrot.slane %v7845_v55, %v9314_v26  ;;  %v13457_v60 = vrot.slane %v7837_v27, %v9304_v17  ;;  %v7867_v0 = vcombine.high %v7845_v55, %v7845_v55  ;;  %p8782_p7 = scmp.ne.s32.totalorder %s13606_s29, %s8781_s16  ;;  %s8785_s10 = sshll.u32 %s8896_s17, 4  ;;  %s8786_s10 = int_to_ptr.vmem [resolvable:$false] %s8785_s10 }
 0xce0   : > { %s8787_s8 = scalar_lea.vmem %s8786_s10, 1536  ;;  %p8788_p11 = scmp.lt.s32.totalorder %s13606_s29, %s8786_s10 }
 0xce1   : > { %v7910_v7 = vrot.slane %v13457_v60, %v9314_v26  ;;  %v7914_v31 = vrot.slane %v7867_v0, %v9314_v26  ;;  %p8783_p8 = pnand %p8782_p7, %p14239_p2  ;;  %p8789_p0 = scmp.lt.s32.totalorder %s8787_s8, %s8781_s16 }
 0xce3   : > { %p8784_p9 = pneg %p8783_p8  ;;  %p8790_p4 = por %p8789_p0, %p8788_p11 }
 0xce5   : > { %p8791_p1 = pnand %p8790_p4, %p8784_p9 }
 0xcff   : > { %v7640_v14 = vpop.permute.xlu1 %7639  ;;  %v7636_v53 = vpop.permute.xlu0 %7635 }
 0xd00   : > { %v7872_v8 = vmul.f32 %v8687_v39, %v7640_v14  ;;  %v7871_v37 = vmul.f32 %v8688_v24, %v7636_v53  ;;  %v7790_v13 = vmul.f32 0.05, %v7640_v14  ;;  %v7789_v35 = vmul.f32 0.05, %v7636_v53 }
 0xd02   : > { %v7944_v36 = vsub.f32 %v7906_v33, %v7872_v8  ;;  %v7943_v62 = vsub.f32 %v7906_v33, %v7871_v37  ;;  %v7822_v37 = vcombine.high %v14240_v29, %v14240_v29 }
 0xd03   : > { %v7644_v6 = vpop.permute.xlu1 %7643  ;;  %v7656_v20 = vpop.permute.xlu0 %7655 }
 0xd04   : > { %v7976_v48 = vmul.f32 %v7944_v36, %v7790_v13  ;;  %v7975_v34 = vmul.f32 %v7943_v62, %v7789_v35  ;;  %v7873_v32 = vmul.f32 %v7644_v6, %v13010_v63  ;;  %v7875_v5 = vmul.f32 %v8689_v30, %v7656_v20  ;;  %v8691_v62 = vld [vmem:[%s9190_s13 + $0x40] sm:$0xff] }
 0xd05   : > { %v7791_v10 = vmul.f32 0.05, %v7644_v6  ;;  %v7793_v52 = vmul.f32 0.05, %v7656_v20 }
 0xd06   : > { %v8008_v41 = vadd.f32 %v8687_v39, %v7976_v48  ;;  %v8007_v54 = vadd.f32 %v8688_v24, %v7975_v34  ;;  %v7945_v50 = vsub.f32 %v7906_v33, %v7873_v32  ;;  %v7947_v38 = vsub.f32 %v7910_v7, %v7875_v5 }
 0xd07   : > { %v7648_v51 = vpop.permute.xlu1 %7647  ;;  %v7664_v43 = vpop.permute.xlu0 %7663 }
 0xd08   : > { %8040 = vst.msk [vmem:[%s9190_s13 + $0x8] sm:$0xff] %vm319_vm0, %v8008_v41  ;;  %8039 = vst.msk [vmem:[%s9190_s13] sm:$0xff] %vm319_vm0, %v8007_v54  ;;  %v7977_v16 = vmul.f32 %v7945_v50, %v7791_v10  ;;  %v7874_v56 = vmul.f32 %v7648_v51, %v13068_v25  ;;  %v7979_v11 = vmul.f32 %v7947_v38, %v7793_v52  ;;  %v7792_v1 = vmul.f32 0.05, %v7648_v51 }
 0xd09   : > { %v7877_v40 = vmul.f32 %v7664_v43, %v13041_v23  ;;  %v7795_v22 = vmul.f32 0.05, %v7664_v43  ;;  %v7836_v41 = vrot.slane %v7822_v37, %v9304_v17 }
 0xd0a   : > { %v8009_v21 = vadd.f32 %v7977_v16, %v13010_v63  ;;  %v7946_v45 = vsub.f32 %v7906_v33, %v7874_v56  ;;  %v8011_v18 = vadd.f32 %v8689_v30, %v7979_v11 }
 0xd0b   : > { %v7949_v58 = vsub.f32 %v7910_v7, %v7877_v40  ;;  %v7660_v59 = vpop.permute.xlu1 %7659  ;;  %v7676_v28 = vpop.permute.xlu0 %7675  ;;  %v13507_v40 = vrot.slane %v7836_v41, %v9304_v17 }
 0xd0c   : > { %8041 = vst.msk [vmem:[%s9190_s13 + $0x10] sm:$0xff] %vm319_vm0, %v8009_v21  ;;  %v7978_v3 = vmul.f32 %v7946_v45, %v7792_v1  ;;  %v7876_v2 = vmul.f32 %v8690_v49, %v7660_v59  ;;  %8043 = vst.msk [vmem:[%s9190_s13 + $0x20] sm:$0xff] %vm319_vm0, %v8011_v18  ;;  %v7879_v63 = vmul.f32 %v7676_v28, %v13035_v19  ;;  %v7794_v4 = vmul.f32 0.05, %v7660_v59 }
 0xd0d   : > { %v7981_v15 = vmul.f32 %v7949_v58, %v7795_v22  ;;  %v7797_v14 = vmul.f32 0.05, %v7676_v28 }
 0xd0e   : > { %v8010_v42 = vadd.f32 %v7978_v3, %v13068_v25  ;;  %v7948_v55 = vsub.f32 %v7910_v7, %v7876_v2  ;;  %v7951_v53 = vsub.f32 %v7914_v31, %v7879_v63  ;;  %v7922_v2 = vrot.slane %v13507_v40, %v9314_v26 }
 0xd0f   : > { %v8013_v27 = vadd.f32 %v7981_v15, %v13041_v23  ;;  %v7668_v33 = vpop.permute.xlu1 %7667  ;;  %v7684_v39 = vpop.permute.xlu0 %7683  ;;  %v7869_v23 = vcombine.high %v13457_v60, %v13457_v60  ;;  %v14241_v15 = vld [vmem:[#allocation46_spill] sm:$0xff] }
 0xd10   : > { %8042 = vst.msk [vmem:[%s9190_s13 + $0x18] sm:$0xff] %vm319_vm0, %v8010_v42  ;;  %v7980_v8 = vmul.f32 %v7948_v55, %v7794_v4  ;;  %v7878_v24 = vmul.f32 %v7668_v33, %v13096_v9  ;;  %v7983_v19 = vmul.f32 %v7951_v53, %v7797_v14  ;;  %v7881_v25 = vmul.f32 %v7684_v39, %v13090_v12 }
 0xd11   : > { %8045 = vst.msk [vmem:[%s9190_s13 + $0x30] sm:$0xff] %vm319_vm0, %v8013_v27  ;;  %v7796_v36 = vmul.f32 0.05, %v7668_v33  ;;  %v7799_v20 = vmul.f32 0.05, %v7684_v39  ;;  %v7918_v29 = vrot.slane %v7869_v23, %v9314_v26 }
 0xd12   : > { %v8012_v13 = vadd.f32 %v8690_v49, %v7980_v8  ;;  %v7950_v35 = vsub.f32 %v7910_v7, %v7878_v24  ;;  %v8015_v6 = vadd.f32 %v8691_v62, %v7983_v19  ;;  %v7953_v48 = vsub.f32 %v7914_v31, %v7881_v25  ;;  %v14242_v8 = vld [vmem:[#allocation25_spill] sm:$0xff]  ;;  %v14243_v25 = vld [vmem:[#allocation43_spill] sm:$0xff] }
 0xd13   : > { %v7680_v34 = vpop.permute.xlu1 %7679  ;;  %v7696_v32 = vpop.permute.xlu0 %7695 }
 0xd14   : > { %8044 = vst.msk [vmem:[%s9190_s13 + $0x28] sm:$0xff] %vm319_vm0, %v8012_v13  ;;  %v7982_v30 = vmul.f32 %v7950_v35, %v7796_v36  ;;  %v7880_v5 = vmul.f32 %v7680_v34, %v13065_v46  ;;  %8047 = vst.msk [vmem:[%s9190_s13 + $0x40] sm:$0xff] %vm319_vm0, %v8015_v6  ;;  %v7985_v60 = vmul.f32 %v7953_v48, %v7799_v20  ;;  %v7798_v10 = vmul.f32 0.05, %v7680_v34  ;;  %v14244_v34 = vld [vmem:[#allocation45_spill] sm:$0xff] }
 0xd15   : > { %v7883_v7 = vmul.f32 %v7696_v32, %v13119_v57  ;;  %v7801_v38 = vmul.f32 0.05, %v7696_v32 }
 0xd16   : > { %v8014_v54 = vadd.f32 %v7982_v30, %v13096_v9  ;;  %v7952_v50 = vsub.f32 %v7914_v31, %v7880_v5  ;;  %v8017_v52 = vadd.f32 %v7985_v60, %v13090_v12  ;;  %v8692_v12 = vld [vmem:[%s9190_s13 + $0x48] sm:$0xff]  ;;  %v14245_v30 = vld [vmem:[#allocation26_spill] sm:$0xff] }
 0xd17   : > { %v7955_v51 = vsub.f32 %v7918_v29, %v7883_v7  ;;  %v7688_v46 = vpop.permute.xlu1 %7687  ;;  %v7704_v43 = vpop.permute.xlu0 %7703 }
 0xd18   : > { %8046 = vst.msk [vmem:[%s9190_s13 + $0x38] sm:$0xff] %vm319_vm0, %v8014_v54  ;;  %v7984_v16 = vmul.f32 %v7952_v50, %v7798_v10  ;;  %v7882_v56 = vmul.f32 %v7688_v46, %v13150_v61  ;;  %8049 = vst.msk [vmem:[%s9190_s13 + $0x50] sm:$0xff] %vm319_vm0, %v8017_v52  ;;  %v7885_v9 = vmul.f32 %v7704_v43, %v13144_v44  ;;  %v7800_v21 = vmul.f32 0.05, %v7688_v46 }
 0xd19   : > { %v7987_v11 = vmul.f32 %v7955_v51, %v7801_v38  ;;  %v7803_v18 = vmul.f32 0.05, %v7704_v43  ;;  %v14246_v51 = vld [vmem:[#allocation23_spill] sm:$0xff] }
 0xd1a   : > { %v8016_v0 = vadd.f32 %v8692_v12, %v7984_v16  ;;  %v7954_v1 = vsub.f32 %v7914_v31, %v7882_v56  ;;  %v7957_v22 = vsub.f32 %v7918_v29, %v7885_v9  ;;  %v14247_v16 = vld [vmem:[#allocation24_spill] sm:$0xff] }
 0xd1b   : > { %v8019_v45 = vadd.f32 %v7987_v11, %v13119_v57  ;;  %v7700_v58 = vpop.permute.xlu1 %7699  ;;  %v7716_v59 = vpop.permute.xlu0 %7715  ;;  %v7838_v57 = vcombine.high %v7836_v41, %v7836_v41  ;;  %v7868_v11 = vcombine.high %v13507_v40, %v13507_v40 }
 0xd1c   : > { %8048 = vst.msk [vmem:[%s9190_s13 + $0x48] sm:$0xff] %vm319_vm0, %v8016_v0  ;;  %v7986_v28 = vmul.f32 %v7954_v1, %v7800_v21  ;;  %v7884_v3 = vmul.f32 %v7700_v58, %v13122_v47  ;;  %v7989_v49 = vmul.f32 %v7957_v22, %v7803_v18  ;;  %v7887_v31 = vmul.f32 %v7716_v59, %v14241_v15 }
 0xd1d   : > { %8051 = vst.msk [vmem:[%s9190_s13 + $0x60] sm:$0xff] %vm319_vm0, %v8019_v45  ;;  %v7802_v42 = vmul.f32 0.05, %v7700_v58  ;;  %v7805_v27 = vmul.f32 0.05, %v7716_v59  ;;  %v13528_v23 = vrot.slane %v7838_v57, %v9304_v17  ;;  %v14248_v59 = vld [vmem:[#allocation47_spill] sm:$0xff] }
 0xd1e   : > { %v8018_v63 = vadd.f32 %v7986_v28, %v13150_v61  ;;  %v7956_v4 = vsub.f32 %v7918_v29, %v7884_v3  ;;  %v8021_v55 = vadd.f32 %v7989_v49, %v13144_v44  ;;  %v7959_v14 = vsub.f32 %v7922_v2, %v7887_v31  ;;  %v14249_v49 = vld [vmem:[#allocation21_spill] sm:$0xff] }
 0xd1f   : > { %v7708_v53 = vpop.permute.xlu1 %7707  ;;  %v7724_v33 = vpop.permute.xlu0 %7723  ;;  %v7930_v3 = vrot.slane %v7868_v11, %v9314_v26 }
 0xd20   : > { %8050 = vst.msk [vmem:[%s9190_s13 + $0x58] sm:$0xff] %vm319_vm0, %v8018_v63  ;;  %v7988_v39 = vmul.f32 %v7956_v4, %v7802_v42  ;;  %v7886_v24 = vmul.f32 %v7708_v53, %v14242_v8  ;;  %8053 = vst.msk [vmem:[%s9190_s13 + $0x70] sm:$0xff] %vm319_vm0, %v8021_v55  ;;  %v7991_v19 = vmul.f32 %v7959_v14, %v7805_v27  ;;  %v7804_v37 = vmul.f32 0.05, %v7708_v53  ;;  %v14250_v53 = vld [vmem:[#allocation32_spill] sm:$0xff] }
 0xd21   : > { %v7889_v61 = vmul.f32 %v7724_v33, %v14243_v25  ;;  %v7807_v35 = vmul.f32 0.05, %v7724_v33 }
 0xd22   : > { %v8020_v44 = vadd.f32 %v7988_v39, %v13122_v47  ;;  %v7958_v13 = vsub.f32 %v7918_v29, %v7886_v24  ;;  %v8023_v36 = vadd.f32 %v7991_v19, %v14241_v15  ;;  %v7926_v47 = vrot.slane %v13528_v23, %v9314_v26 }
 0xd23   : > { %v7961_v62 = vsub.f32 %v7922_v2, %v7889_v61  ;;  %v7720_v6 = vpop.permute.xlu1 %7719  ;;  %v7736_v20 = vpop.permute.xlu0 %7735  ;;  %v7870_v19 = vcombine.high %v13528_v23, %v13528_v23 }
 0xd24   : > { %8052 = vst.msk [vmem:[%s9190_s13 + $0x68] sm:$0xff] %vm319_vm0, %v8020_v44  ;;  %v7990_v48 = vmul.f32 %v7958_v13, %v7804_v37  ;;  %v7888_v32 = vmul.f32 %v7720_v6, %v14244_v34  ;;  %8055 = vst.msk [vmem:[%s9190_s13 + $0x80] sm:$0xff] %vm319_vm0, %v8023_v36  ;;  %v7891_v5 = vmul.f32 %v7736_v20, %v14245_v30  ;;  %v7806_v29 = vmul.f32 0.05, %v7720_v6 }
 0xd25   : > { %v7993_v17 = vmul.f32 %v7961_v62, %v7807_v35  ;;  %v7809_v54 = vmul.f32 0.05, %v7736_v20  ;;  %v14252_v20 = vld [vmem:[#allocation17_spill] sm:$0xff] }
 0xd26   : > { %v8022_v60 = vadd.f32 %v7990_v48, %v14242_v8  ;;  %v7960_v7 = vsub.f32 %v7922_v2, %v7888_v32  ;;  %v7963_v10 = vsub.f32 %v7926_v47, %v7891_v5  ;;  %v14251_v8 = vld [vmem:[#allocation31_spill] sm:$0xff]  ;;  %v14253_v32 = vld [vmem:[#allocation18_spill] sm:$0xff] }
 0xd27   : > { %v8025_v41 = vadd.f32 %v7993_v17, %v14243_v25  ;;  %v7728_v50 = vpop.permute.xlu1 %7727  ;;  %v7744_v52 = vpop.permute.xlu0 %7743 }
 0xd28   : > { %8054 = vst.msk [vmem:[%s9190_s13 + $0x78] sm:$0xff] %vm319_vm0, %v8022_v60  ;;  %v7992_v38 = vmul.f32 %v7960_v7, %v7806_v29  ;;  %v7890_v46 = vmul.f32 %v7728_v50, %v14246_v51  ;;  %v7995_v43 = vmul.f32 %v7963_v10, %v7809_v54  ;;  %v7893_v56 = vmul.f32 %v7744_v52, %v14247_v16 }
 0xd29   : > { %8057 = vst.msk [vmem:[%s9190_s13 + $0x90] sm:$0xff] %vm319_vm0, %v8025_v41  ;;  %v7808_v12 = vmul.f32 0.05, %v7728_v50  ;;  %v7811_v1 = vmul.f32 0.05, %v7744_v52  ;;  %v14254_v50 = vld [vmem:[#allocation16_spill] sm:$0xff] }
 0xd2a   : > { %v8024_v9 = vadd.f32 %v7992_v38, %v14244_v34  ;;  %v7962_v0 = vsub.f32 %v7922_v2, %v7890_v46  ;;  %v8027_v21 = vadd.f32 %v7995_v43, %v14245_v30  ;;  %v7965_v45 = vsub.f32 %v7926_v47, %v7893_v56  ;;  %v14255_v38 = vld [vmem:[#allocation34_spill] sm:$0xff] }
 0xd2b   : > { %v7740_v18 = vpop.permute.xlu1 %7739  ;;  %v7756_v22 = vpop.permute.xlu0 %7755  ;;  %v7934_v34 = vrot.slane %v7870_v19, %v9314_v26 }
 0xd2c   : > { %8056 = vst.msk [vmem:[%s9190_s13 + $0x88] sm:$0xff] %vm319_vm0, %v8024_v9  ;;  %v7994_v58 = vmul.f32 %v7962_v0, %v7808_v12  ;;  %v7892_v28 = vmul.f32 %v7740_v18, %v14248_v59  ;;  %8059 = vst.msk [vmem:[%s9190_s13 + $0xa0] sm:$0xff] %vm319_vm0, %v8027_v21  ;;  %v7997_v40 = vmul.f32 %v7965_v45, %v7811_v1  ;;  %v7810_v31 = vmul.f32 0.05, %v7740_v18  ;;  %v14256_v1 = vld [vmem:[#allocation22_spill] sm:$0xff] }
 0xd2d   : > { %v7895_v2 = vmul.f32 %v7756_v22, %v14249_v49  ;;  %v7813_v42 = vmul.f32 0.05, %v7756_v22 }
 0xd2e   : > { %v8026_v15 = vadd.f32 %v7994_v58, %v14246_v51  ;;  %v7964_v57 = vsub.f32 %v7926_v47, %v7892_v28  ;;  %v8029_v63 = vadd.f32 %v7997_v40, %v14247_v16 }
 0xd2f   : > { %v7967_v4 = vsub.f32 %v7930_v3, %v7895_v2  ;;  %v7748_v55 = vpop.permute.xlu1 %7747  ;;  %v7764_v27 = vpop.permute.xlu0 %7763  ;;  %v14257_v2 = vld [vmem:[#allocation20_spill] sm:$0xff] }
 0xd30   : > { %8058 = vst.msk [vmem:[%s9190_s13 + $0x98] sm:$0xff] %vm319_vm0, %v8026_v15  ;;  %v7996_v14 = vmul.f32 %v7964_v57, %v7810_v31  ;;  %v7894_v33 = vmul.f32 %v7748_v55, %v14250_v53  ;;  %8061 = vst.msk [vmem:[%s9190_s13 + $0xb0] sm:$0xff] %vm319_vm0, %v8029_v63  ;;  %v7897_v24 = vmul.f32 %v7764_v27, %v14251_v8  ;;  %v7812_v61 = vmul.f32 0.05, %v7748_v55 }
 0xd31   : > { %v7999_v39 = vmul.f32 %v7967_v4, %v7813_v42  ;;  %v7815_v13 = vmul.f32 0.05, %v7764_v27 }
 0xd32   : > { %v8028_v25 = vadd.f32 %v7996_v14, %v14248_v59  ;;  %v7966_v44 = vsub.f32 %v7926_v47, %v7894_v33  ;;  %v7969_v36 = vsub.f32 %v7930_v3, %v7897_v24 }
 0xd33   : > { %v8031_v37 = vadd.f32 %v7999_v39, %v14249_v49  ;;  %v7760_v35 = vpop.permute.xlu1 %7759  ;;  %v7776_v62 = vpop.permute.xlu0 %7775 }
 0xd34   : > { %8060 = vst.msk [vmem:[%s9190_s13 + $0xa8] sm:$0xff] %vm319_vm0, %v8028_v25  ;;  %v7998_v6 = vmul.f32 %v7966_v44, %v7812_v61  ;;  %v7896_v48 = vmul.f32 %v7760_v35, %v14252_v20  ;;  %v8001_v23 = vmul.f32 %v7969_v36, %v7815_v13  ;;  %v7899_v17 = vmul.f32 %v7776_v62, %v14253_v32 }
 0xd35   : > { %8063 = vst.msk [vmem:[%s9190_s13 + $0xc0] sm:$0xff] %vm319_vm0, %v8031_v37  ;;  %v7814_v30 = vmul.f32 0.05, %v7760_v35  ;;  %v7817_v29 = vmul.f32 0.05, %v7776_v62 }
 0xd36   : > { %v8030_v47 = vadd.f32 %v7998_v6, %v14250_v53  ;;  %v7968_v5 = vsub.f32 %v7930_v3, %v7896_v48  ;;  %v8033_v60 = vadd.f32 %v8001_v23, %v14251_v8  ;;  %v7971_v7 = vsub.f32 %v7934_v34, %v7899_v17 }
 0xd37   : > { %v7768_v41 = vpop.permute.xlu1 %7767  ;;  %v7784_v54 = vpop.permute.xlu0 %7783 }
 0xd38   : > { %8062 = vst.msk [vmem:[%s9190_s13 + $0xb8] sm:$0xff] %vm319_vm0, %v8030_v47  ;;  %v8000_v10 = vmul.f32 %v7968_v5, %v7814_v30  ;;  %v7898_v52 = vmul.f32 %v7768_v41, %v14254_v50  ;;  %8065 = vst.msk [vmem:[%s9190_s13 + $0xd0] sm:$0xff] %vm319_vm0, %v8033_v60  ;;  %v8003_v26 = vmul.f32 %v7971_v7, %v7817_v29  ;;  %v7816_v43 = vmul.f32 0.05, %v7768_v41 }
 0xd39   : > { %v7901_v51 = vmul.f32 %v7784_v54, %v14255_v38  ;;  %v7819_v11 = vmul.f32 0.05, %v7784_v54 }
 0xd3a   : > { %v8032_v46 = vadd.f32 %v8000_v10, %v14252_v20  ;;  %v7970_v16 = vsub.f32 %v7930_v3, %v7898_v52  ;;  %v8035_v56 = vadd.f32 %v8003_v26, %v14253_v32 }
 0xd3b   : > { %v7973_v9 = vsub.f32 %v7934_v34, %v7901_v51  ;;  %v7780_v12 = vpop.permute.xlu1 %7779  ;;  %v8079_v0 = vpop.permute.xlu0 %8078 }
 0xd3c   : > { %8064 = vst.msk [vmem:[%s9190_s13 + $0xc8] sm:$0xff] %vm319_vm0, %v8032_v46  ;;  %v8002_v21 = vmul.f32 %v7970_v16, %v7816_v43  ;;  %v7900_v45 = vmul.f32 %v7780_v12, %v14256_v1  ;;  %8347 = vst.msk [vmem:[%s9373_s0 + $0x10] sm:$0xff] %vm319_vm0, %v8079_v0  ;;  %v7818_v58 = vmul.f32 0.05, %v7780_v12 }
 0xd3d   : > { %8067 = vst.msk [vmem:[%s9190_s13 + $0xe0] sm:$0xff] %vm319_vm0, %v8035_v56  ;;  %v8005_v18 = vmul.f32 %v7973_v9, %v7819_v11 }
 0xd3e   : > { %v8034_v22 = vadd.f32 %v8002_v21, %v14254_v50  ;;  %v7972_v59 = vsub.f32 %v7934_v34, %v7900_v45 }
 0xd3f   : > { %v8037_v28 = vadd.f32 %v8005_v18, %v14255_v38  ;;  %v7788_v40 = vpop.permute.xlu1 %7787  ;;  %v8093_v3 = vpop.permute.xlu0 %8092 }
 0xd40   : > { %8066 = vst.msk [vmem:[%s9190_s13 + $0xd8] sm:$0xff] %vm319_vm0, %v8034_v22  ;;  %v8004_v49 = vmul.f32 %v7972_v59, %v7818_v58  ;;  %v7902_v15 = vmul.f32 %v7788_v40, %v14257_v2  ;;  %8350 = vst.msk [vmem:[%s9373_s0 + $0x28] sm:$0xff] %vm319_vm0, %v8093_v3  ;;  %v7820_v57 = vmul.f32 0.05, %v7788_v40 }
 0xd41   : > { %8069 = vst.msk [vmem:[%s9190_s13 + $0xf0] sm:$0xff] %vm319_vm0, %v8037_v28 }
 0xd42   : > { %v8036_v31 = vadd.f32 %v8004_v49, %v14256_v1  ;;  %v7974_v63 = vsub.f32 %v7934_v34, %v7902_v15 }
 0xd44   : > { %8068 = vst.msk [vmem:[%s9190_s13 + $0xe8] sm:$0xff] %vm319_vm0, %v8036_v31  ;;  %v8006_v4 = vmul.f32 %v7974_v63, %v7820_v57 }
 0xd4c   : > { %v8085_v42 = vpop.permute.xlu1 %8084 }
 0xd4d   : > { %8348 = vst.msk [vmem:[%s9373_s0 + $0x18] sm:$0xff] %vm319_vm0, %v8085_v42 }
 0xd4e   : > { %8794 = shalt.err (!%p8791_p1)
}
 0xd4f   : > { %s8795_s0 = scalar_lea.hbm %s13613_s11, 768  ;;  %s8799_s17 = scalar_lea.hbm %s13712_s5, 1536 }
 0xd50   : > { %p8796_p3 = scmp.ne.s32.totalorder %s13613_s11, %s8795_s0  ;;  %p8800_p13 = scmp.lt.u32.totalorder %s13613_s11, %s13712_s5 }
 0xd51   : > { %p8801_p12 = scmp.lt.u32.totalorder %s8799_s17, %s8795_s0  ;;  %p8803_p7 = scmp.lt.u32.totalorder %s8795_s0, %s13613_s11 }
 0xd52   : > { %p8797_p5 = pnand %p8796_p3, %p14239_p2 }
 0xd53   : > { %p8802_p10 = por %p8801_p12, %p8800_p13 }
 0xd54   : > { %p8798_p6 = pneg %p8797_p5 }
 0xd55   : > { %p8804_p8 = por %p8803_p7, %p8802_p10 }
 0xd57   : > { %p8805_p9 = pnand %p8804_p8, %p8798_p6 }
 0xd59   : > { %8808 = shalt.err (!%p8805_p9)
}
 0xd5a   : > { %8447 = dma.vmem_to_hbm [thread:$0]  (%p14239_p2), %s13606_s29, 768, %s13613_s11, %s13421_s7, %s8893_s28, %s8894_s25, %s8895_s12   ;;  %v8038_v55 = vadd.f32 %v8006_v4, %v14257_v2 }
 0xd5b   : > { %s13652_s8 = scalar_lea.hbm %s13710_s3, %s8363_s26  ;;  %s14258_s0 = sshll.u32 %s9190_s13, 4  ;;  %s13656_s0 = int_to_ptr.vmem [resolvable:$true] %s14258_s0 }
 0xd5c   : > { %8070 = vst.msk [vmem:[%s9190_s13 + $0xf8] sm:$0xff] %vm319_vm0, %v8038_v55  ;;  %s8098_s23 = scalar_lea.sflag [#allocation5], %s9085_s14  ;;  %s8809_s15 = scalar_lea.vmem %s13656_s0, 4096 }
 0xd5d   : > { %p8810_p11 = scmp.ne.s32.totalorder %s13656_s0, %s8809_s15  ;;  %s8897_s22 = smov [#allocation8]  }
 0xd5e   : > { %s8813_s7 = sshll.u32 %s8897_s22, 4  ;;  %s8814_s7 = int_to_ptr.vmem [resolvable:$false] %s8813_s7 }
 0xd5f   : > { %p8811_p0 = pnand %p8810_p11, %p14239_p2  ;;  %s8815_s25 = scalar_lea.vmem %s8814_s7, 8192 }
 0xd60   : > { %p8816_p1 = scmp.lt.s32.totalorder %s13656_s0, %s8814_s7  ;;  %p8817_p3 = scmp.lt.s32.totalorder %s8815_s25, %s8809_s15 }
 0xd61   : > { %p8812_p4 = pneg %p8811_p0 }
 0xd62   : > { %p8818_p5 = por %p8817_p3, %p8816_p1 }
 0xd64   : > { %p8819_p6 = pnand %p8818_p5, %p8812_p4 }
 0xd66   : > { %8822 = shalt.err (!%p8819_p6)
}
 0xd67   : > { %s8823_s13 = scalar_lea.hbm %s13652_s8, 4096  ;;  %s8827_s26 = scalar_lea.hbm %s13710_s3, 8192 }
 0xd68   : > { %p8824_p13 = scmp.ne.s32.totalorder %s13652_s8, %s8823_s13  ;;  %p8828_p7 = scmp.lt.u32.totalorder %s13652_s8, %s13710_s3 }
 0xd69   : > { %p8829_p8 = scmp.lt.u32.totalorder %s8827_s26, %s8823_s13  ;;  %p8831_p11 = scmp.lt.u32.totalorder %s8823_s13, %s13652_s8 }
 0xd6a   : > { %p8825_p12 = pnand %p8824_p13, %p14239_p2 }
 0xd6b   : > { %p8830_p9 = por %p8829_p8, %p8828_p7 }
 0xd6c   : > { %p8826_p10 = pneg %p8825_p12 }
 0xd6d   : > { %p8832_p0 = por %p8831_p11, %p8830_p9 }
 0xd6f   : > { %p8833_p4 = pnand %p8832_p0, %p8826_p10 }
 0xd71   : > { %8836 = shalt.err (!%p8833_p4)
}
 0xd72   : > { %8445 = dma.vmem_to_hbm [thread:$0]  (%p14239_p2), %s13656_s0, 4096, %s13652_s8, %s8098_s23, %s8893_s28, %s8893_s28, %s8895_s12  }
 0xd73 PF: > { %s8167_s9 = sand.u32 1, %s8871_s18   ;;  %p14259_p1 = scmp.ne.s32.totalorder %s13948_s6, 0 }
 0xd74   : > { %p14260_p3 = scmp.ge.s32.totalorder %s8883_s21, 2  ;;  %s8168_s16 = scalar_lea.sflag [#allocation5], %s8167_s9 }
 0xd76   : > { %p8459_p5 = pnand %p14260_p3, %p14259_p1 }
 0xd78   : > { %8862 = dma.done.wait (!%p8459_p5), %s8168_s16, 4096  }
 0xd79   : > { %8864 = vsyncadd (!%p8459_p5), %s8168_s16, 4294963200  ;;  %s14261_s30 = sadd.s32 4294967294, %s8883_s21  }
 0xd7a   : > { %s8176_s15 = sand.u32 1, %s14261_s30  }
 0xd7b   : > { %s8177_s22 = scalar_lea.sflag [#allocation10], %s8176_s15 }
 0xd7c   : > { %8866 = dma.done.wait (!%p8459_p5), %s8177_s22, 1792  }
 0xd7d   : > { %8868 = vsyncadd (!%p8459_p5), %s8177_s22, 4294965504  ;;  %p25_p2 = scmp.ge.s32.totalorder %s8953_s24, 4   ;;  %s14262_s18 = smov %s8875_s19 }
 0xd7e   : > { %s14263_s19 = smov %s8879_s20  ;;  %s14264_s20 = smov %s8965_s27 }
 0xd7f   : > { %s14265_s21 = smov %s8953_s24  ;;  %27 = sbr.rel (!%p25_p2) target bundleno = 11 (0xb), region = 141 }
 0xd86   :  { %8191 = vsyncpa [#allocation4], 1 }
 0xd87   :  { %8193 = vsyncpa [#allocation4 + $0x1], 1 }
 0xd88   :  { %8194 = vsyncpa [#allocation7], 1 }
 0xd89   :  { %8196 = vsyncpa [#allocation7 + $0x1], 1 }
 0xd8a   :  { %8197 = vsyncpa [#allocation5], 1 }
 0xd8b   :  { %8199 = vsyncpa [#allocation5 + $0x1], 1 }
 0xd8c   :  { %8200 = vsyncpa [#allocation10], 1 }
 0xd8d   :  { %8202 = vsyncpa [#allocation10 + $0x1], 1 }

</bundles_post_ra>
